<compile_context>
chip_gen: v6e
topology: v6e:2x2x1
jax: 0.10.0
libtpu: 0.0.40
codegen_flags: <defaults>
</compile_context>

<pallas_src>
import jax
import jax.numpy as jnp
import numpy as np
from jax.experimental import pallas as pl
from jax.experimental.pallas import tpu as pltpu

HIDDEN = 256   # PoseDecoder hard-codes 256 hidden channels
OUT_PAD = 128  # conv3 output channels padded 6 -> 128 for lane-dense stores


def _pose_decoder_kernel(x_ref, wr_ref, br_ref, b1_ref, b2_ref, w3_ref, b3_ref,
                         w1_hbm_ref, w2_hbm_ref,
                         out_ref,
                         pad_ref, col_ref, w1_vmem, w2_vmem, w1_sem, w2_sem):
    NHW, _ = x_ref.shape
    C = wr_ref.shape[1]
    N, Hp2, Wp, _ = pad_ref.shape
    H = Hp2 - 2
    W = NHW // (N * H)

    # Kick off BOTH 3x3-conv weight DMAs immediately so they overlap the
    # reduce matmul, the border zeroing and the im2col packs.
    w1_copy = pltpu.make_async_copy(w1_hbm_ref, w1_vmem, w1_sem)
    w1_copy.start()
    w2_copy = pltpu.make_async_copy(w2_hbm_ref, w2_vmem, w2_sem)
    w2_copy.start()

    # --- reduce: 1x1 conv + ReLU (bf16 operands, f32 accumulation) ---
    f = jnp.dot(x_ref[...], wr_ref[...],
                preferred_element_type=jnp.float32) + br_ref[...]
    f = jnp.maximum(f, 0.0)

    # Zero the border of the bf16 padded scratch.  The interior is overwritten
    # every conv layer; the whole right alignment pad (cols W+1..Wp-1) is
    # zeroed so no reachable slice ever reads stale VMEM.
    pad_ref[:, 0:1, :, :] = jnp.zeros((N, 1, Wp, C), jnp.bfloat16)
    pad_ref[:, H + 1:H + 2, :, :] = jnp.zeros((N, 1, Wp, C), jnp.bfloat16)
    pad_ref[:, :, 0:1, :] = jnp.zeros((N, Hp2, 1, C), jnp.bfloat16)
    pad_ref[:, :, W + 1:Wp, :] = jnp.zeros((N, Hp2, Wp - (W + 1), C),
                                           jnp.bfloat16)

    # --- conv1 / conv2: 3x3, stride 1, pad 1, as im2col + one K=9*C matmul ---
    for layer in range(2):
        # Single f32->bf16 conversion per layer; patches below copy bf16->bf16.
        pad_ref[:, 1:H + 1, 1:W + 1, :] = \
            f.reshape(N, H, W, C).astype(jnp.bfloat16)
        for k in range(9):
            dy, dx = k // 3, k % 3
            col_ref[:, k * C:(k + 1) * C] = \
                pad_ref[:, dy:dy + H, dx:dx + W, :].reshape(NHW, C)
        if layer == 0:
            w1_copy.wait()            # w1 must be resident only now
            w2d = w1_vmem[...]
            bias = b1_ref[...]
        else:
            w2_copy.wait()            # w2 must be resident only now
            w2d = w2_vmem[...]
            bias = b2_ref[...]
        acc = jnp.dot(col_ref[...], w2d, preferred_element_type=jnp.float32)
        f = jnp.maximum(acc + bias, 0.0)

    # --- spatial mean folded BEFORE conv3 (conv3 is linear, no ReLU) ---
    pooled = f.reshape(N, H * W, C).sum(axis=1) * (1.0 / (H * W))

    # --- conv3: 1x1 conv to 6 (padded to 128) channels, then 0.01 scale ---
    y = jnp.dot(pooled, w3_ref[...],
                preferred_element_type=jnp.float32) + b3_ref[...]
    out_ref[...] = 0.01 * y


def init_params(key, c_in, hidden=HIDDEN):
    ks = jax.random.split(key, 8)

    def rnd(k, shape, scale):
        return scale * jax.random.normal(k, shape, jnp.float32)

    return {
        "wr": rnd(ks[0], (c_in, hidden), 0.1),        # reduce: 1x1, c_in -> 256
        "br": rnd(ks[1], (1, hidden), 0.1),
        "w1": rnd(ks[2], (9, hidden, hidden), 0.02),  # conv1: 3x3, 256 -> 256
        "b1": rnd(ks[3], (1, hidden), 0.1),
        "w2": rnd(ks[4], (9, hidden, hidden), 0.02),  # conv2: 3x3, 256 -> 256
        "b2": rnd(ks[5], (1, hidden), 0.1),
        "w3": rnd(ks[6], (hidden, 6), 0.05),          # conv3: 1x1, 256 -> 6
        "b3": rnd(ks[7], (1, 6), 0.05),
    }


def pose_decoder_forward(input_features, params):
    # Mirrors PoseDecoder.forward: only the last encoder feature is used.
    x_nchw = input_features[-1]
    x = jnp.transpose(x_nchw, (0, 2, 3, 1)).astype(jnp.float32)  # NCHW -> NHWC
    N, H, W, c_in = x.shape
    C = HIDDEN
    NHW = N * H * W
    Wp = ((W + 2 + 7) // 8) * 8  # sublane-aligned padded width

    # Wrapper-side prep: flatten, bf16 matmul operands, im2col weight layout,
    # lane-padded conv3 weights/bias.
    x2d = x.reshape(NHW, c_in).astype(jnp.bfloat16)
    wr = params["wr"].astype(jnp.bfloat16)
    w1 = params["w1"].reshape(9 * C, C).astype(jnp.bfloat16)
    w2 = params["w2"].reshape(9 * C, C).astype(jnp.bfloat16)
    w3 = jnp.zeros((C, OUT_PAD), jnp.float32).at[:, :6].set(params["w3"])
    b3 = jnp.zeros((1, OUT_PAD), jnp.float32).at[:, :6].set(params["b3"])
    br, b1, b2 = params["br"], params["b1"], params["b2"]

    vmem_args = (x2d, wr, br, b1, b2, w3, b3)
    in_specs = [pl.BlockSpec(a.shape, lambda i, nd=a.ndim: (0,) * nd)
                for a in vmem_args]
    # w1 and w2 stay in HBM; the kernel DMAs them into staging buffers so the
    # transfers overlap earlier compute instead of the prologue.
    in_specs.append(pl.BlockSpec(memory_space=pl.ANY))
    in_specs.append(pl.BlockSpec(memory_space=pl.ANY))

    pooled = pl.pallas_call(
        _pose_decoder_kernel,
        out_shape=jax.ShapeDtypeStruct((N, OUT_PAD), jnp.float32),
        grid=(1,),
        in_specs=in_specs,
        out_specs=pl.BlockSpec((N, OUT_PAD), lambda i: (0, 0)),
        scratch_shapes=[
            pltpu.VMEM((N, H + 2, Wp, C), jnp.bfloat16),   # zero-bordered f (bf16)
            pltpu.VMEM((NHW, 9 * C), jnp.bfloat16),        # im2col buffer
            pltpu.VMEM((9 * C, C), jnp.bfloat16),          # w1 staging buffer
            pltpu.VMEM((9 * C, C), jnp.bfloat16),          # w2 staging buffer
            pltpu.SemaphoreType.DMA,                       # w1 DMA semaphore
            pltpu.SemaphoreType.DMA,                       # w2 DMA semaphore
        ],
        compiler_params=pltpu.CompilerParams(
            dimension_semantics=("arbitrary",),
            vmem_limit_bytes=32 * 1024 * 1024),            # v7x-safe ceiling
    )(*vmem_args, w1, w2)

    out = pooled[:, :6].reshape(-1, 1, 1, 6)
    axisangle = out[..., :3]
    translation = out[..., 3:]
    return axisangle, translation


def ref_forward(input_features, params):
    """Pure-JAX reference mirroring the PyTorch module with matching bf16 numerics."""
    x = jnp.transpose(input_features[-1], (0, 2, 3, 1)).astype(jnp.float32)
    N, H, W, c_in = x.shape
    C = HIDDEN
    f = jnp.dot(x.reshape(-1, c_in).astype(jnp.bfloat16),
                params["wr"].astype(jnp.bfloat16),
                preferred_element_type=jnp.float32) + params["br"]
    f = jax.nn.relu(f).reshape(N, H, W, C)
    for wk, bk in (("w1", "b1"), ("w2", "b2")):
        w = params[wk].reshape(3, 3, C, C).astype(jnp.bfloat16)
        y = jax.lax.conv_general_dilated(
            f.astype(jnp.bfloat16), w, window_strides=(1, 1), padding="SAME",
            dimension_numbers=("NHWC", "HWIO", "NHWC"),
            preferred_element_type=jnp.float32)
        f = jax.nn.relu(y + params[bk][0])
    y = jnp.einsum("nhwc,cd->nhwd", f, params["w3"],
                   precision=jax.lax.Precision.HIGHEST) + params["b3"][0]
    pooled = y.mean(axis=(1, 2))
    out = 0.01 * pooled.reshape(-1, 1, 1, 6)
    return out[..., :3], out[..., 3:]


if __name__ == "__main__":
    key = jax.random.PRNGKey(0)
    k_feat, k_par = jax.random.split(key)

    num_ch_enc = [4, 8, 16]
    N, H, W = 2, 8, 8

    # Small synthetic "encoder pyramid" (NCHW, like PyTorch); only [-1] is consumed.
    feat_keys = jax.random.split(k_feat, len(num_ch_enc))
    input_features = [
        jax.random.normal(fk, (N, c, H, W), jnp.float32)
        for fk, c in zip(feat_keys, num_ch_enc)
    ]
    params = init_params(k_par, num_ch_enc[-1])

    axisangle, translation = pose_decoder_forward(input_features, params)
    jax.block_until_ready((axisangle, translation))

    # Validate against the pure-JAX reference (same bf16 operand numerics).
    ref_aa, ref_tr = ref_forward(input_features, params)
    np.testing.assert_allclose(np.asarray(axisangle), np.asarray(ref_aa),
                               rtol=2e-2, atol=2e-5)
    np.testing.assert_allclose(np.asarray(translation), np.asarray(ref_tr),
                               rtol=2e-2, atol=2e-5)
    assert axisangle.shape == (N, 1, 1, 3) and translation.shape == (N, 1, 1, 3)

    print("KERNEL_OK")
</pallas_src>

<mosaic_0001>
module attributes {stable_mosaic.version = 11 : i64} {
  func.func @_pose_decoder_kernel(%arg0: i32, %arg1: memref<128x16xbf16, #tpu.memory_space<vmem>>, %arg2: memref<16x256xbf16, #tpu.memory_space<vmem>>, %arg3: memref<1x256xf32, #tpu.memory_space<vmem>>, %arg4: memref<1x256xf32, #tpu.memory_space<vmem>>, %arg5: memref<1x256xf32, #tpu.memory_space<vmem>>, %arg6: memref<256x128xf32, #tpu.memory_space<vmem>>, %arg7: memref<1x128xf32, #tpu.memory_space<vmem>>, %arg8: memref<2304x256xbf16, #tpu.memory_space<any>>, %arg9: memref<2304x256xbf16, #tpu.memory_space<any>>, %arg10: memref<2x128xf32, #tpu.memory_space<vmem>>, %arg11: memref<2x10x16x256xbf16, #tpu.memory_space<vmem>>, %arg12: memref<128x2304xbf16, #tpu.memory_space<vmem>>, %arg13: memref<2304x256xbf16, #tpu.memory_space<vmem>>, %arg14: memref<2304x256xbf16, #tpu.memory_space<vmem>>, %arg15: memref<!tpu.dma_semaphore, #tpu.memory_space<semaphore_mem>>, %arg16: memref<!tpu.dma_semaphore, #tpu.memory_space<semaphore_mem>>) attributes {dimension_semantics = [#tpu.dimension_semantics<arbitrary>], iteration_bounds = array<i64: 1>, scalar_prefetch = 0 : i64, scratch_operands = 6 : i64, tpu.core_type = #tpu.core_type<tc>, window_params = [{pipeline_mode = #tpu.pipeline_mode<synchronous>, transform_indices = @transform_0, window_bounds = array<i64: 128, 16>}, {pipeline_mode = #tpu.pipeline_mode<synchronous>, transform_indices = @transform_1, window_bounds = array<i64: 16, 256>}, {pipeline_mode = #tpu.pipeline_mode<synchronous>, transform_indices = @transform_2, window_bounds = array<i64: 1, 256>}, {pipeline_mode = #tpu.pipeline_mode<synchronous>, transform_indices = @transform_3, window_bounds = array<i64: 1, 256>}, {pipeline_mode = #tpu.pipeline_mode<synchronous>, transform_indices = @transform_4, window_bounds = array<i64: 1, 256>}, {pipeline_mode = #tpu.pipeline_mode<synchronous>, transform_indices = @transform_5, window_bounds = array<i64: 256, 128>}, {pipeline_mode = #tpu.pipeline_mode<synchronous>, transform_indices = @transform_6, window_bounds = array<i64: 1, 128>}, {}, {}, {pipeline_mode = #tpu.pipeline_mode<synchronous>, transform_indices = @transform_9, window_bounds = array<i64: 2, 128>}]} {
    tpu.enqueue_dma source(%arg8 : memref<2304x256xbf16, #tpu.memory_space<any>>) target(%arg13 : memref<2304x256xbf16, #tpu.memory_space<vmem>>) target_semaphore(%arg15 : memref<!tpu.dma_semaphore, #tpu.memory_space<semaphore_mem>>)
    tpu.enqueue_dma source(%arg9 : memref<2304x256xbf16, #tpu.memory_space<any>>) target(%arg14 : memref<2304x256xbf16, #tpu.memory_space<vmem>>) target_semaphore(%arg16 : memref<!tpu.dma_semaphore, #tpu.memory_space<semaphore_mem>>)
    %c0 = arith.constant 0 : index
    %c0_0 = arith.constant 0 : index
    %0 = vector.load %arg1[%c0, %c0_0] : memref<128x16xbf16, #tpu.memory_space<vmem>>, vector<128x16xbf16>
    %c0_1 = arith.constant 0 : index
    %c0_2 = arith.constant 0 : index
    %1 = vector.load %arg2[%c0_1, %c0_2] : memref<16x256xbf16, #tpu.memory_space<vmem>>, vector<16x256xbf16>
    %cst = arith.constant dense<0.000000e+00> : vector<128x256xf32>
    %2 = tpu.matmul %0, %1, %cst {dimension_numbers = #tpu.dot_dimension_numbers<[1], [0], [0], [1], [0, 0, 1, 1], [], []>} : vector<128x16xbf16>, vector<16x256xbf16>, vector<128x256xf32> -> vector<128x256xf32>
    %c0_3 = arith.constant 0 : index
    %c0_4 = arith.constant 0 : index
    %3 = vector.load %arg3[%c0_3, %c0_4] : memref<1x256xf32, #tpu.memory_space<vmem>>, vector<1x256xf32>
    %4 = vector.broadcast %3 : vector<1x256xf32> to vector<128x256xf32>
    %5 = arith.addf %2, %4 : vector<128x256xf32>
    %cst_5 = arith.constant 0.000000e+00 : f32
    %6 = vector.broadcast %cst_5 : f32 to vector<128x256xf32>
    %7 = arith.maximumf %5, %6 : vector<128x256xf32>
    %cst_6 = arith.constant 0.000000e+00 : bf16
    %8 = vector.broadcast %cst_6 : bf16 to vector<2x1x16x256xbf16>
    %c0_7 = arith.constant 0 : index
    %c0_8 = arith.constant 0 : index
    %c0_9 = arith.constant 0 : index
    %c0_10 = arith.constant 0 : index
    %9 = vector.load %arg11[%c0_7, %c0_8, %c0_9, %c0_10] : memref<2x10x16x256xbf16, #tpu.memory_space<vmem>>, vector<2x1x16x256xbf16>
    tpu.vector_store %arg11[%c0_7, %c0_8, %c0_9, %c0_10], %8 {strides = array<i32>} : memref<2x10x16x256xbf16, #tpu.memory_space<vmem>>, vector<2x1x16x256xbf16>,
    %cst_11 = arith.constant 0.000000e+00 : bf16
    %10 = vector.broadcast %cst_11 : bf16 to vector<2x1x16x256xbf16>
    %c0_12 = arith.constant 0 : index
    %c9 = arith.constant 9 : index
    %c0_13 = arith.constant 0 : index
    %c0_14 = arith.constant 0 : index
    %11 = vector.load %arg11[%c0_12, %c9, %c0_13, %c0_14] : memref<2x10x16x256xbf16, #tpu.memory_space<vmem>>, vector<2x1x16x256xbf16>
    tpu.vector_store %arg11[%c0_12, %c9, %c0_13, %c0_14], %10 {strides = array<i32>} : memref<2x10x16x256xbf16, #tpu.memory_space<vmem>>, vector<2x1x16x256xbf16>,
    %cst_15 = arith.constant 0.000000e+00 : bf16
    %12 = vector.broadcast %cst_15 : bf16 to vector<2x10x1x256xbf16>
    %c0_16 = arith.constant 0 : index
    %c0_17 = arith.constant 0 : index
    %c0_18 = arith.constant 0 : index
    %c0_19 = arith.constant 0 : index
    %13 = vector.load %arg11[%c0_16, %c0_17, %c0_18, %c0_19] : memref<2x10x16x256xbf16, #tpu.memory_space<vmem>>, vector<2x10x1x256xbf16>
    tpu.vector_store %arg11[%c0_16, %c0_17, %c0_18, %c0_19], %12 {strides = array<i32>} : memref<2x10x16x256xbf16, #tpu.memory_space<vmem>>, vector<2x10x1x256xbf16>,
    %cst_20 = arith.constant 0.000000e+00 : bf16
    %14 = vector.broadcast %cst_20 : bf16 to vector<2x10x7x256xbf16>
    %c0_21 = arith.constant 0 : index
    %c0_22 = arith.constant 0 : index
    %c9_23 = arith.constant 9 : index
    %c0_24 = arith.constant 0 : index
    %15 = vector.load %arg11[%c0_21, %c0_22, %c9_23, %c0_24] : memref<2x10x16x256xbf16, #tpu.memory_space<vmem>>, vector<2x10x7x256xbf16>
    tpu.vector_store %arg11[%c0_21, %c0_22, %c9_23, %c0_24], %14 {strides = array<i32>} : memref<2x10x16x256xbf16, #tpu.memory_space<vmem>>, vector<2x10x7x256xbf16>,
    %16 = vector.shape_cast %7 : vector<128x256xf32> to vector<2x8x8x256xf32>
    %17 = arith.truncf %16 : vector<2x8x8x256xf32> to vector<2x8x8x256xbf16>
    %c0_25 = arith.constant 0 : index
    %c1 = arith.constant 1 : index
    %c1_26 = arith.constant 1 : index
    %c0_27 = arith.constant 0 : index
    %18 = vector.load %arg11[%c0_25, %c1, %c1_26, %c0_27] : memref<2x10x16x256xbf16, #tpu.memory_space<vmem>>, vector<2x8x8x256xbf16>
    tpu.vector_store %arg11[%c0_25, %c1, %c1_26, %c0_27], %17 {strides = array<i32>} : memref<2x10x16x256xbf16, #tpu.memory_space<vmem>>, vector<2x8x8x256xbf16>,
    %c0_28 = arith.constant 0 : index
    %c0_29 = arith.constant 0 : index
    %c0_30 = arith.constant 0 : index
    %c0_31 = arith.constant 0 : index
    %19 = vector.load %arg11[%c0_28, %c0_29, %c0_30, %c0_31] : memref<2x10x16x256xbf16, #tpu.memory_space<vmem>>, vector<2x8x8x256xbf16>
    %20 = vector.shape_cast %19 : vector<2x8x8x256xbf16> to vector<128x256xbf16>
    %c0_32 = arith.constant 0 : index
    %c0_33 = arith.constant 0 : index
    %21 = vector.load %arg12[%c0_32, %c0_33] : memref<128x2304xbf16, #tpu.memory_space<vmem>>, vector<128x256xbf16>
    tpu.vector_store %arg12[%c0_32, %c0_33], %20 {strides = array<i32>} : memref<128x2304xbf16, #tpu.memory_space<vmem>>, vector<128x256xbf16>,
    %c0_34 = arith.constant 0 : index
    %c0_35 = arith.constant 0 : index
    %c1_36 = arith.constant 1 : index
    %c0_37 = arith.constant 0 : index
    %22 = vector.load %arg11[%c0_34, %c0_35, %c1_36, %c0_37] : memref<2x10x16x256xbf16, #tpu.memory_space<vmem>>, vector<2x8x8x256xbf16>
    %23 = vector.shape_cast %22 : vector<2x8x8x256xbf16> to vector<128x256xbf16>
    %c0_38 = arith.constant 0 : index
    %c256 = arith.constant 256 : index
    %24 = vector.load %arg12[%c0_38, %c256] : memref<128x2304xbf16, #tpu.memory_space<vmem>>, vector<128x256xbf16>
    tpu.vector_store %arg12[%c0_38, %c256], %23 {strides = array<i32>} : memref<128x2304xbf16, #tpu.memory_space<vmem>>, vector<128x256xbf16>,
    %c0_39 = arith.constant 0 : index
    %c0_40 = arith.constant 0 : index
    %c2 = arith.constant 2 : index
    %c0_41 = arith.constant 0 : index
    %25 = vector.load %arg11[%c0_39, %c0_40, %c2, %c0_41] : memref<2x10x16x256xbf16, #tpu.memory_space<vmem>>, vector<2x8x8x256xbf16>
    %26 = vector.shape_cast %25 : vector<2x8x8x256xbf16> to vector<128x256xbf16>
    %c0_42 = arith.constant 0 : index
    %c512 = arith.constant 512 : index
    %27 = vector.load %arg12[%c0_42, %c512] : memref<128x2304xbf16, #tpu.memory_space<vmem>>, vector<128x256xbf16>
    tpu.vector_store %arg12[%c0_42, %c512], %26 {strides = array<i32>} : memref<128x2304xbf16, #tpu.memory_space<vmem>>, vector<128x256xbf16>,
    %c0_43 = arith.constant 0 : index
    %c1_44 = arith.constant 1 : index
    %c0_45 = arith.constant 0 : index
    %c0_46 = arith.constant 0 : index
    %28 = vector.load %arg11[%c0_43, %c1_44, %c0_45, %c0_46] : memref<2x10x16x256xbf16, #tpu.memory_space<vmem>>, vector<2x8x8x256xbf16>
    %29 = vector.shape_cast %28 : vector<2x8x8x256xbf16> to vector<128x256xbf16>
    %c0_47 = arith.constant 0 : index
    %c768 = arith.constant 768 : index
    %30 = vector.load %arg12[%c0_47, %c768] : memref<128x2304xbf16, #tpu.memory_space<vmem>>, vector<128x256xbf16>
    tpu.vector_store %arg12[%c0_47, %c768], %29 {strides = array<i32>} : memref<128x2304xbf16, #tpu.memory_space<vmem>>, vector<128x256xbf16>,
    %c0_48 = arith.constant 0 : index
    %c1_49 = arith.constant 1 : index
    %c1_50 = arith.constant 1 : index
    %c0_51 = arith.constant 0 : index
    %31 = vector.load %arg11[%c0_48, %c1_49, %c1_50, %c0_51] : memref<2x10x16x256xbf16, #tpu.memory_space<vmem>>, vector<2x8x8x256xbf16>
    %32 = vector.shape_cast %31 : vector<2x8x8x256xbf16> to vector<128x256xbf16>
    %c0_52 = arith.constant 0 : index
    %c1024 = arith.constant 1024 : index
    %33 = vector.load %arg12[%c0_52, %c1024] : memref<128x2304xbf16, #tpu.memory_space<vmem>>, vector<128x256xbf16>
    tpu.vector_store %arg12[%c0_52, %c1024], %32 {strides = array<i32>} : memref<128x2304xbf16, #tpu.memory_space<vmem>>, vector<128x256xbf16>,
    %c0_53 = arith.constant 0 : index
    %c1_54 = arith.constant 1 : index
    %c2_55 = arith.constant 2 : index
    %c0_56 = arith.constant 0 : index
    %34 = vector.load %arg11[%c0_53, %c1_54, %c2_55, %c0_56] : memref<2x10x16x256xbf16, #tpu.memory_space<vmem>>, vector<2x8x8x256xbf16>
    %35 = vector.shape_cast %34 : vector<2x8x8x256xbf16> to vector<128x256xbf16>
    %c0_57 = arith.constant 0 : index
    %c1280 = arith.constant 1280 : index
    %36 = vector.load %arg12[%c0_57, %c1280] : memref<128x2304xbf16, #tpu.memory_space<vmem>>, vector<128x256xbf16>
    tpu.vector_store %arg12[%c0_57, %c1280], %35 {strides = array<i32>} : memref<128x2304xbf16, #tpu.memory_space<vmem>>, vector<128x256xbf16>,
    %c0_58 = arith.constant 0 : index
    %c2_59 = arith.constant 2 : index
    %c0_60 = arith.constant 0 : index
    %c0_61 = arith.constant 0 : index
    %37 = vector.load %arg11[%c0_58, %c2_59, %c0_60, %c0_61] : memref<2x10x16x256xbf16, #tpu.memory_space<vmem>>, vector<2x8x8x256xbf16>
    %38 = vector.shape_cast %37 : vector<2x8x8x256xbf16> to vector<128x256xbf16>
    %c0_62 = arith.constant 0 : index
    %c1536 = arith.constant 1536 : index
    %39 = vector.load %arg12[%c0_62, %c1536] : memref<128x2304xbf16, #tpu.memory_space<vmem>>, vector<128x256xbf16>
    tpu.vector_store %arg12[%c0_62, %c1536], %38 {strides = array<i32>} : memref<128x2304xbf16, #tpu.memory_space<vmem>>, vector<128x256xbf16>,
    %c0_63 = arith.constant 0 : index
    %c2_64 = arith.constant 2 : index
    %c1_65 = arith.constant 1 : index
    %c0_66 = arith.constant 0 : index
    %40 = vector.load %arg11[%c0_63, %c2_64, %c1_65, %c0_66] : memref<2x10x16x256xbf16, #tpu.memory_space<vmem>>, vector<2x8x8x256xbf16>
    %41 = vector.shape_cast %40 : vector<2x8x8x256xbf16> to vector<128x256xbf16>
    %c0_67 = arith.constant 0 : index
    %c1792 = arith.constant 1792 : index
    %42 = vector.load %arg12[%c0_67, %c1792] : memref<128x2304xbf16, #tpu.memory_space<vmem>>, vector<128x256xbf16>
    tpu.vector_store %arg12[%c0_67, %c1792], %41 {strides = array<i32>} : memref<128x2304xbf16, #tpu.memory_space<vmem>>, vector<128x256xbf16>,
    %c0_68 = arith.constant 0 : index
    %c2_69 = arith.constant 2 : index
    %c2_70 = arith.constant 2 : index
    %c0_71 = arith.constant 0 : index
    %43 = vector.load %arg11[%c0_68, %c2_69, %c2_70, %c0_71] : memref<2x10x16x256xbf16, #tpu.memory_space<vmem>>, vector<2x8x8x256xbf16>
    %44 = vector.shape_cast %43 : vector<2x8x8x256xbf16> to vector<128x256xbf16>
    %c0_72 = arith.constant 0 : index
    %c2048 = arith.constant 2048 : index
    %45 = vector.load %arg12[%c0_72, %c2048] : memref<128x2304xbf16, #tpu.memory_space<vmem>>, vector<128x256xbf16>
    tpu.vector_store %arg12[%c0_72, %c2048], %44 {strides = array<i32>} : memref<128x2304xbf16, #tpu.memory_space<vmem>>, vector<128x256xbf16>,
    tpu.wait_dma2 semaphore(%arg15 : memref<!tpu.dma_semaphore, #tpu.memory_space<semaphore_mem>>) src(%arg8 : memref<2304x256xbf16, #tpu.memory_space<any>>) dst(%arg13 : memref<2304x256xbf16, #tpu.memory_space<vmem>>)
    %c0_73 = arith.constant 0 : index
    %c0_74 = arith.constant 0 : index
    %46 = vector.load %arg13[%c0_73, %c0_74] : memref<2304x256xbf16, #tpu.memory_space<vmem>>, vector<2304x256xbf16>
    %c0_75 = arith.constant 0 : index
    %c0_76 = arith.constant 0 : index
    %47 = vector.load %arg4[%c0_75, %c0_76] : memref<1x256xf32, #tpu.memory_space<vmem>>, vector<1x256xf32>
    %c0_77 = arith.constant 0 : index
    %c0_78 = arith.constant 0 : index
    %48 = vector.load %arg12[%c0_77, %c0_78] : memref<128x2304xbf16, #tpu.memory_space<vmem>>, vector<128x2304xbf16>
    %cst_79 = arith.constant dense<0.000000e+00> : vector<128x256xf32>
    %49 = tpu.matmul %48, %46, %cst_79 {dimension_numbers = #tpu.dot_dimension_numbers<[1], [0], [0], [1], [0, 0, 1, 1], [], []>} : vector<128x2304xbf16>, vector<2304x256xbf16>, vector<128x256xf32> -> vector<128x256xf32>
    %50 = vector.broadcast %47 : vector<1x256xf32> to vector<128x256xf32>
    %51 = arith.addf %49, %50 : vector<128x256xf32>
    %cst_80 = arith.constant 0.000000e+00 : f32
    %52 = vector.broadcast %cst_80 : f32 to vector<128x256xf32>
    %53 = arith.maximumf %51, %52 : vector<128x256xf32>
    %54 = vector.shape_cast %53 : vector<128x256xf32> to vector<2x8x8x256xf32>
    %55 = arith.truncf %54 : vector<2x8x8x256xf32> to vector<2x8x8x256xbf16>
    %c0_81 = arith.constant 0 : index
    %c1_82 = arith.constant 1 : index
    %c1_83 = arith.constant 1 : index
    %c0_84 = arith.constant 0 : index
    %56 = vector.load %arg11[%c0_81, %c1_82, %c1_83, %c0_84] : memref<2x10x16x256xbf16, #tpu.memory_space<vmem>>, vector<2x8x8x256xbf16>
    tpu.vector_store %arg11[%c0_81, %c1_82, %c1_83, %c0_84], %55 {strides = array<i32>} : memref<2x10x16x256xbf16, #tpu.memory_space<vmem>>, vector<2x8x8x256xbf16>,
    %c0_85 = arith.constant 0 : index
    %c0_86 = arith.constant 0 : index
    %c0_87 = arith.constant 0 : index
    %c0_88 = arith.constant 0 : index
    %57 = vector.load %arg11[%c0_85, %c0_86, %c0_87, %c0_88] : memref<2x10x16x256xbf16, #tpu.memory_space<vmem>>, vector<2x8x8x256xbf16>
    %58 = vector.shape_cast %57 : vector<2x8x8x256xbf16> to vector<128x256xbf16>
    %c0_89 = arith.constant 0 : index
    %c0_90 = arith.constant 0 : index
    %59 = vector.load %arg12[%c0_89, %c0_90] : memref<128x2304xbf16, #tpu.memory_space<vmem>>, vector<128x256xbf16>
    tpu.vector_store %arg12[%c0_89, %c0_90], %58 {strides = array<i32>} : memref<128x2304xbf16, #tpu.memory_space<vmem>>, vector<128x256xbf16>,
    %c0_91 = arith.constant 0 : index
    %c0_92 = arith.constant 0 : index
    %c1_93 = arith.constant 1 : index
    %c0_94 = arith.constant 0 : index
    %60 = vector.load %arg11[%c0_91, %c0_92, %c1_93, %c0_94] : memref<2x10x16x256xbf16, #tpu.memory_space<vmem>>, vector<2x8x8x256xbf16>
    %61 = vector.shape_cast %60 : vector<2x8x8x256xbf16> to vector<128x256xbf16>
    %c0_95 = arith.constant 0 : index
    %c256_96 = arith.constant 256 : index
    %62 = vector.load %arg12[%c0_95, %c256_96] : memref<128x2304xbf16, #tpu.memory_space<vmem>>, vector<128x256xbf16>
    tpu.vector_store %arg12[%c0_95, %c256_96], %61 {strides = array<i32>} : memref<128x2304xbf16, #tpu.memory_space<vmem>>, vector<128x256xbf16>,
    %c0_97 = arith.constant 0 : index
    %c0_98 = arith.constant 0 : index
    %c2_99 = arith.constant 2 : index
    %c0_100 = arith.constant 0 : index
    %63 = vector.load %arg11[%c0_97, %c0_98, %c2_99, %c0_100] : memref<2x10x16x256xbf16, #tpu.memory_space<vmem>>, vector<2x8x8x256xbf16>
    %64 = vector.shape_cast %63 : vector<2x8x8x256xbf16> to vector<128x256xbf16>
    %c0_101 = arith.constant 0 : index
    %c512_102 = arith.constant 512 : index
    %65 = vector.load %arg12[%c0_101, %c512_102] : memref<128x2304xbf16, #tpu.memory_space<vmem>>, vector<128x256xbf16>
    tpu.vector_store %arg12[%c0_101, %c512_102], %64 {strides = array<i32>} : memref<128x2304xbf16, #tpu.memory_space<vmem>>, vector<128x256xbf16>,
    %c0_103 = arith.constant 0 : index
    %c1_104 = arith.constant 1 : index
    %c0_105 = arith.constant 0 : index
    %c0_106 = arith.constant 0 : index
    %66 = vector.load %arg11[%c0_103, %c1_104, %c0_105, %c0_106] : memref<2x10x16x256xbf16, #tpu.memory_space<vmem>>, vector<2x8x8x256xbf16>
    %67 = vector.shape_cast %66 : vector<2x8x8x256xbf16> to vector<128x256xbf16>
    %c0_107 = arith.constant 0 : index
    %c768_108 = arith.constant 768 : index
    %68 = vector.load %arg12[%c0_107, %c768_108] : memref<128x2304xbf16, #tpu.memory_space<vmem>>, vector<128x256xbf16>
    tpu.vector_store %arg12[%c0_107, %c768_108], %67 {strides = array<i32>} : memref<128x2304xbf16, #tpu.memory_space<vmem>>, vector<128x256xbf16>,
    %c0_109 = arith.constant 0 : index
    %c1_110 = arith.constant 1 : index
    %c1_111 = arith.constant 1 : index
    %c0_112 = arith.constant 0 : index
    %69 = vector.load %arg11[%c0_109, %c1_110, %c1_111, %c0_112] : memref<2x10x16x256xbf16, #tpu.memory_space<vmem>>, vector<2x8x8x256xbf16>
    %70 = vector.shape_cast %69 : vector<2x8x8x256xbf16> to vector<128x256xbf16>
    %c0_113 = arith.constant 0 : index
    %c1024_114 = arith.constant 1024 : index
    %71 = vector.load %arg12[%c0_113, %c1024_114] : memref<128x2304xbf16, #tpu.memory_space<vmem>>, vector<128x256xbf16>
    tpu.vector_store %arg12[%c0_113, %c1024_114], %70 {strides = array<i32>} : memref<128x2304xbf16, #tpu.memory_space<vmem>>, vector<128x256xbf16>,
    %c0_115 = arith.constant 0 : index
    %c1_116 = arith.constant 1 : index
    %c2_117 = arith.constant 2 : index
    %c0_118 = arith.constant 0 : index
    %72 = vector.load %arg11[%c0_115, %c1_116, %c2_117, %c0_118] : memref<2x10x16x256xbf16, #tpu.memory_space<vmem>>, vector<2x8x8x256xbf16>
    %73 = vector.shape_cast %72 : vector<2x8x8x256xbf16> to vector<128x256xbf16>
    %c0_119 = arith.constant 0 : index
    %c1280_120 = arith.constant 1280 : index
    %74 = vector.load %arg12[%c0_119, %c1280_120] : memref<128x2304xbf16, #tpu.memory_space<vmem>>, vector<128x256xbf16>
    tpu.vector_store %arg12[%c0_119, %c1280_120], %73 {strides = array<i32>} : memref<128x2304xbf16, #tpu.memory_space<vmem>>, vector<128x256xbf16>,
    %c0_121 = arith.constant 0 : index
    %c2_122 = arith.constant 2 : index
    %c0_123 = arith.constant 0 : index
    %c0_124 = arith.constant 0 : index
    %75 = vector.load %arg11[%c0_121, %c2_122, %c0_123, %c0_124] : memref<2x10x16x256xbf16, #tpu.memory_space<vmem>>, vector<2x8x8x256xbf16>
    %76 = vector.shape_cast %75 : vector<2x8x8x256xbf16> to vector<128x256xbf16>
    %c0_125 = arith.constant 0 : index
    %c1536_126 = arith.constant 1536 : index
    %77 = vector.load %arg12[%c0_125, %c1536_126] : memref<128x2304xbf16, #tpu.memory_space<vmem>>, vector<128x256xbf16>
    tpu.vector_store %arg12[%c0_125, %c1536_126], %76 {strides = array<i32>} : memref<128x2304xbf16, #tpu.memory_space<vmem>>, vector<128x256xbf16>,
    %c0_127 = arith.constant 0 : index
    %c2_128 = arith.constant 2 : index
    %c1_129 = arith.constant 1 : index
    %c0_130 = arith.constant 0 : index
    %78 = vector.load %arg11[%c0_127, %c2_128, %c1_129, %c0_130] : memref<2x10x16x256xbf16, #tpu.memory_space<vmem>>, vector<2x8x8x256xbf16>
    %79 = vector.shape_cast %78 : vector<2x8x8x256xbf16> to vector<128x256xbf16>
    %c0_131 = arith.constant 0 : index
    %c1792_132 = arith.constant 1792 : index
    %80 = vector.load %arg12[%c0_131, %c1792_132] : memref<128x2304xbf16, #tpu.memory_space<vmem>>, vector<128x256xbf16>
    tpu.vector_store %arg12[%c0_131, %c1792_132], %79 {strides = array<i32>} : memref<128x2304xbf16, #tpu.memory_space<vmem>>, vector<128x256xbf16>,
    %c0_133 = arith.constant 0 : index
    %c2_134 = arith.constant 2 : index
    %c2_135 = arith.constant 2 : index
    %c0_136 = arith.constant 0 : index
    %81 = vector.load %arg11[%c0_133, %c2_134, %c2_135, %c0_136] : memref<2x10x16x256xbf16, #tpu.memory_space<vmem>>, vector<2x8x8x256xbf16>
    %82 = vector.shape_cast %81 : vector<2x8x8x256xbf16> to vector<128x256xbf16>
    %c0_137 = arith.constant 0 : index
    %c2048_138 = arith.constant 2048 : index
    %83 = vector.load %arg12[%c0_137, %c2048_138] : memref<128x2304xbf16, #tpu.memory_space<vmem>>, vector<128x256xbf16>
    tpu.vector_store %arg12[%c0_137, %c2048_138], %82 {strides = array<i32>} : memref<128x2304xbf16, #tpu.memory_space<vmem>>, vector<128x256xbf16>,
    tpu.wait_dma2 semaphore(%arg16 : memref<!tpu.dma_semaphore, #tpu.memory_space<semaphore_mem>>) src(%arg9 : memref<2304x256xbf16, #tpu.memory_space<any>>) dst(%arg14 : memref<2304x256xbf16, #tpu.memory_space<vmem>>)
    %c0_139 = arith.constant 0 : index
    %c0_140 = arith.constant 0 : index
    %84 = vector.load %arg14[%c0_139, %c0_140] : memref<2304x256xbf16, #tpu.memory_space<vmem>>, vector<2304x256xbf16>
    %c0_141 = arith.constant 0 : index
    %c0_142 = arith.constant 0 : index
    %85 = vector.load %arg5[%c0_141, %c0_142] : memref<1x256xf32, #tpu.memory_space<vmem>>, vector<1x256xf32>
    %c0_143 = arith.constant 0 : index
    %c0_144 = arith.constant 0 : index
    %86 = vector.load %arg12[%c0_143, %c0_144] : memref<128x2304xbf16, #tpu.memory_space<vmem>>, vector<128x2304xbf16>
    %cst_145 = arith.constant dense<0.000000e+00> : vector<128x256xf32>
    %87 = tpu.matmul %86, %84, %cst_145 {dimension_numbers = #tpu.dot_dimension_numbers<[1], [0], [0], [1], [0, 0, 1, 1], [], []>} : vector<128x2304xbf16>, vector<2304x256xbf16>, vector<128x256xf32> -> vector<128x256xf32>
    %88 = vector.broadcast %85 : vector<1x256xf32> to vector<128x256xf32>
    %89 = arith.addf %87, %88 : vector<128x256xf32>
    %cst_146 = arith.constant 0.000000e+00 : f32
    %90 = vector.broadcast %cst_146 : f32 to vector<128x256xf32>
    %91 = arith.maximumf %89, %90 : vector<128x256xf32>
    %92 = vector.shape_cast %91 : vector<128x256xf32> to vector<2x64x256xf32>
    %cst_147 = arith.constant dense<0.000000e+00> : vector<2x256xf32>
    %93 = vector.multi_reduction <add>, %92, %cst_147 [1] : vector<2x64x256xf32> to vector<2x256xf32>
    %cst_148 = arith.constant 1.562500e-02 : f32
    %94 = vector.broadcast %cst_148 : f32 to vector<2x256xf32>
    %95 = arith.mulf %93, %94 : vector<2x256xf32>
    %c0_149 = arith.constant 0 : index
    %c0_150 = arith.constant 0 : index
    %96 = vector.load %arg6[%c0_149, %c0_150] : memref<256x128xf32, #tpu.memory_space<vmem>>, vector<256x128xf32>
    %cst_151 = arith.constant dense<0.000000e+00> : vector<2x128xf32>
    %97 = tpu.matmul %95, %96, %cst_151 {dimension_numbers = #tpu.dot_dimension_numbers<[1], [0], [0], [1], [0, 0, 1, 1], [], []>} : vector<2x256xf32>, vector<256x128xf32>, vector<2x128xf32> -> vector<2x128xf32>
    %c0_152 = arith.constant 0 : index
    %c0_153 = arith.constant 0 : index
    %98 = vector.load %arg7[%c0_152, %c0_153] : memref<1x128xf32, #tpu.memory_space<vmem>>, vector<1x128xf32>
    %99 = vector.broadcast %98 : vector<1x128xf32> to vector<2x128xf32>
    %100 = arith.addf %97, %99 : vector<2x128xf32>
    %cst_154 = arith.constant 0.00999999977 : f32
    %101 = vector.broadcast %cst_154 : f32 to vector<2x128xf32>
    %102 = arith.mulf %101, %100 : vector<2x128xf32>
    %c0_155 = arith.constant 0 : index
    %c0_156 = arith.constant 0 : index
    %103 = vector.load %arg10[%c0_155, %c0_156] : memref<2x128xf32, #tpu.memory_space<vmem>>, vector<2x128xf32>
    tpu.vector_store %arg10[%c0_155, %c0_156], %102 {strides = array<i32>} : memref<2x128xf32, #tpu.memory_space<vmem>>, vector<2x128xf32>,
    return
  }
  func.func @transform_0(%arg0: i32) -> (i32, i32) {
    %c0_i32 = arith.constant 0 : i32
    %c0_i32_0 = arith.constant 0 : i32
    %c0_i32_1 = arith.constant 0 : i32
    return %c0_i32, %c0_i32_0 : i32, i32
  }
  func.func @transform_1(%arg0: i32) -> (i32, i32) {
    %c0_i32 = arith.constant 0 : i32
    %c0_i32_0 = arith.constant 0 : i32
    %c0_i32_1 = arith.constant 0 : i32
    return %c0_i32, %c0_i32_0 : i32, i32
  }
  func.func @transform_2(%arg0: i32) -> (i32, i32) {
    %c0_i32 = arith.constant 0 : i32
    %c0_i32_0 = arith.constant 0 : i32
    %c0_i32_1 = arith.constant 0 : i32
    return %c0_i32, %c0_i32_0 : i32, i32
  }
  func.func @transform_3(%arg0: i32) -> (i32, i32) {
    %c0_i32 = arith.constant 0 : i32
    %c0_i32_0 = arith.constant 0 : i32
    %c0_i32_1 = arith.constant 0 : i32
    return %c0_i32, %c0_i32_0 : i32, i32
  }
  func.func @transform_4(%arg0: i32) -> (i32, i32) {
    %c0_i32 = arith.constant 0 : i32
    %c0_i32_0 = arith.constant 0 : i32
    %c0_i32_1 = arith.constant 0 : i32
    return %c0_i32, %c0_i32_0 : i32, i32
  }
  func.func @transform_5(%arg0: i32) -> (i32, i32) {
    %c0_i32 = arith.constant 0 : i32
    %c0_i32_0 = arith.constant 0 : i32
    %c0_i32_1 = arith.constant 0 : i32
    return %c0_i32, %c0_i32_0 : i32, i32
  }
  func.func @transform_6(%arg0: i32) -> (i32, i32) {
    %c0_i32 = arith.constant 0 : i32
    %c0_i32_0 = arith.constant 0 : i32
    %c0_i32_1 = arith.constant 0 : i32
    return %c0_i32, %c0_i32_0 : i32, i32
  }
  func.func @transform_9(%arg0: i32) -> (i32, i32) {
    %c0_i32 = arith.constant 0 : i32
    %c0_i32_0 = arith.constant 0 : i32
    %c0_i32_1 = arith.constant 0 : i32
    return %c0_i32, %c0_i32_0 : i32, i32
  }
}

</mosaic_0001>

<bundles_post_ra>
// kernel: tpu_custom_call.1
= control target key start
LH: loop header
LB: loop body
LE: loop exit
PB: predicated region body
PF: predicated region fallthrough
CT: control target
= control target key end

     0   :  { %14 = vsyncpa [#allocation9], 0  ;;  %s17151_s0 = inlined_call_operand.vmem [shape: bf16[128,16], index: 0, kind: input, shape index: {}]   ;;  %s17152_s1 = inlined_call_operand.hbm [shape: bf16[16,256], index: 1, kind: input, shape index: {}]   ;;  %s17153_s2 = inlined_call_operand.hbm [shape: f32[1,256], index: 2, kind: input, shape index: {}]   ;;  %s17154_s3 = inlined_call_operand.hbm [shape: f32[1,256], index: 3, kind: input, shape index: {}]   ;;  %s17155_s4 = inlined_call_operand.hbm [shape: f32[1,256], index: 4, kind: input, shape index: {}]   ;;  %s17156_s5 = inlined_call_operand.hbm [shape: f32[256,128], index: 5, kind: input, shape index: {}]   ;;  %s17157_s6 = inlined_call_operand.hbm [shape: f32[1,128], index: 6, kind: input, shape index: {}]   ;;  %s17158_s7 = inlined_call_operand.hbm [shape: bf16[2304,256], index: 7, kind: input, shape index: {}]   ;;  %s17159_s8 = inlined_call_operand.hbm [shape: bf16[2304,256], index: 8, kind: input, shape index: {}]   ;;  %s17160_s9 = inlined_call_operand.hbm [shape: f32[2,128], index: 9, kind: output, shape index: {}]  }
   0x1   :  { %15 = vsyncpa [#allocation12], 0 }
   0x2   :  { %16 = vsyncpa [#allocation15], 0 }
   0x3   :  { %17 = vsyncpa [#allocation18], 0 }
   0x4   :  { %18 = vsyncpa [#allocation10], 0  ;;  %s13822_s30 = smov [#allocation11]   ;;  %s13823_s11 = smov [#allocation14]  }
   0x5   :  { %s39_s10 = sshll.u32 %s13822_s30, 4  ;;  %s59_s12 = sshll.u32 %s13823_s11, 4  ;;  %s40_s10 = int_to_ptr.vmem [resolvable:$true] %s39_s10  ;;  %s60_s12 = int_to_ptr.vmem [resolvable:$true] %s59_s12 }
   0x6   :  { %s13636_s13 = scalar_lea.vmem %s40_s10, 32  ;;  %p13641_p1 = scmp.lt.s32.totalorder %s40_s10, %s40_s10 }
   0x7   :  { %p13637_p0 = scmp.ne.s32.totalorder %s40_s10, %s13636_s13  ;;  %p13642_p2 = scmp.lt.s32.totalorder %s13636_s13, %s13636_s13 }
   0x9   :  { %p13643_p3 = por %p13642_p2, %p13641_p1 }
   0xb   :  { %p13644_p4 = pnand %p13643_p3, %p13637_p0 }
   0xd   :  { %13647 = shalt.err (!%p13644_p4)
}
   0xe   :  { %42 = dma.hbm_to_vmem [thread:$0]  %s17153_s2, 32, %s40_s10, [#allocation12]  }
   0xf   :  { %s13656_s16 = scalar_lea.vmem %s60_s12, 32  ;;  %p13661_p6 = scmp.lt.s32.totalorder %s60_s12, %s60_s12 }
  0x10   :  { %p13657_p5 = scmp.ne.s32.totalorder %s60_s12, %s13656_s16  ;;  %p13662_p7 = scmp.lt.s32.totalorder %s13656_s16, %s13656_s16 }
  0x12   :  { %p13663_p8 = por %p13662_p7, %p13661_p6 }
  0x14   :  { %p13664_p9 = pnand %p13663_p8, %p13657_p5 }
  0x16   :  { %13667 = shalt.err (!%p13664_p9)
}
  0x17   :  { %62 = dma.hbm_to_vmem [thread:$0]  %s17155_s4, 32, %s60_s12, [#allocation15]  }
  0x18   :  { %s13824_s19 = smov [#allocation8]  }
  0x19   :  { %s26_s20 = sshll.u32 %s13824_s19, 4  ;;  %s27_s20 = int_to_ptr.vmem [resolvable:$true] %s26_s20 }
  0x1a   :  { %s13676_s21 = scalar_lea.vmem %s27_s20, 256  ;;  %p13681_p11 = scmp.lt.s32.totalorder %s27_s20, %s27_s20 }
  0x1b   :  { %p13677_p10 = scmp.ne.s32.totalorder %s27_s20, %s13676_s21  ;;  %p13682_p12 = scmp.lt.s32.totalorder %s13676_s21, %s13676_s21 }
  0x1d   :  { %p13683_p13 = por %p13682_p12, %p13681_p11 }
  0x1f   :  { %p13684_p0 = pnand %p13683_p13, %p13677_p10 }
  0x21   :  { %13687 = shalt.err (!%p13684_p0)
}
  0x22   :  { %s13825_s2 = smov 128   ;;  %s13826_s22 = smov 8  }
  0x23   :  { %32 = dma.hbm_to_vmem [thread:$0]  %s17152_s1, 256, %s27_s20, [#allocation9], %s13825_s2, %s13825_s2, %s13826_s22  }
  0x24   :  { %s13827_s25 = smov [#allocation13]   ;;  %s13828_s4 = smov [#allocation16]  }
  0x25   :  { %s49_s26 = sshll.u32 %s13827_s25, 4  ;;  %s68_s27 = sshll.u32 %s13828_s4, 4  ;;  %s50_s26 = int_to_ptr.vmem [resolvable:$true] %s49_s26  ;;  %s69_s27 = int_to_ptr.vmem [resolvable:$true] %s68_s27 }
  0x26   :  { %s13696_s28 = scalar_lea.vmem %s50_s26, 32  ;;  %p13701_p2 = scmp.lt.s32.totalorder %s50_s26, %s50_s26 }
  0x27   :  { %p13697_p1 = scmp.ne.s32.totalorder %s50_s26, %s13696_s28  ;;  %p13702_p3 = scmp.lt.s32.totalorder %s13696_s28, %s13696_s28 }
  0x29   :  { %p13703_p4 = por %p13702_p3, %p13701_p2 }
  0x2b   :  { %p13704_p5 = pnand %p13703_p4, %p13697_p1 }
  0x2d   :  { %13707 = shalt.err (!%p13704_p5)
}
  0x2e   :  { %52 = dma.hbm_to_vmem [thread:$0]  %s17154_s3, 32, %s50_s26, [#allocation12]  }
  0x2f   :  { %s13716_s10 = scalar_lea.vmem %s69_s27, 4096  ;;  %p13721_p7 = scmp.lt.s32.totalorder %s69_s27, %s69_s27 }
  0x30   :  { %p13717_p6 = scmp.ne.s32.totalorder %s69_s27, %s13716_s10  ;;  %p13722_p8 = scmp.lt.s32.totalorder %s13716_s10, %s13716_s10 }
  0x32   :  { %p13723_p9 = por %p13722_p8, %p13721_p7 }
  0x34   :  { %p13724_p10 = pnand %p13723_p9, %p13717_p6 }
  0x36   :  { %13727 = shalt.err (!%p13724_p10)
}
  0x37   :  { %74 = dma.hbm_to_vmem [thread:$0]  %s17156_s5, 4096, %s69_s27, [#allocation15], %s13825_s2, %s13825_s2, %s13826_s22  }
  0x38   :  { %s13829_s12 = smov [#allocation17]  }
  0x39   :  { %s81_s13 = sshll.u32 %s13829_s12, 4  ;;  %s82_s13 = int_to_ptr.vmem [resolvable:$true] %s81_s13 }
  0x3a   :  { %s13736_s14 = scalar_lea.vmem %s82_s13, 16  ;;  %s13740_s15 = scalar_lea.vmem %s82_s13, 32 }
  0x3b   :  { %p13737_p11 = scmp.ne.s32.totalorder %s82_s13, %s13736_s14  ;;  %p13741_p12 = scmp.lt.s32.totalorder %s82_s13, %s82_s13 }
  0x3c   :  { %p13742_p13 = scmp.lt.s32.totalorder %s13740_s15, %s13736_s14 }
  0x3e   :  { %p13743_p0 = por %p13742_p13, %p13741_p12 }
  0x40   :  { %p13744_p1 = pnand %p13743_p0, %p13737_p11 }
  0x42   :  { %13747 = shalt.err (!%p13744_p1)
}
  0x43   :  { %84 = dma.hbm_to_vmem [thread:$0]  %s17157_s6, 16, %s82_s13, [#allocation18]  }
  0x44   :  { %13808 = dma.done.wait [#allocation9], 256  }
  0x45   :  { %13809 = vsyncadd [#allocation9], 4294967040 }
  0x46   :  { %13810 = dma.done.wait [#allocation12], 64  }
  0x47   :  { %13811 = vsyncadd [#allocation12], 4294967232 }
  0x48   :  { %13812 = dma.done.wait [#allocation15], 4128  }
  0x49   :  { %13813 = vsyncadd [#allocation15], 4294963168 }
  0x4a   :  { %13814 = dma.done.wait [#allocation18], 16  }
  0x4b   :  { %13815 = vsyncadd [#allocation18], 4294967280  ;;  %vm385_vm0 = vcmask 1040384   ;;  %vm386_vm1 = vsmask.f32 256  ;;  %v13830_v0 = vmov 0  }
  0x4c   :  { %263 = vmatprep.mubr.bf16.mxu0 %v13830_v0  ;;  %376 = vst [vmem:[#allocation2 + $0x110] sm:$0xff] %v13830_v0  ;;  %378 = vst [vmem:[#allocation2 + $0xa0] sm:$0xff] %v13830_v0  ;;  %vm388_vm3 = vcmask 1044484   ;;  %vm389_vm4 = vsmask.f32 4352  ;;  %vm452_vm5 = vcmask 1043456  }
  0x4d   :  { %381 = vst [vmem:[#allocation2 + $0xf8] sm:$0xff] %v13830_v0  ;;  %383 = vst [vmem:[#allocation2 + $0x88] sm:$0xff] %v13830_v0  ;;  %vm453_vm6 = vsmask.f32 7938  ;;  %vm455_vm8 = vcmask 1047556   ;;  %v17331_v1 = vmov 0 }
  0x4e   :  { %vm387_vm2 = vmand %vm385_vm0, %vm386_vm1  ;;  %vm456_vm9 = vsmask.f32 7954  ;;  %v17334_v2 = vmov 0  ;;  %v12753_v3 = vld [vmem:[#allocation8 + $0x4] ss:$8 sps:$4 sm:$0xff]   ;;  %461 = vst [vmem:[#allocation2 + $0x38] sm:$0xff] %v13830_v0 }
  0x4f   :  { %vm390_vm7 = vmand %vm388_vm3, %vm389_vm4  ;;  %v12755_v4 = vld [vmem:[#allocation8] ss:$8 sps:$4 sm:$0xff]   ;;  %488 = vst [vmem:[#allocation2 + $0x138] sm:$0xff] %v13830_v0  ;;  %245 = vmatprep.subr.bf16.mxu0 %v12753_v3  ;;  %vm1275_vm14 = vcmask 1042432   ;;  %vm1276_vm15 = vcmask 1046532   ;;  %vm206_vm0 = vcmask 130048  }
  0x50   :  { %vm13907_vm10 = vmor %vm390_vm7, %vm387_vm2  ;;  %491 = vst [vmem:[#allocation2 + $0x20] sm:$0xff] %v13830_v0  ;;  %246 = vmatpush1.bf16.msra.mxu0 %v12755_v4  ;;  %v12756_v18 = vld [vmem:[%s17151_s0] sm:$0xff]   ;;  %vm952_vm1 = vsmask.f32 3328  ;;  %vm953_vm2 = vsmask.f32 7440 }
  0x51   :  { %v17332_v1 = vsel %vm13907_vm10, 4294967295, %v17331_v1  ;;  %vm454_vm11 = vmand %vm452_vm5, %vm453_vm6  ;;  %518 = vst [vmem:[#allocation2 + $0xb8] sm:$0xff] %v13830_v0  ;;  %v12757_v33 = vld [vmem:[%s17151_s0 + $0x8] sm:$0xff]  }
  0x52   :  { %17333 = vst [vmem:[#allocation33_spill] sm:$0xff] %v17332_v1  ;;  %vm457_vm12 = vmand %vm455_vm8, %vm456_vm9 }
  0x53   :  { %vm13911_vm13 = vmor %vm457_vm12, %vm454_vm11  ;;  %v392_v5 = vld [vmem:[#allocation2 + $0x110] sm:$0x11]  ;;  %v422_v9 = vld [vmem:[#allocation2 + $0xa0] sm:$0x11]  ;;  %11671 = vmatmul.mubr.msk.bf16.vlgmr.msra.gmra.mxu0 %vm206_vm0, %v12756_v18 }
  0x54   :  { %v17335_v2 = vsel %vm13911_vm13, 4294967295, %v17334_v2  ;;  %v419_v6 = vld [vmem:[#allocation2 + $0xf8] sm:$0x11]  ;;  %v393_v7 = vsel %vm13907_vm10, 0, %v392_v5  ;;  %v449_v10 = vld [vmem:[#allocation2 + $0x88] sm:$0x11]  ;;  %273 = vmatprep.mubr.bf16.mxu0 %v13830_v0  ;;  %vm13951_vm3 = vmor %vm1275_vm14, %vm1276_vm15 }
  0x55   :  { %17336 = vst [vmem:[#allocation34_spill] sm:$0xff] %v17335_v2  ;;  %v420_v8 = vsel %vm13907_vm10, 0, %v419_v6  ;;  %394 = vst [vmem:[#allocation2 + $0x110] sm:$0x11] %v393_v7  ;;  %v423_v11 = vsel %vm13907_vm10, 0, %v422_v9  ;;  %v450_v12 = vsel %vm13907_vm10, 0, %v449_v10 }
  0x56   :  { %421 = vst [vmem:[#allocation2 + $0xf8] sm:$0x11] %v420_v8  ;;  %v1211_v13 = vld [vmem:[#allocation2 + $0x110] sm:$0xee]  ;;  %v1227_v14 = vld [vmem:[#allocation2 + $0xa0] sm:$0xee]  ;;  %vm13975_vm4 = vmor %vm952_vm1, %vm953_vm2 }
  0x57   :  { %424 = vst [vmem:[#allocation2 + $0xa0] sm:$0x11] %v423_v11  ;;  %451 = vst [vmem:[#allocation2 + $0x88] sm:$0x11] %v450_v12  ;;  %v11695_v15 = vrot.slane %v1211_v13, 9  ;;  %v11703_v17 = vrot.slane %v1227_v14, 9 }
  0x58   :  { %v13927_v16 = vld [vmem:[#allocation2 + $0xf8] sm:$0xee]  ;;  %v13932_v19 = vld [vmem:[#allocation2 + $0x88] sm:$0xee]  ;;  %v921_v20 = vld [vmem:[#allocation2 + $0x38] sm:$0x11] }
  0x59   :  { %v937_v21 = vld [vmem:[#allocation2 + $0x20] sm:$0x11]  ;;  %v1212_v22 = vld [vmem:[#allocation2 + $0x38] sm:$0x11]  ;;  %v965_v23 = vshll.u32 %v921_v20, 16  ;;  %v11734_v27 = vrot.slane %v13927_v16, 9 }
  0x5a   :  { %v1077_v24 = vshll.u32 %v937_v21, 16  ;;  %v1228_v25 = vld [vmem:[#allocation2 + $0x20] sm:$0x11]  ;;  %v1280_v26 = vrot.slane %v1212_v22, 5  ;;  %v1902_v31 = vld [vmem:[#allocation2 + $0x138] sm:$0x11] }
  0x5b   :  { %v1312_v29 = vrot.slane %v1228_v25, 5  ;;  %v11742_v32 = vrot.slane %v13932_v19, 9  ;;  %v967_v37 = vrot.slane %v965_v23, 5  ;;  %v1918_v45 = vld [vmem:[#allocation2 + $0xb8] sm:$0x11]  ;;  %v2027_v54 = vshll.u32 %v1902_v31, 16  ;;  %11672 = vmatmul.mubr.msk.bf16.gmra.mxu0 %vm206_vm0, %v12757_v33 }
  0x5c   :  { %v13937_v28 = vld [vmem:[#allocation2 + $0x110] sm:$0xff]  ;;  %v1079_v38 = vrot.slane %v1077_v24, 5  ;;  %v13961_v43 = vsel %vm13951_vm3, %v11695_v15, %v1280_v26  ;;  %v2190_v46 = vld [vmem:[#allocation2 + $0x138] sm:$0x11]  ;;  %v2139_v63 = vshll.u32 %v1918_v45, 16  ;;  %283 = vmatprep.mubr.bf16.mxu0 %v13830_v0  ;;  %v12760_v22 = vld [vmem:[%s17151_s0 + $0x20] sm:$0xff]  }
  0x5d   :  { %v13939_v30 = vld [vmem:[#allocation2 + $0xf8] sm:$0xff]  ;;  %v956_v35 = vshrl.u32 %v13937_v28, 16  ;;  %v959_v36 = vshll.u32 %v13937_v28, 16  ;;  %17341 = vst [vmem:[#allocation37_spill] sm:$0xff] %v13961_v43  ;;  %v13965_v44 = vsel %vm13951_vm3, %v11703_v17, %v1312_v29  ;;  %v2029_v61 = vrot.slane %v2027_v54, 5  ;;  %v12758_v15 = vld [vmem:[%s17151_s0 + $0x10] sm:$0xff]  }
  0x5e   :  { %17337 = vst [vmem:[#allocation35_spill] sm:$0xff] %v13939_v30  ;;  %v13945_v34 = vld [vmem:[#allocation2 + $0xa0] sm:$0xff]  ;;  %v13955_v40 = vld [vmem:[#allocation2 + $0x88] sm:$0xff]  ;;  %17342 = vst [vmem:[#allocation38_spill] sm:$0xff] %v13965_v44  ;;  %v2018_v49 = vshrl.u32 %v13939_v30, 16  ;;  %v2021_v50 = vshll.u32 %v13939_v30, 16 }
  0x5f   :  { %17340 = vst [vmem:[#allocation36_spill] sm:$0xff] %v13955_v40  ;;  %v1068_v41 = vshrl.u32 %v13945_v34, 16  ;;  %v1071_v42 = vshll.u32 %v13945_v34, 16  ;;  %v958_v47 = vrot.slane %v956_v35, 4  ;;  %v961_v48 = vrot.slane %v959_v36, 5  ;;  %v12759_v21 = vld [vmem:[%s17151_s0 + $0x18] sm:$0xff]  }
  0x60   :  { %v2206_v51 = vld [vmem:[#allocation2 + $0xb8] sm:$0x11]  ;;  %v2130_v55 = vshrl.u32 %v13955_v40, 16  ;;  %v2020_v57 = vrot.slane %v2018_v49, 4  ;;  %v2023_v58 = vrot.slane %v2021_v50, 5  ;;  %v2133_v59 = vshll.u32 %v13955_v40, 16 }
  0x61   :  { %v1070_v52 = vrot.slane %v1068_v41, 4  ;;  %v1073_v53 = vrot.slane %v1071_v42, 5  ;;  %v962_v56 = vor.u32 %v961_v48, %v958_v47  ;;  %v2269_v6 = vrot.slane %v2190_v46, 5  ;;  %v12761_v23 = vld [vmem:[%s17151_s0 + $0x28] sm:$0xff]   ;;  %v12762_v24 = vld [vmem:[%s17151_s0 + $0x30] sm:$0xff]   ;;  %v12763_v25 = vld [vmem:[%s17151_s0 + $0x38] sm:$0xff]  }
  0x62   :  { %v2132_v62 = vrot.slane %v2130_v55, 4  ;;  %v2024_v4 = vor.u32 %v2023_v58, %v2020_v57  ;;  %v2135_v5 = vrot.slane %v2133_v59, 5  ;;  %v2141_v9 = vrot.slane %v2139_v63, 5  ;;  %v395_v26 = vld [vmem:[#allocation2 + $0xb0] sm:$0x11]  ;;  %v465_v33 = vld [vmem:[#allocation2 + $0xe8] sm:$0xff] }
  0x63   :  { %v1074_v60 = vor.u32 %v1073_v53, %v1070_v52  ;;  %v963_v3 = vrot.slane %v962_v56, 4  ;;  %v2301_v10 = vrot.slane %v2206_v51, 5  ;;  %v13985_v14 = vsel %vm13951_vm3, %v11734_v27, %v2269_v6  ;;  %11673 = vmatmul.mubr.msk.bf16.gmra.mxu0 %vm206_vm0, %v12758_v15  ;;  %v462_v27 = vld [vmem:[#allocation2 + $0x18] sm:$0xff]  ;;  %v401_v36 = vld [vmem:[#allocation2 + $0x128] sm:$0x11]  ;;  %v471_v46 = vld [vmem:[#allocation2 + $0xf0] sm:$0xff] }
  0x64   :  { %v2025_v12 = vrot.slane %v2024_v4, 4  ;;  %v2136_v13 = vor.u32 %v2135_v5, %v2132_v62  ;;  %17345 = vst [vmem:[#allocation39_spill] sm:$0xff] %v13985_v14  ;;  %293 = vmatprep.mubr.bf16.mxu0 %v13830_v0  ;;  %v396_v29 = vsel %vm13907_vm10, 0, %v395_v26  ;;  %v463_v31 = vsel %vm13911_vm13, 0, %v462_v27  ;;  %v404_v42 = vld [vmem:[#allocation2 + $0x78] sm:$0x11] }
  0x65   :  { %v1075_v8 = vrot.slane %v1074_v60, 4  ;;  %v13981_v11 = vsel %vm13975_vm4, %v963_v3, %v967_v37  ;;  %v13996_v17 = vsel %vm13951_vm3, %v11742_v32, %v2301_v10  ;;  %397 = vst [vmem:[#allocation2 + $0xb0] sm:$0x11] %v396_v29  ;;  %464 = vst [vmem:[#allocation2 + $0x18] sm:$0xff] %v463_v31  ;;  %v398_v32 = vld [vmem:[#allocation2 + $0xc8] sm:$0x11] }
  0x66   :  { %17346 = vst [vmem:[#allocation40_spill] sm:$0xff] %v13996_v17  ;;  %v14000_v18 = vsel %vm13975_vm4, %v2025_v12, %v2029_v61  ;;  %v2137_v19 = vrot.slane %v2136_v13, 4  ;;  %v466_v35 = vsel %vm13911_vm13, 0, %v465_v33  ;;  %v468_v37 = vld [vmem:[#allocation2 + $0x48] sm:$0xff]  ;;  %v405_v45 = vsel %vm13907_vm10, 0, %v404_v42  ;;  %v474_v49 = vld [vmem:[#allocation2 + $0x60] sm:$0xff] }
  0x67   :  { %v13992_v16 = vsel %vm13975_vm4, %v1075_v8, %v1079_v38  ;;  %17347 = vst [vmem:[#allocation41_spill] sm:$0xff] %v14000_v18  ;;  %467 = vst [vmem:[#allocation2 + $0xe8] sm:$0xff] %v466_v35  ;;  %v402_v38 = vsel %vm13907_vm10, 0, %v401_v36  ;;  %v469_v41 = vsel %vm13911_vm13, 0, %v468_v37  ;;  %v472_v47 = vsel %vm13911_vm13, 0, %v471_v46  ;;  %v477_v53 = vld [vmem:[#allocation2 + $0x118] sm:$0xff] }
  0x68   :  { %v14004_v20 = vsel %vm13975_vm4, %v2137_v19, %v2141_v9  ;;  %403 = vst [vmem:[#allocation2 + $0x128] sm:$0x11] %v402_v38  ;;  %470 = vst [vmem:[#allocation2 + $0x48] sm:$0xff] %v469_v41  ;;  %v407_v48 = vld [vmem:[#allocation2 + $0xa8] sm:$0x11]  ;;  %v475_v51 = vsel %vm13911_vm13, 0, %v474_v49 }
  0x69   :  { %17348 = vst [vmem:[#allocation42_spill] sm:$0xff] %v14004_v20  ;;  %406 = vst [vmem:[#allocation2 + $0x78] sm:$0x11] %v405_v45  ;;  %v408_v50 = vsel %vm13907_vm10, 0, %v407_v48  ;;  %v410_v52 = vld [vmem:[#allocation2 + $0x28] sm:$0x11] }
  0x6a   :  { %473 = vst [vmem:[#allocation2 + $0xf0] sm:$0xff] %v472_v47  ;;  %409 = vst [vmem:[#allocation2 + $0xa8] sm:$0x11] %v408_v50  ;;  %v411_v54 = vsel %vm13907_vm10, 0, %v410_v52  ;;  %v478_v55 = vsel %vm13911_vm13, 0, %v477_v53  ;;  %v480_v57 = vld [vmem:[#allocation2 + $0x30] sm:$0xff] }
  0x6b   :  { %11674 = vmatmul.mubr.msk.bf16.gmra.mxu0 %vm206_vm0, %v12759_v21  ;;  %476 = vst [vmem:[#allocation2 + $0x60] sm:$0xff] %v475_v51  ;;  %412 = vst [vmem:[#allocation2 + $0x28] sm:$0x11] %v411_v54  ;;  %v413_v56 = vld [vmem:[#allocation2 + $0x70] sm:$0x11]  ;;  %v481_v59 = vsel %vm13911_vm13, 0, %v480_v57 }
  0x6c   :  { %303 = vmatprep.mubr.bf16.mxu0 %v13830_v0  ;;  %479 = vst [vmem:[#allocation2 + $0x118] sm:$0xff] %v478_v55  ;;  %v414_v58 = vsel %vm13907_vm10, 0, %v413_v56  ;;  %482 = vst [vmem:[#allocation2 + $0x30] sm:$0xff] %v481_v59  ;;  %v416_v60 = vld [vmem:[#allocation2 + $0x90] sm:$0x11]  ;;  %v483_v61 = vld [vmem:[#allocation2 + $0x68] sm:$0xff] }
  0x6d   :  { %415 = vst [vmem:[#allocation2 + $0x70] sm:$0x11] %v414_v58  ;;  %v417_v62 = vsel %vm13907_vm10, 0, %v416_v60  ;;  %v484_v63 = vsel %vm13911_vm13, 0, %v483_v61  ;;  %v425_v3 = vld [vmem:[#allocation2 + $0x108] sm:$0x11] }
  0x6e   :  { %418 = vst [vmem:[#allocation2 + $0x90] sm:$0x11] %v417_v62  ;;  %485 = vst [vmem:[#allocation2 + $0x68] sm:$0xff] %v484_v63  ;;  %v492_v4 = vld [vmem:[#allocation2 + $0x40] sm:$0xff]  ;;  %v426_v5 = vsel %vm13907_vm10, 0, %v425_v3  ;;  %v498_v15 = vld [vmem:[#allocation2 + $0x130] sm:$0xff] }
  0x6f   :  { %v493_v6 = vsel %vm13911_vm13, 0, %v492_v4  ;;  %427 = vst [vmem:[#allocation2 + $0x108] sm:$0x11] %v426_v5  ;;  %v428_v8 = vld [vmem:[#allocation2 + $0xd8] sm:$0x11]  ;;  %v495_v9 = vld [vmem:[#allocation2 + $0x80] sm:$0xff] }
  0x70   :  { %494 = vst [vmem:[#allocation2 + $0x40] sm:$0xff] %v493_v6  ;;  %v429_v10 = vsel %vm13907_vm10, 0, %v428_v8  ;;  %v496_v12 = vsel %vm13911_vm13, 0, %v495_v9  ;;  %v431_v13 = vld [vmem:[#allocation2 + $0x8] sm:$0x11]  ;;  %v499_v21 = vsel %vm13911_vm13, 0, %v498_v15 }
  0x71   :  { %430 = vst [vmem:[#allocation2 + $0xd8] sm:$0x11] %v429_v10  ;;  %497 = vst [vmem:[#allocation2 + $0x80] sm:$0xff] %v496_v12  ;;  %v432_v19 = vsel %vm13907_vm10, 0, %v431_v13  ;;  %v437_v26 = vld [vmem:[#allocation2 + $0x100] sm:$0x11] }
  0x72   :  { %433 = vst [vmem:[#allocation2 + $0x8] sm:$0x11] %v432_v19  ;;  %500 = vst [vmem:[#allocation2 + $0x130] sm:$0xff] %v499_v21  ;;  %v504_v27 = vld [vmem:[#allocation2 + $0x98] sm:$0xff]  ;;  %v438_v29 = vsel %vm13907_vm10, 0, %v437_v26  ;;  %v510_v52 = vld [vmem:[#allocation2 + $0x120] sm:$0xff] }
  0x73   :  { %11675 = vmatmul.mubr.msk.bf16.gmra.mxu0 %vm206_vm0, %v12760_v22  ;;  %v434_v22 = vld [vmem:[#allocation2 + $0xe0] sm:$0x11]  ;;  %v505_v31 = vsel %vm13911_vm13, 0, %v504_v27  ;;  %439 = vst [vmem:[#allocation2 + $0x100] sm:$0x11] %v438_v29  ;;  %v511_v55 = vsel %vm13911_vm13, 0, %v510_v52 }
  0x74   :  { %313 = vmatprep.mubr.bf16.mxu0 %v13830_v0  ;;  %506 = vst [vmem:[#allocation2 + $0x98] sm:$0xff] %v505_v31  ;;  %v440_v33 = vld [vmem:[#allocation2 + $0xd0] sm:$0x11]  ;;  %v443_v51 = vld [vmem:[#allocation2 + $0x58] sm:$0x11]  ;;  %512 = vst [vmem:[#allocation2 + $0x120] sm:$0xff] %v511_v55 }
  0x75   :  { %v441_v36 = vsel %vm13907_vm10, 0, %v440_v33  ;;  %v144_v41 = vld [vmem:[#allocation11] sm:$0x3]  ;;  %v444_v54 = vsel %vm13907_vm10, 0, %v443_v51  ;;  %v446_v63 = vld [vmem:[#allocation2 + $0xc0] sm:$0x11] }
  0x76   :  { %442 = vst [vmem:[#allocation2 + $0xd0] sm:$0x11] %v441_v36  ;;  %445 = vst [vmem:[#allocation2 + $0x58] sm:$0x11] %v444_v54  ;;  %v513_v3 = vld [vmem:[#allocation2 + $0x50] sm:$0xff]  ;;  %v447_v10 = vsel %vm13907_vm10, 0, %v446_v63 }
  0x77   :  { %v514_v12 = vsel %vm13911_vm13, 0, %v513_v3  ;;  %448 = vst [vmem:[#allocation2 + $0xc0] sm:$0x11] %v447_v10  ;;  %s13831_s0 = smov [#allocation4]  }
  0x78   :  { %515 = vst [vmem:[#allocation2 + $0x50] sm:$0xff] %v514_v12  ;;  %s111_s29 = sshll.u32 %s13831_s0, 4  ;;  %s112_s29 = int_to_ptr.vmem [resolvable:$true] %s111_s29 }
  0x79   :  { %s13756_s30 = scalar_lea.vmem %s112_s29, 36864  ;;  %p13761_p3 = scmp.lt.s32.totalorder %s112_s29, %s112_s29 }
  0x7a   :  { %p13757_p2 = scmp.ne.s32.totalorder %s112_s29, %s13756_s30  ;;  %p13762_p4 = scmp.lt.s32.totalorder %s13756_s30, %s13756_s30 }
  0x7b   :  { %11676 = vmatmul.mubr.msk.bf16.gmra.mxu0 %vm206_vm0, %v12761_v23  ;;  %v501_v23 = vld [vmem:[#allocation2 + $0x10] sm:$0xff] }
  0x7c   :  { %323 = vmatprep.mubr.bf16.mxu0 %v13830_v0  ;;  %p13763_p5 = por %p13762_p4, %p13761_p3 }
  0x7e   :  { %p13764_p6 = pnand %p13763_p5, %p13757_p2 }
  0x83   :  { %11677 = vmatmul.mubr.msk.bf16.gmra.mxu0 %vm206_vm0, %v12762_v24  ;;  %v435_v24 = vsel %vm13907_vm10, 0, %v434_v22  ;;  %v792_v22 = vld [vmem:[#allocation2 + $0xb0] sm:$0xff] }
  0x84   :  { %333 = vmatprep.mubr.bf16.mxu0 %v13830_v0  ;;  %v399_v0 = vsel %vm13907_vm10, 0, %v398_v32  ;;  %436 = vst [vmem:[#allocation2 + $0xe0] sm:$0x11] %v435_v24  ;;  %v146_v32 = vlaneseq }
  0x85   :  { %400 = vst [vmem:[#allocation2 + $0xc8] sm:$0x11] %v399_v0  ;;  %v507_v0 = vld [vmem:[#allocation2] sm:$0xff] }
  0x86   :  { %v147_v35 = vshrl.u32 %v146_v32, 7  ;;  %v508_v37 = vsel %vm13911_vm13, 0, %v507_v0 }
  0x87   :  { %509 = vst [vmem:[#allocation2] sm:$0xff] %v508_v37 }
  0x88   :  { %v14088_v38 = vsub.s32 0, %v147_v35  ;;  %v14090_v42 = vsub.s32 1, %v147_v35 }
  0x8a   :  { %17349 = vst [vmem:[#allocation43_spill] sm:$0xff] %v14088_v38  ;;  %17350 = vst [vmem:[#allocation44_spill] sm:$0xff] %v14090_v42  ;;  %v14093_v45 = vrot.slane %v144_v41, %v14088_v38  ;;  %v14096_v46 = vrot.slane %v144_v41, %v14090_v42 }
  0x8b   :  { %11678 = vmatmul.mubr.msk.bf16.gmra.mxu0 %vm206_vm0, %v12763_v25  ;;  %v502_v25 = vsel %vm13911_vm13, 0, %v501_v23  ;;  %v795_v23 = vld [vmem:[#allocation2 + $0x18] sm:$0x11] }
  0x8c   :  { %503 = vst [vmem:[#allocation2 + $0x10] sm:$0xff] %v502_v25 }
 0x113   :  { %v265_v47 = vpop.f32.mrf.mxu0 }
 0x114   :  { %v266_v48 = vadd.f32 %v265_v47, %v14093_v45 }
 0x115   :  { %v267_v49 = vpop.f32.mrf.mxu0 }
 0x116   :  { %v268_v50 = vadd.f32 %v267_v49, %v14096_v46  ;;  %v344_v56 = vmax.f32 %v266_v48, 0.0  ;;  %v798_v49 = vld [vmem:[#allocation2 + $0xc8] sm:$0xff] }
 0x117   :  { %v269_v53 = vpop.f32.mrf.mxu0 }
 0x118   :  { %v345_v57 = vmax.f32 %v268_v50, 0.0  ;;  %v270_v58 = vadd.f32 %v269_v53, %v14093_v45  ;;  %v801_v50 = vld [vmem:[#allocation2 + $0xe8] sm:$0x11] }
 0x119   :  { %v271_v59 = vpop.f32.mrf.mxu0 }
 0x11a   :  { %v12674_v60 = vpack.c.bf16 %v345_v57, %v344_v56  ;;  %v272_v61 = vadd.f32 %v271_v59, %v14096_v46  ;;  %v346_v5 = vmax.f32 %v270_v58, 0.0 }
 0x11b   :  { %v275_v62 = vpop.f32.mrf.mxu0 }
 0x11c   :  { %v632_v4 = vshrl.u32 %v12674_v60, 16  ;;  %v347_v6 = vmax.f32 %v272_v61, 0.0  ;;  %v276_v8 = vadd.f32 %v275_v62, %v14093_v45  ;;  %v635_v15 = vshll.u32 %v12674_v60, 16 }
 0x11d   :  { %v277_v9 = vpop.f32.mrf.mxu0 }
 0x11e   :  { %v634_v13 = vrot.slane %v632_v4, 7  ;;  %v12675_v19 = vpack.c.bf16 %v347_v6, %v346_v5  ;;  %v278_v21 = vadd.f32 %v277_v9, %v14096_v46  ;;  %v348_v31 = vmax.f32 %v276_v8, 0.0 }
 0x11f   :  { %v279_v24 = vpop.f32.mrf.mxu0 }
 0x120   :  { %v637_v25 = vor.u32 %v635_v15, %v634_v13  ;;  %v638_v26 = vrot.slane %v634_v13, 4  ;;  %v640_v27 = vshrl.u32 %v12675_v19, 16  ;;  %v643_v29 = vshll.u32 %v12675_v19, 16 }
 0x121   :  { %v349_v32 = vmax.f32 %v278_v21, 0.0  ;;  %v280_v33 = vadd.f32 %v279_v24, %v14093_v45  ;;  %v281_v0 = vpop.f32.mrf.mxu0  ;;  %v804_v24 = vld [vmem:[#allocation2 + $0x128] sm:$0xff] }
 0x122   :  { %v14115_v35 = vsel %vm13911_vm13, %v637_v25, %v792_v22  ;;  %v796_v36 = vsel %vm13907_vm10, %v638_v26, %v795_v23  ;;  %v642_v37 = vrot.slane %v640_v27, 7  ;;  %v282_v41 = vadd.f32 %v281_v0, %v14096_v46  ;;  %v807_v25 = vld [vmem:[#allocation2 + $0x48] sm:$0x11] }
 0x123   :  { %794 = vst [vmem:[#allocation2 + $0xb0] sm:$0xff] %v14115_v35  ;;  %797 = vst [vmem:[#allocation2 + $0x18] sm:$0x11] %v796_v36  ;;  %v970_v47 = vshrl.u32 %v14115_v35, 16  ;;  %v973_v48 = vshll.u32 %v14115_v35, 16  ;;  %v12676_v51 = vpack.c.bf16 %v349_v32, %v348_v31  ;;  %v350_v52 = vmax.f32 %v280_v33, 0.0  ;;  %v285_v53 = vpop.f32.mrf.mxu0 }
 0x124   :  { %v645_v54 = vor.u32 %v643_v29, %v642_v37  ;;  %v646_v55 = vrot.slane %v642_v37, 4  ;;  %v351_v56 = vmax.f32 %v282_v41, 0.0  ;;  %v14124_v57 = vadd.f32 %v285_v53, %v14093_v45 }
 0x125   :  { %v972_v58 = vrot.slane %v970_v47, 4  ;;  %v975_v59 = vrot.slane %v973_v48, 5  ;;  %v648_v60 = vshrl.u32 %v12676_v51, 16  ;;  %v287_v61 = vpop.f32.mrf.mxu0  ;;  %v651_v3 = vshll.u32 %v12676_v51, 16 }
 0x126   :  { %v14128_v62 = vsel %vm13911_vm13, %v645_v54, %v798_v49  ;;  %v802_v63 = vsel %vm13907_vm10, %v646_v55, %v801_v50  ;;  %v14132_v4 = vpack.c.bf16 %v351_v56, %v350_v52  ;;  %v14141_v32 = vadd.f32 %v287_v61, %v14096_v46 }
 0x127   :  { %v976_v5 = vor.u32 %v975_v59, %v972_v58  ;;  %800 = vst [vmem:[#allocation2 + $0xc8] sm:$0xff] %v14128_v62  ;;  %803 = vst [vmem:[#allocation2 + $0xe8] sm:$0x11] %v802_v63  ;;  %v984_v6 = vshrl.u32 %v14128_v62, 16  ;;  %v987_v8 = vshll.u32 %v14128_v62, 16  ;;  %v650_v9 = vrot.slane %v648_v60, 7  ;;  %v289_v10 = vpop.f32.mrf.mxu0 }
 0x128   :  { %v656_v12 = vshrl.u32 %v14132_v4, 16  ;;  %v659_v13 = vshll.u32 %v14132_v4, 16  ;;  %v14148_v53 = vadd.f32 %v289_v10, %v14093_v45 }
 0x129   :  { %v977_v19 = vrot.slane %v976_v5, 4  ;;  %v986_v21 = vrot.slane %v984_v6, 4  ;;  %v989_v22 = vrot.slane %v987_v8, 5  ;;  %v653_v23 = vor.u32 %v651_v3, %v650_v9  ;;  %v291_v26 = vpop.f32.mrf.mxu0 }
 0x12a   :  { %v923_v27 = vld [vmem:[#allocation2 + $0x18] sm:$0x11]  ;;  %v1213_v29 = vld [vmem:[#allocation2 + $0xb0] sm:$0xee]  ;;  %v654_v51 = vrot.slane %v650_v9, 4  ;;  %v14158_v6 = vadd.f32 %v291_v26, %v14096_v46 }
 0x12b   :  { %v1214_v31 = vld [vmem:[#allocation2 + $0x18] sm:$0x11]  ;;  %v979_v33 = vshll.u32 %v923_v27, 16  ;;  %v11696_v0 = vrot.slane %v1213_v29, 9  ;;  %v990_v41 = vor.u32 %v989_v22, %v986_v21  ;;  %v295_v47 = vpop.f32.mrf.mxu0  ;;  %v1694_v49 = vld [vmem:[#allocation2 + $0xb0] sm:$0xee]  ;;  %v14145_v52 = vsel %vm13911_vm13, %v653_v23, %v804_v24 }
 0x12c   :  { %v1284_v36 = vrot.slane %v1214_v31, 5  ;;  %v1407_v37 = vld [vmem:[#allocation2 + $0x18] sm:$0x11]  ;;  %v11711_v56 = vrot.slane %v1694_v49, 9  ;;  %806 = vst [vmem:[#allocation2 + $0x128] sm:$0xff] %v14145_v52  ;;  %v808_v5 = vsel %vm13907_vm10, %v654_v51, %v807_v25 }
 0x12d   :  { %v1448_v48 = vshll.u32 %v1407_v37, 16  ;;  %v1695_v50 = vld [vmem:[#allocation2 + $0x18] sm:$0x11]  ;;  %v981_v54 = vrot.slane %v979_v33, 5  ;;  %v297_v59 = vpop.f32.mrf.mxu0  ;;  %v991_v63 = vrot.slane %v990_v41, 4  ;;  %v14173_v33 = vadd.f32 %v295_v47, %v14093_v45 }
 0x12e   :  { %v14152_v55 = vsel %vm13951_vm3, %v11696_v0, %v1284_v36  ;;  %v1760_v58 = vrot.slane %v1695_v50, 5  ;;  %v925_v61 = vld [vmem:[#allocation2 + $0xe8] sm:$0x11]  ;;  %v1215_v3 = vld [vmem:[#allocation2 + $0xc8] sm:$0xee] }
 0x12f   :  { %v1450_v60 = vrot.slane %v1448_v48, 5  ;;  %v14162_v8 = vsel %vm13975_vm4, %v977_v19, %v981_v54  ;;  %v993_v10 = vshll.u32 %v925_v61, 16  ;;  %v1216_v21 = vld [vmem:[#allocation2 + $0xe8] sm:$0x11]  ;;  %v11697_v22 = vrot.slane %v1215_v3, 9  ;;  %v299_v24 = vpop.f32.mrf.mxu0 }
 0x130   :  { %v14166_v9 = vsel %vm13951_vm3, %v11711_v56, %v1760_v58  ;;  %v1409_v23 = vld [vmem:[#allocation2 + $0xe8] sm:$0x11]  ;;  %809 = vst [vmem:[#allocation2 + $0x48] sm:$0x11] %v808_v5  ;;  %v1288_v26 = vrot.slane %v1216_v21, 5  ;;  %v998_v48 = vshrl.u32 %v14145_v52, 16  ;;  %v14181_v58 = vadd.f32 %v297_v59, %v14096_v46 }
 0x131   :  { %17351 = vst [vmem:[#allocation45_spill] sm:$0xff] %v14166_v9  ;;  %v14170_v25 = vsel %vm13975_vm4, %v977_v19, %v1450_v60  ;;  %v1462_v27 = vshll.u32 %v1409_v23, 16  ;;  %v1696_v29 = vld [vmem:[#allocation2 + $0xc8] sm:$0xee]  ;;  %v1697_v31 = vld [vmem:[#allocation2 + $0xe8] sm:$0x11]  ;;  %v301_v49 = vpop.f32.mrf.mxu0 }
 0x132   :  { %17352 = vst [vmem:[#allocation46_spill] sm:$0xff] %v14170_v25  ;;  %v995_v0 = vrot.slane %v993_v10, 5  ;;  %v11712_v36 = vrot.slane %v1696_v29, 9  ;;  %v1764_v37 = vrot.slane %v1697_v31, 5  ;;  %v1888_v41 = vld [vmem:[#allocation2 + $0xe8] sm:$0x11]  ;;  %v14178_v50 = vsel %vm13951_vm3, %v11697_v22, %v1288_v26 }
 0x133   :  { %17353 = vst [vmem:[#allocation47_spill] sm:$0xff] %v14178_v50  ;;  %v1464_v19 = vrot.slane %v1462_v27, 5  ;;  %v1929_v51 = vshll.u32 %v1888_v41, 16  ;;  %v2175_v54 = vld [vmem:[#allocation2 + $0xc8] sm:$0xee]  ;;  %v305_v5 = vpop.f32.mrf.mxu0  ;;  %v1000_v22 = vrot.slane %v998_v48, 4 }
 0x134   :  { %v2176_v56 = vld [vmem:[#allocation2 + $0xe8] sm:$0x11]  ;;  %v14185_v47 = vsel %vm13975_vm4, %v991_v63, %v995_v0  ;;  %v14189_v60 = vsel %vm13951_vm3, %v11712_v36, %v1764_v37  ;;  %v11727_v61 = vrot.slane %v2175_v54, 9  ;;  %v1001_v59 = vshll.u32 %v14145_v52, 16  ;;  %v1217_v23 = vld [vmem:[#allocation2 + $0x128] sm:$0xee] }
 0x135   :  { %17354 = vst [vmem:[#allocation48_spill] sm:$0xff] %v14189_v60  ;;  %v2241_v3 = vrot.slane %v2176_v56, 5  ;;  %v14193_v10 = vsel %vm13975_vm4, %v991_v63, %v1464_v19  ;;  %v1931_v21 = vrot.slane %v1929_v51, 5  ;;  %v11698_v27 = vrot.slane %v1217_v23, 9  ;;  %v1698_v29 = vld [vmem:[#allocation2 + $0x128] sm:$0xee]  ;;  %v307_v37 = vpop.f32.mrf.mxu0 }
 0x136   :  { %17355 = vst [vmem:[#allocation49_spill] sm:$0xff] %v14193_v10  ;;  %v2177_v31 = vld [vmem:[#allocation2 + $0x128] sm:$0xee]  ;;  %v14202_v0 = vrot.slane %v656_v12, 7  ;;  %v14205_v36 = vadd.f32 %v299_v24, %v14093_v45  ;;  %v1003_v19 = vrot.slane %v1001_v59, 5  ;;  %v11713_v54 = vrot.slane %v1698_v29, 9 }
 0x137   :  { %v14198_v26 = vsel %vm13951_vm3, %v11727_v61, %v2241_v3  ;;  %v14209_v41 = vsel %vm13975_vm4, %v991_v63, %v1931_v21  ;;  %v927_v48 = vld [vmem:[#allocation2 + $0x48] sm:$0x11]  ;;  %v810_v56 = vld [vmem:[#allocation2 + $0x78] sm:$0xff]  ;;  %v14212_v61 = vadd.f32 %v301_v49, %v14096_v46  ;;  %v14218_v63 = vadd.f32 %v305_v5, %v14093_v45 }
 0x138   :  { %17356 = vst [vmem:[#allocation50_spill] sm:$0xff] %v14198_v26  ;;  %17357 = vst [vmem:[#allocation51_spill] sm:$0xff] %v14209_v41  ;;  %v1218_v51 = vld [vmem:[#allocation2 + $0x48] sm:$0x11]  ;;  %v1007_v3 = vshll.u32 %v927_v48, 16  ;;  %v661_v24 = vor.u32 %v659_v13, %v14202_v0  ;;  %v1004_v21 = vor.u32 %v1003_v19, %v1000_v22  ;;  %v14221_v49 = vadd.f32 %v307_v37, %v14096_v46  ;;  %v309_v26 = vpop.f32.mrf.mxu0 }
 0x139   :  { %v1292_v12 = vrot.slane %v1218_v51, 5  ;;  %v1411_v23 = vld [vmem:[#allocation2 + $0x48] sm:$0x11]  ;;  %v11728_v4 = vrot.slane %v2177_v31, 9 }
 0x13a   :  { %v1699_v15 = vld [vmem:[#allocation2 + $0x48] sm:$0x11]  ;;  %v1476_v59 = vshll.u32 %v1411_v23, 16  ;;  %v1009_v48 = vrot.slane %v1007_v3, 5 }
 0x13b   :  { %v1768_v17 = vrot.slane %v1699_v15, 5  ;;  %v1890_v29 = vld [vmem:[#allocation2 + $0x48] sm:$0x11]  ;;  %v14225_v51 = vsel %vm13951_vm3, %v11698_v27, %v1292_v12 }
 0x13c   :  { %v2178_v14 = vld [vmem:[#allocation2 + $0x48] sm:$0x11]  ;;  %17358 = vst [vmem:[#allocation52_spill] sm:$0xff] %v14225_v51  ;;  %v1943_v20 = vshll.u32 %v1890_v29, 16 }
 0x13d   :  { %13767 = shalt.err (!%p13764_p6)  }
 0x13e   :  { %114 = dma.hbm_to_vmem [thread:$0]  %s17158_s7, 36864, %s112_s29, [#allocation6]  ;;  %v1005_v13 = vrot.slane %v1004_v21, 4  ;;  %v1478_v15 = vrot.slane %v1476_v59, 5  ;;  %v14232_v5 = vsel %vm13951_vm3, %v11713_v54, %v1768_v17  ;;  %v2245_v22 = vrot.slane %v2178_v14, 5 }
 0x13f   :  { %17359 = vst [vmem:[#allocation53_spill] sm:$0xff] %v14232_v5  ;;  %v813_v27 = vld [vmem:[#allocation2 + $0xf0] sm:$0x11]  ;;  %s13832_s11 = smov [#allocation5]   ;;  %v1945_v31 = vrot.slane %v1943_v20, 5  ;;  %v662_v37 = vrot.slane %v14202_v0, 4  ;;  %v14237_v19 = vsel %vm13911_vm13, %v661_v24, %v810_v56  ;;  %v14254_v0 = vpop.f32.mrf.mxu0 }
 0x140   :  { %s122_s12 = sshll.u32 %s13832_s11, 4  ;;  %v353_v3 = vmax.f32 %v14141_v32, 0.0  ;;  %v14242_v12 = vsel %vm13975_vm4, %v1005_v13, %v1009_v48  ;;  %v14246_v14 = vsel %vm13975_vm4, %v1005_v13, %v1478_v15  ;;  %v14250_v17 = vsel %vm13951_vm3, %v11728_v4, %v2245_v22  ;;  %812 = vst [vmem:[#allocation2 + $0x78] sm:$0xff] %v14237_v19  ;;  %s123_s12 = int_to_ptr.vmem [resolvable:$true] %s122_s12 }
 0x141   :  { %17360 = vst [vmem:[#allocation54_spill] sm:$0xff] %v14246_v14  ;;  %17361 = vst [vmem:[#allocation55_spill] sm:$0xff] %v14250_v17  ;;  %v1012_v20 = vshrl.u32 %v14237_v19, 16  ;;  %s13776_s7 = scalar_lea.vmem %s123_s12, 36864  ;;  %p13781_p8 = scmp.lt.s32.totalorder %s123_s12, %s123_s12 }
 0x142   :  { %p13777_p7 = scmp.ne.s32.totalorder %s123_s12, %s13776_s7  ;;  %p13782_p9 = scmp.lt.s32.totalorder %s13776_s7, %s13776_s7 }
 0x144   :  { %p13783_p10 = por %p13782_p9, %p13781_p8 }
 0x146   :  { %p13784_p11 = pnand %p13783_p10, %p13777_p7 }
 0x148   :  { %13787 = shalt.err (!%p13784_p11)  }
 0x149   :  { %125 = dma.hbm_to_vmem [thread:$0]  %s17159_s8, 36864, %s123_s12, [#allocation7]  ;;  %v14261_v32 = vsel %vm13975_vm4, %v1005_v13, %v1945_v31  ;;  %v814_v54 = vsel %vm13907_vm10, %v662_v37, %v813_v27  ;;  %v1015_v56 = vshll.u32 %v14237_v19, 16  ;;  %v17363_v23 = vmax.f32 %v14124_v57, 0.0  ;;  %v1700_v57 = vld [vmem:[#allocation2 + $0x78] sm:$0xee] }
 0x14a   :  { %17362 = vst [vmem:[#allocation56_spill] sm:$0xff] %v14261_v32  ;;  %815 = vst [vmem:[#allocation2 + $0xf0] sm:$0x11] %v814_v54  ;;  %v1014_v21 = vrot.slane %v1012_v20, 4  ;;  %v354_v59 = vmax.f32 %v14148_v53, 0.0  ;;  %v355_v29 = vmax.f32 %v14158_v6, 0.0  ;;  %v14271_v48 = vadd.f32 %v309_v26, %v14093_v45 }
 0x14b   :  { %v12678_v24 = vpack.c.bf16 %v353_v3, %v17363_v23  ;;  %v1017_v4 = vrot.slane %v1015_v56, 5  ;;  %v356_v15 = vmax.f32 %v14173_v33, 0.0  ;;  %v357_v22 = vmax.f32 %v14181_v58, 0.0  ;;  %v14277_v3 = vpop.f32.mrf.mxu0  ;;  %v816_v6 = vld [vmem:[#allocation2 + $0xa8] sm:$0xff]  ;;  %v819_v56 = vld [vmem:[#allocation2 + $0x60] sm:$0x11] }
 0x14c   :  { %v12679_v31 = vpack.c.bf16 %v355_v29, %v354_v59  ;;  %v360_v37 = vmax.f32 %v14218_v63, 0.0  ;;  %v361_v26 = vmax.f32 %v14221_v49, 0.0  ;;  %v1219_v29 = vld [vmem:[#allocation2 + $0x78] sm:$0xee] }
 0x14d   :  { %v664_v13 = vshrl.u32 %v12678_v24, 16  ;;  %v667_v27 = vshll.u32 %v12678_v24, 16  ;;  %v1018_v53 = vor.u32 %v1017_v4, %v1014_v21  ;;  %v14279_v54 = vpack.c.bf16 %v357_v22, %v356_v15  ;;  %v14287_v22 = vpop.f32.mrf.mxu0 }
 0x14e   :  { %v672_v23 = vshrl.u32 %v12679_v31, 16  ;;  %v675_v33 = vshll.u32 %v12679_v31, 16  ;;  %v14284_v40 = vpack.c.bf16 %v361_v26, %v360_v37  ;;  %v11699_v21 = vrot.slane %v1219_v29, 9 }
 0x14f   :  { %v666_v20 = vrot.slane %v664_v13, 7  ;;  %v1019_v59 = vrot.slane %v1018_v53, 4  ;;  %v11714_v4 = vrot.slane %v1700_v57, 9  ;;  %v2179_v13 = vld [vmem:[#allocation2 + $0x78] sm:$0xee]  ;;  %v680_v49 = vshrl.u32 %v14279_v54, 16 }
 0x150   :  { %v674_v15 = vrot.slane %v672_v23, 7  ;;  %v11729_v29 = vrot.slane %v2179_v13, 9 }
 0x151   :  { %v669_v63 = vor.u32 %v667_v27, %v666_v20  ;;  %v670_v17 = vrot.slane %v666_v20, 4  ;;  %v929_v31 = vld [vmem:[#allocation2 + $0xf0] sm:$0x11] }
 0x152   :  { %v1220_v18 = vld [vmem:[#allocation2 + $0xf0] sm:$0x11]  ;;  %v1021_v37 = vshll.u32 %v929_v31, 16  ;;  %v677_v38 = vor.u32 %v675_v33, %v674_v15 }
 0x153   :  { %v1413_v58 = vld [vmem:[#allocation2 + $0xf0] sm:$0x11]  ;;  %v14291_v53 = vsel %vm13911_vm13, %v669_v63, %v816_v6  ;;  %v820_v27 = vsel %vm13907_vm10, %v670_v17, %v819_v56  ;;  %v1296_v20 = vrot.slane %v1220_v18, 5  ;;  %v822_v18 = vld [vmem:[#allocation2 + $0x28] sm:$0xff] }
 0x154   :  { %v1490_v26 = vshll.u32 %v1413_v58, 16  ;;  %v1701_v57 = vld [vmem:[#allocation2 + $0xf0] sm:$0x11]  ;;  %818 = vst [vmem:[#allocation2 + $0xa8] sm:$0xff] %v14291_v53  ;;  %821 = vst [vmem:[#allocation2 + $0x60] sm:$0x11] %v820_v27  ;;  %v14301_v58 = vpop.f32.mrf.mxu0 }
 0x155   :  { %v1772_v23 = vrot.slane %v1701_v57, 5  ;;  %v1892_v24 = vld [vmem:[#allocation2 + $0xf0] sm:$0x11]  ;;  %v1026_v42 = vshrl.u32 %v14291_v53, 16  ;;  %v1023_v41 = vrot.slane %v1021_v37, 5  ;;  %v14299_v6 = vsel %vm13951_vm3, %v11699_v21, %v1296_v20 }
 0x156   :  { %v2180_v30 = vld [vmem:[#allocation2 + $0xf0] sm:$0x11]  ;;  %17364 = vst [vmem:[#allocation57_spill] sm:$0xff] %v14299_v6  ;;  %v1492_v17 = vrot.slane %v1490_v26, 5  ;;  %v1957_v56 = vshll.u32 %v1892_v24, 16  ;;  %v1029_v27 = vshll.u32 %v14291_v53, 16 }
 0x157   :  { %v14305_v63 = vsel %vm13951_vm3, %v11714_v4, %v1772_v23  ;;  %v2249_v13 = vrot.slane %v2180_v30, 5  ;;  %v1028_v31 = vrot.slane %v1026_v42, 4  ;;  %v825_v57 = vld [vmem:[#allocation2 + $0x118] sm:$0x11]  ;;  %v14310_v33 = vsel %vm13975_vm4, %v1019_v59, %v1023_v41  ;;  %v14335_v23 = vpop.f32.mrf.mxu0 }
 0x158   :  { %17365 = vst [vmem:[#allocation58_spill] sm:$0xff] %v14305_v63  ;;  %v14314_v21 = vsel %vm13975_vm4, %v1019_v59, %v1492_v17  ;;  %v1959_v24 = vrot.slane %v1957_v56, 5  ;;  %v678_v37 = vrot.slane %v674_v15, 4  ;;  %v1031_v4 = vrot.slane %v1029_v27, 5 }
 0x159   :  { %17366 = vst [vmem:[#allocation59_spill] sm:$0xff] %v14314_v21  ;;  %v14318_v20 = vsel %vm13951_vm3, %v11729_v29, %v2249_v13  ;;  %v14322_v30 = vsel %vm13911_vm13, %v677_v38, %v822_v18  ;;  %v14324_v42 = vrot.slane %v680_v49, 7 }
 0x15a   :  { %17367 = vst [vmem:[#allocation60_spill] sm:$0xff] %v14318_v20  ;;  %v14328_v41 = vsel %vm13975_vm4, %v1019_v59, %v1959_v24  ;;  %824 = vst [vmem:[#allocation2 + $0x28] sm:$0xff] %v14322_v30  ;;  %v826_v15 = vsel %vm13907_vm10, %v678_v37, %v825_v57  ;;  %v1040_v26 = vshrl.u32 %v14322_v30, 16  ;;  %v1043_v29 = vshll.u32 %v14322_v30, 16 }
 0x15b   :  { %17368 = vst [vmem:[#allocation61_spill] sm:$0xff] %v14328_v41  ;;  %v931_v17 = vld [vmem:[#allocation2 + $0x60] sm:$0x11]  ;;  %v1032_v38 = vor.u32 %v1031_v4, %v1028_v31  ;;  %v1221_v56 = vld [vmem:[#allocation2 + $0xa8] sm:$0xee]  ;;  %v14341_v4 = vpop.f32.mrf.mxu0 }
 0x15c   :  { %v1222_v49 = vld [vmem:[#allocation2 + $0x60] sm:$0x11]  ;;  %827 = vst [vmem:[#allocation2 + $0x118] sm:$0x11] %v826_v15  ;;  %v1035_v18 = vshll.u32 %v931_v17, 16  ;;  %v11700_v13 = vrot.slane %v1221_v56, 9 }
 0x15d   :  { %v1300_v59 = vrot.slane %v1222_v49, 5  ;;  %v1415_v27 = vld [vmem:[#allocation2 + $0x60] sm:$0x11]  ;;  %v1042_v24 = vrot.slane %v1040_v26, 4  ;;  %v1033_v20 = vrot.slane %v1032_v38, 4  ;;  %v17370_v26 = vmax.f32 %v14205_v36, 0.0 }
 0x15e   :  { %v1504_v41 = vshll.u32 %v1415_v27, 16  ;;  %v1702_v32 = vld [vmem:[#allocation2 + $0xa8] sm:$0xee]  ;;  %v1703_v57 = vld [vmem:[#allocation2 + $0x60] sm:$0x11]  ;;  %v1037_v37 = vrot.slane %v1035_v18, 5 }
 0x15f   :  { %v14339_v5 = vsel %vm13951_vm3, %v11700_v13, %v1300_v59  ;;  %v11715_v63 = vrot.slane %v1702_v32, 9  ;;  %v1776_v14 = vrot.slane %v1703_v57, 5  ;;  %v1894_v31 = vld [vmem:[#allocation2 + $0x60] sm:$0x11]  ;;  %v2181_v56 = vld [vmem:[#allocation2 + $0xa8] sm:$0xee] }
 0x160   :  { %17369 = vst [vmem:[#allocation62_spill] sm:$0xff] %v14339_v5  ;;  %v1506_v15 = vrot.slane %v1504_v41, 5  ;;  %v1971_v17 = vshll.u32 %v1894_v31, 16  ;;  %v2182_v49 = vld [vmem:[#allocation2 + $0x60] sm:$0x11]  ;;  %v17371_v38 = vmax.f32 %v14212_v61, 0.0  ;;  %v14351_v18 = vsel %vm13975_vm4, %v1033_v20, %v1037_v37 }
 0x161   :  { %v14355_v32 = vsel %vm13951_vm3, %v11715_v63, %v1776_v14  ;;  %v11730_v13 = vrot.slane %v2181_v56, 9  ;;  %v2253_v59 = vrot.slane %v2182_v49, 5  ;;  %v1045_v36 = vrot.slane %v1043_v29, 5  ;;  %v1223_v31 = vld [vmem:[#allocation2 + $0x28] sm:$0xee] }
 0x162   :  { %v14347_v27 = vpack.c.bf16 %v17371_v38, %v17370_v26  ;;  %17372 = vst [vmem:[#allocation63_spill] sm:$0xff] %v14355_v32  ;;  %v14359_v41 = vsel %vm13975_vm4, %v1033_v20, %v1506_v15  ;;  %v1973_v57 = vrot.slane %v1971_v17, 5  ;;  %v1704_v61 = vld [vmem:[#allocation2 + $0x28] sm:$0xee]  ;;  %v14363_v26 = vadd.f32 %v14254_v0, %v14096_v46  ;;  %v14371_v38 = vpop.f32.mrf.mxu0 }
 0x163   :  { %17373 = vst [vmem:[#allocation64_spill] sm:$0xff] %v14359_v41  ;;  %v14367_v37 = vsel %vm13951_vm3, %v11730_v13, %v2253_v59  ;;  %v933_v14 = vld [vmem:[#allocation2 + $0x118] sm:$0x11]  ;;  %v11701_v56 = vrot.slane %v1223_v31, 9  ;;  %v11716_v49 = vrot.slane %v1704_v61, 9  ;;  %v316_v15 = vadd.f32 %v14277_v3, %v14093_v45 }
 0x164   :  { %17374 = vst [vmem:[#allocation65_spill] sm:$0xff] %v14367_v37  ;;  %v1224_v63 = vld [vmem:[#allocation2 + $0x118] sm:$0x11]  ;;  %v14375_v29 = vsel %vm13975_vm4, %v1033_v20, %v1973_v57  ;;  %v1046_v17 = vor.u32 %v1045_v36, %v1042_v24  ;;  %v1049_v0 = vshll.u32 %v933_v14, 16  ;;  %v2183_v9 = vld [vmem:[#allocation2 + $0x28] sm:$0xee]  ;;  %v318_v31 = vadd.f32 %v14287_v22, %v14096_v46 }
 0x165   :  { %17375 = vst [vmem:[#allocation66_spill] sm:$0xff] %v14375_v29  ;;  %v1304_v32 = vrot.slane %v1224_v63, 5  ;;  %v1417_v41 = vld [vmem:[#allocation2 + $0x118] sm:$0x11]  ;;  %v14381_v3 = vadd.f32 %v14301_v58, %v14093_v45  ;;  %v831_v22 = vld [vmem:[#allocation2 + $0x30] sm:$0x11]  ;;  %v14391_v63 = vpop.f32.mrf.mxu0 }
 0x166   :  { %v1705_v21 = vld [vmem:[#allocation2 + $0x118] sm:$0x11]  ;;  %v1518_v13 = vshll.u32 %v1417_v41, 16  ;;  %v1047_v61 = vrot.slane %v1046_v17, 4  ;;  %v1051_v60 = vrot.slane %v1049_v0, 5  ;;  %v11731_v41 = vrot.slane %v2183_v9, 9 }
 0x167   :  { %v1780_v59 = vrot.slane %v1705_v21, 5  ;;  %v1896_v37 = vld [vmem:[#allocation2 + $0x118] sm:$0x11]  ;;  %v14385_v20 = vsel %vm13951_vm3, %v11701_v56, %v1304_v32  ;;  %v683_v32 = vshll.u32 %v14279_v54, 16  ;;  %v688_v0 = vshrl.u32 %v14347_v27, 16 }
 0x168   :  { %17376 = vst [vmem:[#allocation67_spill] sm:$0xff] %v14385_v20  ;;  %v1985_v24 = vshll.u32 %v1896_v37, 16  ;;  %v2184_v57 = vld [vmem:[#allocation2 + $0x118] sm:$0x11]  ;;  %v1520_v36 = vrot.slane %v1518_v13, 5  ;;  %v14395_v58 = vsel %vm13975_vm4, %v1047_v61, %v1051_v60  ;;  %v686_v37 = vrot.slane %v14324_v42, 4 }
 0x169   :  { %v14389_v21 = vsel %vm13951_vm3, %v11716_v49, %v1780_v59  ;;  %v2257_v14 = vrot.slane %v2184_v57, 5  ;;  %v828_v49 = vld [vmem:[#allocation2 + $0x70] sm:$0xff]  ;;  %v691_v13 = vshll.u32 %v14347_v27, 16  ;;  %v685_v54 = vor.u32 %v683_v32, %v14324_v42 }
 0x16a   :  { %17377 = vst [vmem:[#allocation68_spill] sm:$0xff] %v14389_v21  ;;  %v1987_v17 = vrot.slane %v1985_v24, 5  ;;  %v14401_v56 = vsel %vm13975_vm4, %v1047_v61, %v1520_v36  ;;  %v832_v59 = vsel %vm13907_vm10, %v686_v37, %v831_v22  ;;  %v696_v24 = vshrl.u32 %v14284_v40, 16 }
 0x16b   :  { %17378 = vst [vmem:[#allocation69_spill] sm:$0xff] %v14401_v56  ;;  %v14405_v9 = vsel %vm13951_vm3, %v11731_v41, %v2257_v14  ;;  %833 = vst [vmem:[#allocation2 + $0x30] sm:$0x11] %v832_v59  ;;  %v690_v57 = vrot.slane %v688_v0, 7  ;;  %v699_v36 = vshll.u32 %v14284_v40, 16  ;;  %v363_v41 = vmax.f32 %v14363_v26, 0.0 }
 0x16c   :  { %17379 = vst [vmem:[#allocation70_spill] sm:$0xff] %v14405_v9  ;;  %v14411_v60 = vsel %vm13975_vm4, %v1047_v61, %v1987_v17  ;;  %v364_v14 = vmax.f32 %v316_v15, 0.0  ;;  %v331_v9 = vpop.f32.mrf.mxu0  ;;  %v14421_v27 = vsel %vm13911_vm13, %v685_v54, %v828_v49  ;;  %v834_v61 = vld [vmem:[#allocation2 + $0x90] sm:$0xff]  ;;  %v837_v17 = vld [vmem:[#allocation2 + $0x68] sm:$0x11]  ;;  %v698_v42 = vrot.slane %v696_v24, 7 }
 0x16d   :  { %17380 = vst [vmem:[#allocation71_spill] sm:$0xff] %v14411_v60  ;;  %v365_v32 = vmax.f32 %v318_v31, 0.0  ;;  %830 = vst [vmem:[#allocation2 + $0x70] sm:$0xff] %v14421_v27  ;;  %v1054_v37 = vshrl.u32 %v14421_v27, 16  ;;  %v1057_v40 = vshll.u32 %v14421_v27, 16  ;;  %v693_v0 = vor.u32 %v691_v13, %v690_v57  ;;  %v840_v15 = vld [vmem:[#allocation2 + $0x108] sm:$0xff] }
 0x16e   :  { %v694_v26 = vrot.slane %v690_v57, 4  ;;  %v843_v59 = vld [vmem:[#allocation2 + $0x40] sm:$0x11]  ;;  %v701_v60 = vor.u32 %v699_v36, %v698_v42  ;;  %v702_v29 = vrot.slane %v698_v42, 4  ;;  %v17381_v49 = vmax.f32 %v14271_v48, 0.0  ;;  %v335_v57 = vpop.f32.mrf.mxu0 }
 0x16f   :  { %v14431_v24 = vpack.c.bf16 %v365_v32, %v364_v14  ;;  %v1056_v31 = vrot.slane %v1054_v37, 4  ;;  %v1059_v22 = vrot.slane %v1057_v40, 5  ;;  %v14435_v21 = vsel %vm13911_vm13, %v693_v0, %v834_v61 }
 0x170   :  { %v14429_v54 = vpack.c.bf16 %v363_v41, %v17381_v49  ;;  %17382 = vst [vmem:[#allocation72_spill] sm:$0xff] %v14435_v21  ;;  %v838_v13 = vsel %vm13907_vm10, %v694_v26, %v837_v17  ;;  %836 = vst [vmem:[#allocation2 + $0x90] sm:$0xff] %v14435_v21  ;;  %v1537_v36 = vshrl.u32 %v14435_v21, 16  ;;  %v1540_v48 = vshll.u32 %v14435_v21, 16 }
 0x171   :  { %839 = vst [vmem:[#allocation2 + $0x68] sm:$0x11] %v838_v13  ;;  %v14444_v41 = vsel %vm13911_vm13, %v701_v60, %v840_v15  ;;  %v844_v14 = vsel %vm13907_vm10, %v702_v29, %v843_v59  ;;  %v1060_v61 = vor.u32 %v1059_v22, %v1056_v31  ;;  %v14454_v60 = vadd.f32 %v14335_v23, %v14096_v46  ;;  %v337_v13 = vpop.f32.mrf.mxu0 }
 0x172   :  { %842 = vst [vmem:[#allocation2 + $0x108] sm:$0xff] %v14444_v41  ;;  %845 = vst [vmem:[#allocation2 + $0x40] sm:$0x11] %v844_v14  ;;  %v1082_v17 = vshrl.u32 %v14444_v41, 16  ;;  %v1085_v42 = vshll.u32 %v14444_v41, 16  ;;  %v14458_v29 = vadd.f32 %v14341_v4, %v14093_v45  ;;  %v14462_v22 = vadd.f32 %v14371_v38, %v14096_v46 }
 0x173   :  { %v935_v37 = vld [vmem:[#allocation2 + $0x30] sm:$0x11]  ;;  %v1061_v26 = vrot.slane %v1060_v61, 4  ;;  %v1539_v25 = vrot.slane %v1537_v36, 4  ;;  %v14466_v23 = vadd.f32 %v14391_v63, %v14093_v45  ;;  %v14469_v4 = vadd.f32 %v331_v9, %v14096_v46 }
 0x174   :  { %v1226_v40 = vld [vmem:[#allocation2 + $0x30] sm:$0x11]  ;;  %v1063_v15 = vshll.u32 %v935_v37, 16  ;;  %v1225_v14 = vld [vmem:[#allocation2 + $0x70] sm:$0xee]  ;;  %v1542_v20 = vrot.slane %v1540_v48, 5  ;;  %v14472_v6 = vadd.f32 %v335_v57, %v14093_v45  ;;  %v14475_v36 = vadd.f32 %v337_v13, %v14096_v46 }
 0x175   :  { %v1419_v0 = vld [vmem:[#allocation2 + $0x30] sm:$0x11]  ;;  %v1308_v59 = vrot.slane %v1226_v40, 5  ;;  %v1706_v32 = vld [vmem:[#allocation2 + $0x70] sm:$0xee]  ;;  %v11702_v38 = vrot.slane %v1225_v14, 9 }
 0x176   :  { %v1532_v49 = vshll.u32 %v1419_v0, 16  ;;  %v1707_v31 = vld [vmem:[#allocation2 + $0x30] sm:$0x11]  ;;  %v1065_v10 = vrot.slane %v1063_v15, 5  ;;  %v11717_v61 = vrot.slane %v1706_v32, 9 }
 0x177   :  { %v1784_v56 = vrot.slane %v1707_v31, 5  ;;  %v1898_v37 = vld [vmem:[#allocation2 + $0x30] sm:$0x11]  ;;  %v2185_v0 = vld [vmem:[#allocation2 + $0x70] sm:$0xee]  ;;  %v14483_v9 = vsel %vm13951_vm3, %v11702_v38, %v1308_v59 }
 0x178   :  { %v1534_v44 = vrot.slane %v1532_v49, 5  ;;  %v1999_v40 = vshll.u32 %v1898_v37, 16  ;;  %v2186_v21 = vld [vmem:[#allocation2 + $0x30] sm:$0x11]  ;;  %v14479_v63 = vsel %vm13975_vm4, %v1061_v26, %v1065_v10  ;;  %17383 = vst [vmem:[#allocation73_spill] sm:$0xff] %v14483_v9  ;;  %v11732_v13 = vrot.slane %v2185_v0, 9 }
 0x179   :  { %v14491_v48 = vsel %vm13951_vm3, %v11717_v61, %v1784_v56  ;;  %v1421_v57 = vld [vmem:[#allocation2 + $0x68] sm:$0x11]  ;;  %v1708_v15 = vld [vmem:[#allocation2 + $0x90] sm:$0xee]  ;;  %v2261_v14 = vrot.slane %v2186_v21, 5  ;;  %v1543_v10 = vor.u32 %v1542_v20, %v1539_v25 }
 0x17a   :  { %v14487_v32 = vsel %vm13975_vm4, %v1061_v26, %v1534_v44  ;;  %17385 = vst [vmem:[#allocation75_spill] sm:$0xff] %v14491_v48  ;;  %v1709_v49 = vld [vmem:[#allocation2 + $0x68] sm:$0x11]  ;;  %v2001_v31 = vrot.slane %v1999_v40, 5  ;;  %v1546_v5 = vshll.u32 %v1421_v57, 16  ;;  %v11718_v50 = vrot.slane %v1708_v15, 9 }
 0x17b   :  { %17384 = vst [vmem:[#allocation74_spill] sm:$0xff] %v14487_v32  ;;  %v1900_v37 = vld [vmem:[#allocation2 + $0x68] sm:$0x11]  ;;  %v1788_v59 = vrot.slane %v1709_v49, 5  ;;  %v2187_v9 = vld [vmem:[#allocation2 + $0x90] sm:$0xee]  ;;  %v14499_v56 = vsel %vm13951_vm3, %v11732_v13, %v2261_v14 }
 0x17c   :  { %v2013_v38 = vshll.u32 %v1900_v37, 16  ;;  %v14495_v44 = vsel %vm13975_vm4, %v1061_v26, %v2001_v31  ;;  %17387 = vst [vmem:[#allocation77_spill] sm:$0xff] %v14499_v56  ;;  %v1544_v61 = vrot.slane %v1543_v10, 4  ;;  %v2188_v48 = vld [vmem:[#allocation2 + $0x68] sm:$0x11]  ;;  %v11733_v40 = vrot.slane %v2187_v9, 9 }
 0x17d   :  { %17386 = vst [vmem:[#allocation76_spill] sm:$0xff] %v14495_v44  ;;  %v939_v0 = vld [vmem:[#allocation2 + $0x40] sm:$0x11]  ;;  %v1548_v21 = vrot.slane %v1546_v5, 5  ;;  %v14503_v25 = vsel %vm13951_vm3, %v11718_v50, %v1788_v59  ;;  %v2265_v57 = vrot.slane %v2188_v48, 5  ;;  %v1084_v49 = vrot.slane %v1082_v17, 4 }
 0x17e   :  { %17388 = vst [vmem:[#allocation78_spill] sm:$0xff] %v14503_v25  ;;  %v2015_v20 = vrot.slane %v2013_v38, 5  ;;  %v1229_v15 = vld [vmem:[#allocation2 + $0x108] sm:$0xee]  ;;  %v1087_v37 = vrot.slane %v1085_v42, 5  ;;  %v1091_v26 = vshll.u32 %v939_v0, 16 }
 0x17f   :  { %v1230_v31 = vld [vmem:[#allocation2 + $0x40] sm:$0x11]  ;;  %v11704_v44 = vrot.slane %v1229_v15, 9  ;;  %v14507_v13 = vsel %vm13975_vm4, %v1544_v61, %v1548_v21  ;;  %v14515_v50 = vsel %vm13951_vm3, %v11733_v40, %v2265_v57  ;;  %v1710_v14 = vld [vmem:[#allocation2 + $0x108] sm:$0xee]  ;;  %v707_v15 = vshll.u32 %v14429_v54, 16 }
 0x180   :  { %17389 = vst [vmem:[#allocation79_spill] sm:$0xff] %v14507_v13  ;;  %v14511_v9 = vsel %vm13975_vm4, %v1544_v61, %v2015_v20  ;;  %17391 = vst [vmem:[#allocation81_spill] sm:$0xff] %v14515_v50  ;;  %v1316_v5 = vrot.slane %v1230_v31, 5  ;;  %v1423_v48 = vld [vmem:[#allocation2 + $0x40] sm:$0x11]  ;;  %v1088_v17 = vor.u32 %v1087_v37, %v1084_v49  ;;  %v1093_v42 = vrot.slane %v1091_v26, 5 }
 0x181   :  { %17390 = vst [vmem:[#allocation80_spill] sm:$0xff] %v14511_v9  ;;  %v1560_v10 = vshll.u32 %v1423_v48, 16  ;;  %v1711_v59 = vld [vmem:[#allocation2 + $0x40] sm:$0x11]  ;;  %v11719_v38 = vrot.slane %v1710_v14, 9  ;;  %v17393_v61 = vshrl.u32 %v14429_v54, 16 }
 0x182   :  { %v14519_v0 = vsel %vm13951_vm3, %v11704_v44, %v1316_v5  ;;  %v1792_v21 = vrot.slane %v1711_v59, 5  ;;  %v846_v40 = vld [vmem:[#allocation2 + $0xd8] sm:$0xff]  ;;  %v1089_v57 = vrot.slane %v1088_v17, 4  ;;  %v849_v50 = vld [vmem:[#allocation2 + $0x80] sm:$0x11]  ;;  %v712_v49 = vshrl.u32 %v14431_v24, 16 }
 0x183   :  { %17392 = vst [vmem:[#allocation82_spill] sm:$0xff] %v14519_v0  ;;  %v706_v20 = vrot.slane %v17393_v61, 7  ;;  %v1562_v31 = vrot.slane %v1560_v10, 5  ;;  %v715_v37 = vshll.u32 %v14431_v24, 16  ;;  %v367_v48 = vmax.f32 %v14454_v60, 0.0  ;;  %v864_v56 = vld [vmem:[#allocation2 + $0x100] sm:$0xff] }
 0x184   :  { %v14528_v26 = vsel %vm13951_vm3, %v11719_v38, %v1792_v21  ;;  %v14533_v14 = vsel %vm13975_vm4, %v1089_v57, %v1093_v42  ;;  %v714_v17 = vrot.slane %v712_v49, 7  ;;  %v368_v10 = vmax.f32 %v14458_v29, 0.0  ;;  %v852_v38 = vld [vmem:[#allocation2 + $0x8] sm:$0xff]  ;;  %v855_v60 = vld [vmem:[#allocation2 + $0x130] sm:$0x11] }
 0x185   :  { %17394 = vst [vmem:[#allocation83_spill] sm:$0xff] %v14528_v26  ;;  %v709_v44 = vor.u32 %v707_v15, %v706_v20  ;;  %v710_v5 = vrot.slane %v706_v20, 4  ;;  %v14537_v54 = vsel %vm13975_vm4, %v1089_v57, %v1562_v31  ;;  %v17396_v21 = vmax.f32 %v14381_v3, 0.0  ;;  %v873_v0 = vld [vmem:[#allocation2] sm:$0x11] }
 0x186   :  { %17395 = vst [vmem:[#allocation84_spill] sm:$0xff] %v14537_v54  ;;  %v369_v61 = vmax.f32 %v14462_v22, 0.0  ;;  %v717_v15 = vor.u32 %v715_v37, %v714_v17  ;;  %v339_v54 = vpop.f32.mrf.mxu0 }
 0x187   :  { %v14542_v24 = vsel %vm13911_vm13, %v709_v44, %v846_v40  ;;  %v850_v59 = vsel %vm13907_vm10, %v710_v5, %v849_v50  ;;  %v12685_v42 = vpack.c.bf16 %v367_v48, %v17396_v21  ;;  %v718_v40 = vrot.slane %v714_v17, 4  ;;  %v861_v21 = vld [vmem:[#allocation2 + $0x10] sm:$0x11] }
 0x188   :  { %848 = vst [vmem:[#allocation2 + $0xd8] sm:$0xff] %v14542_v24  ;;  %851 = vst [vmem:[#allocation2 + $0x80] sm:$0x11] %v850_v59  ;;  %v1096_v20 = vshrl.u32 %v14542_v24, 16  ;;  %v1099_v29 = vshll.u32 %v14542_v24, 16  ;;  %v12686_v49 = vpack.c.bf16 %v369_v61, %v368_v10  ;;  %v370_v50 = vmax.f32 %v14466_v23, 0.0 }
 0x189   :  { %v720_v57 = vshrl.u32 %v12685_v42, 16  ;;  %v723_v31 = vshll.u32 %v12685_v42, 16  ;;  %v14555_v3 = vsel %vm13911_vm13, %v717_v15, %v852_v38  ;;  %v856_v22 = vsel %vm13907_vm10, %v718_v40, %v855_v60  ;;  %v858_v23 = vld [vmem:[#allocation2 + $0xe0] sm:$0xff] }
 0x18a   :  { %v1098_v44 = vrot.slane %v1096_v20, 4  ;;  %v1101_v5 = vrot.slane %v1099_v29, 5  ;;  %854 = vst [vmem:[#allocation2 + $0x8] sm:$0xff] %v14555_v3  ;;  %857 = vst [vmem:[#allocation2 + $0x130] sm:$0x11] %v856_v22  ;;  %v1110_v37 = vshrl.u32 %v14555_v3, 16 }
 0x18b   :  { %v1113_v48 = vshll.u32 %v14555_v3, 16  ;;  %v722_v17 = vrot.slane %v720_v57, 7  ;;  %v728_v10 = vshrl.u32 %v12686_v49, 16  ;;  %v731_v42 = vshll.u32 %v12686_v49, 16 }
 0x18c   :  { %v1102_v59 = vor.u32 %v1101_v5, %v1098_v44  ;;  %v371_v61 = vmax.f32 %v14469_v4, 0.0  ;;  %v372_v38 = vmax.f32 %v14472_v6, 0.0  ;;  %v1112_v20 = vrot.slane %v1110_v37, 4 }
 0x18d   :  { %v1115_v29 = vrot.slane %v1113_v48, 5  ;;  %v725_v60 = vor.u32 %v723_v31, %v722_v17  ;;  %v726_v15 = vrot.slane %v722_v17, 4  ;;  %v14564_v22 = vrot.slane %v728_v10, 7 }
 0x18e   :  { %v1103_v40 = vrot.slane %v1102_v59, 4  ;;  %v14566_v9 = vpack.c.bf16 %v371_v61, %v370_v50  ;;  %v373_v57 = vmax.f32 %v14475_v36, 0.0 }
 0x18f   :  { %v941_v44 = vld [vmem:[#allocation2 + $0x80] sm:$0x11]  ;;  %v1231_v5 = vld [vmem:[#allocation2 + $0xd8] sm:$0xee]  ;;  %v1116_v49 = vor.u32 %v1115_v29, %v1112_v20  ;;  %v14571_v4 = vsel %vm13911_vm13, %v725_v60, %v858_v23  ;;  %v862_v6 = vsel %vm13907_vm10, %v726_v15, %v861_v21  ;;  %v733_v23 = vor.u32 %v731_v42, %v14564_v22 }
 0x190   :  { %v1232_v26 = vld [vmem:[#allocation2 + $0x80] sm:$0x11]  ;;  %v1105_v31 = vshll.u32 %v941_v44, 16  ;;  %v11705_v37 = vrot.slane %v1231_v5, 9  ;;  %860 = vst [vmem:[#allocation2 + $0xe0] sm:$0xff] %v14571_v4  ;;  %v1124_v36 = vshrl.u32 %v14571_v4, 16  ;;  %v14580_v20 = vpack.c.bf16 %v373_v57, %v372_v38 }
 0x191   :  { %v1320_v48 = vrot.slane %v1232_v26, 5  ;;  %v1425_v17 = vld [vmem:[#allocation2 + $0x80] sm:$0x11]  ;;  %863 = vst [vmem:[#allocation2 + $0x10] sm:$0x11] %v862_v6  ;;  %v14577_v61 = vrot.slane %v1116_v49, 4  ;;  %v14588_v49 = vsel %vm13911_vm13, %v733_v23, %v864_v56 }
 0x192   :  { %v1574_v50 = vshll.u32 %v1425_v17, 16  ;;  %v1712_v10 = vld [vmem:[#allocation2 + $0xd8] sm:$0xee]  ;;  %v1713_v59 = vld [vmem:[#allocation2 + $0x80] sm:$0x11]  ;;  %v1107_v29 = vrot.slane %v1105_v31, 5 }
 0x193   :  { %v14584_v21 = vsel %vm13951_vm3, %v11705_v37, %v1320_v48  ;;  %v11720_v26 = vrot.slane %v1712_v10, 9  ;;  %v1796_v60 = vrot.slane %v1713_v59, 5  ;;  %v1904_v15 = vld [vmem:[#allocation2 + $0x80] sm:$0x11]  ;;  %v2191_v6 = vld [vmem:[#allocation2 + $0xd8] sm:$0xee] }
 0x194   :  { %17397 = vst [vmem:[#allocation85_spill] sm:$0xff] %v14584_v21  ;;  %v1576_v44 = vrot.slane %v1574_v50, 5  ;;  %v2041_v5 = vshll.u32 %v1904_v15, 16  ;;  %v2192_v17 = vld [vmem:[#allocation2 + $0x80] sm:$0x11]  ;;  %v14592_v42 = vsel %vm13975_vm4, %v1103_v40, %v1107_v29  ;;  %v11735_v57 = vrot.slane %v2191_v6, 9 }
 0x195   :  { %v14596_v38 = vsel %vm13951_vm3, %v11720_v26, %v1796_v60  ;;  %v2273_v31 = vrot.slane %v2192_v17, 5  ;;  %v943_v37 = vld [vmem:[#allocation2 + $0x130] sm:$0x11]  ;;  %v1233_v48 = vld [vmem:[#allocation2 + $0x8] sm:$0xee]  ;;  %866 = vst [vmem:[#allocation2 + $0x100] sm:$0xff] %v14588_v49 }
 0x196   :  { %17398 = vst [vmem:[#allocation86_spill] sm:$0xff] %v14596_v38  ;;  %v14601_v50 = vsel %vm13975_vm4, %v1103_v40, %v1576_v44  ;;  %v2043_v56 = vrot.slane %v2041_v5, 5  ;;  %v1119_v10 = vshll.u32 %v943_v37, 16  ;;  %v1234_v59 = vld [vmem:[#allocation2 + $0x130] sm:$0x11]  ;;  %v11706_v23 = vrot.slane %v1233_v48, 9  ;;  %v341_v5 = vpop.f32.mrf.mxu0 }
 0x197   :  { %17399 = vst [vmem:[#allocation87_spill] sm:$0xff] %v14601_v50  ;;  %v14605_v29 = vsel %vm13951_vm3, %v11735_v57, %v2273_v31  ;;  %v1324_v26 = vrot.slane %v1234_v59, 5  ;;  %v1427_v60 = vld [vmem:[#allocation2 + $0x130] sm:$0x11]  ;;  %v1714_v15 = vld [vmem:[#allocation2 + $0x8] sm:$0xee] }
 0x198   :  { %17400 = vst [vmem:[#allocation88_spill] sm:$0xff] %v14605_v29  ;;  %v1126_v6 = vrot.slane %v1124_v36, 4  ;;  %v14609_v17 = vsel %vm13975_vm4, %v1103_v40, %v2043_v56  ;;  %v1121_v38 = vrot.slane %v1119_v10, 5  ;;  %v1588_v25 = vshll.u32 %v1427_v60, 16  ;;  %v1715_v44 = vld [vmem:[#allocation2 + $0x130] sm:$0x11] }
 0x199   :  { %17401 = vst [vmem:[#allocation89_spill] sm:$0xff] %v14609_v17  ;;  %v11721_v50 = vrot.slane %v1714_v15, 9  ;;  %v14613_v37 = vsel %vm13951_vm3, %v11706_v23, %v1324_v26  ;;  %v1800_v48 = vrot.slane %v1715_v44, 5  ;;  %v1906_v57 = vld [vmem:[#allocation2 + $0x130] sm:$0x11]  ;;  %v1127_v59 = vshll.u32 %v14571_v4, 16 }
 0x19a   :  { %17402 = vst [vmem:[#allocation90_spill] sm:$0xff] %v14613_v37  ;;  %v2193_v31 = vld [vmem:[#allocation2 + $0x8] sm:$0xee]  ;;  %v14617_v36 = vadd.f32 %v339_v54, %v14093_v45  ;;  %v14622_v40 = vsel %vm13975_vm4, %v14577_v61, %v1121_v38  ;;  %v1590_v56 = vrot.slane %v1588_v25, 5  ;;  %v2055_v10 = vshll.u32 %v1906_v57, 16 }
 0x19b   :  { %v2194_v60 = vld [vmem:[#allocation2 + $0x130] sm:$0x11]  ;;  %v11736_v15 = vrot.slane %v2193_v31, 9  ;;  %v867_v29 = vld [vmem:[#allocation2 + $0x98] sm:$0x11]  ;;  %v14626_v23 = vsel %vm13951_vm3, %v11721_v50, %v1800_v48  ;;  %v1129_v17 = vrot.slane %v1127_v59, 5  ;;  %v342_v45 = vadd.f32 %v341_v5, %v14096_v46 }
 0x19c   :  { %17403 = vst [vmem:[#allocation91_spill] sm:$0xff] %v14626_v23  ;;  %v2277_v26 = vrot.slane %v2194_v60, 5  ;;  %v945_v44 = vld [vmem:[#allocation2 + $0x10] sm:$0x11]  ;;  %v1235_v32 = vld [vmem:[#allocation2 + $0xe0] sm:$0xee]  ;;  %v14632_v54 = vsel %vm13975_vm4, %v14577_v61, %v1590_v56 }
 0x19d   :  { %17404 = vst [vmem:[#allocation92_spill] sm:$0xff] %v14632_v54  ;;  %v2057_v25 = vrot.slane %v2055_v10, 5  ;;  %v1133_v38 = vshll.u32 %v945_v44, 16  ;;  %v1236_v57 = vld [vmem:[#allocation2 + $0x10] sm:$0x11]  ;;  %v11707_v31 = vrot.slane %v1235_v32, 9  ;;  %v1130_v50 = vor.u32 %v1129_v17, %v1126_v6 }
 0x19e   :  { %v14636_v13 = vsel %vm13951_vm3, %v11736_v15, %v2277_v26  ;;  %v1328_v48 = vrot.slane %v1236_v57, 5  ;;  %v1429_v60 = vld [vmem:[#allocation2 + $0x10] sm:$0x11]  ;;  %v1716_v59 = vld [vmem:[#allocation2 + $0xe0] sm:$0xee]  ;;  %v734_v23 = vrot.slane %v14564_v22, 4 }
 0x19f   :  { %17405 = vst [vmem:[#allocation93_spill] sm:$0xff] %v14636_v13  ;;  %v14642_v46 = vsel %vm13975_vm4, %v14577_v61, %v2057_v25  ;;  %v1135_v5 = vrot.slane %v1133_v38, 5  ;;  %v1602_v56 = vshll.u32 %v1429_v60, 16  ;;  %v1717_v10 = vld [vmem:[#allocation2 + $0x10] sm:$0x11]  ;;  %v11722_v44 = vrot.slane %v1716_v59, 9 }
 0x1a0   :  { %17406 = vst [vmem:[#allocation94_spill] sm:$0xff] %v14642_v46  ;;  %v1131_v32 = vrot.slane %v1130_v50, 4  ;;  %v14646_v15 = vsel %vm13951_vm3, %v11707_v31, %v1328_v48  ;;  %v1804_v6 = vrot.slane %v1717_v10, 5  ;;  %v1908_v17 = vld [vmem:[#allocation2 + $0x10] sm:$0x11]  ;;  %v868_v22 = vsel %vm13907_vm10, %v734_v23, %v867_v29 }
 0x1a1   :  { %17407 = vst [vmem:[#allocation95_spill] sm:$0xff] %v14646_v15  ;;  %v2195_v26 = vld [vmem:[#allocation2 + $0xe0] sm:$0xee]  ;;  %v1604_v57 = vrot.slane %v1602_v56, 5  ;;  %v2069_v13 = vshll.u32 %v1908_v17, 16  ;;  %v1138_v25 = vshrl.u32 %v14588_v49, 16 }
 0x1a2   :  { %v2196_v54 = vld [vmem:[#allocation2 + $0x10] sm:$0x11]  ;;  %v11737_v61 = vrot.slane %v2195_v26, 9  ;;  %869 = vst [vmem:[#allocation2 + $0x98] sm:$0x11] %v868_v22  ;;  %v14653_v38 = vsel %vm13975_vm4, %v1131_v32, %v1135_v5  ;;  %v14657_v31 = vsel %vm13951_vm3, %v11722_v44, %v1804_v6  ;;  %v1141_v48 = vshll.u32 %v14588_v49, 16 }
 0x1a3   :  { %17408 = vst [vmem:[#allocation96_spill] sm:$0xff] %v14657_v31  ;;  %v2281_v50 = vrot.slane %v2196_v54, 5  ;;  %v1237_v60 = vld [vmem:[#allocation2 + $0x100] sm:$0xee]  ;;  %v14662_v29 = vsel %vm13975_vm4, %v1131_v32, %v1604_v57  ;;  %v2071_v23 = vrot.slane %v2069_v13, 5  ;;  %v1140_v59 = vrot.slane %v1138_v25, 4 }
 0x1a4   :  { %17409 = vst [vmem:[#allocation97_spill] sm:$0xff] %v14662_v29  ;;  %v1718_v56 = vld [vmem:[#allocation2 + $0x100] sm:$0xee]  ;;  %v1143_v5 = vrot.slane %v1141_v48, 5  ;;  %v11708_v54 = vrot.slane %v1237_v60, 9  ;;  %v736_v6 = vshrl.u32 %v14566_v9, 16 }
 0x1a5   :  { %v14666_v10 = vsel %vm13951_vm3, %v11737_v61, %v2281_v50  ;;  %v2197_v17 = vld [vmem:[#allocation2 + $0x100] sm:$0xee]  ;;  %v14670_v44 = vsel %vm13975_vm4, %v1131_v32, %v2071_v23  ;;  %v744_v26 = vshrl.u32 %v14580_v20, 16  ;;  %v11723_v57 = vrot.slane %v1718_v56, 9  ;;  %v870_v50 = vld [vmem:[#allocation2 + $0xd0] sm:$0xff] }
 0x1a6   :  { %17410 = vst [vmem:[#allocation98_spill] sm:$0xff] %v14666_v10  ;;  %17411 = vst [vmem:[#allocation99_spill] sm:$0xff] %v14670_v44  ;;  %v1144_v22 = vor.u32 %v1143_v5, %v1140_v59  ;;  %v374_v13 = vmax.f32 %v14617_v36, 0.0  ;;  %v375_v25 = vmax.f32 %v342_v45, 0.0  ;;  %v11738_v46 = vrot.slane %v2197_v17, 9 }
 0x1a7   :  { %v738_v31 = vrot.slane %v736_v6, 7  ;;  %v739_v61 = vshll.u32 %v14566_v9, 16  ;;  %v746_v48 = vrot.slane %v744_v26, 7  ;;  %v747_v60 = vshll.u32 %v14580_v20, 16 }
 0x1a8   :  { %v1145_v29 = vrot.slane %v1144_v22, 4  ;;  %v12689_v23 = vpack.c.bf16 %v375_v25, %v374_v13  ;;  %v876_v25 = vld [vmem:[#allocation2 + $0x58] sm:$0xff] }
 0x1a9   :  { %v947_v10 = vld [vmem:[#allocation2 + $0x98] sm:$0x11]  ;;  %v741_v56 = vor.u32 %v739_v61, %v738_v31  ;;  %v749_v6 = vor.u32 %v747_v60, %v746_v48  ;;  %v742_v13 = vrot.slane %v738_v31, 4  ;;  %v879_v61 = vld [vmem:[#allocation2 + $0x120] sm:$0x11] }
 0x1aa   :  { %v1238_v32 = vld [vmem:[#allocation2 + $0x98] sm:$0x11]  ;;  %v1147_v44 = vshll.u32 %v947_v10, 16 }
 0x1ab   :  { %v1332_v15 = vrot.slane %v1238_v32, 5  ;;  %v1431_v21 = vld [vmem:[#allocation2 + $0x98] sm:$0x11]  ;;  %v750_v32 = vrot.slane %v746_v48, 4 }
 0x1ac   :  { %v1719_v59 = vld [vmem:[#allocation2 + $0x98] sm:$0x11]  ;;  %v1616_v5 = vshll.u32 %v1431_v21, 16  ;;  %v1149_v37 = vrot.slane %v1147_v44, 5  ;;  %v14687_v21 = vsel %vm13911_vm13, %v741_v56, %v870_v50  ;;  %v874_v50 = vsel %vm13907_vm10, %v742_v13, %v873_v0 }
 0x1ad   :  { %v1808_v36 = vrot.slane %v1719_v59, 5  ;;  %v1910_v45 = vld [vmem:[#allocation2 + $0x98] sm:$0x11]  ;;  %v14679_v9 = vsel %vm13951_vm3, %v11708_v54, %v1332_v15  ;;  %872 = vst [vmem:[#allocation2 + $0xd0] sm:$0xff] %v14687_v21  ;;  %875 = vst [vmem:[#allocation2] sm:$0x11] %v874_v50  ;;  %v14712_v59 = vsel %vm13911_vm13, %v749_v6, %v876_v25  ;;  %v880_v0 = vsel %vm13907_vm10, %v750_v32, %v879_v61 }
 0x1ae   :  { %v2198_v17 = vld [vmem:[#allocation2 + $0x98] sm:$0x11]  ;;  %17412 = vst [vmem:[#allocation100_spill] sm:$0xff] %v14679_v9  ;;  %v2083_v26 = vshll.u32 %v1910_v45, 16  ;;  %v1618_v20 = vrot.slane %v1616_v5, 5  ;;  %v14691_v44 = vsel %vm13975_vm4, %v1145_v29, %v1149_v37  ;;  %v1155_v37 = vshll.u32 %v14687_v21, 16 }
 0x1af   :  { %v2285_v22 = vrot.slane %v2198_v17, 5  ;;  %v14683_v10 = vsel %vm13951_vm3, %v11723_v57, %v1808_v36  ;;  %v1152_v57 = vshrl.u32 %v14687_v21, 16  ;;  %v752_v56 = vshrl.u32 %v12689_v23, 16  ;;  %878 = vst [vmem:[#allocation2 + $0x58] sm:$0xff] %v14712_v59  ;;  %881 = vst [vmem:[#allocation2 + $0x120] sm:$0x11] %v880_v0 }
 0x1b0   :  { %17413 = vst [vmem:[#allocation101_spill] sm:$0xff] %v14683_v10  ;;  %v2085_v15 = vrot.slane %v2083_v26, 5  ;;  %v14701_v31 = vsel %vm13975_vm4, %v1145_v29, %v1618_v20  ;;  %v1157_v5 = vrot.slane %v1155_v37, 5  ;;  %v1166_v36 = vshrl.u32 %v14712_v59, 16  ;;  %v882_v20 = vld [vmem:[#allocation2 + $0xc0] sm:$0xff] }
 0x1b1   :  { %v14695_v54 = vsel %vm13951_vm3, %v11738_v46, %v2285_v22  ;;  %17415 = vst [vmem:[#allocation103_spill] sm:$0xff] %v14701_v31  ;;  %v1154_v46 = vrot.slane %v1152_v57, 4  ;;  %v1169_v48 = vshll.u32 %v14712_v59, 16  ;;  %v755_v45 = vshll.u32 %v12689_v23, 16  ;;  %v885_v6 = vld [vmem:[#allocation2 + $0x50] sm:$0x11] }
 0x1b2   :  { %17414 = vst [vmem:[#allocation102_spill] sm:$0xff] %v14695_v54  ;;  %v14708_v60 = vsel %vm13975_vm4, %v1145_v29, %v2085_v15  ;;  %v754_v29 = vrot.slane %v752_v56, 7  ;;  %v1168_v26 = vrot.slane %v1166_v36, 4 }
 0x1b3   :  { %17416 = vst [vmem:[#allocation104_spill] sm:$0xff] %v14708_v60  ;;  %v1158_v17 = vor.u32 %v1157_v5, %v1154_v46  ;;  %v1171_v22 = vrot.slane %v1169_v48, 5 }
 0x1b4   :  { %v757_v13 = vor.u32 %v755_v45, %v754_v29  ;;  %v758_v25 = vrot.slane %v754_v29, 4  ;;  %v1239_v57 = vld [vmem:[#allocation2 + $0xd0] sm:$0xee]  ;;  %v949_v46 = vld [vmem:[#allocation2] sm:$0x11] }
 0x1b5   :  { %v1159_v15 = vrot.slane %v1158_v17, 4  ;;  %v1720_v50 = vld [vmem:[#allocation2 + $0xd0] sm:$0xee]  ;;  %v1172_v37 = vor.u32 %v1171_v22, %v1168_v26  ;;  %v11709_v54 = vrot.slane %v1239_v57, 9  ;;  %v1240_v56 = vld [vmem:[#allocation2] sm:$0x11] }
 0x1b6   :  { %v11724_v61 = vrot.slane %v1720_v50, 9  ;;  %v2199_v32 = vld [vmem:[#allocation2 + $0xd0] sm:$0xee]  ;;  %v14721_v60 = vsel %vm13911_vm13, %v757_v13, %v882_v20  ;;  %v886_v23 = vsel %vm13907_vm10, %v758_v25, %v885_v6  ;;  %v1433_v5 = vld [vmem:[#allocation2] sm:$0x11]  ;;  %v1161_v0 = vshll.u32 %v949_v46, 16 }
 0x1b7   :  { %17417 = vst [vmem:[#allocation105_spill] sm:$0xff] %v14721_v60  ;;  %884 = vst [vmem:[#allocation2 + $0xc0] sm:$0xff] %v14721_v60  ;;  %v1336_v36 = vrot.slane %v1240_v56, 5  ;;  %v1630_v48 = vshll.u32 %v1433_v5, 16  ;;  %v1721_v29 = vld [vmem:[#allocation2] sm:$0x11] }
 0x1b8   :  { %887 = vst [vmem:[#allocation2 + $0x50] sm:$0x11] %v886_v23  ;;  %v11739_v45 = vrot.slane %v2199_v32, 9  ;;  %v1812_v17 = vrot.slane %v1721_v29, 5  ;;  %v1912_v26 = vld [vmem:[#allocation2] sm:$0x11] }
 0x1b9   :  { %v2200_v22 = vld [vmem:[#allocation2] sm:$0x11]  ;;  %v1173_v57 = vrot.slane %v1172_v37, 4  ;;  %v1163_v20 = vrot.slane %v1161_v0, 5  ;;  %v14728_v13 = vsel %vm13951_vm3, %v11709_v54, %v1336_v36  ;;  %v1632_v6 = vrot.slane %v1630_v48, 5 }
 0x1ba   :  { %17418 = vst [vmem:[#allocation106_spill] sm:$0xff] %v14728_v13  ;;  %v2097_v25 = vshll.u32 %v1912_v26, 16  ;;  %v951_v50 = vld [vmem:[#allocation2 + $0x120] sm:$0x11]  ;;  %v14732_v23 = vsel %vm13951_vm3, %v11724_v61, %v1812_v17  ;;  %v2289_v46 = vrot.slane %v2200_v22, 5 }
 0x1bb   :  { %17419 = vst [vmem:[#allocation107_spill] sm:$0xff] %v14732_v23  ;;  %v1175_v56 = vshll.u32 %v951_v50, 16  ;;  %v1241_v5 = vld [vmem:[#allocation2 + $0x58] sm:$0xee]  ;;  %v1242_v32 = vld [vmem:[#allocation2 + $0x120] sm:$0x11]  ;;  %v14736_v29 = vsel %vm13975_vm4, %v1159_v15, %v1163_v20  ;;  %v14740_v37 = vsel %vm13975_vm4, %v1159_v15, %v1632_v6 }
 0x1bc   :  { %17420 = vst [vmem:[#allocation108_spill] sm:$0xff] %v14740_v37  ;;  %v2099_v54 = vrot.slane %v2097_v25, 5  ;;  %v11710_v0 = vrot.slane %v1241_v5, 9  ;;  %v1435_v36 = vld [vmem:[#allocation2 + $0x120] sm:$0x11]  ;;  %v14744_v61 = vsel %vm13951_vm3, %v11739_v45, %v2289_v46  ;;  %v1340_v26 = vrot.slane %v1242_v32, 5 }
 0x1bd   :  { %v1722_v48 = vld [vmem:[#allocation2 + $0x58] sm:$0xee]  ;;  %17421 = vst [vmem:[#allocation109_spill] sm:$0xff] %v14744_v61  ;;  %v1177_v17 = vrot.slane %v1175_v56, 5  ;;  %v1644_v22 = vshll.u32 %v1435_v36, 16 }
 0x1be   :  { %v1723_v50 = vld [vmem:[#allocation2 + $0x120] sm:$0x11]  ;;  %v14748_v20 = vsel %vm13975_vm4, %v1159_v15, %v2099_v54  ;;  %v11725_v1 = vrot.slane %v1722_v48, 9  ;;  %v2201_v10 = vld [vmem:[#allocation2 + $0x58] sm:$0xee]  ;;  %v14756_v45 = vsel %vm13951_vm3, %v11710_v0, %v1340_v26  ;;  %v1649_v48 = vshrl.u32 %v14721_v60, 16 }
 0x1bf   :  { %17422 = vst [vmem:[#allocation110_spill] sm:$0xff] %v14748_v20  ;;  %v1816_v2 = vrot.slane %v1723_v50, 5  ;;  %v1914_v6 = vld [vmem:[#allocation2 + $0x120] sm:$0x11]  ;;  %v14752_v25 = vsel %vm13975_vm4, %v1173_v57, %v1177_v17  ;;  %17423 = vst [vmem:[#allocation111_spill] sm:$0xff] %v14756_v45  ;;  %v1646_v46 = vrot.slane %v1644_v22, 5 }
 0x1c0   :  { %v2111_v56 = vshll.u32 %v1914_v6, 16  ;;  %v2202_v5 = vld [vmem:[#allocation2 + $0x120] sm:$0x11]  ;;  %v1437_v32 = vld [vmem:[#allocation2 + $0x50] sm:$0x11]  ;;  %v11740_v54 = vrot.slane %v2201_v10, 9 }
 0x1c1   :  { %v14760_v15 = vsel %vm13951_vm3, %v11725_v1, %v1816_v2  ;;  %v2293_v36 = vrot.slane %v2202_v5, 5  ;;  %v1724_v50 = vld [vmem:[#allocation2 + $0xc0] sm:$0xee]  ;;  %v14765_v17 = vsel %vm13975_vm4, %v1173_v57, %v1646_v46  ;;  %v1652_v0 = vshll.u32 %v14721_v60, 16  ;;  %v1725_v22 = vld [vmem:[#allocation2 + $0x50] sm:$0x11] }
 0x1c2   :  { %17424 = vst [vmem:[#allocation112_spill] sm:$0xff] %v14760_v15  ;;  %17425 = vst [vmem:[#allocation113_spill] sm:$0xff] %v14765_v17  ;;  %v2113_v61 = vrot.slane %v2111_v56, 5  ;;  %v1658_v26 = vshll.u32 %v1437_v32, 16  ;;  %v1651_v1 = vrot.slane %v1649_v48, 4  ;;  %v11726_v2 = vrot.slane %v1724_v50, 9 }
 0x1c3   :  { %v14770_v6 = vsel %vm13951_vm3, %v11740_v54, %v2293_v36  ;;  %v1820_v10 = vrot.slane %v1725_v22, 5  ;;  %v1916_v5 = vld [vmem:[#allocation2 + $0x50] sm:$0x11]  ;;  %v1654_v15 = vrot.slane %v1652_v0, 5  ;;  %v2203_v17 = vld [vmem:[#allocation2 + $0xc0] sm:$0xee] }
 0x1c4   :  { %17426 = vst [vmem:[#allocation114_spill] sm:$0xff] %v14770_v6  ;;  %v14774_v20 = vsel %vm13975_vm4, %v1173_v57, %v2113_v61  ;;  %v2125_v46 = vshll.u32 %v1916_v5, 16  ;;  %v2204_v32 = vld [vmem:[#allocation2 + $0x50] sm:$0x11]  ;;  %v11741_v23 = vrot.slane %v2203_v17, 9  ;;  %v1660_v54 = vrot.slane %v1658_v26, 5 }
 0x1c5   :  { %17427 = vst [vmem:[#allocation115_spill] sm:$0xff] %v14774_v20  ;;  %v14778_v56 = vsel %vm13951_vm3, %v11726_v2, %v1820_v10  ;;  %v1655_v31 = vor.u32 %v1654_v15, %v1651_v1  ;;  %v2297_v48 = vrot.slane %v2204_v32, 5 }
 0x1c6   :  { %17428 = vst [vmem:[#allocation116_spill] sm:$0xff] %v14778_v56  ;;  %v2127_v36 = vrot.slane %v2125_v46, 5 }
 0x1c7   :  { %v1656_v50 = vrot.slane %v1655_v31, 4  ;;  %v14782_v22 = vsel %vm13951_vm3, %v11741_v23, %v2297_v48 }
 0x1c8   :  { %17429 = vst [vmem:[#allocation117_spill] sm:$0xff] %v14782_v22 }
 0x1c9   :  { %v14786_v57 = vsel %vm13975_vm4, %v1656_v50, %v1660_v54  ;;  %v14790_v61 = vsel %vm13975_vm4, %v1656_v50, %v2127_v36 }
 0x1ca   :  { %17430 = vst [vmem:[#allocation118_spill] sm:$0xff] %v14786_v57  ;;  %17431 = vst [vmem:[#allocation119_spill] sm:$0xff] %v14790_v61 }
 0x1cb   :  { %13816 = dma.done.wait [#allocation6], 36864 }
 0x1cc   :  { %13817 = vsyncadd [#allocation6], 4294930432  ;;  %v11744_v15 = vcombine.high %v13937_v28, %v14115_v35  ;;  %v11746_v31 = vcombine.high %v13981_v11, %v14162_v8  ;;  %v14796_v23 = vld [vmem:[#allocation2 + $0x110] sm:$0xff]  ;;  %v14798_v17 = vld [vmem:[#allocation2 + $0xa0] sm:$0xff] }
 0x1cd   :  { %17432 = vst [vmem:[#allocation120_spill] sm:$0xff] %v14796_v23  ;;  %17433 = vst [vmem:[#allocation121_spill] sm:$0xff] %v14798_v17  ;;  %v6393_v0 = vld [vmem:[#allocation2 + $0x38] sm:$0x11]  ;;  %v6409_v26 = vld [vmem:[#allocation2 + $0x20] sm:$0x11] }
 0x1ce   :  { %4975 = vmatprep.mubr.bf16.mxu1 %v11744_v15  ;;  %5088 = vmatprep.mubr.bf16.mxu0 %v11746_v31  ;;  %v6425_v1 = vshrl.u32 %v14796_v23, 16  ;;  %v6428_v2 = vshll.u32 %v14796_v23, 16  ;;  %v6434_v10 = vshll.u32 %v6393_v0, 16  ;;  %v6537_v5 = vshrl.u32 %v14798_v17, 16  ;;  %v6680_v54 = vld [vmem:[#allocation2 + $0x110] sm:$0xee] }
 0x1cf   :  { %v6540_v46 = vshll.u32 %v14798_v17, 16  ;;  %v6546_v32 = vshll.u32 %v6409_v26, 16  ;;  %v6681_v36 = vld [vmem:[#allocation2 + $0x38] sm:$0x11]  ;;  %v6696_v22 = vld [vmem:[#allocation2 + $0xa0] sm:$0xee] }
 0x1d0   :  { %v6427_v48 = vrot.slane %v6425_v1, 4  ;;  %v6430_v50 = vrot.slane %v6428_v2, 5  ;;  %v6436_v15 = vrot.slane %v6434_v10, 5  ;;  %v6539_v31 = vrot.slane %v6537_v5, 4  ;;  %v6697_v20 = vld [vmem:[#allocation2 + $0x20] sm:$0x11] }
 0x1d1   :  { %v6542_v6 = vrot.slane %v6540_v46, 5  ;;  %v6548_v61 = vrot.slane %v6546_v32, 5  ;;  %v12191_v56 = vrot.slane %v6680_v54, 9  ;;  %v6746_v57 = vrot.slane %v6681_v36, 5  ;;  %v14804_v60 = vld [vmem:[#allocation2 + $0xf8] sm:$0xff]  ;;  %v14806_v13 = vld [vmem:[#allocation2 + $0x88] sm:$0xff] }
 0x1d2   :  { %v6431_v37 = vor.u32 %v6430_v50, %v6427_v48  ;;  %v12199_v23 = vrot.slane %v6696_v22, 9  ;;  %v6778_v0 = vrot.slane %v6697_v20, 5  ;;  %17434 = vst [vmem:[#allocation122_spill] sm:$0xff] %v14804_v60  ;;  %17435 = vst [vmem:[#allocation123_spill] sm:$0xff] %v14806_v13  ;;  %v7367_v26 = vld [vmem:[#allocation2 + $0x138] sm:$0x11] }
 0x1d3   :  { %v6543_v17 = vor.u32 %v6542_v6, %v6539_v31  ;;  %v14810_v1 = vsel %vm13951_vm3, %v12191_v56, %v6746_v57  ;;  %v7383_v2 = vld [vmem:[#allocation2 + $0xb8] sm:$0x11]  ;;  %v7483_v10 = vshrl.u32 %v14804_v60, 16  ;;  %v7486_v5 = vshll.u32 %v14804_v60, 16  ;;  %v7654_v46 = vld [vmem:[#allocation2 + $0xf8] sm:$0xee] }
 0x1d4   :  { %17436 = vst [vmem:[#allocation124_spill] sm:$0xff] %v14810_v1  ;;  %v6432_v32 = vrot.slane %v6431_v37, 4  ;;  %v14816_v20 = vsel %vm13951_vm3, %v12199_v23, %v6778_v0  ;;  %v7492_v22 = vshll.u32 %v7367_v26, 16  ;;  %v7595_v54 = vshrl.u32 %v14806_v13, 16  ;;  %v7655_v36 = vld [vmem:[#allocation2 + $0x138] sm:$0x11] }
 0x1d5   :  { %17437 = vst [vmem:[#allocation125_spill] sm:$0xff] %v14816_v20  ;;  %v6544_v6 = vrot.slane %v6543_v17, 4  ;;  %v7485_v48 = vrot.slane %v7483_v10, 4  ;;  %v7488_v50 = vrot.slane %v7486_v5, 5  ;;  %v7598_v56 = vshll.u32 %v14806_v13, 16 }
 0x1d6   :  { %v7670_v57 = vld [vmem:[#allocation2 + $0x88] sm:$0xee]  ;;  %v14822_v31 = vsel %vm13975_vm4, %v6432_v32, %v6436_v15  ;;  %v7494_v60 = vrot.slane %v7492_v22, 5  ;;  %v7597_v37 = vrot.slane %v7595_v54, 4  ;;  %v7604_v1 = vshll.u32 %v7383_v2, 16 }
 0x1d7   :  { %17438 = vst [vmem:[#allocation126_spill] sm:$0xff] %v14822_v31  ;;  %v7671_v45 = vld [vmem:[#allocation2 + $0xb8] sm:$0x11]  ;;  %v14826_v23 = vsel %vm13975_vm4, %v6544_v6, %v6548_v61  ;;  %v7489_v0 = vor.u32 %v7488_v50, %v7485_v48  ;;  %v7600_v26 = vrot.slane %v7598_v56, 5  ;;  %v12230_v17 = vrot.slane %v7654_v46, 9 }
 0x1d8   :  { %17439 = vst [vmem:[#allocation127_spill] sm:$0xff] %v14826_v23  ;;  %v12764_v10 = vld [vmem:[#allocation4 + $0x74] ss:$8 sps:$4 sm:$0xff]   ;;  %v12766_v5 = vld [vmem:[#allocation4 + $0x70] ss:$8 sps:$4 sm:$0xff]   ;;  %v7606_v20 = vrot.slane %v7604_v1, 5 }
 0x1d9   :  { %v7734_v13 = vrot.slane %v7655_v36, 5  ;;  %v12238_v9 = vrot.slane %v7670_v57, 9  ;;  %v7766_v51 = vrot.slane %v7671_v45, 5  ;;  %v7490_v43 = vrot.slane %v7489_v0, 4  ;;  %4943 = vmatprep.subr.bf16.mxu1 %v12764_v10  ;;  %v12767_v32 = vld [vmem:[#allocation4 + $0x174] ss:$8 sps:$4 sm:$0xff]  }
 0x1da   :  { %v7601_v15 = vor.u32 %v7600_v26, %v7597_v37  ;;  %v12769_v22 = vld [vmem:[#allocation4 + $0x170] ss:$8 sps:$4 sm:$0xff]   ;;  %4944 = vmatpush1.bf16.msra.mxu1 %v12766_v5  ;;  %v12770_v46 = vld [vmem:[#allocation4 + $0x64] ss:$8 sps:$4 sm:$0xff]   ;;  %v12772_v54 = vld [vmem:[#allocation4 + $0x60] ss:$8 sps:$4 sm:$0xff]   ;;  %5056 = vmatprep.subr.bf16.mxu0 %v12767_v32 }
 0x1db   :  { %v14830_v2 = vsel %vm13951_vm3, %v12230_v17, %v7734_v13  ;;  %v14834_v61 = vsel %vm13951_vm3, %v12238_v9, %v7766_v51  ;;  %v14838_v1 = vsel %vm13975_vm4, %v7490_v43, %v7494_v60  ;;  %v12773_v36 = vld [vmem:[#allocation4 + $0x164] ss:$8 sps:$4 sm:$0xff]   ;;  %5057 = vmatpush1.bf16.msra.mxu0 %v12769_v22  ;;  %4945 = vmatprep.subr.bf16.mxu1 %v12770_v46  ;;  %v12775_v6 = vld [vmem:[#allocation4 + $0x160] ss:$8 sps:$4 sm:$0xff]   ;;  %v12776_v51 = vld [vmem:[#allocation4 + $0x54] ss:$8 sps:$4 sm:$0xff]  }
 0x1dc   :  { %17440 = vst [vmem:[#allocation128_spill] sm:$0xff] %v14830_v2  ;;  %17441 = vst [vmem:[#allocation129_spill] sm:$0xff] %v14834_v61  ;;  %v7602_v45 = vrot.slane %v7601_v15, 4  ;;  %5058 = vmatprep.subr.bf16.mxu0 %v12773_v36  ;;  %v12778_v9 = vld [vmem:[#allocation4 + $0x50] ss:$8 sps:$4 sm:$0xff]  }
 0x1dd   :  { %17442 = vst [vmem:[#allocation130_spill] sm:$0xff] %v14838_v1  ;;  %v12779_v48 = vld [vmem:[#allocation4 + $0x154] ss:$8 sps:$4 sm:$0xff]   ;;  %v12782_v50 = vld [vmem:[#allocation4 + $0x44] ss:$8 sps:$4 sm:$0xff]  }
 0x1de   :  { %v14842_v13 = vsel %vm13975_vm4, %v7602_v45, %v7606_v20  ;;  %4946 = vmatpush1.bf16.msra.mxu1 %v12772_v54  ;;  %v12781_v43 = vld [vmem:[#allocation4 + $0x150] ss:$8 sps:$4 sm:$0xff]   ;;  %v12785_v60 = vld [vmem:[#allocation4 + $0x144] ss:$8 sps:$4 sm:$0xff]   ;;  %v12784_v56 = vld [vmem:[#allocation4 + $0x40] ss:$8 sps:$4 sm:$0xff]  }
 0x1df   :  { %17443 = vst [vmem:[#allocation131_spill] sm:$0xff] %v14842_v13  ;;  %4947 = vmatprep.subr.bf16.mxu1 %v12776_v51  ;;  %5059 = vmatpush1.bf16.msra.mxu0 %v12775_v6  ;;  %v12788_v57 = vld [vmem:[#allocation4 + $0x34] ss:$8 sps:$4 sm:$0xff]   ;;  %v12787_v37 = vld [vmem:[#allocation4 + $0x140] ss:$8 sps:$4 sm:$0xff]  }
 0x1e0   :  { %5060 = vmatprep.subr.bf16.mxu0 %v12779_v48  ;;  %v12791_v20 = vld [vmem:[#allocation4 + $0x134] ss:$8 sps:$4 sm:$0xff]   ;;  %v12790_v0 = vld [vmem:[#allocation4 + $0x30] ss:$8 sps:$4 sm:$0xff]   ;;  %v12794_v26 = vld [vmem:[#allocation4 + $0x24] ss:$8 sps:$4 sm:$0xff]  }
 0x1e1   :  { %v12793_v17 = vld [vmem:[#allocation4 + $0x130] ss:$8 sps:$4 sm:$0xff]   ;;  %v12797_v10 = vld [vmem:[#allocation4 + $0x124] ss:$8 sps:$4 sm:$0xff]   ;;  %v12796_v5 = vld [vmem:[#allocation4 + $0x20] ss:$8 sps:$4 sm:$0xff]  }
 0x1e2   :  { %4948 = vmatpush1.bf16.msra.mxu1 %v12778_v9  ;;  %v12800_v15 = vld [vmem:[#allocation4 + $0x14] ss:$8 sps:$4 sm:$0xff]   ;;  %v12799_v32 = vld [vmem:[#allocation4 + $0x120] ss:$8 sps:$4 sm:$0xff]   ;;  %v12802_v46 = vld [vmem:[#allocation4 + $0x10] ss:$8 sps:$4 sm:$0xff]  }
 0x1e3   :  { %4949 = vmatprep.subr.bf16.mxu1 %v12782_v50  ;;  %5061 = vmatpush1.bf16.msra.mxu0 %v12781_v43  ;;  %v12803_v22 = vld [vmem:[#allocation4 + $0x114] ss:$8 sps:$4 sm:$0xff]   ;;  %v12806_v54 = vld [vmem:[#allocation4 + $0x4] ss:$8 sps:$4 sm:$0xff]   ;;  %v12805_v45 = vld [vmem:[#allocation4 + $0x110] ss:$8 sps:$4 sm:$0xff]  }
 0x1e4   :  { %5062 = vmatprep.subr.bf16.mxu0 %v12785_v60  ;;  %v12809_v36 = vld [vmem:[#allocation4 + $0x104] ss:$8 sps:$4 sm:$0xff]   ;;  %v12808_v6 = vld [vmem:[#allocation4] ss:$8 sps:$4 sm:$0xff]   ;;  %v12812_v51 = vld [vmem:[#allocation4 + $0xf4] ss:$8 sps:$4 sm:$0xff]  }
 0x1e5   :  { %v12811_v9 = vld [vmem:[#allocation4 + $0x100] ss:$8 sps:$4 sm:$0xff]   ;;  %v12815_v48 = vld [vmem:[#allocation4 + $0x1f4] ss:$8 sps:$4 sm:$0xff]   ;;  %v12814_v50 = vld [vmem:[#allocation4 + $0xf0] ss:$8 sps:$4 sm:$0xff]  }
 0x1e6   :  { %4950 = vmatpush1.bf16.msra.mxu1 %v12784_v56  ;;  %v12818_v43 = vld [vmem:[#allocation4 + $0xe4] ss:$8 sps:$4 sm:$0xff]   ;;  %v12817_v60 = vld [vmem:[#allocation4 + $0x1f0] ss:$8 sps:$4 sm:$0xff]  }
 0x1e7   :  { %4951 = vmatprep.subr.bf16.mxu1 %v12788_v57  ;;  %5063 = vmatpush1.bf16.msra.mxu0 %v12787_v37  ;;  %v12821_v56 = vld [vmem:[#allocation4 + $0x1e4] ss:$8 sps:$4 sm:$0xff]   ;;  %v12820_v57 = vld [vmem:[#allocation4 + $0xe0] ss:$8 sps:$4 sm:$0xff]   ;;  %v12824_v37 = vld [vmem:[#allocation4 + $0xd4] ss:$8 sps:$4 sm:$0xff]  }
 0x1e8   :  { %5064 = vmatprep.subr.bf16.mxu0 %v12791_v20  ;;  %v12823_v20 = vld [vmem:[#allocation4 + $0x1e0] ss:$8 sps:$4 sm:$0xff]  }
 0x1ea   :  { %4952 = vmatpush1.bf16.msra.mxu1 %v12790_v0  ;;  %v12827_v0 = vld [vmem:[#allocation4 + $0x1d4] ss:$8 sps:$4 sm:$0xff]  }
 0x1eb   :  { %4953 = vmatprep.subr.bf16.mxu1 %v12794_v26  ;;  %5065 = vmatpush1.bf16.msra.mxu0 %v12793_v17  ;;  %v12826_v26 = vld [vmem:[#allocation4 + $0xd0] ss:$8 sps:$4 sm:$0xff]   ;;  %v12830_v17 = vld [vmem:[#allocation4 + $0xc4] ss:$8 sps:$4 sm:$0xff]  }
 0x1ec   :  { %5066 = vmatprep.subr.bf16.mxu0 %v12797_v10  ;;  %v12829_v10 = vld [vmem:[#allocation4 + $0x1d0] ss:$8 sps:$4 sm:$0xff]  }
 0x1ee   :  { %4954 = vmatpush1.bf16.msra.mxu1 %v12796_v5  ;;  %v12833_v5 = vld [vmem:[#allocation4 + $0x1c4] ss:$8 sps:$4 sm:$0xff]  }
 0x1ef   :  { %4955 = vmatprep.subr.bf16.mxu1 %v12800_v15  ;;  %5067 = vmatpush1.bf16.msra.mxu0 %v12799_v32  ;;  %v12832_v15 = vld [vmem:[#allocation4 + $0xc0] ss:$8 sps:$4 sm:$0xff]   ;;  %v12836_v32 = vld [vmem:[#allocation4 + $0xb4] ss:$8 sps:$4 sm:$0xff]  }
 0x1f0   :  { %5068 = vmatprep.subr.bf16.mxu0 %v12803_v22  ;;  %v12835_v22 = vld [vmem:[#allocation4 + $0x1c0] ss:$8 sps:$4 sm:$0xff]  }
 0x1f2   :  { %4956 = vmatpush1.bf16.msra.mxu1 %v12802_v46  ;;  %v12839_v46 = vld [vmem:[#allocation4 + $0x1b4] ss:$8 sps:$4 sm:$0xff]  }
 0x1f3   :  { %4957 = vmatprep.subr.bf16.mxu1 %v12806_v54  ;;  %5069 = vmatpush1.bf16.msra.mxu0 %v12805_v45  ;;  %v12838_v54 = vld [vmem:[#allocation4 + $0xb0] ss:$8 sps:$4 sm:$0xff]   ;;  %v12842_v45 = vld [vmem:[#allocation4 + $0xa4] ss:$8 sps:$4 sm:$0xff]  }
 0x1f4   :  { %5070 = vmatprep.subr.bf16.mxu0 %v12809_v36  ;;  %v12841_v36 = vld [vmem:[#allocation4 + $0x1b0] ss:$8 sps:$4 sm:$0xff]  }
 0x1f6   :  { %4958 = vmatpush1.bf16.msra.mxu1 %v12808_v6  ;;  %v12845_v6 = vld [vmem:[#allocation4 + $0x1a4] ss:$8 sps:$4 sm:$0xff]  }
 0x1f7   :  { %4959 = vmatprep.subr.bf16.mxu1 %v12812_v51  ;;  %5071 = vmatpush1.bf16.msra.mxu0 %v12811_v9  ;;  %v12844_v51 = vld [vmem:[#allocation4 + $0xa0] ss:$8 sps:$4 sm:$0xff]   ;;  %v12848_v9 = vld [vmem:[#allocation4 + $0x94] ss:$8 sps:$4 sm:$0xff]  }
 0x1f8   :  { %5072 = vmatprep.subr.bf16.mxu0 %v12815_v48  ;;  %v12847_v48 = vld [vmem:[#allocation4 + $0x1a0] ss:$8 sps:$4 sm:$0xff]  }
 0x1fa   :  { %4960 = vmatpush2.bf16.msra.mxu1 %v12814_v50  ;;  %v12851_v50 = vld [vmem:[#allocation4 + $0x194] ss:$8 sps:$4 sm:$0xff]  }
 0x1fb   :  { %4961 = vmatprep.subr.bf16.mxu1 %v12818_v43  ;;  %5073 = vmatpush2.bf16.msra.mxu0 %v12817_v60  ;;  %v12850_v43 = vld [vmem:[#allocation4 + $0x90] ss:$8 sps:$4 sm:$0xff]   ;;  %v12854_v60 = vld [vmem:[#allocation4 + $0x84] ss:$8 sps:$4 sm:$0xff]  }
 0x1fc   :  { %5074 = vmatprep.subr.bf16.mxu0 %v12821_v56  ;;  %v12853_v56 = vld [vmem:[#allocation4 + $0x190] ss:$8 sps:$4 sm:$0xff]  }
 0x1fe   :  { %4962 = vmatpush2.bf16.msra.mxu1 %v12820_v57  ;;  %v12857_v57 = vld [vmem:[#allocation4 + $0x184] ss:$8 sps:$4 sm:$0xff]  }
 0x1ff   :  { %4963 = vmatprep.subr.bf16.mxu1 %v12824_v37  ;;  %5075 = vmatpush2.bf16.msra.mxu0 %v12823_v20  ;;  %v12856_v37 = vld [vmem:[#allocation4 + $0x80] ss:$8 sps:$4 sm:$0xff]   ;;  %v12862_v20 = vld [vmem:[#allocation4 + $0x274] ss:$8 sps:$4 sm:$0xff]  }
 0x200   :  { %5076 = vmatprep.subr.bf16.mxu0 %v12827_v0  ;;  %v12859_v0 = vld [vmem:[#allocation4 + $0x180] ss:$8 sps:$4 sm:$0xff]  }
 0x202   :  { %4964 = vmatpush2.bf16.msra.mxu1 %v12826_v26  ;;  %v11743_v26 = vcombine.low %v13937_v28, %v14115_v35  ;;  %v12871_v28 = vld [vmem:[#allocation4 + $0x364] ss:$8 sps:$4 sm:$0xff]  }
 0x203   :  { %4965 = vmatprep.subr.bf16.mxu1 %v12830_v17  ;;  %5077 = vmatpush2.bf16.msra.mxu0 %v12829_v10  ;;  %v12865_v17 = vld [vmem:[#allocation4 + $0x374] ss:$8 sps:$4 sm:$0xff]   ;;  %v12860_v10 = vld [vmem:[#allocation4 + $0x270] ss:$8 sps:$4 sm:$0xff]  }
 0x204   :  { %5078 = vmatprep.subr.bf16.mxu0 %v12833_v5  ;;  %v14848_v5 = vcombine.high %v14128_v62, %v14145_v52 }
 0x206   :  { %4966 = vmatpush2.bf16.msra.mxu1 %v12832_v15  ;;  %v11745_v15 = vcombine.low %v13981_v11, %v14162_v8  ;;  %v14857_v11 = vcombine.low %v14128_v62, %v14145_v52  ;;  %v12877_v8 = vld [vmem:[#allocation4 + $0x354] ss:$8 sps:$4 sm:$0xff]  }
 0x207   :  { %4967 = vmatprep.subr.bf16.mxu1 %v12836_v32  ;;  %5079 = vmatpush2.bf16.msra.mxu0 %v12835_v22  ;;  %v12868_v32 = vld [vmem:[#allocation4 + $0x264] ss:$8 sps:$4 sm:$0xff]   ;;  %v12863_v22 = vld [vmem:[#allocation4 + $0x370] ss:$8 sps:$4 sm:$0xff]  }
 0x208   :  { %5080 = vmatprep.subr.bf16.mxu0 %v12839_v46  ;;  %v11764_v46 = vcombine.high %v14185_v47, %v14242_v12 }
 0x20a   :  { %4968 = vmatpush2.bf16.msra.mxu1 %v12838_v54  ;;  %v12866_v54 = vld [vmem:[#allocation4 + $0x260] ss:$8 sps:$4 sm:$0xff]  }
 0x20b   :  { %4969 = vmatprep.subr.bf16.mxu1 %v12842_v45  ;;  %5081 = vmatpush2.bf16.msra.mxu0 %v12841_v36  ;;  %v12874_v45 = vld [vmem:[#allocation4 + $0x254] ss:$8 sps:$4 sm:$0xff]   ;;  %v12869_v36 = vld [vmem:[#allocation4 + $0x360] ss:$8 sps:$4 sm:$0xff]  }
 0x20c   :  { %5082 = vmatprep.subr.bf16.mxu0 %v12845_v6  ;;  %v12872_v6 = vld [vmem:[#allocation4 + $0x250] ss:$8 sps:$4 sm:$0xff]  }
 0x20e   :  { %4970 = vmatpush2.bf16.msra.mxu1 %v12844_v51  ;;  %v14861_v51 = vcombine.high %v14237_v19, %v14291_v53 }
 0x20f   :  { %4971 = vmatprep.subr.bf16.mxu1 %v12848_v9  ;;  %5083 = vmatpush2.bf16.msra.mxu0 %v12847_v48  ;;  %v11763_v9 = vcombine.low %v14185_v47, %v14242_v12  ;;  %v12880_v48 = vld [vmem:[#allocation4 + $0x244] ss:$8 sps:$4 sm:$0xff]   ;;  %v14871_v47 = vcombine.low %v14237_v19, %v14291_v53  ;;  %v12889_v12 = vld [vmem:[#allocation4 + $0x334] ss:$8 sps:$4 sm:$0xff]  }
 0x210   :  { %5084 = vmatprep.subr.bf16.mxu0 %v12851_v50  ;;  %v12875_v50 = vld [vmem:[#allocation4 + $0x350] ss:$8 sps:$4 sm:$0xff]  }
 0x212   :  { %4972 = vmatpush2.bf16.msra.mxu1 %v12850_v43  ;;  %v11782_v43 = vcombine.high %v14310_v33, %v14351_v18 }
 0x213   :  { %4973 = vmatprep.subr.bf16.mxu1 %v12854_v60  ;;  %5085 = vmatpush2.bf16.msra.mxu0 %v12853_v56  ;;  %v12883_v60 = vld [vmem:[#allocation4 + $0x344] ss:$8 sps:$4 sm:$0xff]   ;;  %v12878_v56 = vld [vmem:[#allocation4 + $0x240] ss:$8 sps:$4 sm:$0xff]  }
 0x214   :  { %5086 = vmatprep.subr.bf16.mxu0 %v12857_v57  ;;  %v12886_v57 = vld [vmem:[#allocation4 + $0x234] ss:$8 sps:$4 sm:$0xff]  }
 0x216   :  { %4974 = vmatpush2.bf16.msra.mxu1 %v12856_v37  ;;  %v12881_v37 = vld [vmem:[#allocation4 + $0x340] ss:$8 sps:$4 sm:$0xff]  }
 0x217   :  { %5169 = vmatprep.subr.bf16.mxu1 %v12862_v20  ;;  %5087 = vmatpush2.bf16.msra.mxu0 %v12859_v0  ;;  %v12884_v20 = vld [vmem:[#allocation4 + $0x230] ss:$8 sps:$4 sm:$0xff]   ;;  %v14875_v0 = vcombine.high %v14322_v30, %v14421_v27 }
 0x218   :  { %5282 = vmatprep.subr.bf16.mxu0 %v12865_v17  ;;  %v12892_v17 = vld [vmem:[#allocation4 + $0x224] ss:$8 sps:$4 sm:$0xff]  }
 0x219   :  { %4976 = vmatmul.mubr.bf16.vlgmr.msra.gmra.mxu1 %v11743_v26  ;;  %v11781_v26 = vcombine.low %v14310_v33, %v14351_v18  ;;  %v14885_v33 = vcombine.low %v14322_v30, %v14421_v27  ;;  %v12901_v18 = vld [vmem:[#allocation4 + $0x314] ss:$8 sps:$4 sm:$0xff]  }
 0x21a   :  { %5170 = vmatpush1.bf16.msra.mxu1 %v12860_v10  ;;  %4985 = vmatprep.mubr.bf16.mxu1 %v14848_v5  ;;  %v12887_v10 = vld [vmem:[#allocation4 + $0x330] ss:$8 sps:$4 sm:$0xff]  }
 0x21b   :  { %5089 = vmatmul.mubr.bf16.vlgmr.msra.gmra.mxu0 %v11745_v15  ;;  %5171 = vmatprep.subr.bf16.mxu1 %v12868_v32  ;;  %v11800_v15 = vcombine.high %v14395_v58, %v14479_v63  ;;  %v12895_v32 = vld [vmem:[#allocation4 + $0x324] ss:$8 sps:$4 sm:$0xff]  }
 0x21c   :  { %5283 = vmatpush1.bf16.msra.mxu0 %v12863_v22  ;;  %5098 = vmatprep.mubr.bf16.mxu0 %v11764_v46  ;;  %v12890_v22 = vld [vmem:[#allocation4 + $0x220] ss:$8 sps:$4 sm:$0xff]   ;;  %v12898_v46 = vld [vmem:[#allocation4 + $0x214] ss:$8 sps:$4 sm:$0xff]  }
 0x21d   :  { %5284 = vmatprep.subr.bf16.mxu0 %v12871_v28  ;;  %v12893_v28 = vld [vmem:[#allocation4 + $0x320] ss:$8 sps:$4 sm:$0xff]  }
 0x21e   :  { %5172 = vmatpush1.bf16.msra.mxu1 %v12866_v54  ;;  %v12896_v54 = vld [vmem:[#allocation4 + $0x210] ss:$8 sps:$4 sm:$0xff]  }
 0x21f   :  { %5173 = vmatprep.subr.bf16.mxu1 %v12874_v45  ;;  %v11816_v45 = vcombine.high %v13945_v34, %v14444_v41 }
 0x220   :  { %5285 = vmatpush1.bf16.msra.mxu0 %v12869_v36  ;;  %v11799_v36 = vcombine.low %v14395_v58, %v14479_v63  ;;  %v11815_v58 = vcombine.low %v13945_v34, %v14444_v41  ;;  %v12913_v63 = vld [vmem:[#allocation4 + $0x3f4] ss:$8 sps:$4 sm:$0xff]   ;;  %v12919_v34 = vld [vmem:[#allocation4 + $0x3e4] ss:$8 sps:$4 sm:$0xff]  }
 0x221   :  { %4986 = vmatmul.mubr.bf16.gmra.mxu1 %v14857_v11  ;;  %5286 = vmatprep.subr.bf16.mxu0 %v12877_v8  ;;  %v12904_v8 = vld [vmem:[#allocation4 + $0x204] ss:$8 sps:$4 sm:$0xff]  }
 0x222   :  { %5174 = vmatpush1.bf16.msra.mxu1 %v12872_v6  ;;  %4995 = vmatprep.mubr.bf16.mxu1 %v14861_v51  ;;  %v12899_v6 = vld [vmem:[#allocation4 + $0x310] ss:$8 sps:$4 sm:$0xff]  }
 0x223   :  { %5099 = vmatmul.mubr.bf16.gmra.mxu0 %v11763_v9  ;;  %5175 = vmatprep.subr.bf16.mxu1 %v12880_v48  ;;  %v11818_v9 = vcombine.high %v13992_v16, %v14533_v14  ;;  %v12907_v48 = vld [vmem:[#allocation4 + $0x304] ss:$8 sps:$4 sm:$0xff]  }
 0x224   :  { %5287 = vmatpush1.bf16.msra.mxu0 %v12875_v50  ;;  %5108 = vmatprep.mubr.bf16.mxu0 %v11782_v43  ;;  %v12902_v50 = vld [vmem:[#allocation4 + $0x200] ss:$8 sps:$4 sm:$0xff]   ;;  %v12910_v43 = vld [vmem:[#allocation4 + $0x2f4] ss:$8 sps:$4 sm:$0xff]  }
 0x225   :  { %5288 = vmatprep.subr.bf16.mxu0 %v12883_v60  ;;  %v12905_v60 = vld [vmem:[#allocation4 + $0x300] ss:$8 sps:$4 sm:$0xff]  }
 0x226   :  { %5176 = vmatpush1.bf16.msra.mxu1 %v12878_v56  ;;  %v12908_v56 = vld [vmem:[#allocation4 + $0x2f0] ss:$8 sps:$4 sm:$0xff]  }
 0x227   :  { %5177 = vmatprep.subr.bf16.mxu1 %v12886_v57  ;;  %v14898_v57 = vcombine.high %v14542_v24, %v14555_v3 }
 0x228   :  { %5289 = vmatpush1.bf16.msra.mxu0 %v12881_v37  ;;  %v11817_v37 = vcombine.low %v13992_v16, %v14533_v14  ;;  %v14907_v16 = vcombine.low %v14542_v24, %v14555_v3  ;;  %v12925_v14 = vld [vmem:[#allocation4 + $0x3d4] ss:$8 sps:$4 sm:$0xff]  }
 0x229   :  { %4996 = vmatmul.mubr.bf16.gmra.mxu1 %v14871_v47  ;;  %5290 = vmatprep.subr.bf16.mxu0 %v12889_v12  ;;  %v12916_v12 = vld [vmem:[#allocation4 + $0x2e4] ss:$8 sps:$4 sm:$0xff]  }
 0x22a   :  { %5178 = vmatpush1.bf16.msra.mxu1 %v12884_v20  ;;  %5005 = vmatprep.mubr.bf16.mxu1 %v14875_v0  ;;  %v12911_v20 = vld [vmem:[#allocation4 + $0x3f0] ss:$8 sps:$4 sm:$0xff]  }
 0x22b   :  { %5109 = vmatmul.mubr.bf16.gmra.mxu0 %v11781_v26  ;;  %5179 = vmatprep.subr.bf16.mxu1 %v12892_v17  ;;  %v11836_v26 = vcombine.high %v14592_v42, %v14622_v40  ;;  %v12914_v17 = vld [vmem:[#allocation4 + $0x2e0] ss:$8 sps:$4 sm:$0xff]  }
 0x22c   :  { %5291 = vmatpush1.bf16.msra.mxu0 %v12887_v10  ;;  %5118 = vmatprep.mubr.bf16.mxu0 %v11800_v15  ;;  %v12922_v10 = vld [vmem:[#allocation4 + $0x2d4] ss:$8 sps:$4 sm:$0xff]   ;;  %v12917_v15 = vld [vmem:[#allocation4 + $0x3e0] ss:$8 sps:$4 sm:$0xff]  }
 0x22d   :  { %5292 = vmatprep.subr.bf16.mxu0 %v12895_v32  ;;  %v12920_v32 = vld [vmem:[#allocation4 + $0x2d0] ss:$8 sps:$4 sm:$0xff]  }
 0x22e   :  { %5180 = vmatpush1.bf16.msra.mxu1 %v12890_v22  ;;  %v14911_v22 = vcombine.high %v14571_v4, %v14588_v49 }
 0x22f   :  { %5181 = vmatprep.subr.bf16.mxu1 %v12898_v46  ;;  %v11835_v46 = vcombine.low %v14592_v42, %v14622_v40  ;;  %v14921_v42 = vcombine.low %v14571_v4, %v14588_v49  ;;  %v12937_v40 = vld [vmem:[#allocation4 + $0x3b4] ss:$8 sps:$4 sm:$0xff]  }
 0x230   :  { %5293 = vmatpush1.bf16.msra.mxu0 %v12893_v28  ;;  %v12928_v28 = vld [vmem:[#allocation4 + $0x2c4] ss:$8 sps:$4 sm:$0xff]  }
 0x231   :  { %5006 = vmatmul.mubr.bf16.gmra.mxu1 %v14885_v33  ;;  %5294 = vmatprep.subr.bf16.mxu0 %v12901_v18  ;;  %v12923_v18 = vld [vmem:[#allocation4 + $0x3d0] ss:$8 sps:$4 sm:$0xff]  }
 0x232   :  { %5182 = vmatpush1.bf16.msra.mxu1 %v12896_v54  ;;  %5015 = vmatprep.mubr.bf16.mxu1 %v11816_v45  ;;  %v11854_v54 = vcombine.high %v14653_v38, %v14691_v44  ;;  %v12931_v45 = vld [vmem:[#allocation4 + $0x3c4] ss:$8 sps:$4 sm:$0xff]  }
 0x233   :  { %5119 = vmatmul.mubr.bf16.gmra.mxu0 %v11799_v36  ;;  %5183 = vmatprep.subr.bf16.mxu1 %v12904_v8  ;;  %v12926_v36 = vld [vmem:[#allocation4 + $0x2c0] ss:$8 sps:$4 sm:$0xff]   ;;  %v12934_v8 = vld [vmem:[#allocation4 + $0x2b4] ss:$8 sps:$4 sm:$0xff]  }
 0x234   :  { %5295 = vmatpush1.bf16.msra.mxu0 %v12899_v6  ;;  %5128 = vmatprep.mubr.bf16.mxu0 %v11818_v9  ;;  %v12929_v6 = vld [vmem:[#allocation4 + $0x3c0] ss:$8 sps:$4 sm:$0xff]   ;;  %v12932_v9 = vld [vmem:[#allocation4 + $0x2b0] ss:$8 sps:$4 sm:$0xff]  }
 0x235   :  { %5296 = vmatprep.subr.bf16.mxu0 %v12907_v48  ;;  %v14925_v48 = vcombine.high %v14687_v21, %v14712_v59 }
 0x236   :  { %5184 = vmatpush1.bf16.msra.mxu1 %v12902_v50  ;;  %v11853_v50 = vcombine.low %v14653_v38, %v14691_v44  ;;  %v14935_v38 = vcombine.low %v14687_v21, %v14712_v59  ;;  %v12949_v44 = vld [vmem:[#allocation4 + $0x394] ss:$8 sps:$4 sm:$0xff]  }
 0x237   :  { %5185 = vmatprep.subr.bf16.mxu1 %v12910_v43  ;;  %v12940_v43 = vld [vmem:[#allocation4 + $0x2a4] ss:$8 sps:$4 sm:$0xff]  }
 0x238   :  { %5297 = vmatpush1.bf16.msra.mxu0 %v12905_v60  ;;  %v12935_v60 = vld [vmem:[#allocation4 + $0x3b0] ss:$8 sps:$4 sm:$0xff]  }
 0x239   :  { %5016 = vmatmul.mubr.bf16.gmra.mxu1 %v11815_v58  ;;  %5298 = vmatprep.subr.bf16.mxu0 %v12913_v63  ;;  %v11872_v58 = vcombine.high %v14736_v29, %v14752_v25  ;;  %v12943_v63 = vld [vmem:[#allocation4 + $0x3a4] ss:$8 sps:$4 sm:$0xff]  }
 0x23a   :  { %5186 = vmatpush2.bf16.msra.mxu1 %v12908_v56  ;;  %5025 = vmatprep.mubr.bf16.mxu1 %v14898_v57  ;;  %v12938_v56 = vld [vmem:[#allocation4 + $0x2a0] ss:$8 sps:$4 sm:$0xff]  }
 0x23b   :  { %5129 = vmatmul.mubr.bf16.gmra.mxu0 %v11817_v37  ;;  %5187 = vmatprep.subr.bf16.mxu1 %v12916_v12  ;;  %v12946_v37 = vld [vmem:[#allocation4 + $0x294] ss:$8 sps:$4 sm:$0xff]   ;;  %v12941_v12 = vld [vmem:[#allocation4 + $0x3a0] ss:$8 sps:$4 sm:$0xff]  }
 0x23c   :  { %5299 = vmatpush2.bf16.msra.mxu0 %v12911_v20  ;;  %5138 = vmatprep.mubr.bf16.mxu0 %v11836_v26  ;;  %v12944_v20 = vld [vmem:[#allocation4 + $0x290] ss:$8 sps:$4 sm:$0xff]  }
 0x23d   :  { %5300 = vmatprep.subr.bf16.mxu0 %v12919_v34  ;;  %v17444_v26 = vld [vmem:[#allocation37_spill] sm:$0xff] }
 0x23e   :  { %5188 = vmatpush2.bf16.msra.mxu1 %v12914_v17  ;;  %v11748_v34 = vcombine.high %v17444_v26, %v14152_v55  ;;  %v11871_v17 = vcombine.low %v14736_v29, %v14752_v25  ;;  %v11747_v29 = vcombine.low %v17444_v26, %v14152_v55  ;;  %v12961_v25 = vld [vmem:[#allocation4 + $0x574] ss:$8 sps:$4 sm:$0xff]   ;;  %v12962_v55 = vld [vmem:[#allocation4 + $0x460] ss:$8 sps:$4 sm:$0xff]   ;;  %v12971_v26 = vld [vmem:[#allocation4 + $0x550] ss:$8 sps:$4 sm:$0xff]  }
 0x23f   :  { %5189 = vmatprep.subr.bf16.mxu1 %v12922_v10  ;;  %v12952_v10 = vld [vmem:[#allocation4 + $0x284] ss:$8 sps:$4 sm:$0xff]  }
 0x240   :  { %5301 = vmatpush2.bf16.msra.mxu0 %v12917_v15  ;;  %v12947_v15 = vld [vmem:[#allocation4 + $0x390] ss:$8 sps:$4 sm:$0xff]  }
 0x241   :  { %5026 = vmatmul.mubr.bf16.gmra.mxu1 %v14907_v16  ;;  %5302 = vmatprep.subr.bf16.mxu0 %v12925_v14  ;;  %v11750_v14 = vcombine.high %v14115_v35, %v14128_v62 }
 0x242   :  { %5190 = vmatpush2.bf16.msra.mxu1 %v12920_v32  ;;  %5035 = vmatprep.mubr.bf16.mxu1 %v14911_v22  ;;  %v12955_v32 = vld [vmem:[#allocation4 + $0x384] ss:$8 sps:$4 sm:$0xff]  }
 0x243   :  { %5139 = vmatmul.mubr.bf16.gmra.mxu0 %v11835_v46  ;;  %5191 = vmatprep.subr.bf16.mxu1 %v12928_v28  ;;  %v12950_v46 = vld [vmem:[#allocation4 + $0x280] ss:$8 sps:$4 sm:$0xff]   ;;  %v12958_v28 = vld [vmem:[#allocation4 + $0x474] ss:$8 sps:$4 sm:$0xff]  }
 0x244   :  { %5303 = vmatpush2.bf16.msra.mxu0 %v12923_v18  ;;  %5148 = vmatprep.mubr.bf16.mxu0 %v11854_v54  ;;  %v12953_v18 = vld [vmem:[#allocation4 + $0x380] ss:$8 sps:$4 sm:$0xff]   ;;  %v12956_v54 = vld [vmem:[#allocation4 + $0x470] ss:$8 sps:$4 sm:$0xff]  }
 0x245   :  { %5304 = vmatprep.subr.bf16.mxu0 %v12931_v45  ;;  %v17445_v45 = vld [vmem:[#allocation52_spill] sm:$0xff] }
 0x246   :  { %5192 = vmatpush2.bf16.msra.mxu1 %v12926_v36  ;;  %v17446_v36 = vld [vmem:[#allocation47_spill] sm:$0xff] }
 0x247   :  { %5193 = vmatprep.subr.bf16.mxu1 %v12934_v8  ;;  %v11766_v8 = vcombine.high %v17446_v36, %v17445_v45 }
 0x248   :  { %5305 = vmatpush2.bf16.msra.mxu0 %v12929_v6  ;;  %v11749_v6 = vcombine.low %v14115_v35, %v14128_v62  ;;  %v11765_v35 = vcombine.low %v17446_v36, %v17445_v45  ;;  %v12973_v62 = vld [vmem:[#allocation4 + $0x554] ss:$8 sps:$4 sm:$0xff]  }
 0x249   :  { %5036 = vmatmul.mubr.bf16.gmra.mxu1 %v14921_v42  ;;  %5306 = vmatprep.subr.bf16.mxu0 %v12937_v40  ;;  %v12964_v40 = vld [vmem:[#allocation4 + $0x464] ss:$8 sps:$4 sm:$0xff]   ;;  %v17451_v45 = vld [vmem:[#allocation72_spill] sm:$0xff] }
 0x24a   :  { %5194 = vmatpush2.bf16.msra.mxu1 %v12932_v9  ;;  %5045 = vmatprep.mubr.bf16.mxu1 %v14925_v48  ;;  %v12959_v9 = vld [vmem:[#allocation4 + $0x570] ss:$8 sps:$4 sm:$0xff]   ;;  %v11804_v36 = vcombine.high %v14421_v27, %v17451_v45 }
 0x24b   :  { %5149 = vmatmul.mubr.bf16.gmra.mxu0 %v11853_v50  ;;  %5195 = vmatprep.subr.bf16.mxu1 %v12940_v43  ;;  %v11768_v50 = vcombine.high %v14145_v52, %v14237_v19  ;;  %v12967_v43 = vld [vmem:[#allocation4 + $0x564] ss:$8 sps:$4 sm:$0xff]  }
 0x24c   :  { %5307 = vmatpush2.bf16.msra.mxu0 %v12935_v60  ;;  %5158 = vmatprep.mubr.bf16.mxu0 %v11872_v58  ;;  %v12970_v60 = vld [vmem:[#allocation4 + $0x454] ss:$8 sps:$4 sm:$0xff]   ;;  %v12965_v58 = vld [vmem:[#allocation4 + $0x560] ss:$8 sps:$4 sm:$0xff]  }
 0x24d   :  { %5308 = vmatprep.subr.bf16.mxu0 %v12943_v63  ;;  %v12968_v63 = vld [vmem:[#allocation4 + $0x450] ss:$8 sps:$4 sm:$0xff]  }
 0x24e   :  { %5196 = vmatpush2.bf16.msra.mxu1 %v12938_v56  ;;  %v17447_v56 = vld [vmem:[#allocation62_spill] sm:$0xff] }
 0x24f   :  { %5197 = vmatprep.subr.bf16.mxu1 %v12946_v37  ;;  %v17448_v37 = vld [vmem:[#allocation57_spill] sm:$0xff] }
 0x250   :  { %5309 = vmatpush2.bf16.msra.mxu0 %v12941_v12  ;;  %v11784_v12 = vcombine.high %v17448_v37, %v17447_v56 }
 0x251   :  { %5046 = vmatmul.mubr.bf16.gmra.mxu1 %v14935_v38  ;;  %5310 = vmatprep.subr.bf16.mxu0 %v12949_v44  ;;  %v11767_v44 = vcombine.low %v14145_v52, %v14237_v19  ;;  %v11783_v52 = vcombine.low %v17448_v37, %v17447_v56  ;;  %v12985_v19 = vld [vmem:[#allocation4 + $0x534] ss:$8 sps:$4 sm:$0xff]   ;;  %v13003_v56 = vld [vmem:[#allocation4 + $0x504] ss:$8 sps:$4 sm:$0xff]   ;;  %v12998_v37 = vld [vmem:[#allocation4 + $0x400] ss:$8 sps:$4 sm:$0xff]  }
 0x252   :  { %5198 = vmatpush2.bf16.msra.mxu1 %v12944_v20  ;;  %5201 = vmatprep.mubr.bf16.mxu1 %v11748_v34  ;;  %v12976_v20 = vld [vmem:[#allocation4 + $0x444] ss:$8 sps:$4 sm:$0xff]   ;;  %v11786_v34 = vcombine.high %v14291_v53, %v14322_v30 }
 0x253   :  { %5159 = vmatmul.mubr.bf16.gmra.mxu0 %v11871_v17  ;;  %5199 = vmatprep.subr.bf16.mxu1 %v12952_v10  ;;  %v12979_v17 = vld [vmem:[#allocation4 + $0x544] ss:$8 sps:$4 sm:$0xff]   ;;  %v12974_v10 = vld [vmem:[#allocation4 + $0x440] ss:$8 sps:$4 sm:$0xff]  }
 0x254   :  { %5311 = vmatpush2.bf16.msra.mxu0 %v12947_v15  ;;  %5314 = vmatprep.mubr.bf16.mxu0 %v11750_v14  ;;  %v12982_v15 = vld [vmem:[#allocation4 + $0x434] ss:$8 sps:$4 sm:$0xff]   ;;  %v12977_v14 = vld [vmem:[#allocation4 + $0x540] ss:$8 sps:$4 sm:$0xff]  }
 0x255   :  { %5312 = vmatprep.subr.bf16.mxu0 %v12955_v32  ;;  %v12980_v32 = vld [vmem:[#allocation4 + $0x430] ss:$8 sps:$4 sm:$0xff]  }
 0x256   :  { %5200 = vmatpush2.bf16.msra.mxu1 %v12950_v46  ;;  %v17449_v46 = vld [vmem:[#allocation73_spill] sm:$0xff] }
 0x257   :  { %5395 = vmatprep.subr.bf16.mxu1 %v12958_v28  ;;  %v17450_v28 = vld [vmem:[#allocation67_spill] sm:$0xff] }
 0x258   :  { %5313 = vmatpush2.bf16.msra.mxu0 %v12953_v18  ;;  %v11802_v18 = vcombine.high %v17450_v28, %v17449_v46 }
 0x259   :  { %5202 = vmatmul.mubr.bf16.vlgmr.msra.gmra.mxu1 %v11747_v29  ;;  %5508 = vmatprep.subr.bf16.mxu0 %v12961_v25  ;;  %v11785_v29 = vcombine.low %v14291_v53, %v14322_v30  ;;  %v12988_v25 = vld [vmem:[#allocation4 + $0x424] ss:$8 sps:$4 sm:$0xff]   ;;  %v11801_v53 = vcombine.low %v17450_v28, %v17449_v46  ;;  %v12997_v30 = vld [vmem:[#allocation4 + $0x514] ss:$8 sps:$4 sm:$0xff]   ;;  %v13010_v46 = vld [vmem:[#allocation4 + $0x4e0] ss:$8 sps:$4 sm:$0xff]  }
 0x25a   :  { %5396 = vmatpush1.bf16.msra.mxu1 %v12956_v54  ;;  %5211 = vmatprep.mubr.bf16.mxu1 %v11766_v8  ;;  %v12983_v54 = vld [vmem:[#allocation4 + $0x530] ss:$8 sps:$4 sm:$0xff]   ;;  %v12991_v8 = vld [vmem:[#allocation4 + $0x524] ss:$8 sps:$4 sm:$0xff]   ;;  %v13018_v28 = vld [vmem:[#allocation4 + $0x4d4] ss:$8 sps:$4 sm:$0xff]  }
 0x25b   :  { %5315 = vmatmul.mubr.bf16.vlgmr.msra.gmra.mxu0 %v11749_v6  ;;  %5397 = vmatprep.subr.bf16.mxu1 %v12964_v40  ;;  %v12986_v6 = vld [vmem:[#allocation4 + $0x420] ss:$8 sps:$4 sm:$0xff]   ;;  %v12994_v40 = vld [vmem:[#allocation4 + $0x414] ss:$8 sps:$4 sm:$0xff]  }
 0x25c   :  { %5509 = vmatpush1.bf16.msra.mxu0 %v12959_v9  ;;  %5324 = vmatprep.mubr.bf16.mxu0 %v11768_v50  ;;  %v12989_v9 = vld [vmem:[#allocation4 + $0x520] ss:$8 sps:$4 sm:$0xff]   ;;  %v12992_v50 = vld [vmem:[#allocation4 + $0x410] ss:$8 sps:$4 sm:$0xff]  }
 0x25d   :  { %5510 = vmatprep.subr.bf16.mxu0 %v12967_v43  ;;  %v17452_v43 = vld [vmem:[#allocation82_spill] sm:$0xff] }
 0x25e   :  { %5398 = vmatpush1.bf16.msra.mxu1 %v12962_v55  ;;  %v17453_v55 = vld [vmem:[#allocation38_spill] sm:$0xff] }
 0x25f   :  { %5399 = vmatprep.subr.bf16.mxu1 %v12970_v60  ;;  %v11820_v60 = vcombine.high %v17453_v55, %v17452_v43 }
 0x260   :  { %5511 = vmatpush1.bf16.msra.mxu0 %v12965_v58  ;;  %v11803_v58 = vcombine.low %v14421_v27, %v17451_v45  ;;  %v11819_v27 = vcombine.low %v17453_v55, %v17452_v43  ;;  %v13025_v43 = vld [vmem:[#allocation4 + $0x5c0] ss:$8 sps:$4 sm:$0xff]   ;;  %v13028_v55 = vld [vmem:[#allocation4 + $0x4b0] ss:$8 sps:$4 sm:$0xff]  }
 0x261   :  { %5212 = vmatmul.mubr.bf16.gmra.mxu1 %v11765_v35  ;;  %5512 = vmatprep.subr.bf16.mxu0 %v12973_v62  ;;  %v13000_v35 = vld [vmem:[#allocation4 + $0x404] ss:$8 sps:$4 sm:$0xff]   ;;  %v12995_v62 = vld [vmem:[#allocation4 + $0x510] ss:$8 sps:$4 sm:$0xff]  }
 0x262   :  { %5400 = vmatpush1.bf16.msra.mxu1 %v12968_v63  ;;  %5221 = vmatprep.mubr.bf16.mxu1 %v11784_v12  ;;  %v11822_v63 = vcombine.high %v14444_v41, %v14542_v24  ;;  %v13006_v12 = vld [vmem:[#allocation4 + $0x4f4] ss:$8 sps:$4 sm:$0xff]  }
 0x263   :  { %5325 = vmatmul.mubr.bf16.gmra.mxu0 %v11767_v44  ;;  %5401 = vmatprep.subr.bf16.mxu1 %v12976_v20  ;;  %v13001_v44 = vld [vmem:[#allocation4 + $0x500] ss:$8 sps:$4 sm:$0xff]   ;;  %v13009_v20 = vld [vmem:[#allocation4 + $0x5f4] ss:$8 sps:$4 sm:$0xff]  }
 0x264   :  { %5513 = vmatpush1.bf16.msra.mxu0 %v12971_v26  ;;  %5334 = vmatprep.mubr.bf16.mxu0 %v11786_v34  ;;  %v13004_v26 = vld [vmem:[#allocation4 + $0x4f0] ss:$8 sps:$4 sm:$0xff]   ;;  %v17454_v34 = vld [vmem:[#allocation90_spill] sm:$0xff] }
 0x265   :  { %5514 = vmatprep.subr.bf16.mxu0 %v12979_v17  ;;  %v17455_v17 = vld [vmem:[#allocation85_spill] sm:$0xff] }
 0x266   :  { %5402 = vmatpush1.bf16.msra.mxu1 %v12974_v10  ;;  %v11838_v10 = vcombine.high %v17455_v17, %v17454_v34 }
 0x267   :  { %5403 = vmatprep.subr.bf16.mxu1 %v12982_v15  ;;  %v11821_v15 = vcombine.low %v14444_v41, %v14542_v24  ;;  %v11837_v41 = vcombine.low %v17455_v17, %v17454_v34  ;;  %v13021_v24 = vld [vmem:[#allocation4 + $0x5d4] ss:$8 sps:$4 sm:$0xff]   ;;  %v13040_v34 = vld [vmem:[#allocation4 + $0x490] ss:$8 sps:$4 sm:$0xff]  }
 0x268   :  { %5515 = vmatpush1.bf16.msra.mxu0 %v12977_v14  ;;  %v13012_v14 = vld [vmem:[#allocation4 + $0x4e4] ss:$8 sps:$4 sm:$0xff]   ;;  %v17461_v17 = vld [vmem:[#allocation49_spill] sm:$0xff] }
 0x269   :  { %5222 = vmatmul.mubr.bf16.gmra.mxu1 %v11783_v52  ;;  %5516 = vmatprep.subr.bf16.mxu0 %v12985_v19  ;;  %v13007_v52 = vld [vmem:[#allocation4 + $0x5f0] ss:$8 sps:$4 sm:$0xff]   ;;  %v11840_v19 = vcombine.high %v14555_v3, %v14571_v4 }
 0x26a   :  { %5404 = vmatpush1.bf16.msra.mxu1 %v12980_v32  ;;  %5231 = vmatprep.mubr.bf16.mxu1 %v11802_v18  ;;  %v13015_v32 = vld [vmem:[#allocation4 + $0x5e4] ss:$8 sps:$4 sm:$0xff]   ;;  %v13013_v18 = vld [vmem:[#allocation4 + $0x5e0] ss:$8 sps:$4 sm:$0xff]  }
 0x26b   :  { %5335 = vmatmul.mubr.bf16.gmra.mxu0 %v11785_v29  ;;  %5405 = vmatprep.subr.bf16.mxu1 %v12988_v25  ;;  %v13016_v29 = vld [vmem:[#allocation4 + $0x4d0] ss:$8 sps:$4 sm:$0xff]  }
 0x26c   :  { %5517 = vmatpush1.bf16.msra.mxu0 %v12983_v54  ;;  %5344 = vmatprep.mubr.bf16.mxu0 %v11804_v36  ;;  %v17456_v25 = vld [vmem:[#allocation100_spill] sm:$0xff]  ;;  %v17457_v54 = vld [vmem:[#allocation95_spill] sm:$0xff] }
 0x26d   :  { %5518 = vmatprep.subr.bf16.mxu0 %v12991_v8  ;;  %v11856_v36 = vcombine.high %v17457_v54, %v17456_v25  ;;  %v11839_v8 = vcombine.low %v14555_v3, %v14571_v4  ;;  %v11855_v3 = vcombine.low %v17457_v54, %v17456_v25  ;;  %v13033_v4 = vld [vmem:[#allocation4 + $0x5b4] ss:$8 sps:$4 sm:$0xff]   ;;  %v13052_v54 = vld [vmem:[#allocation4 + $0x670] ss:$8 sps:$4 sm:$0xff]  }
 0x26e   :  { %5406 = vmatpush1.bf16.msra.mxu1 %v12986_v6  ;;  %v13024_v6 = vld [vmem:[#allocation4 + $0x4c4] ss:$8 sps:$4 sm:$0xff]   ;;  %v13057_v25 = vld [vmem:[#allocation4 + $0x774] ss:$8 sps:$4 sm:$0xff]  }
 0x26f   :  { %5407 = vmatprep.subr.bf16.mxu1 %v12994_v40  ;;  %v13019_v40 = vld [vmem:[#allocation4 + $0x5d0] ss:$8 sps:$4 sm:$0xff]  }
 0x270   :  { %5519 = vmatpush1.bf16.msra.mxu0 %v12989_v9  ;;  %v11858_v9 = vcombine.high %v14588_v49, %v14687_v21 }
 0x271   :  { %5232 = vmatmul.mubr.bf16.gmra.mxu1 %v11801_v53  ;;  %5520 = vmatprep.subr.bf16.mxu0 %v12997_v30  ;;  %v13027_v53 = vld [vmem:[#allocation4 + $0x5c4] ss:$8 sps:$4 sm:$0xff]   ;;  %v13022_v30 = vld [vmem:[#allocation4 + $0x4c0] ss:$8 sps:$4 sm:$0xff]  }
 0x272   :  { %5408 = vmatpush1.bf16.msra.mxu1 %v12992_v50  ;;  %5241 = vmatprep.mubr.bf16.mxu1 %v11820_v60  ;;  %v13030_v50 = vld [vmem:[#allocation4 + $0x4b4] ss:$8 sps:$4 sm:$0xff]   ;;  %v17458_v60 = vld [vmem:[#allocation111_spill] sm:$0xff] }
 0x273   :  { %5345 = vmatmul.mubr.bf16.gmra.mxu0 %v11803_v58  ;;  %5409 = vmatprep.subr.bf16.mxu1 %v13000_v35  ;;  %v17459_v58 = vld [vmem:[#allocation106_spill] sm:$0xff] }
 0x274   :  { %5521 = vmatpush1.bf16.msra.mxu0 %v12995_v62  ;;  %5354 = vmatprep.mubr.bf16.mxu0 %v11822_v63  ;;  %v11874_v35 = vcombine.high %v17459_v58, %v17458_v60  ;;  %v11857_v62 = vcombine.low %v14588_v49, %v14687_v21  ;;  %v13036_v63 = vld [vmem:[#allocation4 + $0x4a4] ss:$8 sps:$4 sm:$0xff]   ;;  %v11873_v49 = vcombine.low %v17459_v58, %v17458_v60  ;;  %v13045_v21 = vld [vmem:[#allocation4 + $0x594] ss:$8 sps:$4 sm:$0xff]   ;;  %v13061_v60 = vld [vmem:[#allocation4 + $0x760] ss:$8 sps:$4 sm:$0xff]  }
 0x275   :  { %5522 = vmatprep.subr.bf16.mxu0 %v13003_v56  ;;  %v13031_v56 = vld [vmem:[#allocation4 + $0x5b0] ss:$8 sps:$4 sm:$0xff]  }
 0x276   :  { %5410 = vmatpush1.bf16.msra.mxu1 %v12998_v37  ;;  %v17460_v37 = vld [vmem:[#allocation105_spill] sm:$0xff] }
 0x277   :  { %5411 = vmatprep.subr.bf16.mxu1 %v13006_v12  ;;  %v11876_v12 = vcombine.high %v14712_v59, %v17460_v37 }
 0x278   :  { %5523 = vmatpush1.bf16.msra.mxu0 %v13001_v44  ;;  %v13039_v44 = vld [vmem:[#allocation4 + $0x5a4] ss:$8 sps:$4 sm:$0xff]  }
 0x279   :  { %5242 = vmatmul.mubr.bf16.gmra.mxu1 %v11819_v27  ;;  %5524 = vmatprep.subr.bf16.mxu0 %v13009_v20  ;;  %v13034_v27 = vld [vmem:[#allocation4 + $0x4a0] ss:$8 sps:$4 sm:$0xff]   ;;  %v13042_v20 = vld [vmem:[#allocation4 + $0x494] ss:$8 sps:$4 sm:$0xff]  }
 0x27a   :  { %5412 = vmatpush2.bf16.msra.mxu1 %v13004_v26  ;;  %5251 = vmatprep.mubr.bf16.mxu1 %v11838_v10  ;;  %v13037_v26 = vld [vmem:[#allocation4 + $0x5a0] ss:$8 sps:$4 sm:$0xff]  }
 0x27b   :  { %5355 = vmatmul.mubr.bf16.gmra.mxu0 %v11821_v15  ;;  %5413 = vmatprep.subr.bf16.mxu1 %v13012_v14  ;;  %v17462_v10 = vld [vmem:[#allocation46_spill] sm:$0xff]  ;;  %v11875_v14 = vcombine.low %v14712_v59, %v17460_v37 }
 0x27c   :  { %5525 = vmatpush2.bf16.msra.mxu0 %v13007_v52  ;;  %5364 = vmatprep.mubr.bf16.mxu0 %v11840_v19  ;;  %v11752_v15 = vcombine.high %v17462_v10, %v17461_v17  ;;  %v13048_v52 = vld [vmem:[#allocation4 + $0x484] ss:$8 sps:$4 sm:$0xff]   ;;  %v13043_v19 = vld [vmem:[#allocation4 + $0x590] ss:$8 sps:$4 sm:$0xff]   ;;  %v11751_v59 = vcombine.low %v17462_v10, %v17461_v17  ;;  %v13070_v17 = vld [vmem:[#allocation4 + $0x640] ss:$8 sps:$4 sm:$0xff]  }
 0x27d   :  { %5526 = vmatprep.subr.bf16.mxu0 %v13015_v32  ;;  %v17463_v32 = vld [vmem:[#allocation48_spill] sm:$0xff] }
 0x27e   :  { %5414 = vmatpush2.bf16.msra.mxu1 %v13010_v46  ;;  %v17464_v46 = vld [vmem:[#allocation45_spill] sm:$0xff] }
 0x27f   :  { %5415 = vmatprep.subr.bf16.mxu1 %v13018_v28  ;;  %v11754_v28 = vcombine.high %v17464_v46, %v17463_v32  ;;  %v13078_v10 = vld [vmem:[#allocation4 + $0x634] ss:$8 sps:$4 sm:$0xff]  }
 0x280   :  { %5527 = vmatpush2.bf16.msra.mxu0 %v13013_v18  ;;  %v13051_v18 = vld [vmem:[#allocation4 + $0x584] ss:$8 sps:$4 sm:$0xff]  }
 0x281   :  { %5252 = vmatmul.mubr.bf16.gmra.mxu1 %v11837_v41  ;;  %5528 = vmatprep.subr.bf16.mxu0 %v13021_v24  ;;  %v13046_v41 = vld [vmem:[#allocation4 + $0x480] ss:$8 sps:$4 sm:$0xff]   ;;  %v13054_v24 = vld [vmem:[#allocation4 + $0x674] ss:$8 sps:$4 sm:$0xff]  }
 0x282   :  { %5416 = vmatpush2.bf16.msra.mxu1 %v13016_v29  ;;  %5261 = vmatprep.mubr.bf16.mxu1 %v11856_v36  ;;  %v13049_v29 = vld [vmem:[#allocation4 + $0x580] ss:$8 sps:$4 sm:$0xff]  }
 0x283   :  { %5365 = vmatmul.mubr.bf16.gmra.mxu0 %v11839_v8  ;;  %5417 = vmatprep.subr.bf16.mxu1 %v13024_v6  ;;  %v17465_v36 = vld [vmem:[#allocation59_spill] sm:$0xff]  ;;  %v17466_v8 = vld [vmem:[#allocation54_spill] sm:$0xff] }
 0x284   :  { %5529 = vmatpush2.bf16.msra.mxu0 %v13019_v40  ;;  %5374 = vmatprep.mubr.bf16.mxu0 %v11858_v9  ;;  %v11770_v6 = vcombine.high %v17466_v8, %v17465_v36  ;;  %v11753_v40 = vcombine.low %v17464_v46, %v17463_v32  ;;  %v13060_v9 = vld [vmem:[#allocation4 + $0x664] ss:$8 sps:$4 sm:$0xff]   ;;  %v11769_v58 = vcombine.low %v17466_v8, %v17465_v36  ;;  %v13082_v36 = vld [vmem:[#allocation4 + $0x620] ss:$8 sps:$4 sm:$0xff]   ;;  %v13090_v8 = vld [vmem:[#allocation4 + $0x614] ss:$8 sps:$4 sm:$0xff]  }
 0x285   :  { %5530 = vmatprep.subr.bf16.mxu0 %v13027_v53  ;;  %v13055_v53 = vld [vmem:[#allocation4 + $0x770] ss:$8 sps:$4 sm:$0xff]   ;;  %v17474_v46 = vld [vmem:[#allocation74_spill] sm:$0xff] }
 0x286   :  { %5418 = vmatpush2.bf16.msra.mxu1 %v13022_v30  ;;  %v17467_v30 = vld [vmem:[#allocation58_spill] sm:$0xff]  ;;  %v17473_v32 = vld [vmem:[#allocation79_spill] sm:$0xff] }
 0x287   :  { %5419 = vmatprep.subr.bf16.mxu1 %v13030_v50  ;;  %v17468_v50 = vld [vmem:[#allocation53_spill] sm:$0xff] }
 0x288   :  { %5531 = vmatpush2.bf16.msra.mxu0 %v13025_v43  ;;  %v11772_v43 = vcombine.high %v17468_v50, %v17467_v30 }
 0x289   :  { %5262 = vmatmul.mubr.bf16.gmra.mxu1 %v11855_v3  ;;  %5532 = vmatprep.subr.bf16.mxu0 %v13033_v4  ;;  %v13063_v3 = vld [vmem:[#allocation4 + $0x764] ss:$8 sps:$4 sm:$0xff]   ;;  %v13058_v4 = vld [vmem:[#allocation4 + $0x660] ss:$8 sps:$4 sm:$0xff]  }
 0x28a   :  { %5420 = vmatpush2.bf16.msra.mxu1 %v13028_v55  ;;  %5271 = vmatprep.mubr.bf16.mxu1 %v11874_v35  ;;  %v13066_v55 = vld [vmem:[#allocation4 + $0x654] ss:$8 sps:$4 sm:$0xff]  }
 0x28b   :  { %5375 = vmatmul.mubr.bf16.gmra.mxu0 %v11857_v62  ;;  %5421 = vmatprep.subr.bf16.mxu1 %v13036_v63  ;;  %v13069_v35 = vld [vmem:[#allocation4 + $0x754] ss:$8 sps:$4 sm:$0xff]   ;;  %v13064_v62 = vld [vmem:[#allocation4 + $0x650] ss:$8 sps:$4 sm:$0xff]  }
 0x28c   :  { %5533 = vmatpush2.bf16.msra.mxu0 %v13031_v56  ;;  %5384 = vmatprep.mubr.bf16.mxu0 %v11876_v12  ;;  %v17469_v63 = vld [vmem:[#allocation69_spill] sm:$0xff]  ;;  %v17470_v56 = vld [vmem:[#allocation64_spill] sm:$0xff] }
 0x28d   :  { %5534 = vmatprep.subr.bf16.mxu0 %v13039_v44  ;;  %v11788_v12 = vcombine.high %v17470_v56, %v17469_v63  ;;  %v11771_v44 = vcombine.low %v17468_v50, %v17467_v30  ;;  %v17477_v30 = vld [vmem:[#allocation87_spill] sm:$0xff]  ;;  %v17478_v50 = vld [vmem:[#allocation84_spill] sm:$0xff] }
 0x28e   :  { %5422 = vmatpush2.bf16.msra.mxu1 %v13034_v27  ;;  %v13072_v27 = vld [vmem:[#allocation4 + $0x644] ss:$8 sps:$4 sm:$0xff]  }
 0x28f   :  { %5423 = vmatprep.subr.bf16.mxu1 %v13042_v20  ;;  %v13067_v20 = vld [vmem:[#allocation4 + $0x750] ss:$8 sps:$4 sm:$0xff]  }
 0x290   :  { %5535 = vmatpush2.bf16.msra.mxu0 %v13037_v26  ;;  %v17471_v26 = vld [vmem:[#allocation68_spill] sm:$0xff] }
 0x291   :  { %5272 = vmatmul.mubr.bf16.gmra.mxu1 %v11873_v49  ;;  %5536 = vmatprep.subr.bf16.mxu0 %v13045_v21  ;;  %v17472_v49 = vld [vmem:[#allocation63_spill] sm:$0xff] }
 0x292   :  { %5424 = vmatpush2.bf16.msra.mxu1 %v13040_v34  ;;  %5427 = vmatprep.mubr.bf16.mxu1 %v11752_v15  ;;  %v11790_v21 = vcombine.high %v17472_v49, %v17471_v26  ;;  %v13075_v34 = vld [vmem:[#allocation4 + $0x744] ss:$8 sps:$4 sm:$0xff]   ;;  %v13073_v15 = vld [vmem:[#allocation4 + $0x740] ss:$8 sps:$4 sm:$0xff]  }
 0x293   :  { %5385 = vmatmul.mubr.bf16.gmra.mxu0 %v11875_v14  ;;  %5425 = vmatprep.subr.bf16.mxu1 %v13048_v52  ;;  %v11787_v14 = vcombine.low %v17470_v56, %v17469_v63  ;;  %v13081_v52 = vld [vmem:[#allocation4 + $0x734] ss:$8 sps:$4 sm:$0xff]   ;;  %v13094_v63 = vld [vmem:[#allocation4 + $0x600] ss:$8 sps:$4 sm:$0xff]  }
 0x294   :  { %5537 = vmatpush2.bf16.msra.mxu0 %v13043_v19  ;;  %5540 = vmatprep.mubr.bf16.mxu0 %v11754_v28  ;;  %v13076_v19 = vld [vmem:[#allocation4 + $0x630] ss:$8 sps:$4 sm:$0xff]   ;;  %v11806_v28 = vcombine.high %v17474_v46, %v17473_v32  ;;  %v13102_v56 = vld [vmem:[#allocation4 + $0x6f4] ss:$8 sps:$4 sm:$0xff]  }
 0x295   :  { %5538 = vmatprep.subr.bf16.mxu0 %v13051_v18  ;;  %v11789_v18 = vcombine.low %v17472_v49, %v17471_v26  ;;  %v17481_v26 = vld [vmem:[#allocation97_spill] sm:$0xff]  ;;  %v17482_v49 = vld [vmem:[#allocation92_spill] sm:$0xff] }
 0x296   :  { %5426 = vmatpush2.bf16.msra.mxu1 %v13046_v41  ;;  %v13084_v41 = vld [vmem:[#allocation4 + $0x624] ss:$8 sps:$4 sm:$0xff]  }
 0x297   :  { %5621 = vmatprep.subr.bf16.mxu1 %v13054_v24  ;;  %v13079_v24 = vld [vmem:[#allocation4 + $0x730] ss:$8 sps:$4 sm:$0xff]  }
 0x298   :  { %5539 = vmatpush2.bf16.msra.mxu0 %v13049_v29  ;;  %v17475_v29 = vld [vmem:[#allocation78_spill] sm:$0xff] }
 0x299   :  { %5428 = vmatmul.mubr.bf16.vlgmr.msra.gmra.mxu1 %v11751_v59  ;;  %5734 = vmatprep.subr.bf16.mxu0 %v13057_v25  ;;  %v17476_v59 = vld [vmem:[#allocation75_spill] sm:$0xff] }
 0x29a   :  { %5622 = vmatpush1.bf16.msra.mxu1 %v13052_v54  ;;  %5437 = vmatprep.mubr.bf16.mxu1 %v11770_v6  ;;  %v11808_v25 = vcombine.high %v17476_v59, %v17475_v29  ;;  %v13087_v54 = vld [vmem:[#allocation4 + $0x724] ss:$8 sps:$4 sm:$0xff]   ;;  %v13085_v6 = vld [vmem:[#allocation4 + $0x720] ss:$8 sps:$4 sm:$0xff]  }
 0x29b   :  { %5541 = vmatmul.mubr.bf16.vlgmr.msra.gmra.mxu0 %v11753_v40  ;;  %5623 = vmatprep.subr.bf16.mxu1 %v13060_v9  ;;  %v11805_v40 = vcombine.low %v17474_v46, %v17473_v32  ;;  %v13093_v9 = vld [vmem:[#allocation4 + $0x714] ss:$8 sps:$4 sm:$0xff]   ;;  %v13106_v32 = vld [vmem:[#allocation4 + $0x6e0] ss:$8 sps:$4 sm:$0xff]  }
 0x29c   :  { %5735 = vmatpush1.bf16.msra.mxu0 %v13055_v53  ;;  %5550 = vmatprep.mubr.bf16.mxu0 %v11772_v43  ;;  %v13088_v53 = vld [vmem:[#allocation4 + $0x610] ss:$8 sps:$4 sm:$0xff]   ;;  %v11824_v43 = vcombine.high %v17478_v50, %v17477_v30  ;;  %v13114_v46 = vld [vmem:[#allocation4 + $0x6d4] ss:$8 sps:$4 sm:$0xff]  }
 0x29d   :  { %5736 = vmatprep.subr.bf16.mxu0 %v13063_v3  ;;  %v11807_v3 = vcombine.low %v17476_v59, %v17475_v29  ;;  %v17485_v29 = vld [vmem:[#allocation108_spill] sm:$0xff]  ;;  %v17486_v59 = vld [vmem:[#allocation103_spill] sm:$0xff] }
 0x29e   :  { %5624 = vmatpush1.bf16.msra.mxu1 %v13058_v4  ;;  %v13096_v4 = vld [vmem:[#allocation4 + $0x604] ss:$8 sps:$4 sm:$0xff]  }
 0x29f   :  { %5625 = vmatprep.subr.bf16.mxu1 %v13066_v55  ;;  %v13091_v55 = vld [vmem:[#allocation4 + $0x710] ss:$8 sps:$4 sm:$0xff]  }
 0x2a0   :  { %5737 = vmatpush1.bf16.msra.mxu0 %v13061_v60  ;;  %v17479_v60 = vld [vmem:[#allocation86_spill] sm:$0xff] }
 0x2a1   :  { %5438 = vmatmul.mubr.bf16.gmra.mxu1 %v11769_v58  ;;  %5738 = vmatprep.subr.bf16.mxu0 %v13069_v35  ;;  %v17480_v58 = vld [vmem:[#allocation83_spill] sm:$0xff] }
 0x2a2   :  { %5626 = vmatpush1.bf16.msra.mxu1 %v13064_v62  ;;  %5447 = vmatprep.mubr.bf16.mxu1 %v11788_v12  ;;  %v11826_v35 = vcombine.high %v17480_v58, %v17479_v60  ;;  %v13099_v62 = vld [vmem:[#allocation4 + $0x704] ss:$8 sps:$4 sm:$0xff]   ;;  %v13097_v12 = vld [vmem:[#allocation4 + $0x700] ss:$8 sps:$4 sm:$0xff]  }
 0x2a3   :  { %5551 = vmatmul.mubr.bf16.gmra.mxu0 %v11771_v44  ;;  %5627 = vmatprep.subr.bf16.mxu1 %v13072_v27  ;;  %v11823_v44 = vcombine.low %v17478_v50, %v17477_v30  ;;  %v13105_v27 = vld [vmem:[#allocation4 + $0x7f4] ss:$8 sps:$4 sm:$0xff]   ;;  %v13118_v30 = vld [vmem:[#allocation4 + $0x6c0] ss:$8 sps:$4 sm:$0xff]  }
 0x2a4   :  { %5739 = vmatpush1.bf16.msra.mxu0 %v13067_v20  ;;  %5560 = vmatprep.mubr.bf16.mxu0 %v11790_v21  ;;  %v13100_v20 = vld [vmem:[#allocation4 + $0x6f0] ss:$8 sps:$4 sm:$0xff]   ;;  %v11842_v21 = vcombine.high %v17482_v49, %v17481_v26  ;;  %v13126_v50 = vld [vmem:[#allocation4 + $0x6b4] ss:$8 sps:$4 sm:$0xff]  }
 0x2a5   :  { %5740 = vmatprep.subr.bf16.mxu0 %v13075_v34  ;;  %v11825_v34 = vcombine.low %v17480_v58, %v17479_v60  ;;  %v17489_v60 = vld [vmem:[#allocation118_spill] sm:$0xff]  ;;  %v17490_v58 = vld [vmem:[#allocation113_spill] sm:$0xff] }
 0x2a6   :  { %5628 = vmatpush1.bf16.msra.mxu1 %v13070_v17  ;;  %v13108_v17 = vld [vmem:[#allocation4 + $0x6e4] ss:$8 sps:$4 sm:$0xff]  }
 0x2a7   :  { %5629 = vmatprep.subr.bf16.mxu1 %v13078_v10  ;;  %v13103_v10 = vld [vmem:[#allocation4 + $0x7f0] ss:$8 sps:$4 sm:$0xff]  }
 0x2a8   :  { %5741 = vmatpush1.bf16.msra.mxu0 %v13073_v15  ;;  %v17483_v15 = vld [vmem:[#allocation96_spill] sm:$0xff] }
 0x2a9   :  { %5448 = vmatmul.mubr.bf16.gmra.mxu1 %v11787_v14  ;;  %5742 = vmatprep.subr.bf16.mxu0 %v13081_v52  ;;  %v17484_v14 = vld [vmem:[#allocation91_spill] sm:$0xff] }
 0x2aa   :  { %5630 = vmatpush1.bf16.msra.mxu1 %v13076_v19  ;;  %5457 = vmatprep.mubr.bf16.mxu1 %v11806_v28  ;;  %v11844_v52 = vcombine.high %v17484_v14, %v17483_v15  ;;  %v13111_v19 = vld [vmem:[#allocation4 + $0x7e4] ss:$8 sps:$4 sm:$0xff]   ;;  %v13109_v28 = vld [vmem:[#allocation4 + $0x7e0] ss:$8 sps:$4 sm:$0xff]  }
 0x2ab   :  { %5561 = vmatmul.mubr.bf16.gmra.mxu0 %v11789_v18  ;;  %5631 = vmatprep.subr.bf16.mxu1 %v13084_v41  ;;  %v11841_v18 = vcombine.low %v17482_v49, %v17481_v26  ;;  %v13117_v41 = vld [vmem:[#allocation4 + $0x7d4] ss:$8 sps:$4 sm:$0xff]   ;;  %v13130_v26 = vld [vmem:[#allocation4 + $0x6a0] ss:$8 sps:$4 sm:$0xff]  }
 0x2ac   :  { %5743 = vmatpush1.bf16.msra.mxu0 %v13079_v24  ;;  %5570 = vmatprep.mubr.bf16.mxu0 %v11808_v25  ;;  %v13112_v24 = vld [vmem:[#allocation4 + $0x6d0] ss:$8 sps:$4 sm:$0xff]   ;;  %v11860_v25 = vcombine.high %v17486_v59, %v17485_v29  ;;  %v13138_v49 = vld [vmem:[#allocation4 + $0x694] ss:$8 sps:$4 sm:$0xff]  }
 0x2ad   :  { %5744 = vmatprep.subr.bf16.mxu0 %v13087_v54  ;;  %v11843_v54 = vcombine.low %v17484_v14, %v17483_v15  ;;  %v13144_v14 = vld [vmem:[#allocation4 + $0x684] ss:$8 sps:$4 sm:$0xff]  }
 0x2ae   :  { %5632 = vmatpush1.bf16.msra.mxu1 %v13082_v36  ;;  %v13120_v36 = vld [vmem:[#allocation4 + $0x6c4] ss:$8 sps:$4 sm:$0xff]  }
 0x2af   :  { %5633 = vmatprep.subr.bf16.mxu1 %v13090_v8  ;;  %v13115_v8 = vld [vmem:[#allocation4 + $0x7d0] ss:$8 sps:$4 sm:$0xff]  }
 0x2b0   :  { %5745 = vmatpush1.bf16.msra.mxu0 %v13085_v6  ;;  %v17487_v6 = vld [vmem:[#allocation107_spill] sm:$0xff] }
 0x2b1   :  { %5458 = vmatmul.mubr.bf16.gmra.mxu1 %v11805_v40  ;;  %5746 = vmatprep.subr.bf16.mxu0 %v13093_v9  ;;  %v17488_v40 = vld [vmem:[#allocation101_spill] sm:$0xff] }
 0x2b2   :  { %5634 = vmatpush1.bf16.msra.mxu1 %v13088_v53  ;;  %5467 = vmatprep.mubr.bf16.mxu1 %v11824_v43  ;;  %v11862_v9 = vcombine.high %v17488_v40, %v17487_v6  ;;  %v13123_v53 = vld [vmem:[#allocation4 + $0x7c4] ss:$8 sps:$4 sm:$0xff]   ;;  %v13121_v43 = vld [vmem:[#allocation4 + $0x7c0] ss:$8 sps:$4 sm:$0xff]  }
 0x2b3   :  { %5571 = vmatmul.mubr.bf16.gmra.mxu0 %v11807_v3  ;;  %5635 = vmatprep.subr.bf16.mxu1 %v13096_v4  ;;  %v11859_v3 = vcombine.low %v17486_v59, %v17485_v29  ;;  %v13129_v4 = vld [vmem:[#allocation4 + $0x7b4] ss:$8 sps:$4 sm:$0xff]   ;;  %v13145_v29 = vld [vmem:[#allocation4 + $0x780] ss:$8 sps:$4 sm:$0xff]  }
 0x2b4   :  { %5747 = vmatpush1.bf16.msra.mxu0 %v13091_v55  ;;  %5580 = vmatprep.mubr.bf16.mxu0 %v11826_v35  ;;  %v13124_v55 = vld [vmem:[#allocation4 + $0x6b0] ss:$8 sps:$4 sm:$0xff]   ;;  %v11878_v35 = vcombine.high %v17490_v58, %v17489_v60 }
 0x2b5   :  { %5748 = vmatprep.subr.bf16.mxu0 %v13099_v62  ;;  %v11861_v62 = vcombine.low %v17488_v40, %v17487_v6  ;;  %v17495_v59 = vld [vmem:[#allocation43_spill] sm:$0xff]  ;;  %v17497_v40 = vld [vmem:[#allocation66_spill] sm:$0xff] }
 0x2b6   :  { %5636 = vmatpush1.bf16.msra.mxu1 %v13094_v63  ;;  %v13132_v63 = vld [vmem:[#allocation4 + $0x6a4] ss:$8 sps:$4 sm:$0xff]  }
 0x2b7   :  { %5637 = vmatprep.subr.bf16.mxu1 %v13102_v56  ;;  %v13127_v56 = vld [vmem:[#allocation4 + $0x7b0] ss:$8 sps:$4 sm:$0xff]  }
 0x2b8   :  { %5749 = vmatpush1.bf16.msra.mxu0 %v13097_v12  ;;  %v17491_v12 = vld [vmem:[#allocation116_spill] sm:$0xff] }
 0x2b9   :  { %5468 = vmatmul.mubr.bf16.gmra.mxu1 %v11823_v44  ;;  %5750 = vmatprep.subr.bf16.mxu0 %v13105_v27  ;;  %v17492_v44 = vld [vmem:[#allocation112_spill] sm:$0xff] }
 0x2ba   :  { %5638 = vmatpush2.bf16.msra.mxu1 %v13100_v20  ;;  %5477 = vmatprep.mubr.bf16.mxu1 %v11842_v21  ;;  %v11880_v27 = vcombine.high %v17492_v44, %v17491_v12  ;;  %v13135_v20 = vld [vmem:[#allocation4 + $0x7a4] ss:$8 sps:$4 sm:$0xff]   ;;  %v13133_v21 = vld [vmem:[#allocation4 + $0x7a0] ss:$8 sps:$4 sm:$0xff]   ;;  %v11879_v15 = vcombine.low %v17492_v44, %v17491_v12 }
 0x2bb   :  { %5581 = vmatmul.mubr.bf16.gmra.mxu0 %v11825_v34  ;;  %5639 = vmatprep.subr.bf16.mxu1 %v13108_v17  ;;  %v11877_v34 = vcombine.low %v17490_v58, %v17489_v60  ;;  %v13141_v17 = vld [vmem:[#allocation4 + $0x794] ss:$8 sps:$4 sm:$0xff]  }
 0x2bc   :  { %5751 = vmatpush2.bf16.msra.mxu0 %v13103_v10  ;;  %5590 = vmatprep.mubr.bf16.mxu0 %v11844_v52  ;;  %v13136_v10 = vld [vmem:[#allocation4 + $0x690] ss:$8 sps:$4 sm:$0xff]  }
 0x2bd   :  { %5752 = vmatprep.subr.bf16.mxu0 %v13111_v19  ;;  %v13139_v52 = vld [vmem:[#allocation4 + $0x790] ss:$8 sps:$4 sm:$0xff]  }
 0x2be   :  { %5640 = vmatpush2.bf16.msra.mxu1 %v13106_v32  ;;  %v17493_v19 = vld [vmem:[#allocation56_spill] sm:$0xff]  ;;  %v17494_v32 = vld [vmem:[#allocation51_spill] sm:$0xff] }
 0x2bf   :  { %5641 = vmatprep.subr.bf16.mxu1 %v13114_v46  ;;  %v11758_v46 = vcombine.high %v17494_v32, %v17493_v19 }
 0x2c0   :  { %5753 = vmatpush2.bf16.msra.mxu0 %v13109_v28  ;;  %v13147_v28 = vld [vmem:[#allocation4 + $0x784] ss:$8 sps:$4 sm:$0xff]  }
 0x2c1   :  { %5478 = vmatmul.mubr.bf16.gmra.mxu1 %v11841_v18  ;;  %5754 = vmatprep.subr.bf16.mxu0 %v13117_v41  ;;  %v13142_v18 = vld [vmem:[#allocation4 + $0x680] ss:$8 sps:$4 sm:$0xff]   ;;  %v2627_v41 = vld [vmem:[#allocation13] sm:$0x3] }
 0x2c2   :  { %5642 = vmatpush2.bf16.msra.mxu1 %v13112_v24  ;;  %5487 = vmatprep.mubr.bf16.mxu1 %v11860_v25  ;;  %v13150_v24 = vld [vmem:[#allocation4 + $0x874] ss:$8 sps:$4 sm:$0xff]   ;;  %v15072_v25 = vrot.slane %v2627_v41, %v17495_v59 }
 0x2c3   :  { %5591 = vmatmul.mubr.bf16.gmra.mxu0 %v11843_v54  ;;  %5643 = vmatprep.subr.bf16.mxu1 %v13120_v36  ;;  %v13148_v54 = vld [vmem:[#allocation4 + $0x870] ss:$8 sps:$4 sm:$0xff]   ;;  %v11757_v36 = vcombine.low %v17494_v32, %v17493_v19 }
 0x2c4   :  { %5755 = vmatpush2.bf16.msra.mxu0 %v13115_v8  ;;  %5600 = vmatprep.mubr.bf16.mxu0 %v11862_v9  ;;  %v13153_v8 = vld [vmem:[#allocation4 + $0x864] ss:$8 sps:$4 sm:$0xff]   ;;  %v17498_v9 = vld [vmem:[#allocation61_spill] sm:$0xff] }
 0x2c5   :  { %5756 = vmatprep.subr.bf16.mxu0 %v13123_v53  ;;  %v11776_v53 = vcombine.high %v17498_v9, %v17497_v40  ;;  %v11775_v44 = vcombine.low %v17498_v9, %v17497_v40 }
 0x2c6   :  { %5644 = vmatpush2.bf16.msra.mxu1 %v13118_v30 }
 0x2c7   :  { %5645 = vmatprep.subr.bf16.mxu1 %v13126_v50 }
 0x2c8   :  { %5757 = vmatpush2.bf16.msra.mxu0 %v13121_v43  ;;  %v13151_v43 = vld [vmem:[#allocation4 + $0x860] ss:$8 sps:$4 sm:$0xff]  }
 0x2c9   :  { %5488 = vmatmul.mubr.bf16.gmra.mxu1 %v11859_v3  ;;  %5758 = vmatprep.subr.bf16.mxu0 %v13129_v4 }
 0x2ca   :  { %5646 = vmatpush2.bf16.msra.mxu1 %v13124_v55  ;;  %5497 = vmatprep.mubr.bf16.mxu1 %v11878_v35  ;;  %v13156_v55 = vld [vmem:[#allocation4 + $0x854] ss:$8 sps:$4 sm:$0xff]  }
 0x2cb   :  { %5601 = vmatmul.mubr.bf16.gmra.mxu0 %v11861_v62  ;;  %5647 = vmatprep.subr.bf16.mxu1 %v13132_v63 }
 0x2cc   :  { %5759 = vmatpush2.bf16.msra.mxu0 %v13127_v56  ;;  %5610 = vmatprep.mubr.bf16.mxu0 %v11880_v27  ;;  %v13154_v56 = vld [vmem:[#allocation4 + $0x850] ss:$8 sps:$4 sm:$0xff]   ;;  %v13159_v27 = vld [vmem:[#allocation4 + $0x844] ss:$8 sps:$4 sm:$0xff]  }
 0x2cd   :  { %5760 = vmatprep.subr.bf16.mxu0 %v13135_v20 }
 0x2ce   :  { %5648 = vmatpush2.bf16.msra.mxu1 %v13130_v26 }
 0x2cf   :  { %5649 = vmatprep.subr.bf16.mxu1 %v13138_v49  ;;  %v17499_v49 = vld [vmem:[#allocation76_spill] sm:$0xff] }
 0x2d0   :  { %5761 = vmatpush2.bf16.msra.mxu0 %v13133_v21  ;;  %v17500_v21 = vld [vmem:[#allocation71_spill] sm:$0xff] }
 0x2d1   :  { %5498 = vmatmul.mubr.bf16.gmra.mxu1 %v11877_v34  ;;  %5762 = vmatprep.subr.bf16.mxu0 %v13141_v17  ;;  %v11794_v34 = vcombine.high %v17500_v21, %v17499_v49  ;;  %v11793_v9 = vcombine.low %v17500_v21, %v17499_v49 }
 0x2d2   :  { %5650 = vmatpush2.bf16.msra.mxu1 %v13136_v10  ;;  %5653 = vmatprep.mubr.bf16.mxu1 %v14848_v5  ;;  %v17496_v5 = vld [vmem:[#allocation44_spill] sm:$0xff] }
 0x2d3   :  { %5611 = vmatmul.mubr.bf16.gmra.mxu0 %v11879_v15  ;;  %5651 = vmatprep.subr.bf16.mxu1 %v13144_v14  ;;  %v15077_v6 = vrot.slane %v2627_v41, %v17496_v5 }
 0x2d4   :  { %5763 = vmatpush2.bf16.msra.mxu0 %v13139_v52  ;;  %5766 = vmatprep.mubr.bf16.mxu0 %v11758_v46  ;;  %v13157_v52 = vld [vmem:[#allocation4 + $0x840] ss:$8 sps:$4 sm:$0xff]   ;;  %v13162_v46 = vld [vmem:[#allocation4 + $0x834] ss:$8 sps:$4 sm:$0xff]  }
 0x2d5   :  { %5764 = vmatprep.subr.bf16.mxu0 %v13147_v28 }
 0x2d6   :  { %5652 = vmatpush2.bf16.msra.mxu1 %v13142_v18 }
 0x2d7   :  { %5847 = vmatprep.subr.bf16.mxu1 %v13150_v24 }
 0x2d8   :  { %5765 = vmatpush2.bf16.msra.mxu0 %v13145_v29 }
 0x2d9   :  { %v4977_v30 = vpop.f32.mrf.mxu1  ;;  %5654 = vmatmul.mubr.bf16.vlgmr.msra.gmra.mxu1 %v14857_v11 }
 0x2da   :  { %v4978_v50 = vadd.f32 %v4977_v30, %v15072_v25  ;;  %5848 = vmatpush1.bf16.msra.mxu1 %v13148_v54  ;;  %5663 = vmatprep.mubr.bf16.mxu1 %v14861_v51  ;;  %v13160_v54 = vld [vmem:[#allocation4 + $0x830] ss:$8 sps:$4 sm:$0xff]  }
 0x2db   :  { %v4979_v3 = vpop.f32.mrf.mxu1  ;;  %v5090_v4 = vpop.f32.mrf.mxu0  ;;  %5767 = vmatmul.mubr.bf16.vlgmr.msra.gmra.mxu0 %v11757_v36  ;;  %5849 = vmatprep.subr.bf16.mxu1 %v13153_v8  ;;  %v17501_v36 = vld [vmem:[#allocation35_spill] sm:$0xff] }
 0x2dc   :  { %v4980_v60 = vadd.f32 %v4979_v3, %v15077_v6  ;;  %v15085_v58 = vadd.f32 %v5090_v4, %v4978_v50  ;;  %5776 = vmatprep.mubr.bf16.mxu0 %v11776_v53  ;;  %v13165_v53 = vld [vmem:[#allocation4 + $0x824] ss:$8 sps:$4 sm:$0xff]   ;;  %v17503_v3 = vld [vmem:[#allocation80_spill] sm:$0xff] }
 0x2dd   :  { %v4981_v35 = vpop.f32.mrf.mxu1  ;;  %v5092_v62 = vpop.f32.mrf.mxu0 }
 0x2de   :  { %v4982_v11 = vadd.f32 %v4981_v35, %v15072_v25  ;;  %v15088_v63 = vadd.f32 %v5092_v62, %v4980_v60  ;;  %5850 = vmatpush1.bf16.msra.mxu1 %v13151_v43  ;;  %v17502_v43 = vld [vmem:[#allocation41_spill] sm:$0xff] }
 0x2df   :  { %v4983_v12 = vpop.f32.mrf.mxu1  ;;  %v5094_v51 = vpop.f32.mrf.mxu0  ;;  %5851 = vmatprep.subr.bf16.mxu1 %v13156_v55  ;;  %v11812_v4 = vcombine.high %v17503_v3, %v17502_v43 }
 0x2e0   :  { %v4984_v20 = vadd.f32 %v4983_v12, %v15077_v6  ;;  %v15093_v26 = vadd.f32 %v5094_v51, %v4982_v11  ;;  %v13163_v11 = vld [vmem:[#allocation4 + $0x820] ss:$8 sps:$4 sm:$0xff]   ;;  %v13168_v51 = vld [vmem:[#allocation4 + $0x814] ss:$8 sps:$4 sm:$0xff]  }
 0x2e1   :  { %v4987_v17 = vpop.f32.mrf.mxu1  ;;  %v5096_v10 = vpop.f32.mrf.mxu0  ;;  %5664 = vmatmul.mubr.bf16.gmra.mxu1 %v14871_v47 }
 0x2e2   :  { %v4988_v15 = vadd.f32 %v4987_v17, %v15072_v25  ;;  %v15099_v14 = vadd.f32 %v5096_v10, %v4984_v20  ;;  %5852 = vmatpush1.bf16.msra.mxu1 %v13154_v56  ;;  %5673 = vmatprep.mubr.bf16.mxu1 %v14875_v0  ;;  %v11810_v0 = vcombine.high %v17451_v45, %v17501_v36  ;;  %v13166_v17 = vld [vmem:[#allocation4 + $0x810] ss:$8 sps:$4 sm:$0xff]  }
 0x2e3   :  { %v4989_v19 = vpop.f32.mrf.mxu1  ;;  %v5100_v32 = vpop.f32.mrf.mxu0  ;;  %5777 = vmatmul.mubr.bf16.gmra.mxu0 %v11775_v44  ;;  %5853 = vmatprep.subr.bf16.mxu1 %v13159_v27 }
 0x2e4   :  { %v4990_v28 = vadd.f32 %v4989_v19, %v15077_v6  ;;  %v15103_v18 = vadd.f32 %v5100_v32, %v4988_v15  ;;  %5786 = vmatprep.mubr.bf16.mxu0 %v11794_v34  ;;  %v13171_v19 = vld [vmem:[#allocation4 + $0x804] ss:$8 sps:$4 sm:$0xff]  }
 0x2e5   :  { %v4991_v41 = vpop.f32.mrf.mxu1  ;;  %v5102_v47 = vpop.f32.mrf.mxu0 }
 0x2e6   :  { %v4992_v24 = vadd.f32 %v4991_v41, %v15072_v25  ;;  %v15106_v29 = vadd.f32 %v5102_v47, %v4990_v28  ;;  %5854 = vmatpush1.bf16.msra.mxu1 %v13157_v52  ;;  %v11811_v52 = vcombine.low %v17503_v3, %v17502_v43  ;;  %v17504_v28 = vld [vmem:[#allocation94_spill] sm:$0xff]  ;;  %v17505_v41 = vld [vmem:[#allocation89_spill] sm:$0xff] }
 0x2e7   :  { %v4993_v8 = vpop.f32.mrf.mxu1  ;;  %v5104_v40 = vpop.f32.mrf.mxu0  ;;  %5855 = vmatprep.subr.bf16.mxu1 %v13162_v46 }
 0x2e8   :  { %v4994_v30 = vadd.f32 %v4993_v8, %v15077_v6  ;;  %v15113_v50 = vadd.f32 %v5104_v40, %v4992_v24 }
 0x2e9   :  { %v4997_v55 = vpop.f32.mrf.mxu1  ;;  %v5106_v60 = vpop.f32.mrf.mxu0  ;;  %5674 = vmatmul.mubr.bf16.gmra.mxu1 %v14885_v33  ;;  %v11809_v33 = vcombine.low %v17451_v45, %v17501_v36  ;;  %v11830_v45 = vcombine.high %v17505_v41, %v17504_v28 }
 0x2ea   :  { %v4998_v35 = vadd.f32 %v4997_v55, %v15072_v25  ;;  %v15119_v62 = vadd.f32 %v5106_v60, %v4994_v30  ;;  %5856 = vmatpush1.bf16.msra.mxu1 %v13160_v54  ;;  %5683 = vmatprep.mubr.bf16.mxu1 %v11810_v0  ;;  %v13169_v0 = vld [vmem:[#allocation4 + $0x800] ss:$8 sps:$4 sm:$0xff]   ;;  %v13172_v60 = vld [vmem:[#allocation4 + $0x8f0] ss:$8 sps:$4 sm:$0xff]  }
 0x2eb   :  { %v4999_v56 = vpop.f32.mrf.mxu1  ;;  %v5110_v12 = vpop.f32.mrf.mxu0  ;;  %5787 = vmatmul.mubr.bf16.gmra.mxu0 %v11793_v9  ;;  %5857 = vmatprep.subr.bf16.mxu1 %v13165_v53  ;;  %v13174_v9 = vld [vmem:[#allocation4 + $0x8f4] ss:$8 sps:$4 sm:$0xff]  }
 0x2ec   :  { %v5000_v44 = vadd.f32 %v4999_v56, %v15077_v6  ;;  %v15122_v27 = vadd.f32 %v5110_v12, %v4998_v35  ;;  %5796 = vmatprep.mubr.bf16.mxu0 %v11812_v4  ;;  %v13177_v56 = vld [vmem:[#allocation4 + $0x8e4] ss:$8 sps:$4 sm:$0xff]  }
 0x2ed   :  { %v5001_v20 = vpop.f32.mrf.mxu1  ;;  %v5112_v49 = vpop.f32.mrf.mxu0 }
 0x2ee   :  { %v5002_v21 = vadd.f32 %v5001_v20, %v15072_v25  ;;  %v15127_v34 = vadd.f32 %v5112_v49, %v5000_v44  ;;  %5858 = vmatpush1.bf16.msra.mxu1 %v13163_v11  ;;  %v11829_v11 = vcombine.low %v17505_v41, %v17504_v28  ;;  %v17506_v44 = vld [vmem:[#allocation104_spill] sm:$0xff]  ;;  %v17507_v20 = vld [vmem:[#allocation99_spill] sm:$0xff] }
 0x2ef   :  { %v5003_v10 = vpop.f32.mrf.mxu1  ;;  %v5114_v15 = vpop.f32.mrf.mxu0  ;;  %5859 = vmatprep.subr.bf16.mxu1 %v13168_v51  ;;  %v11848_v49 = vcombine.high %v17507_v20, %v17506_v44 }
 0x2f0   :  { %v5004_v32 = vadd.f32 %v5003_v10, %v15077_v6  ;;  %v15132_v46 = vadd.f32 %v5114_v15, %v5002_v21  ;;  %v13175_v15 = vld [vmem:[#allocation4 + $0x8e0] ss:$8 sps:$4 sm:$0xff]  }
 0x2f1   :  { %v5007_v47 = vpop.f32.mrf.mxu1  ;;  %v5116_v24 = vpop.f32.mrf.mxu0  ;;  %5684 = vmatmul.mubr.bf16.gmra.mxu1 %v11809_v33 }
 0x2f2   :  { %v5008_v54 = vadd.f32 %v5007_v47, %v15072_v25  ;;  %v15137_v36 = vadd.f32 %v5116_v24, %v5004_v32  ;;  %5860 = vmatpush1.bf16.msra.mxu1 %v13166_v17  ;;  %5693 = vmatprep.mubr.bf16.mxu1 %v14898_v57  ;;  %v13180_v32 = vld [vmem:[#allocation4 + $0x8d4] ss:$8 sps:$4 sm:$0xff]  }
 0x2f3   :  { %v5009_v8 = vpop.f32.mrf.mxu1  ;;  %v5120_v40 = vpop.f32.mrf.mxu0  ;;  %5797 = vmatmul.mubr.bf16.gmra.mxu0 %v11811_v52  ;;  %5861 = vmatprep.subr.bf16.mxu1 %v13171_v19 }
 0x2f4   :  { %v5010_v53 = vadd.f32 %v5009_v8, %v15077_v6  ;;  %v15141_v30 = vadd.f32 %v5120_v40, %v5008_v54  ;;  %5806 = vmatprep.mubr.bf16.mxu0 %v11830_v45  ;;  %v13178_v54 = vld [vmem:[#allocation4 + $0x8d0] ss:$8 sps:$4 sm:$0xff]   ;;  %v11847_v8 = vcombine.low %v17507_v20, %v17506_v44  ;;  %v13183_v40 = vld [vmem:[#allocation4 + $0x8c4] ss:$8 sps:$4 sm:$0xff]   ;;  %v13186_v20 = vld [vmem:[#allocation4 + $0x8b4] ss:$8 sps:$4 sm:$0xff]  }
 0x2f5   :  { %v5011_v43 = vpop.f32.mrf.mxu1  ;;  %v5122_v3 = vpop.f32.mrf.mxu0 }
 0x2f6   :  { %v5012_v4 = vadd.f32 %v5011_v43, %v15072_v25  ;;  %v15144_v55 = vadd.f32 %v5122_v3, %v5010_v53  ;;  %5862 = vmatpush1.bf16.msra.mxu1 %v13169_v0  ;;  %v17508_v43 = vld [vmem:[#allocation115_spill] sm:$0xff]  ;;  %v17509_v3 = vld [vmem:[#allocation110_spill] sm:$0xff] }
 0x2f7   :  { %v5013_v35 = vpop.f32.mrf.mxu1  ;;  %v5124_v57 = vpop.f32.mrf.mxu0  ;;  %5863 = vmatprep.subr.bf16.mxu1 %v13174_v9 }
 0x2f8   :  { %v5014_v12 = vadd.f32 %v5013_v35, %v15077_v6  ;;  %v15149_v51 = vadd.f32 %v5124_v57, %v5012_v4  ;;  %v11866_v4 = vcombine.high %v17509_v3, %v17508_v43 }
 0x2f9   :  { %v5017_v33 = vpop.f32.mrf.mxu1  ;;  %v5126_v21 = vpop.f32.mrf.mxu0  ;;  %5694 = vmatmul.mubr.bf16.gmra.mxu1 %v14907_v16 }
 0x2fa   :  { %v5018_v17 = vadd.f32 %v5017_v33, %v15072_v25  ;;  %v15155_v10 = vadd.f32 %v5126_v21, %v5014_v12  ;;  %5864 = vmatpush2.bf16.msra.mxu1 %v13172_v60  ;;  %5703 = vmatprep.mubr.bf16.mxu1 %v14911_v22 }
 0x2fb   :  { %v5019_v52 = vpop.f32.mrf.mxu1  ;;  %v5130_v19 = vpop.f32.mrf.mxu0  ;;  %5807 = vmatmul.mubr.bf16.gmra.mxu0 %v11829_v11  ;;  %5865 = vmatprep.subr.bf16.mxu1 %v13177_v56  ;;  %v13181_v56 = vld [vmem:[#allocation4 + $0x8c0] ss:$8 sps:$4 sm:$0xff]  }
 0x2fc   :  { %v5020_v28 = vadd.f32 %v5019_v52, %v15077_v6  ;;  %v15159_v41 = vadd.f32 %v5130_v19, %v5018_v17  ;;  %5816 = vmatprep.mubr.bf16.mxu0 %v11848_v49  ;;  %v13184_v52 = vld [vmem:[#allocation4 + $0x8b0] ss:$8 sps:$4 sm:$0xff]  }
 0x2fd   :  { %v5021_v45 = vpop.f32.mrf.mxu1  ;;  %v5132_v16 = vpop.f32.mrf.mxu0  ;;  %v17510_v19 = vld [vmem:[#allocation36_spill] sm:$0xff] }
 0x2fe   :  { %v5022_v47 = vadd.f32 %v5021_v45, %v15072_v25  ;;  %v15162_v24 = vadd.f32 %v5132_v16, %v5020_v28  ;;  %5866 = vmatpush2.bf16.msra.mxu1 %v13175_v15  ;;  %v11865_v45 = vcombine.low %v17509_v3, %v17508_v43  ;;  %v13189_v16 = vld [vmem:[#allocation4 + $0x8a4] ss:$8 sps:$4 sm:$0xff]  }
 0x2ff   :  { %v5023_v0 = vpop.f32.mrf.mxu1  ;;  %v5134_v22 = vpop.f32.mrf.mxu0  ;;  %5867 = vmatprep.subr.bf16.mxu1 %v13180_v32 }
 0x300   :  { %v5024_v9 = vadd.f32 %v5023_v0, %v15077_v6  ;;  %v15167_v53 = vadd.f32 %v5134_v22, %v5022_v47  ;;  %v17511_v0 = vld [vmem:[#allocation42_spill] sm:$0xff]  ;;  %v17512_v22 = vld [vmem:[#allocation119_spill] sm:$0xff] }
 0x301   :  { %v5027_v60 = vpop.f32.mrf.mxu1  ;;  %v5136_v35 = vpop.f32.mrf.mxu0  ;;  %5704 = vmatmul.mubr.bf16.gmra.mxu1 %v14921_v42 }
 0x302   :  { %v5028_v57 = vadd.f32 %v5027_v60, %v15072_v25  ;;  %v15173_v11 = vadd.f32 %v5136_v35, %v5024_v9  ;;  %5868 = vmatpush2.bf16.msra.mxu1 %v13178_v54  ;;  %5713 = vmatprep.mubr.bf16.mxu1 %v14925_v48  ;;  %v11882_v48 = vcombine.high %v17460_v37, %v17510_v19  ;;  %v13187_v35 = vld [vmem:[#allocation4 + $0x8a0] ss:$8 sps:$4 sm:$0xff]  }
 0x303   :  { %v5029_v12 = vpop.f32.mrf.mxu1  ;;  %v5140_v44 = vpop.f32.mrf.mxu0  ;;  %5817 = vmatmul.mubr.bf16.gmra.mxu0 %v11847_v8  ;;  %5869 = vmatprep.subr.bf16.mxu1 %v13183_v40  ;;  %v11884_v8 = vcombine.high %v17512_v22, %v17511_v0 }
 0x304   :  { %v5030_v49 = vadd.f32 %v5029_v12, %v15077_v6  ;;  %v15177_v33 = vadd.f32 %v5140_v44, %v5028_v57  ;;  %5826 = vmatprep.mubr.bf16.mxu0 %v11866_v4  ;;  %v13192_v57 = vld [vmem:[#allocation4 + $0x894] ss:$8 sps:$4 sm:$0xff]  }
 0x305   :  { %v5031_v21 = vpop.f32.mrf.mxu1  ;;  %v5142_v42 = vpop.f32.mrf.mxu0 }
 0x306   :  { %v5032_v17 = vadd.f32 %v5031_v21, %v15072_v25  ;;  %v15180_v15 = vadd.f32 %v5142_v42, %v5030_v49  ;;  %5870 = vmatpush2.bf16.msra.mxu1 %v13181_v56  ;;  %v13190_v42 = vld [vmem:[#allocation4 + $0x890] ss:$8 sps:$4 sm:$0xff]  }
 0x307   :  { %v5033_v32 = vpop.f32.mrf.mxu1  ;;  %v5144_v28 = vpop.f32.mrf.mxu0  ;;  %5871 = vmatprep.subr.bf16.mxu1 %v13186_v20 }
 0x308   :  { %v5034_v47 = vadd.f32 %v5033_v32, %v15077_v6  ;;  %v15187_v54 = vadd.f32 %v5144_v28, %v5032_v17  ;;  %v17513_v17 = vld [vmem:[#allocation55_spill] sm:$0xff] }
 0x309   :  { %v5037_v40 = vpop.f32.mrf.mxu1  ;;  %v5146_v9 = vpop.f32.mrf.mxu0  ;;  %5714 = vmatmul.mubr.bf16.gmra.mxu1 %v14935_v38  ;;  %v11881_v38 = vcombine.low %v17460_v37, %v17510_v19 }
 0x30a   :  { %v5038_v4 = vadd.f32 %v5037_v40, %v15072_v25  ;;  %v15193_v60 = vadd.f32 %v5146_v9, %v5034_v47  ;;  %5872 = vmatpush2.bf16.msra.mxu1 %v13184_v52  ;;  %5723 = vmatprep.mubr.bf16.mxu1 %v11882_v48  ;;  %v17514_v52 = vld [vmem:[#allocation50_spill] sm:$0xff] }
 0x30b   :  { %v5039_v43 = vpop.f32.mrf.mxu1  ;;  %v5150_v3 = vpop.f32.mrf.mxu0  ;;  %5827 = vmatmul.mubr.bf16.gmra.mxu0 %v11865_v45  ;;  %5873 = vmatprep.subr.bf16.mxu1 %v13189_v16  ;;  %v11760_v48 = vcombine.high %v17514_v52, %v17513_v17  ;;  %v11883_v45 = vcombine.low %v17512_v22, %v17511_v0  ;;  %v13195_v16 = vld [vmem:[#allocation4 + $0x884] ss:$8 sps:$4 sm:$0xff]  }
 0x30c   :  { %v5040_v56 = vadd.f32 %v5039_v43, %v15077_v6  ;;  %v15196_v12 = vadd.f32 %v5150_v3, %v5038_v4  ;;  %5836 = vmatprep.mubr.bf16.mxu0 %v11884_v8  ;;  %v13193_v4 = vld [vmem:[#allocation4 + $0x880] ss:$8 sps:$4 sm:$0xff]  }
 0x30d   :  { %v5041_v44 = vpop.f32.mrf.mxu1  ;;  %v5152_v20 = vpop.f32.mrf.mxu0 }
 0x30e   :  { %v5042_v49 = vadd.f32 %v5041_v44, %v15072_v25  ;;  %v15201_v21 = vadd.f32 %v5152_v20, %v5040_v56  ;;  %5874 = vmatpush2.bf16.msra.mxu1 %v13187_v35  ;;  %v11759_v56 = vcombine.low %v17514_v52, %v17513_v17 }
 0x30f   :  { %v5043_v32 = vpop.f32.mrf.mxu1  ;;  %v5154_v28 = vpop.f32.mrf.mxu0  ;;  %5875 = vmatprep.subr.bf16.mxu1 %v13192_v57 }
 0x310   :  { %v5044_v47 = vadd.f32 %v5043_v32, %v15077_v6  ;;  %v15208_v8 = vadd.f32 %v5154_v28, %v5042_v49  ;;  %v17516_v49 = vld [vmem:[#allocation60_spill] sm:$0xff] }
 0x311   :  { %v5047_v37 = vpop.f32.mrf.mxu1  ;;  %v5156_v19 = vpop.f32.mrf.mxu0  ;;  %5724 = vmatmul.mubr.bf16.gmra.mxu1 %v11881_v38  ;;  %v17515_v38 = vld [vmem:[#allocation65_spill] sm:$0xff] }
 0x312   :  { %v5048_v40 = vadd.f32 %v5047_v37, %v15072_v25  ;;  %v15211_v9 = vadd.f32 %v5156_v19, %v5044_v47  ;;  %5876 = vmatpush2.bf16.msra.mxu1 %v13190_v42  ;;  %5879 = vmatprep.mubr.bf16.mxu1 %v11760_v48  ;;  %v11778_v42 = vcombine.high %v17516_v49, %v17515_v38 }
 0x313   :  { %v5049_v35 = vpop.f32.mrf.mxu1  ;;  %v5160_v43 = vpop.f32.mrf.mxu0  ;;  %5837 = vmatmul.mubr.bf16.gmra.mxu0 %v11883_v45  ;;  %5877 = vmatprep.subr.bf16.mxu1 %v13195_v16 }
 0x314   :  { %v5050_v0 = vadd.f32 %v5049_v35, %v15077_v6  ;;  %v15214_v22 = vadd.f32 %v5160_v43, %v5048_v40 }
 0x315   :  { %v5051_v3 = vpop.f32.mrf.mxu1  ;;  %v5162_v57 = vpop.f32.mrf.mxu0 }
 0x316   :  { %v5052_v44 = vadd.f32 %v5051_v3, %v15072_v25  ;;  %v15219_v20 = vadd.f32 %v5162_v57, %v5050_v0  ;;  %5878 = vmatpush2.bf16.msra.mxu1 %v13193_v4  ;;  %v17517_v3 = vld [vmem:[#allocation77_spill] sm:$0xff]  ;;  %v17518_v57 = vld [vmem:[#allocation70_spill] sm:$0xff] }
 0x317   :  { %v5053_v48 = vpop.f32.mrf.mxu1  ;;  %v5164_v32 = vpop.f32.mrf.mxu0 }
 0x318   :  { %v5054_v28 = vadd.f32 %v5053_v48, %v15077_v6  ;;  %v15224_v45 = vadd.f32 %v5164_v32, %v5052_v44  ;;  %v11777_v6 = vcombine.low %v17516_v49, %v17515_v38 }
 0x319   :  { %v5166_v16 = vpop.f32.mrf.mxu0  ;;  %v5203_v47 = vpop.f32.mrf.mxu1  ;;  %5880 = vmatmul.mubr.bf16.vlgmr.msra.gmra.mxu1 %v11759_v56  ;;  %v11796_v56 = vcombine.high %v17518_v57, %v17517_v3 }
 0x31a   :  { %v15226_v37 = vadd.f32 %v5166_v16, %v5054_v28  ;;  %v5204_v17 = vadd.f32 %v5203_v47, %v15085_v58  ;;  %5889 = vmatprep.mubr.bf16.mxu1 %v11778_v42 }
 0x31b   :  { %v5205_v25 = vpop.f32.mrf.mxu1  ;;  %v5316_v52 = vpop.f32.mrf.mxu0 }
 0x31c   :  { %v5206_v19 = vadd.f32 %v5205_v25, %v15088_v63  ;;  %v15230_v40 = vadd.f32 %v5316_v52, %v5204_v17 }
 0x31d   :  { %v5207_v4 = vpop.f32.mrf.mxu1  ;;  %v5318_v35 = vpop.f32.mrf.mxu0 }
 0x31e   :  { %v5208_v43 = vadd.f32 %v5207_v4, %v15093_v26  ;;  %v15235_v0 = vadd.f32 %v5318_v35, %v5206_v19  ;;  %v17519_v4 = vld [vmem:[#allocation39_spill] sm:$0xff] }
 0x31f   :  { %v5209_v58 = vpop.f32.mrf.mxu1  ;;  %v5320_v44 = vpop.f32.mrf.mxu0 }
 0x320   :  { %v5210_v42 = vadd.f32 %v5209_v58, %v15099_v14  ;;  %v15240_v48 = vadd.f32 %v5320_v44, %v5208_v43  ;;  %v11795_v14 = vcombine.low %v17518_v57, %v17517_v3 }
 0x321   :  { %v5213_v63 = vpop.f32.mrf.mxu1  ;;  %v5322_v32 = vpop.f32.mrf.mxu0  ;;  %5890 = vmatmul.mubr.bf16.gmra.mxu1 %v11777_v6 }
 0x322   :  { %v5214_v28 = vadd.f32 %v5213_v63, %v15103_v18  ;;  %v15243_v16 = vadd.f32 %v5322_v32, %v5210_v42  ;;  %5899 = vmatprep.mubr.bf16.mxu1 %v11796_v56  ;;  %v17520_v18 = vld [vmem:[#allocation81_spill] sm:$0xff] }
 0x323   :  { %v5215_v26 = vpop.f32.mrf.mxu1  ;;  %v5326_v38 = vpop.f32.mrf.mxu0  ;;  %v11814_v35 = vcombine.high %v17520_v18, %v17519_v4 }
 0x324   :  { %v5216_v49 = vadd.f32 %v5215_v26, %v15106_v29  ;;  %v15246_v47 = vadd.f32 %v5326_v38, %v5214_v28 }
 0x325   :  { %v5217_v17 = vpop.f32.mrf.mxu1  ;;  %v5328_v25 = vpop.f32.mrf.mxu0 }
 0x326   :  { %v5218_v52 = vadd.f32 %v5217_v17, %v15113_v50  ;;  %v15251_v19 = vadd.f32 %v5328_v25, %v5216_v49  ;;  %v17521_v17 = vld [vmem:[#allocation93_spill] sm:$0xff] }
 0x327   :  { %v5219_v6 = vpop.f32.mrf.mxu1  ;;  %v5330_v43 = vpop.f32.mrf.mxu0 }
 0x328   :  { %v5220_v56 = vadd.f32 %v5219_v6, %v15119_v62  ;;  %v15256_v58 = vadd.f32 %v5330_v43, %v5218_v52  ;;  %v11813_v62 = vcombine.low %v17520_v18, %v17519_v4 }
 0x329   :  { %v5223_v29 = vpop.f32.mrf.mxu1  ;;  %v5332_v44 = vpop.f32.mrf.mxu0  ;;  %5900 = vmatmul.mubr.bf16.gmra.mxu1 %v11795_v14 }
 0x32a   :  { %v5224_v42 = vadd.f32 %v5223_v29, %v15122_v27  ;;  %v15259_v63 = vadd.f32 %v5332_v44, %v5220_v56  ;;  %5909 = vmatprep.mubr.bf16.mxu1 %v11814_v35  ;;  %v17522_v27 = vld [vmem:[#allocation88_spill] sm:$0xff] }
 0x32b   :  { %v5225_v50 = vpop.f32.mrf.mxu1  ;;  %v5336_v3 = vpop.f32.mrf.mxu0  ;;  %v11832_v25 = vcombine.high %v17522_v27, %v17521_v17 }
 0x32c   :  { %v5226_v57 = vadd.f32 %v5225_v50, %v15127_v34  ;;  %v15262_v32 = vadd.f32 %v5336_v3, %v5224_v42 }
 0x32d   :  { %v5227_v28 = vpop.f32.mrf.mxu1  ;;  %v5338_v26 = vpop.f32.mrf.mxu0 }
 0x32e   :  { %v5228_v38 = vadd.f32 %v5227_v28, %v15132_v46  ;;  %v15267_v49 = vadd.f32 %v5338_v26, %v5226_v57  ;;  %v17523_v28 = vld [vmem:[#allocation102_spill] sm:$0xff] }
 0x32f   :  { %v5229_v14 = vpop.f32.mrf.mxu1  ;;  %v5340_v52 = vpop.f32.mrf.mxu0 }
 0x330   :  { %v5230_v35 = vadd.f32 %v5229_v14, %v15137_v36  ;;  %v15272_v6 = vadd.f32 %v5340_v52, %v5228_v38  ;;  %v11831_v36 = vcombine.low %v17522_v27, %v17521_v17 }
 0x331   :  { %v5233_v34 = vpop.f32.mrf.mxu1  ;;  %v5342_v43 = vpop.f32.mrf.mxu0  ;;  %5910 = vmatmul.mubr.bf16.gmra.mxu1 %v11813_v62 }
 0x332   :  { %v5234_v56 = vadd.f32 %v5233_v34, %v15141_v30  ;;  %v15275_v29 = vadd.f32 %v5342_v43, %v5230_v35  ;;  %5919 = vmatprep.mubr.bf16.mxu1 %v11832_v25  ;;  %v17524_v30 = vld [vmem:[#allocation98_spill] sm:$0xff] }
 0x333   :  { %v5235_v46 = vpop.f32.mrf.mxu1  ;;  %v5346_v4 = vpop.f32.mrf.mxu0  ;;  %v11850_v26 = vcombine.high %v17524_v30, %v17523_v28 }
 0x334   :  { %v5236_v18 = vadd.f32 %v5235_v46, %v15144_v55  ;;  %v15278_v44 = vadd.f32 %v5346_v4, %v5234_v56 }
 0x335   :  { %v5237_v42 = vpop.f32.mrf.mxu1  ;;  %v5348_v50 = vpop.f32.mrf.mxu0 }
 0x336   :  { %v5238_v3 = vadd.f32 %v5237_v42, %v15149_v51  ;;  %v15283_v57 = vadd.f32 %v5348_v50, %v5236_v18  ;;  %v17525_v42 = vld [vmem:[#allocation114_spill] sm:$0xff] }
 0x337   :  { %v5239_v62 = vpop.f32.mrf.mxu1  ;;  %v5350_v38 = vpop.f32.mrf.mxu0 }
 0x338   :  { %v5240_v25 = vadd.f32 %v5239_v62, %v15155_v10  ;;  %v15288_v14 = vadd.f32 %v5350_v38, %v5238_v3  ;;  %v11849_v10 = vcombine.low %v17524_v30, %v17523_v28 }
 0x339   :  { %v5243_v55 = vpop.f32.mrf.mxu1  ;;  %v5352_v52 = vpop.f32.mrf.mxu0  ;;  %5920 = vmatmul.mubr.bf16.gmra.mxu1 %v11831_v36 }
 0x33a   :  { %v5244_v35 = vadd.f32 %v5243_v55, %v15159_v41  ;;  %v15291_v34 = vadd.f32 %v5352_v52, %v5240_v25  ;;  %5929 = vmatprep.mubr.bf16.mxu1 %v11850_v26  ;;  %v17526_v41 = vld [vmem:[#allocation109_spill] sm:$0xff] }
 0x33b   :  { %v5245_v51 = vpop.f32.mrf.mxu1  ;;  %v5356_v17 = vpop.f32.mrf.mxu0  ;;  %v11868_v50 = vcombine.high %v17526_v41, %v17525_v42 }
 0x33c   :  { %v5246_v27 = vadd.f32 %v5245_v51, %v15162_v24  ;;  %v15294_v43 = vadd.f32 %v5356_v17, %v5244_v35 }
 0x33d   :  { %v5247_v56 = vpop.f32.mrf.mxu1  ;;  %v5358_v46 = vpop.f32.mrf.mxu0 }
 0x33e   :  { %v5248_v4 = vadd.f32 %v5247_v56, %v15167_v53  ;;  %v15299_v18 = vadd.f32 %v5358_v46, %v5246_v27  ;;  %v17527_v56 = vld [vmem:[#allocation40_spill] sm:$0xff] }
 0x33f   :  { %v5249_v36 = vpop.f32.mrf.mxu1  ;;  %v5360_v3 = vpop.f32.mrf.mxu0 }
 0x340   :  { %v5250_v26 = vadd.f32 %v5249_v36, %v15173_v11  ;;  %v15304_v62 = vadd.f32 %v5360_v3, %v5248_v4  ;;  %v11867_v11 = vcombine.low %v17526_v41, %v17525_v42 }
 0x341   :  { %v5253_v24 = vpop.f32.mrf.mxu1  ;;  %v5362_v38 = vpop.f32.mrf.mxu0  ;;  %5930 = vmatmul.mubr.bf16.gmra.mxu1 %v11849_v10 }
 0x342   :  { %v5254_v25 = vadd.f32 %v5253_v24, %v15177_v33  ;;  %v15307_v55 = vadd.f32 %v5362_v38, %v5250_v26  ;;  %5939 = vmatprep.mubr.bf16.mxu1 %v11868_v50  ;;  %v17528_v33 = vld [vmem:[#allocation117_spill] sm:$0xff] }
 0x343   :  { %v5255_v53 = vpop.f32.mrf.mxu1  ;;  %v5366_v28 = vpop.f32.mrf.mxu0  ;;  %v11886_v46 = vcombine.high %v17528_v33, %v17527_v56 }
 0x344   :  { %v5256_v30 = vadd.f32 %v5255_v53, %v15180_v15  ;;  %v15310_v52 = vadd.f32 %v5366_v28, %v5254_v25 }
 0x345   :  { %v5257_v35 = vpop.f32.mrf.mxu1  ;;  %v5368_v51 = vpop.f32.mrf.mxu0 }
 0x346   :  { %v5258_v17 = vadd.f32 %v5257_v35, %v15187_v54  ;;  %v15315_v27 = vadd.f32 %v5368_v51, %v5256_v30 }
 0x347   :  { %v5259_v10 = vpop.f32.mrf.mxu1  ;;  %v5370_v4 = vpop.f32.mrf.mxu0 }
 0x348   :  { %v5260_v50 = vadd.f32 %v5259_v10, %v15193_v60  ;;  %v15320_v36 = vadd.f32 %v5370_v4, %v5258_v17  ;;  %v11885_v60 = vcombine.low %v17528_v33, %v17527_v56 }
 0x349   :  { %v5263_v15 = vpop.f32.mrf.mxu1  ;;  %v5372_v3 = vpop.f32.mrf.mxu0  ;;  %5940 = vmatmul.mubr.bf16.gmra.mxu1 %v11867_v11 }
 0x34a   :  { %v5264_v26 = vadd.f32 %v5263_v15, %v15196_v12  ;;  %v15323_v24 = vadd.f32 %v5372_v3, %v5260_v50  ;;  %5949 = vmatprep.mubr.bf16.mxu1 %v11886_v46 }
 0x34b   :  { %v5265_v54 = vpop.f32.mrf.mxu1  ;;  %v5376_v42 = vpop.f32.mrf.mxu0 }
 0x34c   :  { %v5266_v41 = vadd.f32 %v5265_v54, %v15201_v21  ;;  %v15326_v38 = vadd.f32 %v5376_v42, %v5264_v26 }
 0x34d   :  { %v5267_v25 = vpop.f32.mrf.mxu1  ;;  %v5378_v53 = vpop.f32.mrf.mxu0 }
 0x34e   :  { %v5268_v28 = vadd.f32 %v5267_v25, %v15208_v8  ;;  %v15331_v30 = vadd.f32 %v5378_v53, %v5266_v41 }
 0x34f   :  { %v5269_v35 = vpop.f32.mrf.mxu1  ;;  %v5380_v12 = vpop.f32.mrf.mxu0 }
 0x350   :  { %v5270_v51 = vadd.f32 %v5269_v35, %v15211_v9  ;;  %v15334_v11 = vadd.f32 %v5380_v12, %v5268_v28 }
 0x351   :  { %v5273_v17 = vpop.f32.mrf.mxu1  ;;  %v5382_v46 = vpop.f32.mrf.mxu0  ;;  %5950 = vmatmul.mubr.bf16.gmra.mxu1 %v11885_v60 }
 0x352   :  { %v5274_v21 = vadd.f32 %v5273_v17, %v15214_v22  ;;  %v15337_v10 = vadd.f32 %v5382_v46, %v5270_v51 }
 0x353   :  { %v5275_v4 = vpop.f32.mrf.mxu1  ;;  %v5386_v50 = vpop.f32.mrf.mxu0 }
 0x354   :  { %v5276_v56 = vadd.f32 %v5275_v4, %v15219_v20  ;;  %v15340_v8 = vadd.f32 %v5386_v50, %v5274_v21 }
 0x355   :  { %v5277_v33 = vpop.f32.mrf.mxu1  ;;  %v5388_v15 = vpop.f32.mrf.mxu0 }
 0x356   :  { %v5278_v3 = vadd.f32 %v5277_v33, %v15224_v45  ;;  %v15343_v9 = vadd.f32 %v5388_v15, %v5276_v56 }
 0x357   :  { %v5279_v26 = vpop.f32.mrf.mxu1  ;;  %v5390_v54 = vpop.f32.mrf.mxu0 }
 0x358   :  { %v5280_v42 = vadd.f32 %v5279_v26, %v15226_v37  ;;  %v15346_v41 = vadd.f32 %v5390_v54, %v5278_v3 }
 0x359   :  { %v5392_v22 = vpop.f32.mrf.mxu0  ;;  %v5429_v25 = vpop.f32.mrf.mxu1 }
 0x35a   :  { %v15348_v53 = vadd.f32 %v5392_v22, %v5280_v42  ;;  %v15351_v20 = vadd.f32 %v5429_v25, %v15230_v40 }
 0x35b   :  { %v5431_v60 = vpop.f32.mrf.mxu1  ;;  %v15353_v28 = vpop.f32.mrf.mxu0 }
 0x35c   :  { %v15356_v45 = vadd.f32 %v5431_v60, %v15235_v0 }
 0x35d   :  { %v5433_v35 = vpop.f32.mrf.mxu1  ;;  %v15358_v12 = vpop.f32.mrf.mxu0 }
 0x35e   :  { %v15361_v37 = vadd.f32 %v5433_v35, %v15240_v48 }
 0x35f   :  { %v5435_v51 = vpop.f32.mrf.mxu1  ;;  %v15363_v17 = vpop.f32.mrf.mxu0 }
 0x360   :  { %v15366_v46 = vadd.f32 %v5435_v51, %v15243_v16 }
 0x361   :  { %v5439_v40 = vpop.f32.mrf.mxu1  ;;  %v15368_v21 = vpop.f32.mrf.mxu0 }
 0x362   :  { %v5440_v4 = vadd.f32 %v5439_v40, %v15246_v47 }
 0x363   :  { %v5441_v50 = vpop.f32.mrf.mxu1  ;;  %v5552_v0 = vpop.f32.mrf.mxu0 }
 0x364   :  { %v15372_v56 = vadd.f32 %v5441_v50, %v15251_v19  ;;  %v15374_v33 = vadd.f32 %v5552_v0, %v5440_v4 }
 0x365   :  { %v5443_v48 = vpop.f32.mrf.mxu1  ;;  %v15376_v15 = vpop.f32.mrf.mxu0 }
 0x366   :  { %v5444_v3 = vadd.f32 %v5443_v48, %v15256_v58 }
 0x367   :  { %v5445_v26 = vpop.f32.mrf.mxu1  ;;  %v5556_v16 = vpop.f32.mrf.mxu0 }
 0x368   :  { %v5446_v54 = vadd.f32 %v5445_v26, %v15259_v63  ;;  %v15380_v42 = vadd.f32 %v5556_v16, %v5444_v3 }
 0x369   :  { %v5449_v22 = vpop.f32.mrf.mxu1  ;;  %v5558_v47 = vpop.f32.mrf.mxu0 }
 0x36a   :  { %v5450_v25 = vadd.f32 %v5449_v22, %v15262_v32  ;;  %v15383_v60 = vadd.f32 %v5558_v47, %v5446_v54 }
 0x36b   :  { %v5451_v19 = vpop.f32.mrf.mxu1  ;;  %v5562_v35 = vpop.f32.mrf.mxu0 }
 0x36c   :  { %v5452_v51 = vadd.f32 %v5451_v19, %v15267_v49  ;;  %v15386_v40 = vadd.f32 %v5562_v35, %v5450_v25 }
 0x36d   :  { %v5453_v4 = vpop.f32.mrf.mxu1  ;;  %v5564_v58 = vpop.f32.mrf.mxu0 }
 0x36e   :  { %v5454_v50 = vadd.f32 %v5453_v4, %v15272_v6  ;;  %v15389_v0 = vadd.f32 %v5564_v58, %v5452_v51 }
 0x36f   :  { %v5455_v63 = vpop.f32.mrf.mxu1  ;;  %v5566_v48 = vpop.f32.mrf.mxu0 }
 0x370   :  { %v5456_v3 = vadd.f32 %v5455_v63, %v15275_v29  ;;  %v15392_v26 = vadd.f32 %v5566_v48, %v5454_v50 }
 0x371   :  { %v5459_v32 = vpop.f32.mrf.mxu1  ;;  %v5568_v16 = vpop.f32.mrf.mxu0 }
 0x372   :  { %v5460_v54 = vadd.f32 %v5459_v32, %v15278_v44  ;;  %v15395_v22 = vadd.f32 %v5568_v16, %v5456_v3 }
 0x373   :  { %v5461_v49 = vpop.f32.mrf.mxu1  ;;  %v5572_v47 = vpop.f32.mrf.mxu0 }
 0x374   :  { %v5462_v25 = vadd.f32 %v5461_v49, %v15283_v57  ;;  %v15398_v19 = vadd.f32 %v5572_v47, %v5460_v54 }
 0x375   :  { %v5463_v6 = vpop.f32.mrf.mxu1  ;;  %v5574_v35 = vpop.f32.mrf.mxu0 }
 0x376   :  { %v5464_v51 = vadd.f32 %v5463_v6, %v15288_v14  ;;  %v15401_v4 = vadd.f32 %v5574_v35, %v5462_v25 }
 0x377   :  { %v5465_v29 = vpop.f32.mrf.mxu1  ;;  %v5576_v58 = vpop.f32.mrf.mxu0 }
 0x378   :  { %v5466_v50 = vadd.f32 %v5465_v29, %v15291_v34  ;;  %v15404_v63 = vadd.f32 %v5576_v58, %v5464_v51 }
 0x379   :  { %v5469_v44 = vpop.f32.mrf.mxu1  ;;  %v5578_v48 = vpop.f32.mrf.mxu0 }
 0x37a   :  { %v5470_v3 = vadd.f32 %v5469_v44, %v15294_v43  ;;  %v15407_v32 = vadd.f32 %v5578_v48, %v5466_v50 }
 0x37b   :  { %v5471_v57 = vpop.f32.mrf.mxu1  ;;  %v5582_v16 = vpop.f32.mrf.mxu0 }
 0x37c   :  { %v5472_v54 = vadd.f32 %v5471_v57, %v15299_v18  ;;  %v15410_v49 = vadd.f32 %v5582_v16, %v5470_v3 }
 0x37d   :  { %v5473_v14 = vpop.f32.mrf.mxu1  ;;  %v5584_v47 = vpop.f32.mrf.mxu0 }
 0x37e   :  { %v5474_v25 = vadd.f32 %v5473_v14, %v15304_v62  ;;  %v15413_v6 = vadd.f32 %v5584_v47, %v5472_v54 }
 0x37f   :  { %v5475_v34 = vpop.f32.mrf.mxu1  ;;  %v5586_v35 = vpop.f32.mrf.mxu0 }
 0x380   :  { %v5476_v51 = vadd.f32 %v5475_v34, %v15307_v55  ;;  %v15416_v29 = vadd.f32 %v5586_v35, %v5474_v25 }
 0x381   :  { %v5479_v43 = vpop.f32.mrf.mxu1  ;;  %v5588_v58 = vpop.f32.mrf.mxu0 }
 0x382   :  { %v5480_v50 = vadd.f32 %v5479_v43, %v15310_v52  ;;  %v15419_v44 = vadd.f32 %v5588_v58, %v5476_v51 }
 0x383   :  { %v5481_v18 = vpop.f32.mrf.mxu1  ;;  %v5592_v48 = vpop.f32.mrf.mxu0 }
 0x384   :  { %v5482_v3 = vadd.f32 %v5481_v18, %v15315_v27  ;;  %v15422_v57 = vadd.f32 %v5592_v48, %v5480_v50 }
 0x385   :  { %v5483_v62 = vpop.f32.mrf.mxu1  ;;  %v5594_v16 = vpop.f32.mrf.mxu0 }
 0x386   :  { %v5484_v54 = vadd.f32 %v5483_v62, %v15320_v36  ;;  %v15425_v14 = vadd.f32 %v5594_v16, %v5482_v3 }
 0x387   :  { %v5485_v55 = vpop.f32.mrf.mxu1  ;;  %v5596_v47 = vpop.f32.mrf.mxu0 }
 0x388   :  { %v5486_v25 = vadd.f32 %v5485_v55, %v15323_v24  ;;  %v15428_v34 = vadd.f32 %v5596_v47, %v5484_v54 }
 0x389   :  { %v5489_v52 = vpop.f32.mrf.mxu1  ;;  %v5598_v35 = vpop.f32.mrf.mxu0 }
 0x38a   :  { %v5490_v51 = vadd.f32 %v5489_v52, %v15326_v38  ;;  %v15431_v43 = vadd.f32 %v5598_v35, %v5486_v25 }
 0x38b   :  { %v5491_v27 = vpop.f32.mrf.mxu1  ;;  %v5602_v58 = vpop.f32.mrf.mxu0 }
 0x38c   :  { %v5492_v50 = vadd.f32 %v5491_v27, %v15331_v30  ;;  %v15434_v18 = vadd.f32 %v5602_v58, %v5490_v51 }
 0x38d   :  { %v5493_v36 = vpop.f32.mrf.mxu1  ;;  %v5604_v48 = vpop.f32.mrf.mxu0 }
 0x38e   :  { %v5494_v3 = vadd.f32 %v5493_v36, %v15334_v11  ;;  %v15437_v62 = vadd.f32 %v5604_v48, %v5492_v50 }
 0x38f   :  { %v5495_v24 = vpop.f32.mrf.mxu1  ;;  %v5606_v16 = vpop.f32.mrf.mxu0 }
 0x390   :  { %v5496_v54 = vadd.f32 %v5495_v24, %v15337_v10  ;;  %v15440_v55 = vadd.f32 %v5606_v16, %v5494_v3 }
 0x391   :  { %v5499_v38 = vpop.f32.mrf.mxu1  ;;  %v5608_v47 = vpop.f32.mrf.mxu0 }
 0x392   :  { %v5500_v25 = vadd.f32 %v5499_v38, %v15340_v8  ;;  %v15443_v52 = vadd.f32 %v5608_v47, %v5496_v54 }
 0x393   :  { %v5501_v30 = vpop.f32.mrf.mxu1  ;;  %v5612_v35 = vpop.f32.mrf.mxu0 }
 0x394   :  { %v5502_v51 = vadd.f32 %v5501_v30, %v15343_v9  ;;  %v15446_v27 = vadd.f32 %v5612_v35, %v5500_v25 }
 0x395   :  { %v5503_v11 = vpop.f32.mrf.mxu1  ;;  %v5614_v58 = vpop.f32.mrf.mxu0 }
 0x396   :  { %v5504_v50 = vadd.f32 %v5503_v11, %v15346_v41  ;;  %v15449_v36 = vadd.f32 %v5614_v58, %v5502_v51 }
 0x397   :  { %v5505_v10 = vpop.f32.mrf.mxu1  ;;  %v5616_v48 = vpop.f32.mrf.mxu0 }
 0x398   :  { %v5506_v3 = vadd.f32 %v5505_v10, %v15348_v53  ;;  %v15452_v24 = vadd.f32 %v5616_v48, %v5504_v50 }
 0x399   :  { %v5618_v8 = vpop.f32.mrf.mxu0  ;;  %v15454_v16 = vpop.f32.mrf.mxu1 }
 0x39a   :  { %v15456_v54 = vadd.f32 %v5618_v8, %v5506_v3 }
 0x39b   :  { %v15458_v9 = vpop.f32.mrf.mxu1  ;;  %v15469_v53 = vpop.f32.mrf.mxu0 }
 0x39d   :  { %v15460_v38 = vpop.f32.mrf.mxu1  ;;  %v15474_v58 = vpop.f32.mrf.mxu0 }
 0x39f   :  { %v15462_v47 = vpop.f32.mrf.mxu1  ;;  %v15482_v3 = vpop.f32.mrf.mxu0 }
 0x3a1   :  { %v5665_v41 = vpop.f32.mrf.mxu1  ;;  %v15490_v61 = vpop.f32.mrf.mxu0 }
 0x3a2   :  { %v15465_v25 = vadd.f32 %v5665_v41, %v15374_v33 }
 0x3a3   :  { %v15467_v30 = vpop.f32.mrf.mxu1  ;;  %v15498_v2 = vpop.f32.mrf.mxu0 }
 0x3a5   :  { %v5669_v35 = vpop.f32.mrf.mxu1  ;;  %v15506_v13 = vpop.f32.mrf.mxu0 }
 0x3a6   :  { %v15472_v51 = vadd.f32 %v5669_v35, %v15380_v42 }
 0x3a7   :  { %v5671_v11 = vpop.f32.mrf.mxu1  ;;  %v15514_v1 = vpop.f32.mrf.mxu0 }
 0x3a8   :  { %v15477_v50 = vadd.f32 %v5671_v11, %v15383_v60 }
 0x3a9   :  { %v5675_v10 = vpop.f32.mrf.mxu1  ;;  %v15522_v5 = vpop.f32.mrf.mxu0 }
 0x3aa   :  { %v15480_v48 = vadd.f32 %v5675_v10, %v15386_v40 }
 0x3ab   :  { %v5677_v33 = vpop.f32.mrf.mxu1  ;;  %v5788_v59 = vpop.f32.mrf.mxu0 }
 0x3ac   :  { %v15485_v8 = vadd.f32 %v5677_v33, %v15389_v0 }
 0x3ad   :  { %v5679_v41 = vpop.f32.mrf.mxu1 }
 0x3ae   :  { %v15488_v42 = vadd.f32 %v5679_v41, %v15392_v26 }
 0x3af   :  { %v5681_v35 = vpop.f32.mrf.mxu1 }
 0x3b0   :  { %v15493_v60 = vadd.f32 %v5681_v35, %v15395_v22 }
 0x3b1   :  { %v5685_v11 = vpop.f32.mrf.mxu1 }
 0x3b2   :  { %v15496_v40 = vadd.f32 %v5685_v11, %v15398_v19 }
 0x3b3   :  { %v5687_v10 = vpop.f32.mrf.mxu1 }
 0x3b4   :  { %v15501_v0 = vadd.f32 %v5687_v10, %v15401_v4 }
 0x3b5   :  { %v5689_v33 = vpop.f32.mrf.mxu1 }
 0x3b6   :  { %v15504_v26 = vadd.f32 %v5689_v33, %v15404_v63 }
 0x3b7   :  { %v5691_v41 = vpop.f32.mrf.mxu1 }
 0x3b8   :  { %v15509_v22 = vadd.f32 %v5691_v41, %v15407_v32 }
 0x3b9   :  { %v5695_v35 = vpop.f32.mrf.mxu1 }
 0x3ba   :  { %v15512_v19 = vadd.f32 %v5695_v35, %v15410_v49 }
 0x3bb   :  { %v5697_v11 = vpop.f32.mrf.mxu1 }
 0x3bc   :  { %v15517_v4 = vadd.f32 %v5697_v11, %v15413_v6 }
 0x3bd   :  { %v5699_v10 = vpop.f32.mrf.mxu1 }
 0x3be   :  { %v15520_v63 = vadd.f32 %v5699_v10, %v15416_v29  ;;  %v5790_v10 = vpop.f32.mrf.mxu0 }
 0x3bf   :  { %v5701_v33 = vpop.f32.mrf.mxu1 }
 0x3c0   :  { %v15525_v32 = vadd.f32 %v5701_v33, %v15419_v44 }
 0x3c1   :  { %v5705_v41 = vpop.f32.mrf.mxu1 }
 0x3c2   :  { %v15528_v49 = vadd.f32 %v5705_v41, %v15422_v57  ;;  %v5792_v41 = vpop.f32.mrf.mxu0 }
 0x3c3   :  { %v5707_v35 = vpop.f32.mrf.mxu1 }
 0x3c4   :  { %17529 = vst [vmem:[#allocation37_spill] sm:$0xff] %v15528_v49  ;;  %v15531_v23 = vadd.f32 %v5707_v35, %v15425_v14 }
 0x3c5   :  { %v5709_v6 = vpop.f32.mrf.mxu1 }
 0x3c6   :  { %v15534_v11 = vadd.f32 %v5709_v6, %v15428_v34  ;;  %v5794_v6 = vpop.f32.mrf.mxu0 }
 0x3c7   :  { %v5711_v29 = vpop.f32.mrf.mxu1 }
 0x3c8   :  { %17530 = vst [vmem:[#allocation52_spill] sm:$0xff] %v15534_v11  ;;  %v15537_v31 = vadd.f32 %v5711_v29, %v15431_v43  ;;  %v5543_v29 = vadd.f32 %v15353_v28, %v15351_v20 }
 0x3c9   :  { %v5715_v44 = vpop.f32.mrf.mxu1 }
 0x3ca   :  { %v15540_v33 = vadd.f32 %v5715_v44, %v15434_v18 }
 0x3cb   :  { %v5717_v57 = vpop.f32.mrf.mxu1 }
 0x3cc   :  { %v15543_v49 = vadd.f32 %v5717_v57, %v15437_v62  ;;  %v5545_v62 = vadd.f32 %v15358_v12, %v15356_v45  ;;  %v5656_v57 = vadd.f32 %v15454_v16, %v5543_v29 }
 0x3cd   :  { %v5719_v14 = vpop.f32.mrf.mxu1 }
 0x3ce   :  { %v15546_v35 = vadd.f32 %v5719_v14, %v15440_v55  ;;  %v5798_v55 = vpop.f32.mrf.mxu0  ;;  %v5769_v45 = vadd.f32 %v15469_v53, %v5656_v57 }
 0x3cf   :  { %v5721_v34 = vpop.f32.mrf.mxu1 }
 0x3d0   :  { %17531 = vst [vmem:[#allocation47_spill] sm:$0xff] %v15546_v35  ;;  %v15549_v11 = vadd.f32 %v5721_v34, %v15443_v52  ;;  %v5547_v52 = vadd.f32 %v15363_v17, %v15361_v37  ;;  %v5658_v34 = vadd.f32 %v15458_v9, %v5545_v62  ;;  %v5800_v16 = vpop.f32.mrf.mxu0 }
 0x3d1   :  { %v5725_v43 = vpop.f32.mrf.mxu1 }
 0x3d2   :  { %v15554_v18 = vadd.f32 %v5725_v43, %v15446_v27  ;;  %v5549_v27 = vadd.f32 %v15368_v21, %v15366_v46  ;;  %v5660_v12 = vadd.f32 %v15460_v38, %v5547_v52  ;;  %v5771_v37 = vadd.f32 %v15474_v58, %v5658_v34  ;;  %v5802_v21 = vpop.f32.mrf.mxu0 }
 0x3d3   :  { %v5727_v44 = vpop.f32.mrf.mxu1 }
 0x3d4   :  { %v15560_v14 = vadd.f32 %v5727_v44, %v15449_v36  ;;  %v5662_v17 = vadd.f32 %v15462_v47, %v5549_v27  ;;  %v5773_v46 = vadd.f32 %v15482_v3, %v5660_v12  ;;  %v5804_v52 = vpop.f32.mrf.mxu0  ;;  %v5789_v12 = vadd.f32 %v5788_v59, %v15480_v48  ;;  %v6267_v48 = vld [vmem:[#allocation2 + $0x18] sm:$0x11] }
 0x3d5   :  { %v5729_v35 = vpop.f32.mrf.mxu1  ;;  %v15603_v59 = vadd.f32 %v5800_v16, %v15501_v0 }
 0x3d6   :  { %v15566_v20 = vadd.f32 %v5729_v35, %v15452_v24  ;;  %v5555_v24 = vadd.f32 %v15376_v15, %v15372_v56  ;;  %v5779_v56 = vadd.f32 %v15498_v2, %v15465_v25  ;;  %v5808_v2 = vpop.f32.mrf.mxu0 }
 0x3d7   :  { %v5731_v28 = vpop.f32.mrf.mxu1 }
 0x3d8   :  { %v15573_v36 = vadd.f32 %v5731_v28, %v15456_v54  ;;  %v5668_v38 = vadd.f32 %v15467_v30, %v5555_v24  ;;  %v5775_v54 = vadd.f32 %v15490_v61, %v5662_v17  ;;  %v5783_v28 = vadd.f32 %v15514_v1, %v15472_v51 }
 0x3d9   :  { %v5881_v43 = vpop.f32.mrf.mxu1  ;;  %v5785_v61 = vadd.f32 %v15522_v5, %v15477_v50  ;;  %v15594_v1 = vadd.f32 %v5792_v41, %v15488_v42  ;;  %v15597_v51 = vadd.f32 %v5794_v6, %v15493_v60  ;;  %v15600_v5 = vadd.f32 %v5798_v55, %v15496_v40  ;;  %v6264_v50 = vld [vmem:[#allocation2 + $0xb0] sm:$0xff] }
 0x3da   :  { %v5882_v9 = vadd.f32 %v5881_v43, %v5769_v45  ;;  %v5781_v15 = vadd.f32 %v15506_v13, %v5668_v38  ;;  %v15591_v43 = vadd.f32 %v5790_v10, %v15485_v8  ;;  %v15606_v10 = vadd.f32 %v5802_v21, %v15504_v26 }
 0x3db   :  { %v5883_v35 = vpop.f32.mrf.mxu1 }
 0x3dc   :  { %v5884_v53 = vadd.f32 %v5883_v35, %v5771_v37  ;;  %v5960_v44 = vmax.f32 %v5882_v9, 0.0 }
 0x3dd   :  { %v5885_v29 = vpop.f32.mrf.mxu1 }
 0x3de   :  { %v5961_v62 = vmax.f32 %v5884_v53, 0.0  ;;  %v5886_v57 = vadd.f32 %v5885_v29, %v5773_v46  ;;  %v5810_v29 = vpop.f32.mrf.mxu0 }
 0x3df   :  { %v5887_v58 = vpop.f32.mrf.mxu1 }
 0x3e0   :  { %v12690_v47 = vpack.c.bf16 %v5961_v62, %v5960_v44  ;;  %v5888_v34 = vadd.f32 %v5887_v58, %v5775_v54  ;;  %v5962_v27 = vmax.f32 %v5886_v57, 0.0  ;;  %v6270_v62 = vld [vmem:[#allocation2 + $0xc8] sm:$0xff] }
 0x3e1   :  { %v5891_v3 = vpop.f32.mrf.mxu1  ;;  %v6273_v57 = vld [vmem:[#allocation2 + $0xe8] sm:$0x11] }
 0x3e2   :  { %v6105_v30 = vshrl.u32 %v12690_v47, 16  ;;  %v5963_v45 = vmax.f32 %v5888_v34, 0.0  ;;  %v5892_v37 = vadd.f32 %v5891_v3, %v5779_v56  ;;  %v6108_v13 = vshll.u32 %v12690_v47, 16 }
 0x3e3   :  { %v5893_v17 = vpop.f32.mrf.mxu1 }
 0x3e4   :  { %v6107_v25 = vrot.slane %v6105_v30, 7  ;;  %v12691_v9 = vpack.c.bf16 %v5963_v45, %v5962_v27  ;;  %v5894_v24 = vadd.f32 %v5893_v17, %v5781_v15  ;;  %v5964_v41 = vmax.f32 %v5892_v37, 0.0  ;;  %v5812_v17 = vpop.f32.mrf.mxu0 }
 0x3e5   :  { %v5895_v8 = vpop.f32.mrf.mxu1  ;;  %v15620_v30 = vadd.f32 %v5804_v52, %v15509_v22 }
 0x3e6   :  { %v6110_v35 = vor.u32 %v6108_v13, %v6107_v25  ;;  %v6111_v46 = vrot.slane %v6107_v25, 4  ;;  %v6113_v53 = vshrl.u32 %v12691_v9, 16  ;;  %v6116_v42 = vshll.u32 %v12691_v9, 16 }
 0x3e7   :  { %v5965_v38 = vmax.f32 %v5894_v24, 0.0  ;;  %v5896_v60 = vadd.f32 %v5895_v8, %v5783_v28  ;;  %v5897_v6 = vpop.f32.mrf.mxu1  ;;  %v15634_v8 = vadd.f32 %v5808_v2, %v15512_v19  ;;  %v15645_v19 = vpop.f32.mrf.mxu0 }
 0x3e8   :  { %v15610_v55 = vsel %vm13911_vm13, %v6110_v35, %v6264_v50  ;;  %v6268_v16 = vsel %vm13907_vm10, %v6111_v46, %v6267_v48  ;;  %v6115_v54 = vrot.slane %v6113_v53, 7  ;;  %v5898_v44 = vadd.f32 %v5897_v6, %v5785_v61  ;;  %v6276_v6 = vld [vmem:[#allocation2 + $0x128] sm:$0xff] }
 0x3e9   :  { %6266 = vst [vmem:[#allocation2 + $0xb0] sm:$0xff] %v15610_v55  ;;  %6269 = vst [vmem:[#allocation2 + $0x18] sm:$0x11] %v6268_v16  ;;  %v6439_v26 = vshrl.u32 %v15610_v55, 16  ;;  %v6442_v21 = vshll.u32 %v15610_v55, 16  ;;  %v12692_v58 = vpack.c.bf16 %v5965_v38, %v5964_v41  ;;  %v5966_v47 = vmax.f32 %v5896_v60, 0.0  ;;  %v5901_v34 = vpop.f32.mrf.mxu1 }
 0x3ea   :  { %v6118_v56 = vor.u32 %v6116_v42, %v6115_v54  ;;  %v6119_v15 = vrot.slane %v6115_v54, 4  ;;  %v5967_v3 = vmax.f32 %v5898_v44, 0.0  ;;  %v15617_v28 = vadd.f32 %v5901_v34, %v5789_v12  ;;  %v6279_v16 = vld [vmem:[#allocation2 + $0x48] sm:$0x11] }
 0x3eb   :  { %v6441_v27 = vrot.slane %v6439_v26, 4  ;;  %v6444_v45 = vrot.slane %v6442_v21, 5  ;;  %v6121_v61 = vshrl.u32 %v12692_v58, 16  ;;  %v5903_v37 = vpop.f32.mrf.mxu1  ;;  %v6124_v9 = vshll.u32 %v12692_v58, 16 }
 0x3ec   :  { %v15624_v25 = vsel %vm13911_vm13, %v6118_v56, %v6270_v62  ;;  %v6274_v13 = vsel %vm13907_vm10, %v6119_v15, %v6273_v57  ;;  %v15628_v24 = vpack.c.bf16 %v5967_v3, %v5966_v47  ;;  %v15640_v44 = vadd.f32 %v5810_v29, %v15517_v4 }
 0x3ed   :  { %v6445_v12 = vor.u32 %v6444_v45, %v6441_v27  ;;  %6272 = vst [vmem:[#allocation2 + $0xc8] sm:$0xff] %v15624_v25  ;;  %6275 = vst [vmem:[#allocation2 + $0xe8] sm:$0x11] %v6274_v13  ;;  %v6453_v22 = vshrl.u32 %v15624_v25, 16  ;;  %v6456_v52 = vshll.u32 %v15624_v25, 16  ;;  %v6123_v50 = vrot.slane %v6121_v61, 7  ;;  %v5905_v48 = vpop.f32.mrf.mxu1 }
 0x3ee   :  { %v6129_v35 = vshrl.u32 %v15628_v24, 16  ;;  %v15643_v26 = vadd.f32 %v5812_v17, %v15520_v63  ;;  %v15648_v57 = vadd.f32 %v5903_v37, %v15591_v43  ;;  %v15651_v58 = vadd.f32 %v5905_v48, %v15594_v1 }
 0x3ef   :  { %v6446_v42 = vrot.slane %v6445_v12, 4  ;;  %v6455_v41 = vrot.slane %v6453_v22, 4  ;;  %v6458_v38 = vrot.slane %v6456_v52, 5  ;;  %v6126_v60 = vor.u32 %v6124_v9, %v6123_v50  ;;  %v5907_v54 = vpop.f32.mrf.mxu1  ;;  %v15665_v12 = vpop.f32.mrf.mxu0 }
 0x3f0   :  { %v6395_v2 = vld [vmem:[#allocation2 + $0x18] sm:$0x11]  ;;  %v6682_v21 = vld [vmem:[#allocation2 + $0xb0] sm:$0xee]  ;;  %v6127_v45 = vrot.slane %v6123_v50, 4  ;;  %v15658_v43 = vadd.f32 %v5907_v54, %v15597_v51 }
 0x3f1   :  { %v6683_v62 = vld [vmem:[#allocation2 + $0x18] sm:$0x11]  ;;  %v6448_v47 = vshll.u32 %v6395_v2, 16  ;;  %v12192_v34 = vrot.slane %v6682_v21, 9  ;;  %v6459_v4 = vor.u32 %v6458_v38, %v6455_v41  ;;  %v5911_v29 = vpop.f32.mrf.mxu1  ;;  %v7160_v63 = vld [vmem:[#allocation2 + $0xb0] sm:$0xee]  ;;  %v15655_v61 = vsel %vm13911_vm13, %v6126_v60, %v6276_v6 }
 0x3f2   :  { %v6750_v56 = vrot.slane %v6683_v62, 5  ;;  %v6873_v15 = vld [vmem:[#allocation2 + $0x18] sm:$0x11]  ;;  %v12207_v17 = vrot.slane %v7160_v63, 9  ;;  %6278 = vst [vmem:[#allocation2 + $0x128] sm:$0xff] %v15655_v61  ;;  %v6280_v51 = vsel %vm13907_vm10, %v6127_v45, %v6279_v16  ;;  %v15670_v41 = vadd.f32 %v5911_v29, %v15600_v5 }
 0x3f3   :  { %v6914_v3 = vshll.u32 %v6873_v15, 16  ;;  %v7161_v27 = vld [vmem:[#allocation2 + $0x18] sm:$0x11]  ;;  %v6450_v37 = vrot.slane %v6448_v47, 5  ;;  %v5913_v9 = vpop.f32.mrf.mxu1  ;;  %v6460_v50 = vrot.slane %v6459_v4, 4 }
 0x3f4   :  { %v15662_v1 = vsel %vm13951_vm3, %v12192_v34, %v6750_v56  ;;  %v7226_v13 = vrot.slane %v7161_v27, 5  ;;  %v6397_v52 = vld [vmem:[#allocation2 + $0xe8] sm:$0x11]  ;;  %v6684_v48 = vld [vmem:[#allocation2 + $0xc8] sm:$0xee]  ;;  %v15685_v15 = vadd.f32 %v5913_v9, %v15603_v59  ;;  %v6467_v27 = vshrl.u32 %v15655_v61, 16 }
 0x3f5   :  { %v6916_v22 = vrot.slane %v6914_v3, 5  ;;  %v15674_v38 = vsel %vm13975_vm4, %v6446_v42, %v6450_v37  ;;  %v6462_v6 = vshll.u32 %v6397_v52, 16  ;;  %v6685_v54 = vld [vmem:[#allocation2 + $0xe8] sm:$0x11]  ;;  %v12193_v2 = vrot.slane %v6684_v48, 9  ;;  %v5915_v62 = vpop.f32.mrf.mxu1  ;;  %v15688_v37 = vpop.f32.mrf.mxu0 }
 0x3f6   :  { %v15678_v60 = vsel %vm13951_vm3, %v12207_v17, %v7226_v13  ;;  %v6875_v21 = vld [vmem:[#allocation2 + $0xe8] sm:$0x11]  ;;  %6281 = vst [vmem:[#allocation2 + $0x48] sm:$0x11] %v6280_v51  ;;  %v6754_v5 = vrot.slane %v6685_v54, 5  ;;  %v15695_v59 = vadd.f32 %v5915_v62, %v15606_v10  ;;  %v6470_v10 = vshll.u32 %v15655_v61, 16 }
 0x3f7   :  { %17534 = vst [vmem:[#allocation62_spill] sm:$0xff] %v15678_v60  ;;  %v15682_v16 = vsel %vm13975_vm4, %v6446_v42, %v6916_v22  ;;  %v6928_v47 = vshll.u32 %v6875_v21, 16  ;;  %v7162_v34 = vld [vmem:[#allocation2 + $0xc8] sm:$0xee]  ;;  %v7163_v56 = vld [vmem:[#allocation2 + $0xe8] sm:$0x11]  ;;  %v5917_v45 = vpop.f32.mrf.mxu1 }
 0x3f8   :  { %17535 = vst [vmem:[#allocation57_spill] sm:$0xff] %v15682_v16  ;;  %v6464_v4 = vrot.slane %v6462_v6, 5  ;;  %v12208_v29 = vrot.slane %v7162_v34, 9  ;;  %v7230_v3 = vrot.slane %v7163_v56, 5  ;;  %v7353_v63 = vld [vmem:[#allocation2 + $0xe8] sm:$0x11]  ;;  %v15692_v42 = vsel %vm13951_vm3, %v12193_v2, %v6754_v5 }
 0x3f9   :  { %v6930_v17 = vrot.slane %v6928_v47, 5  ;;  %v7394_v13 = vshll.u32 %v7353_v63, 16  ;;  %v7640_v22 = vld [vmem:[#allocation2 + $0xc8] sm:$0xee]  ;;  %v7641_v52 = vld [vmem:[#allocation2 + $0xe8] sm:$0x11]  ;;  %v5921_v54 = vpop.f32.mrf.mxu1 }
 0x3fa   :  { %v15699_v9 = vsel %vm13975_vm4, %v6460_v50, %v6464_v4  ;;  %v15703_v48 = vsel %vm13951_vm3, %v12208_v29, %v7230_v3  ;;  %v12223_v51 = vrot.slane %v7640_v22, 9  ;;  %v7706_v6 = vrot.slane %v7641_v52, 5  ;;  %v6686_v62 = vld [vmem:[#allocation2 + $0x128] sm:$0xee] }
 0x3fb   :  { %17536 = vst [vmem:[#allocation73_spill] sm:$0xff] %v15703_v48  ;;  %v15707_v2 = vsel %vm13975_vm4, %v6460_v50, %v6930_v17  ;;  %v7396_v21 = vrot.slane %v7394_v13, 5  ;;  %v6469_v5 = vrot.slane %v6467_v27, 4  ;;  %v12194_v34 = vrot.slane %v6686_v62, 9  ;;  %v7164_v56 = vld [vmem:[#allocation2 + $0x128] sm:$0xee]  ;;  %v5923_v63 = vpop.f32.mrf.mxu1  ;;  %v15719_v17 = vpop.f32.mrf.mxu0 }
 0x3fc   :  { %17537 = vst [vmem:[#allocation67_spill] sm:$0xff] %v15707_v2  ;;  %v15712_v47 = vsel %vm13951_vm3, %v12223_v51, %v7706_v6  ;;  %v7642_v4 = vld [vmem:[#allocation2 + $0x128] sm:$0xee]  ;;  %v6131_v29 = vrot.slane %v6129_v35, 7  ;;  %v15717_v3 = vadd.f32 %v5917_v45, %v15620_v30  ;;  %v6472_v22 = vrot.slane %v6470_v10, 5  ;;  %v6282_v6 = vld [vmem:[#allocation2 + $0x78] sm:$0xff] }
 0x3fd   :  { %17538 = vst [vmem:[#allocation72_spill] sm:$0xff] %v15712_v47  ;;  %v15723_v27 = vsel %vm13975_vm4, %v6460_v50, %v7396_v21  ;;  %v6399_v13 = vld [vmem:[#allocation2 + $0x48] sm:$0x11]  ;;  %v12209_v51 = vrot.slane %v7164_v56, 9  ;;  %v15726_v62 = vadd.f32 %v5921_v54, %v15634_v8  ;;  %v17540_v45 = vshll.u32 %v15628_v24, 16  ;;  %v5925_v50 = vpop.f32.mrf.mxu1 }
 0x3fe   :  { %17539 = vst [vmem:[#allocation82_spill] sm:$0xff] %v15723_v27  ;;  %v6687_v52 = vld [vmem:[#allocation2 + $0x48] sm:$0x11]  ;;  %v6476_v53 = vshll.u32 %v6399_v13, 16  ;;  %v15731_v60 = vadd.f32 %v5923_v63, %v15640_v44  ;;  %v6473_v21 = vor.u32 %v6472_v22, %v6469_v5  ;;  %v15734_v16 = vadd.f32 %v5925_v50, %v15643_v26  ;;  %v6285_v22 = vld [vmem:[#allocation2 + $0xf0] sm:$0x11] }
 0x3ff   :  { %v6758_v35 = vrot.slane %v6687_v52, 5  ;;  %v6877_v46 = vld [vmem:[#allocation2 + $0x48] sm:$0x11]  ;;  %v6134_v47 = vor.u32 %v17540_v45, %v6131_v29  ;;  %v12224_v24 = vrot.slane %v7642_v4, 9  ;;  %v15740_v52 = vpop.f32.mrf.mxu0  ;;  %v6135_v26 = vrot.slane %v6131_v29, 4 }
 0x400   :  { %v7165_v30 = vld [vmem:[#allocation2 + $0x48] sm:$0x11]  ;;  %v6942_v27 = vshll.u32 %v6877_v46, 16  ;;  %v6478_v8 = vrot.slane %v6476_v53, 5  ;;  %v6474_v44 = vrot.slane %v6473_v21, 4 }
 0x401   :  { %v7234_v10 = vrot.slane %v7165_v30, 5  ;;  %v7355_v48 = vld [vmem:[#allocation2 + $0x48] sm:$0x11]  ;;  %v15738_v54 = vsel %vm13951_vm3, %v12194_v34, %v6758_v35  ;;  %v15748_v53 = vsel %vm13911_vm13, %v6134_v47, %v6282_v6  ;;  %v5969_v34 = vmax.f32 %v15648_v57, 0.0  ;;  %v15765_v47 = vpop.f32.mrf.mxu1  ;;  %v15776_v50 = vpop.f32.mrf.mxu0  ;;  %v6297_v2 = vld [vmem:[#allocation2 + $0x118] sm:$0x11] }
 0x402   :  { %v7643_v56 = vld [vmem:[#allocation2 + $0x48] sm:$0x11]  ;;  %v7408_v13 = vshll.u32 %v7355_v48, 16  ;;  %v6944_v63 = vrot.slane %v6942_v27, 5  ;;  %v15753_v48 = vsel %vm13975_vm4, %v6474_v44, %v6478_v8  ;;  %6284 = vst [vmem:[#allocation2 + $0x78] sm:$0xff] %v15748_v53  ;;  %v6481_v29 = vshrl.u32 %v15748_v53, 16 }
 0x403   :  { %v15744_v46 = vsel %vm13951_vm3, %v12209_v51, %v7234_v10  ;;  %v7710_v5 = vrot.slane %v7643_v56, 5  ;;  %v6286_v51 = vsel %vm13907_vm10, %v6135_v26, %v6285_v22  ;;  %v6484_v6 = vshll.u32 %v15748_v53, 16  ;;  %v15785_v26 = vpop.f32.mrf.mxu1 }
 0x404   :  { %17541 = vst [vmem:[#allocation38_spill] sm:$0xff] %v15744_v46  ;;  %v7410_v30 = vrot.slane %v7408_v13, 5  ;;  %v15757_v4 = vsel %vm13975_vm4, %v6474_v44, %v6944_v63  ;;  %v17545_v35 = vmax.f32 %v15617_v28, 0.0  ;;  %6287 = vst [vmem:[#allocation2 + $0xf0] sm:$0x11] %v6286_v51  ;;  %v6483_v21 = vrot.slane %v6481_v29, 4 }
 0x405   :  { %17542 = vst [vmem:[#allocation90_spill] sm:$0xff] %v15757_v4  ;;  %v15761_v27 = vsel %vm13951_vm3, %v12224_v24, %v7710_v5  ;;  %v5970_v10 = vmax.f32 %v15651_v58, 0.0  ;;  %v5971_v56 = vmax.f32 %v15658_v43, 0.0  ;;  %v5972_v8 = vmax.f32 %v15670_v41, 0.0  ;;  %v15790_v41 = vpop.f32.mrf.mxu0  ;;  %v6288_v51 = vld [vmem:[#allocation2 + $0xa8] sm:$0xff] }
 0x406   :  { %17543 = vst [vmem:[#allocation85_spill] sm:$0xff] %v15761_v27  ;;  %v15769_v57 = vsel %vm13975_vm4, %v6474_v44, %v7410_v30  ;;  %v12694_v45 = vpack.c.bf16 %v5969_v34, %v17545_v35  ;;  %v6486_v13 = vrot.slane %v6484_v6, 5  ;;  %v5973_v63 = vmax.f32 %v15685_v15, 0.0  ;;  %v6291_v6 = vld [vmem:[#allocation2 + $0x60] sm:$0x11] }
 0x407   :  { %17544 = vst [vmem:[#allocation100_spill] sm:$0xff] %v15769_v57  ;;  %v12695_v5 = vpack.c.bf16 %v5971_v56, %v5970_v10  ;;  %v5974_v22 = vmax.f32 %v15695_v59, 0.0  ;;  %v5975_v28 = vmax.f32 %v15717_v3, 0.0  ;;  %v5976_v30 = vmax.f32 %v15726_v62, 0.0  ;;  %v15798_v57 = vpop.f32.mrf.mxu1 }
 0x408   :  { %v6137_v24 = vshrl.u32 %v12694_v45, 16  ;;  %v6140_v44 = vshll.u32 %v12694_v45, 16  ;;  %v6487_v34 = vor.u32 %v6486_v13, %v6483_v21  ;;  %v15787_v29 = vpack.c.bf16 %v5973_v63, %v5972_v8 }
 0x409   :  { %v5977_v43 = vmax.f32 %v15731_v60, 0.0  ;;  %v6145_v15 = vshrl.u32 %v12695_v5, 16  ;;  %v6148_v35 = vshll.u32 %v12695_v5, 16  ;;  %v15792_v45 = vpack.c.bf16 %v5975_v28, %v5974_v22  ;;  %v6688_v62 = vld [vmem:[#allocation2 + $0x78] sm:$0xee] }
 0x40a   :  { %v6139_v58 = vrot.slane %v6137_v24, 7  ;;  %v6488_v3 = vrot.slane %v6487_v34, 4  ;;  %v7166_v10 = vld [vmem:[#allocation2 + $0x78] sm:$0xee]  ;;  %v12195_v8 = vrot.slane %v6688_v62, 9  ;;  %v6153_v27 = vshrl.u32 %v15787_v29, 16 }
 0x40b   :  { %v15795_v13 = vpack.c.bf16 %v5977_v43, %v5976_v30  ;;  %v12210_v24 = vrot.slane %v7166_v10, 9  ;;  %v7644_v60 = vld [vmem:[#allocation2 + $0x78] sm:$0xee]  ;;  %v6147_v63 = vrot.slane %v6145_v15, 7  ;;  %v15802_v5 = vadd.f32 %v15645_v19, %v15525_v32  ;;  %v6689_v34 = vld [vmem:[#allocation2 + $0xf0] sm:$0x11]  ;;  %v5832_v15 = vpop.f32.mrf.mxu0 }
 0x40c   :  { %v6142_v56 = vor.u32 %v6140_v44, %v6139_v58  ;;  %v6143_v21 = vrot.slane %v6139_v58, 4  ;;  %v17546_v22 = vld [vmem:[#allocation37_spill] sm:$0xff]  ;;  %v6401_v44 = vld [vmem:[#allocation2 + $0xf0] sm:$0x11]  ;;  %v6762_v10 = vrot.slane %v6689_v34, 5  ;;  %v12225_v19 = vrot.slane %v7644_v60, 9 }
 0x40d   :  { %v15806_v28 = vadd.f32 %v15665_v12, %v17546_v22  ;;  %v6879_v30 = vld [vmem:[#allocation2 + $0xf0] sm:$0x11]  ;;  %v6490_v62 = vshll.u32 %v6401_v44, 16  ;;  %v15817_v12 = vadd.f32 %v15688_v37, %v15531_v23  ;;  %v6150_v4 = vor.u32 %v6148_v35, %v6147_v63  ;;  %v6294_v34 = vld [vmem:[#allocation2 + $0x28] sm:$0xff]  ;;  %v5834_v35 = vpop.f32.mrf.mxu0 }
 0x40e   :  { %v15810_v58 = vsel %vm13911_vm13, %v6142_v56, %v6288_v51  ;;  %v6292_v43 = vsel %vm13907_vm10, %v6143_v21, %v6291_v6  ;;  %v6956_v59 = vshll.u32 %v6879_v30, 16  ;;  %v7167_v32 = vld [vmem:[#allocation2 + $0xf0] sm:$0x11]  ;;  %v15822_v21 = vsel %vm13951_vm3, %v12195_v8, %v6762_v10  ;;  %v15824_v30 = vpop.f32.mrf.mxu1 }
 0x40f   :  { %6290 = vst [vmem:[#allocation2 + $0xa8] sm:$0xff] %v15810_v58  ;;  %6293 = vst [vmem:[#allocation2 + $0x60] sm:$0x11] %v6292_v43  ;;  %v7238_v22 = vrot.slane %v7167_v32, 5  ;;  %v7357_v46 = vld [vmem:[#allocation2 + $0xf0] sm:$0x11] }
 0x410   :  { %v7645_v51 = vld [vmem:[#allocation2 + $0xf0] sm:$0x11]  ;;  %v6495_v56 = vshrl.u32 %v15810_v58, 16  ;;  %v6492_v6 = vrot.slane %v6490_v62, 5  ;;  %17547 = vst [vmem:[#allocation95_spill] sm:$0xff] %v15822_v21  ;;  %v6958_v44 = vrot.slane %v6956_v59, 5 }
 0x411   :  { %v7422_v60 = vshll.u32 %v7357_v46, 16  ;;  %v15828_v23 = vsel %vm13951_vm3, %v12210_v24, %v7238_v22  ;;  %v7714_v37 = vrot.slane %v7645_v51, 5  ;;  %v6498_v32 = vshll.u32 %v15810_v58, 16 }
 0x412   :  { %17548 = vst [vmem:[#allocation111_spill] sm:$0xff] %v15828_v23  ;;  %v6497_v43 = vrot.slane %v6495_v56, 4  ;;  %v15833_v62 = vsel %vm13975_vm4, %v6488_v3, %v6492_v6  ;;  %v15837_v46 = vsel %vm13975_vm4, %v6488_v3, %v6958_v44  ;;  %v6151_v8 = vrot.slane %v6147_v63, 4  ;;  %v15858_v44 = vpop.f32.mrf.mxu1 }
 0x413   :  { %17549 = vst [vmem:[#allocation106_spill] sm:$0xff] %v15837_v46  ;;  %v7424_v59 = vrot.slane %v7422_v60, 5  ;;  %v15841_v24 = vsel %vm13951_vm3, %v12225_v19, %v7714_v37  ;;  %v6500_v10 = vrot.slane %v6498_v32, 5  ;;  %v15845_v22 = vsel %vm13911_vm13, %v6150_v4, %v6294_v34  ;;  %v17552_v60 = vld [vmem:[#allocation52_spill] sm:$0xff] }
 0x414   :  { %17550 = vst [vmem:[#allocation105_spill] sm:$0xff] %v15841_v24  ;;  %v15847_v51 = vrot.slane %v6153_v27, 7  ;;  %6296 = vst [vmem:[#allocation2 + $0x28] sm:$0xff] %v15845_v22  ;;  %v6298_v63 = vsel %vm13907_vm10, %v6151_v8, %v6297_v2  ;;  %v6509_v6 = vshrl.u32 %v15845_v22, 16  ;;  %v6512_v19 = vshll.u32 %v15845_v22, 16 }
 0x415   :  { %v15851_v56 = vsel %vm13975_vm4, %v6488_v3, %v7424_v59  ;;  %v5823_v4 = vadd.f32 %v15719_v17, %v17552_v60  ;;  %v15864_v27 = vadd.f32 %v15740_v52, %v15537_v31  ;;  %v15868_v3 = vadd.f32 %v15776_v50, %v15540_v33  ;;  %6299 = vst [vmem:[#allocation2 + $0x118] sm:$0x11] %v6298_v63  ;;  %v5838_v59 = vpop.f32.mrf.mxu0  ;;  %v17553_v31 = vld [vmem:[#allocation47_spill] sm:$0xff] }
 0x416   :  { %17551 = vst [vmem:[#allocation49_spill] sm:$0xff] %v15851_v56  ;;  %v6403_v34 = vld [vmem:[#allocation2 + $0x60] sm:$0x11]  ;;  %v6501_v37 = vor.u32 %v6500_v10, %v6497_v43  ;;  %v6690_v2 = vld [vmem:[#allocation2 + $0xa8] sm:$0xee]  ;;  %v6511_v46 = vrot.slane %v6509_v6, 4  ;;  %v15872_v17 = vadd.f32 %v15790_v41, %v15543_v49  ;;  %v15875_v52 = vadd.f32 %v5832_v15, %v17553_v31  ;;  %v15881_v6 = vpop.f32.mrf.mxu1 }
 0x417   :  { %v6691_v32 = vld [vmem:[#allocation2 + $0x60] sm:$0x11]  ;;  %v6504_v8 = vshll.u32 %v6403_v34, 16  ;;  %v12196_v24 = vrot.slane %v6690_v2, 9  ;;  %v7168_v60 = vld [vmem:[#allocation2 + $0xa8] sm:$0xee]  ;;  %v15884_v49 = vadd.f32 %v5834_v35, %v15549_v11  ;;  %v15887_v41 = vadd.f32 %v5838_v59, %v15554_v18 }
 0x418   :  { %v6766_v56 = vrot.slane %v6691_v32, 5  ;;  %v6881_v23 = vld [vmem:[#allocation2 + $0x60] sm:$0x11]  ;;  %v6502_v33 = vrot.slane %v6501_v37, 4  ;;  %v12211_v34 = vrot.slane %v7168_v60, 9  ;;  %v6514_v35 = vrot.slane %v6512_v19, 5 }
 0x419   :  { %v6970_v50 = vshll.u32 %v6881_v23, 16  ;;  %v7169_v43 = vld [vmem:[#allocation2 + $0x60] sm:$0x11]  ;;  %v6506_v10 = vrot.slane %v6504_v8, 5  ;;  %v7646_v37 = vld [vmem:[#allocation2 + $0xa8] sm:$0xee] }
 0x41a   :  { %v15879_v63 = vsel %vm13951_vm3, %v12196_v24, %v6766_v56  ;;  %v7242_v2 = vrot.slane %v7169_v43, 5  ;;  %v7359_v32 = vld [vmem:[#allocation2 + $0x60] sm:$0x11]  ;;  %v12226_v56 = vrot.slane %v7646_v37, 9  ;;  %v15903_v43 = vadd.f32 %v15765_v47, %v15802_v5 }
 0x41b   :  { %v6972_v15 = vrot.slane %v6970_v50, 5  ;;  %v7436_v23 = vshll.u32 %v7359_v32, 16  ;;  %v7647_v31 = vld [vmem:[#allocation2 + $0x60] sm:$0x11]  ;;  %v15891_v8 = vsel %vm13975_vm4, %v6502_v33, %v6506_v10  ;;  %v6692_v59 = vld [vmem:[#allocation2 + $0x28] sm:$0xee] }
 0x41c   :  { %v15895_v24 = vsel %vm13951_vm3, %v12211_v34, %v7242_v2  ;;  %v7718_v60 = vrot.slane %v7647_v31, 5  ;;  %v7170_v50 = vld [vmem:[#allocation2 + $0x28] sm:$0xee]  ;;  %v6405_v34 = vld [vmem:[#allocation2 + $0x118] sm:$0x11]  ;;  %v12197_v32 = vrot.slane %v6692_v59, 9  ;;  %v15911_v31 = vpop.f32.mrf.mxu1  ;;  %v5934_v59 = vadd.f32 %v15798_v57, %v15817_v12 }
 0x41d   :  { %17554 = vst [vmem:[#allocation46_spill] sm:$0xff] %v15895_v24  ;;  %v15899_v11 = vsel %vm13975_vm4, %v6502_v33, %v6972_v15  ;;  %v7438_v18 = vrot.slane %v7436_v23, 5  ;;  %v6693_v2 = vld [vmem:[#allocation2 + $0x118] sm:$0x11]  ;;  %v12212_v37 = vrot.slane %v7170_v50, 9  ;;  %v5932_v15 = vadd.f32 %v15785_v26, %v15806_v28 }
 0x41e   :  { %17555 = vst [vmem:[#allocation48_spill] sm:$0xff] %v15899_v11  ;;  %v15907_v10 = vsel %vm13951_vm3, %v12226_v56, %v7718_v60  ;;  %v6515_v23 = vor.u32 %v6514_v35, %v6511_v46  ;;  %v6518_v47 = vshll.u32 %v6405_v34, 16  ;;  %v6770_v5 = vrot.slane %v6693_v2, 5  ;;  %v6883_v24 = vld [vmem:[#allocation2 + $0x118] sm:$0x11]  ;;  %v15930_v57 = vpop.f32.mrf.mxu1 }
 0x41f   :  { %17556 = vst [vmem:[#allocation45_spill] sm:$0xff] %v15907_v10  ;;  %v15915_v19 = vsel %vm13975_vm4, %v6502_v33, %v7438_v18  ;;  %v7171_v11 = vld [vmem:[#allocation2 + $0x118] sm:$0x11]  ;;  %v6984_v56 = vshll.u32 %v6883_v24, 16  ;;  %v7648_v21 = vld [vmem:[#allocation2 + $0x28] sm:$0xee]  ;;  %v15920_v26 = vadd.f32 %v15824_v30, %v5823_v4 }
 0x420   :  { %17557 = vst [vmem:[#allocation59_spill] sm:$0xff] %v15915_v19  ;;  %v7246_v60 = vrot.slane %v7171_v11, 5  ;;  %v7361_v10 = vld [vmem:[#allocation2 + $0x118] sm:$0x11]  ;;  %v6516_v28 = vrot.slane %v6515_v23, 4  ;;  %v6520_v50 = vrot.slane %v6518_v47, 5  ;;  %v15924_v33 = vsel %vm13951_vm3, %v12197_v32, %v6770_v5 }
 0x421   :  { %v7450_v46 = vshll.u32 %v7361_v10, 16  ;;  %v7649_v18 = vld [vmem:[#allocation2 + $0x118] sm:$0x11]  ;;  %v6986_v35 = vrot.slane %v6984_v56, 5  ;;  %v12227_v11 = vrot.slane %v7648_v21, 9  ;;  %v6156_v4 = vshll.u32 %v15787_v29, 16 }
 0x422   :  { %v15928_v24 = vsel %vm13951_vm3, %v12212_v37, %v7246_v60  ;;  %v7722_v34 = vrot.slane %v7649_v18, 5  ;;  %v6303_v2 = vld [vmem:[#allocation2 + $0x30] sm:$0x11]  ;;  %v15934_v12 = vsel %vm13975_vm4, %v6516_v28, %v6520_v50  ;;  %v6159_v10 = vrot.slane %v15847_v51, 4 }
 0x423   :  { %17558 = vst [vmem:[#allocation54_spill] sm:$0xff] %v15928_v24  ;;  %v7452_v30 = vrot.slane %v7450_v46, 5  ;;  %v15940_v32 = vsel %vm13975_vm4, %v6516_v28, %v6986_v35  ;;  %v6300_v37 = vld [vmem:[#allocation2 + $0x70] sm:$0xff]  ;;  %v6161_v23 = vshrl.u32 %v15792_v45, 16  ;;  %v6164_v47 = vshll.u32 %v15792_v45, 16 }
 0x424   :  { %17559 = vst [vmem:[#allocation58_spill] sm:$0xff] %v15940_v32  ;;  %v15944_v21 = vsel %vm13951_vm3, %v12227_v11, %v7722_v34  ;;  %v6158_v29 = vor.u32 %v6156_v4, %v15847_v51  ;;  %v6304_v56 = vsel %vm13907_vm10, %v6159_v10, %v6303_v2  ;;  %v6169_v60 = vshrl.u32 %v15795_v13, 16  ;;  %v5947_v11 = vpop.f32.mrf.mxu1  ;;  %v6309_v34 = vld [vmem:[#allocation2 + $0x68] sm:$0x11] }
 0x425   :  { %17560 = vst [vmem:[#allocation53_spill] sm:$0xff] %v15944_v21  ;;  %v15950_v5 = vsel %vm13975_vm4, %v6516_v28, %v7452_v30  ;;  %6305 = vst [vmem:[#allocation2 + $0x30] sm:$0x11] %v6304_v56  ;;  %v6163_v50 = vrot.slane %v6161_v23, 7  ;;  %v6172_v46 = vshll.u32 %v15795_v13, 16  ;;  %v5979_v18 = vmax.f32 %v15903_v43, 0.0 }
 0x426   :  { %17561 = vst [vmem:[#allocation69_spill] sm:$0xff] %v15950_v5  ;;  %v5980_v35 = vmax.f32 %v5932_v15, 0.0  ;;  %v15960_v45 = vsel %vm13911_vm13, %v6158_v29, %v6300_v37  ;;  %v6306_v28 = vld [vmem:[#allocation2 + $0x90] sm:$0xff]  ;;  %v6171_v51 = vrot.slane %v6169_v60, 7  ;;  %v5981_v30 = vmax.f32 %v5934_v59, 0.0  ;;  %v6312_v15 = vld [vmem:[#allocation2 + $0x108] sm:$0xff]  ;;  %v5840_v59 = vpop.f32.mrf.mxu0 }
 0x427   :  { %6302 = vst [vmem:[#allocation2 + $0x70] sm:$0xff] %v15960_v45  ;;  %v6523_v4 = vshrl.u32 %v15960_v45, 16  ;;  %v6526_v13 = vshll.u32 %v15960_v45, 16  ;;  %v6166_v10 = vor.u32 %v6164_v47, %v6163_v50  ;;  %v6167_v43 = vrot.slane %v6163_v50, 4  ;;  %v6315_v23 = vld [vmem:[#allocation2 + $0x40] sm:$0x11]  ;;  %v5951_v50 = vpop.f32.mrf.mxu1 }
 0x428   :  { %v6174_v56 = vor.u32 %v6172_v46, %v6171_v51  ;;  %v6175_v21 = vrot.slane %v6171_v51, 4  ;;  %v17562_v37 = vmax.f32 %v15734_v16, 0.0  ;;  %v15970_v60 = vpack.c.bf16 %v5981_v30, %v5980_v35 }
 0x429   :  { %v6525_v2 = vrot.slane %v6523_v4, 4  ;;  %v6528_v5 = vrot.slane %v6526_v13, 5  ;;  %v15974_v19 = vsel %vm13911_vm13, %v6166_v10, %v6306_v28  ;;  %v6310_v47 = vsel %vm13907_vm10, %v6167_v43, %v6309_v34 }
 0x42a   :  { %v15968_v29 = vpack.c.bf16 %v5979_v18, %v17562_v37  ;;  %17563 = vst [vmem:[#allocation64_spill] sm:$0xff] %v15974_v19  ;;  %6308 = vst [vmem:[#allocation2 + $0x90] sm:$0xff] %v15974_v19  ;;  %v7003_v16 = vshrl.u32 %v15974_v19, 16  ;;  %v7006_v46 = vshll.u32 %v15974_v19, 16  ;;  %v15983_v18 = vsel %vm13911_vm13, %v6174_v56, %v6312_v15 }
 0x42b   :  { %6311 = vst [vmem:[#allocation2 + $0x68] sm:$0x11] %v6310_v47  ;;  %v6316_v35 = vsel %vm13907_vm10, %v6175_v21, %v6315_v23  ;;  %v6529_v28 = vor.u32 %v6528_v5, %v6525_v2  ;;  %6314 = vst [vmem:[#allocation2 + $0x108] sm:$0xff] %v15983_v18  ;;  %v6551_v34 = vshrl.u32 %v15983_v18, 16  ;;  %v6554_v51 = vshll.u32 %v15983_v18, 16 }
 0x42c   :  { %6317 = vst [vmem:[#allocation2 + $0x40] sm:$0x11] %v6316_v35  ;;  %v5841_v4 = vadd.f32 %v5840_v59, %v15560_v14  ;;  %v6407_v13 = vld [vmem:[#allocation2 + $0x30] sm:$0x11]  ;;  %v15994_v15 = vadd.f32 %v15858_v44, %v15864_v27  ;;  %v15998_v21 = vadd.f32 %v15881_v6, %v15868_v3  ;;  %v16002_v5 = vadd.f32 %v15911_v31, %v15872_v17  ;;  %v5953_v59 = vpop.f32.mrf.mxu1 }
 0x42d   :  { %v6695_v10 = vld [vmem:[#allocation2 + $0x30] sm:$0x11]  ;;  %v6530_v2 = vrot.slane %v6529_v28, 4  ;;  %v6532_v23 = vshll.u32 %v6407_v13, 16  ;;  %v7005_v24 = vrot.slane %v7003_v16, 4  ;;  %v16006_v44 = vadd.f32 %v15930_v57, %v15875_v52 }
 0x42e   :  { %v6885_v43 = vld [vmem:[#allocation2 + $0x30] sm:$0x11]  ;;  %v6774_v56 = vrot.slane %v6695_v10, 5  ;;  %v6694_v47 = vld [vmem:[#allocation2 + $0x70] sm:$0xee]  ;;  %v16009_v27 = vadd.f32 %v5947_v11, %v15884_v49  ;;  %v7008_v32 = vrot.slane %v7006_v46, 5  ;;  %v16012_v19 = vadd.f32 %v5951_v50, %v15887_v41 }
 0x42f   :  { %v6998_v37 = vshll.u32 %v6885_v43, 16  ;;  %v7173_v14 = vld [vmem:[#allocation2 + $0x30] sm:$0x11]  ;;  %v7172_v35 = vld [vmem:[#allocation2 + $0x70] sm:$0xee]  ;;  %v6534_v3 = vrot.slane %v6532_v23, 5  ;;  %v16014_v16 = vadd.f32 %v5953_v59, %v5841_v4 }
 0x430   :  { %v7250_v30 = vrot.slane %v7173_v14, 5  ;;  %v12198_v17 = vrot.slane %v6694_v47, 9  ;;  %v12213_v31 = vrot.slane %v7172_v35, 9  ;;  %v7363_v28 = vld [vmem:[#allocation2 + $0x30] sm:$0x11]  ;;  %v7009_v14 = vor.u32 %v7008_v32, %v7005_v24 }
 0x431   :  { %v7000_v6 = vrot.slane %v6998_v37, 5  ;;  %v7464_v13 = vshll.u32 %v7363_v28, 16  ;;  %v7650_v10 = vld [vmem:[#allocation2 + $0x70] sm:$0xee]  ;;  %v7651_v43 = vld [vmem:[#allocation2 + $0x30] sm:$0x11]  ;;  %v16018_v52 = vsel %vm13975_vm4, %v6530_v2, %v6534_v3 }
 0x432   :  { %v16022_v49 = vsel %vm13951_vm3, %v12198_v17, %v6774_v56  ;;  %v16030_v11 = vsel %vm13951_vm3, %v12213_v31, %v7250_v30  ;;  %v6887_v41 = vld [vmem:[#allocation2 + $0x68] sm:$0x11]  ;;  %v7174_v50 = vld [vmem:[#allocation2 + $0x90] sm:$0xee]  ;;  %v12228_v23 = vrot.slane %v7650_v10, 9  ;;  %v7726_v37 = vrot.slane %v7651_v43, 5 }
 0x433   :  { %v16026_v57 = vsel %vm13975_vm4, %v6530_v2, %v7000_v6  ;;  %17565 = vst [vmem:[#allocation63_spill] sm:$0xff] %v16030_v11  ;;  %v7175_v46 = vld [vmem:[#allocation2 + $0x68] sm:$0x11]  ;;  %v7466_v4 = vrot.slane %v7464_v13, 5  ;;  %v7012_v47 = vshll.u32 %v6887_v41, 16  ;;  %v12214_v35 = vrot.slane %v7174_v50, 9 }
 0x434   :  { %17564 = vst [vmem:[#allocation68_spill] sm:$0xff] %v16026_v57  ;;  %v7365_v59 = vld [vmem:[#allocation2 + $0x68] sm:$0x11]  ;;  %v7254_v56 = vrot.slane %v7175_v46, 5  ;;  %v7652_v17 = vld [vmem:[#allocation2 + $0x90] sm:$0xee]  ;;  %v16038_v30 = vsel %vm13951_vm3, %v12228_v23, %v7726_v37 }
 0x435   :  { %v7478_v3 = vshll.u32 %v7365_v59, 16  ;;  %v16034_v6 = vsel %vm13975_vm4, %v6530_v2, %v7466_v4  ;;  %17567 = vst [vmem:[#allocation74_spill] sm:$0xff] %v16038_v30  ;;  %v7010_v31 = vrot.slane %v7009_v14, 4  ;;  %v7653_v28 = vld [vmem:[#allocation2 + $0x68] sm:$0x11]  ;;  %v12229_v13 = vrot.slane %v7652_v17, 9 }
 0x436   :  { %17566 = vst [vmem:[#allocation79_spill] sm:$0xff] %v16034_v6  ;;  %v6411_v10 = vld [vmem:[#allocation2 + $0x40] sm:$0x11]  ;;  %v7014_v43 = vrot.slane %v7012_v47, 5  ;;  %v16042_v24 = vsel %vm13951_vm3, %v12214_v35, %v7254_v56  ;;  %v7730_v41 = vrot.slane %v7653_v28, 5  ;;  %v6553_v46 = vrot.slane %v6551_v34, 4 }
 0x437   :  { %17568 = vst [vmem:[#allocation78_spill] sm:$0xff] %v16042_v24  ;;  %v7480_v32 = vrot.slane %v7478_v3, 5  ;;  %v6698_v50 = vld [vmem:[#allocation2 + $0x108] sm:$0xee]  ;;  %v6556_v59 = vrot.slane %v6554_v51, 5  ;;  %v6560_v2 = vshll.u32 %v6411_v10, 16 }
 0x438   :  { %v6699_v4 = vld [vmem:[#allocation2 + $0x40] sm:$0x11]  ;;  %v12200_v6 = vrot.slane %v6698_v50, 9  ;;  %v16046_v23 = vsel %vm13975_vm4, %v7010_v31, %v7014_v43  ;;  %v16054_v14 = vsel %vm13951_vm3, %v12229_v13, %v7730_v41  ;;  %v7176_v56 = vld [vmem:[#allocation2 + $0x108] sm:$0xee]  ;;  %v6180_v50 = vshll.u32 %v15968_v29, 16 }
 0x439   :  { %17569 = vst [vmem:[#allocation75_spill] sm:$0xff] %v16046_v23  ;;  %v16050_v37 = vsel %vm13975_vm4, %v7010_v31, %v7480_v32  ;;  %17571 = vst [vmem:[#allocation84_spill] sm:$0xff] %v16054_v14  ;;  %v6782_v47 = vrot.slane %v6699_v4, 5  ;;  %v6889_v35 = vld [vmem:[#allocation2 + $0x40] sm:$0x11]  ;;  %v6557_v34 = vor.u32 %v6556_v59, %v6553_v46  ;;  %v6562_v51 = vrot.slane %v6560_v2, 5 }
 0x43a   :  { %17570 = vst [vmem:[#allocation87_spill] sm:$0xff] %v16050_v37  ;;  %v7026_v3 = vshll.u32 %v6889_v35, 16  ;;  %v7177_v17 = vld [vmem:[#allocation2 + $0x40] sm:$0x11]  ;;  %v12215_v28 = vrot.slane %v7176_v56, 9  ;;  %v17572_v31 = vshrl.u32 %v15968_v29, 16 }
 0x43b   :  { %v16058_v10 = vsel %vm13951_vm3, %v12200_v6, %v6782_v47  ;;  %v7258_v43 = vrot.slane %v7177_v17, 5  ;;  %v6318_v13 = vld [vmem:[#allocation2 + $0xd8] sm:$0xff]  ;;  %v6558_v41 = vrot.slane %v6557_v34, 4  ;;  %v6321_v14 = vld [vmem:[#allocation2 + $0x80] sm:$0x11]  ;;  %v6185_v46 = vshrl.u32 %v15970_v60, 16 }
 0x43c   :  { %v6179_v32 = vrot.slane %v17572_v31, 7  ;;  %v7028_v4 = vrot.slane %v7026_v3, 5  ;;  %v6188_v59 = vshll.u32 %v15970_v60, 16  ;;  %v5983_v35 = vmax.f32 %v15994_v15, 0.0  ;;  %v6327_v15 = vld [vmem:[#allocation2 + $0x130] sm:$0x11] }
 0x43d   :  { %v16067_v2 = vsel %vm13951_vm3, %v12215_v28, %v7258_v43  ;;  %v16072_v56 = vsel %vm13975_vm4, %v6558_v41, %v6562_v51  ;;  %v6187_v34 = vrot.slane %v6185_v46, 7  ;;  %v5984_v3 = vmax.f32 %v15998_v21, 0.0  ;;  %v6324_v28 = vld [vmem:[#allocation2 + $0x8] sm:$0xff]  ;;  %v6336_v30 = vld [vmem:[#allocation2 + $0x100] sm:$0xff] }
 0x43e   :  { %17573 = vst [vmem:[#allocation86_spill] sm:$0xff] %v16067_v2  ;;  %v6182_v6 = vor.u32 %v6180_v50, %v6179_v32  ;;  %v6183_v47 = vrot.slane %v6179_v32, 4  ;;  %v16076_v29 = vsel %vm13975_vm4, %v6558_v41, %v7028_v4  ;;  %v17575_v43 = vmax.f32 %v15920_v26, 0.0 }
 0x43f   :  { %17574 = vst [vmem:[#allocation83_spill] sm:$0xff] %v16076_v29  ;;  %v5985_v31 = vmax.f32 %v16002_v5, 0.0  ;;  %v6190_v50 = vor.u32 %v6188_v59, %v6187_v34 }
 0x440   :  { %v16081_v60 = vsel %vm13911_vm13, %v6182_v6, %v6318_v13  ;;  %v6322_v17 = vsel %vm13907_vm10, %v6183_v47, %v6321_v14  ;;  %v12701_v51 = vpack.c.bf16 %v5983_v35, %v17575_v43  ;;  %v6191_v13 = vrot.slane %v6187_v34, 4  ;;  %v6333_v43 = vld [vmem:[#allocation2 + $0x10] sm:$0x11] }
 0x441   :  { %6320 = vst [vmem:[#allocation2 + $0xd8] sm:$0xff] %v16081_v60  ;;  %6323 = vst [vmem:[#allocation2 + $0x80] sm:$0x11] %v6322_v17  ;;  %v6565_v32 = vshrl.u32 %v16081_v60, 16  ;;  %v6568_v21 = vshll.u32 %v16081_v60, 16  ;;  %v12702_v46 = vpack.c.bf16 %v5985_v31, %v5984_v3  ;;  %v5986_v14 = vmax.f32 %v16006_v44, 0.0 }
 0x442   :  { %v6193_v41 = vshrl.u32 %v12701_v51, 16  ;;  %v6196_v4 = vshll.u32 %v12701_v51, 16  ;;  %v16094_v26 = vsel %vm13911_vm13, %v6190_v50, %v6324_v28  ;;  %v6328_v5 = vsel %vm13907_vm10, %v6191_v13, %v6327_v15  ;;  %v6330_v44 = vld [vmem:[#allocation2 + $0xe0] sm:$0xff] }
 0x443   :  { %v6567_v6 = vrot.slane %v6565_v32, 4  ;;  %v6570_v47 = vrot.slane %v6568_v21, 5  ;;  %6326 = vst [vmem:[#allocation2 + $0x8] sm:$0xff] %v16094_v26  ;;  %6329 = vst [vmem:[#allocation2 + $0x130] sm:$0x11] %v6328_v5  ;;  %v6579_v59 = vshrl.u32 %v16094_v26, 16 }
 0x444   :  { %v6582_v35 = vshll.u32 %v16094_v26, 16  ;;  %v6195_v34 = vrot.slane %v6193_v41, 7  ;;  %v6201_v3 = vshrl.u32 %v12702_v46, 16  ;;  %v6204_v51 = vshll.u32 %v12702_v46, 16 }
 0x445   :  { %v6571_v17 = vor.u32 %v6570_v47, %v6567_v6  ;;  %v5987_v31 = vmax.f32 %v16009_v27, 0.0  ;;  %v5988_v28 = vmax.f32 %v16012_v19, 0.0  ;;  %v6581_v32 = vrot.slane %v6579_v59, 4  ;;  %v5842_v6 = vpop.f32.mrf.mxu0 }
 0x446   :  { %v6584_v21 = vrot.slane %v6582_v35, 5  ;;  %v6198_v15 = vor.u32 %v6196_v4, %v6195_v34  ;;  %v6199_v50 = vrot.slane %v6195_v34, 4  ;;  %v16103_v5 = vrot.slane %v6201_v3, 7 }
 0x447   :  { %v6572_v13 = vrot.slane %v6571_v17, 4  ;;  %v16105_v37 = vpack.c.bf16 %v5987_v31, %v5986_v14  ;;  %v5989_v41 = vmax.f32 %v16014_v16, 0.0 }
 0x448   :  { %v6413_v47 = vld [vmem:[#allocation2 + $0x80] sm:$0x11]  ;;  %v6700_v2 = vld [vmem:[#allocation2 + $0xd8] sm:$0xee]  ;;  %v6585_v29 = vor.u32 %v6584_v21, %v6581_v32  ;;  %v16110_v19 = vsel %vm13911_vm13, %v6198_v15, %v6330_v44  ;;  %v6334_v27 = vsel %vm13907_vm10, %v6199_v50, %v6333_v43  ;;  %v6206_v44 = vor.u32 %v6204_v51, %v16103_v5 }
 0x449   :  { %v6701_v46 = vld [vmem:[#allocation2 + $0x80] sm:$0x11]  ;;  %v6574_v4 = vshll.u32 %v6413_v47, 16  ;;  %v12201_v59 = vrot.slane %v6700_v2, 9  ;;  %6332 = vst [vmem:[#allocation2 + $0xe0] sm:$0xff] %v16110_v19  ;;  %v6593_v16 = vshrl.u32 %v16110_v19, 16  ;;  %v16119_v32 = vpack.c.bf16 %v5989_v41, %v5988_v28  ;;  %v5955_v28 = vpop.f32.mrf.mxu1 }
 0x44a   :  { %v6786_v35 = vrot.slane %v6701_v46, 5  ;;  %v6891_v34 = vld [vmem:[#allocation2 + $0x80] sm:$0x11]  ;;  %6335 = vst [vmem:[#allocation2 + $0x10] sm:$0x11] %v6334_v27  ;;  %v16116_v31 = vrot.slane %v6585_v29, 4  ;;  %v5843_v47 = vadd.f32 %v5842_v6, %v15566_v20  ;;  %v5844_v46 = vpop.f32.mrf.mxu0  ;;  %v16128_v51 = vsel %vm13911_vm13, %v6206_v44, %v6336_v30 }
 0x44b   :  { %v7040_v14 = vshll.u32 %v6891_v34, 16  ;;  %v7178_v3 = vld [vmem:[#allocation2 + $0xd8] sm:$0xee]  ;;  %v7179_v17 = vld [vmem:[#allocation2 + $0x80] sm:$0x11]  ;;  %v6576_v21 = vrot.slane %v6574_v4, 5  ;;  %v5957_v24 = vpop.f32.mrf.mxu1 }
 0x44c   :  { %v16123_v2 = vsel %vm13951_vm3, %v12201_v59, %v6786_v35  ;;  %v12216_v43 = vrot.slane %v7178_v3, 9  ;;  %v7262_v15 = vrot.slane %v7179_v17, 5  ;;  %v7369_v50 = vld [vmem:[#allocation2 + $0x80] sm:$0x11]  ;;  %v7656_v11 = vld [vmem:[#allocation2 + $0xd8] sm:$0xee] }
 0x44d   :  { %17576 = vst [vmem:[#allocation97_spill] sm:$0xff] %v16123_v2  ;;  %v7042_v27 = vrot.slane %v7040_v14, 5  ;;  %v7506_v34 = vshll.u32 %v7369_v50, 16  ;;  %v7657_v29 = vld [vmem:[#allocation2 + $0x80] sm:$0x11]  ;;  %v16132_v41 = vsel %vm13975_vm4, %v6572_v13, %v6576_v21  ;;  %v12231_v59 = vrot.slane %v7656_v11, 9 }
 0x44e   :  { %v16136_v4 = vsel %vm13951_vm3, %v12216_v43, %v7262_v15  ;;  %v7738_v20 = vrot.slane %v7657_v29, 5  ;;  %v6415_v6 = vld [vmem:[#allocation2 + $0x130] sm:$0x11]  ;;  %v6702_v35 = vld [vmem:[#allocation2 + $0x8] sm:$0xee]  ;;  %6338 = vst [vmem:[#allocation2 + $0x100] sm:$0xff] %v16128_v51  ;;  %v5845_v21 = vadd.f32 %v5844_v46, %v15573_v36 }
 0x44f   :  { %17577 = vst [vmem:[#allocation92_spill] sm:$0xff] %v16136_v4  ;;  %v16141_v14 = vsel %vm13975_vm4, %v6572_v13, %v7042_v27  ;;  %v7508_v30 = vrot.slane %v7506_v34, 5  ;;  %v6588_v3 = vshll.u32 %v6415_v6, 16  ;;  %v6703_v17 = vld [vmem:[#allocation2 + $0x130] sm:$0x11]  ;;  %v12202_v44 = vrot.slane %v6702_v35, 9 }
 0x450   :  { %17578 = vst [vmem:[#allocation96_spill] sm:$0xff] %v16141_v14  ;;  %v16146_v43 = vsel %vm13951_vm3, %v12231_v59, %v7738_v20  ;;  %v6790_v11 = vrot.slane %v6703_v17, 5  ;;  %v6893_v15 = vld [vmem:[#allocation2 + $0x130] sm:$0x11]  ;;  %v7180_v50 = vld [vmem:[#allocation2 + $0x8] sm:$0xee]  ;;  %v16157_v17 = vadd.f32 %v5955_v28, %v5843_v47  ;;  %v5958_v47 = vadd.f32 %v5957_v24, %v5845_v21 }
 0x451   :  { %17579 = vst [vmem:[#allocation91_spill] sm:$0xff] %v16146_v43  ;;  %v6595_v29 = vrot.slane %v6593_v16, 4  ;;  %v16150_v4 = vsel %vm13975_vm4, %v6572_v13, %v7508_v30  ;;  %v6590_v27 = vrot.slane %v6588_v3, 5  ;;  %v7054_v14 = vshll.u32 %v6893_v15, 16  ;;  %v7181_v34 = vld [vmem:[#allocation2 + $0x130] sm:$0x11] }
 0x452   :  { %17580 = vst [vmem:[#allocation108_spill] sm:$0xff] %v16150_v4  ;;  %v12217_v6 = vrot.slane %v7180_v50, 9  ;;  %v16154_v36 = vsel %vm13951_vm3, %v12202_v44, %v6790_v11  ;;  %v7266_v46 = vrot.slane %v7181_v34, 5  ;;  %v7371_v59 = vld [vmem:[#allocation2 + $0x130] sm:$0x11]  ;;  %v6596_v35 = vshll.u32 %v16110_v19, 16 }
 0x453   :  { %17581 = vst [vmem:[#allocation103_spill] sm:$0xff] %v16154_v36  ;;  %v7658_v20 = vld [vmem:[#allocation2 + $0x8] sm:$0xee]  ;;  %v16162_v13 = vsel %vm13975_vm4, %v16116_v31, %v6590_v27  ;;  %v7056_v16 = vrot.slane %v7054_v14, 5  ;;  %v7520_v30 = vshll.u32 %v7371_v59, 16 }
 0x454   :  { %v7659_v3 = vld [vmem:[#allocation2 + $0x130] sm:$0x11]  ;;  %v12232_v15 = vrot.slane %v7658_v20, 9  ;;  %v6339_v50 = vld [vmem:[#allocation2 + $0x98] sm:$0x11]  ;;  %v16166_v44 = vsel %vm13951_vm3, %v12217_v6, %v7266_v46  ;;  %v6598_v43 = vrot.slane %v6596_v35, 5 }
 0x455   :  { %17582 = vst [vmem:[#allocation107_spill] sm:$0xff] %v16166_v44  ;;  %v7742_v11 = vrot.slane %v7659_v3, 5  ;;  %v6417_v34 = vld [vmem:[#allocation2 + $0x10] sm:$0x11]  ;;  %v6704_v4 = vld [vmem:[#allocation2 + $0xe0] sm:$0xee]  ;;  %v16171_v28 = vsel %vm13975_vm4, %v16116_v31, %v7056_v16 }
 0x456   :  { %17583 = vst [vmem:[#allocation101_spill] sm:$0xff] %v16171_v28  ;;  %v7522_v27 = vrot.slane %v7520_v30, 5  ;;  %v6602_v14 = vshll.u32 %v6417_v34, 16  ;;  %v6705_v59 = vld [vmem:[#allocation2 + $0x10] sm:$0x11]  ;;  %v12203_v57 = vrot.slane %v6704_v4, 9  ;;  %v6599_v6 = vor.u32 %v6598_v43, %v6595_v29 }
 0x457   :  { %v16175_v20 = vsel %vm13951_vm3, %v12232_v15, %v7742_v11  ;;  %v6794_v46 = vrot.slane %v6705_v59, 5  ;;  %v6895_v3 = vld [vmem:[#allocation2 + $0x10] sm:$0x11]  ;;  %v7182_v44 = vld [vmem:[#allocation2 + $0xe0] sm:$0xee]  ;;  %v6207_v35 = vrot.slane %v16103_v5, 4 }
 0x458   :  { %17584 = vst [vmem:[#allocation118_spill] sm:$0xff] %v16175_v20  ;;  %v16181_v24 = vsel %vm13975_vm4, %v16116_v31, %v7522_v27  ;;  %v6604_v21 = vrot.slane %v6602_v14, 5  ;;  %v7068_v16 = vshll.u32 %v6895_v3, 16  ;;  %v7183_v30 = vld [vmem:[#allocation2 + $0x10] sm:$0x11]  ;;  %v12218_v34 = vrot.slane %v7182_v44, 9 }
 0x459   :  { %17585 = vst [vmem:[#allocation113_spill] sm:$0xff] %v16181_v24  ;;  %v6600_v4 = vrot.slane %v6599_v6, 4  ;;  %v16185_v15 = vsel %vm13951_vm3, %v12203_v57, %v6794_v46  ;;  %v7270_v43 = vrot.slane %v7183_v30, 5  ;;  %v7373_v29 = vld [vmem:[#allocation2 + $0x10] sm:$0x11]  ;;  %v6340_v5 = vsel %vm13907_vm10, %v6207_v35, %v6339_v50 }
 0x45a   :  { %17586 = vst [vmem:[#allocation116_spill] sm:$0xff] %v16185_v15  ;;  %v7660_v11 = vld [vmem:[#allocation2 + $0xe0] sm:$0xee]  ;;  %v7070_v59 = vrot.slane %v7068_v16, 5  ;;  %v7534_v20 = vshll.u32 %v7373_v29, 16  ;;  %v6607_v27 = vshrl.u32 %v16128_v51, 16 }
 0x45b   :  { %v7661_v28 = vld [vmem:[#allocation2 + $0x10] sm:$0x11]  ;;  %v12233_v31 = vrot.slane %v7660_v11, 9  ;;  %6341 = vst [vmem:[#allocation2 + $0x98] sm:$0x11] %v6340_v5  ;;  %v16192_v44 = vsel %vm13975_vm4, %v6600_v4, %v6604_v21  ;;  %v16196_v57 = vsel %vm13951_vm3, %v12218_v34, %v7270_v43  ;;  %v6610_v6 = vshll.u32 %v16128_v51, 16 }
 0x45c   :  { %17587 = vst [vmem:[#allocation112_spill] sm:$0xff] %v16196_v57  ;;  %v7746_v14 = vrot.slane %v7661_v28, 5  ;;  %v6706_v46 = vld [vmem:[#allocation2 + $0x100] sm:$0xee]  ;;  %v16201_v50 = vsel %vm13975_vm4, %v6600_v4, %v7070_v59  ;;  %v7536_v3 = vrot.slane %v7534_v20, 5  ;;  %v6609_v35 = vrot.slane %v6607_v27, 4 }
 0x45d   :  { %17588 = vst [vmem:[#allocation56_spill] sm:$0xff] %v16201_v50  ;;  %v7184_v16 = vld [vmem:[#allocation2 + $0x100] sm:$0xee]  ;;  %v6612_v21 = vrot.slane %v6610_v6, 5  ;;  %v12204_v28 = vrot.slane %v6706_v46, 9  ;;  %v6209_v43 = vshrl.u32 %v16105_v37, 16 }
 0x45e   :  { %v16205_v30 = vsel %vm13951_vm3, %v12233_v31, %v7746_v14  ;;  %v7662_v29 = vld [vmem:[#allocation2 + $0x100] sm:$0xee]  ;;  %v16209_v34 = vsel %vm13975_vm4, %v6600_v4, %v7536_v3  ;;  %v6217_v11 = vshrl.u32 %v16119_v32, 16  ;;  %v12219_v59 = vrot.slane %v7184_v16, 9  ;;  %v6342_v14 = vld [vmem:[#allocation2 + $0xd0] sm:$0xff] }
 0x45f   :  { %17589 = vst [vmem:[#allocation51_spill] sm:$0xff] %v16205_v30  ;;  %17590 = vst [vmem:[#allocation66_spill] sm:$0xff] %v16209_v34  ;;  %v6613_v5 = vor.u32 %v6612_v21, %v6609_v35  ;;  %v5990_v20 = vmax.f32 %v16157_v17, 0.0  ;;  %v5991_v27 = vmax.f32 %v5958_v47, 0.0  ;;  %v12234_v24 = vrot.slane %v7662_v29, 9 }
 0x460   :  { %v6211_v57 = vrot.slane %v6209_v43, 7  ;;  %v6212_v31 = vshll.u32 %v16105_v37, 16  ;;  %v6219_v6 = vrot.slane %v6217_v11, 7  ;;  %v6220_v46 = vshll.u32 %v16119_v32, 16  ;;  %v6345_v36 = vld [vmem:[#allocation2] sm:$0x11] }
 0x461   :  { %v6614_v50 = vrot.slane %v6613_v5, 4  ;;  %v12705_v3 = vpack.c.bf16 %v5991_v27, %v5990_v20  ;;  %v6348_v27 = vld [vmem:[#allocation2 + $0x58] sm:$0xff] }
 0x462   :  { %v6419_v30 = vld [vmem:[#allocation2 + $0x98] sm:$0x11]  ;;  %v6214_v16 = vor.u32 %v6212_v31, %v6211_v57  ;;  %v6222_v43 = vor.u32 %v6220_v46, %v6219_v6  ;;  %v6215_v20 = vrot.slane %v6211_v57, 4  ;;  %v6351_v31 = vld [vmem:[#allocation2 + $0x120] sm:$0x11] }
 0x463   :  { %v6707_v4 = vld [vmem:[#allocation2 + $0x98] sm:$0x11]  ;;  %v6616_v34 = vshll.u32 %v6419_v30, 16 }
 0x464   :  { %v6798_v23 = vrot.slane %v6707_v4, 5  ;;  %v6897_v15 = vld [vmem:[#allocation2 + $0x98] sm:$0x11]  ;;  %v6223_v4 = vrot.slane %v6219_v6, 4 }
 0x465   :  { %v7185_v35 = vld [vmem:[#allocation2 + $0x98] sm:$0x11]  ;;  %v7082_v21 = vshll.u32 %v6897_v15, 16  ;;  %v6618_v2 = vrot.slane %v6616_v34, 5  ;;  %v16226_v15 = vsel %vm13911_vm13, %v6214_v16, %v6342_v14  ;;  %v6346_v14 = vsel %vm13907_vm10, %v6215_v20, %v6345_v36 }
 0x466   :  { %v7274_v17 = vrot.slane %v7185_v35, 5  ;;  %v7375_v47 = vld [vmem:[#allocation2 + $0x98] sm:$0x11]  ;;  %v16218_v37 = vsel %vm13951_vm3, %v12204_v28, %v6798_v23  ;;  %6344 = vst [vmem:[#allocation2 + $0xd0] sm:$0xff] %v16226_v15  ;;  %6347 = vst [vmem:[#allocation2] sm:$0x11] %v6346_v14  ;;  %v16251_v35 = vsel %vm13911_vm13, %v6222_v43, %v6348_v27  ;;  %v6352_v36 = vsel %vm13907_vm10, %v6223_v4, %v6351_v31 }
 0x467   :  { %v7663_v29 = vld [vmem:[#allocation2 + $0x98] sm:$0x11]  ;;  %v7548_v11 = vshll.u32 %v7375_v47, 16  ;;  %v7084_v32 = vrot.slane %v7082_v21, 5  ;;  %v16230_v34 = vsel %vm13975_vm4, %v6614_v50, %v6618_v2  ;;  %v6624_v2 = vshll.u32 %v16226_v15, 16  ;;  %6350 = vst [vmem:[#allocation2 + $0x58] sm:$0xff] %v16251_v35 }
 0x468   :  { %v7750_v5 = vrot.slane %v7663_v29, 5  ;;  %v16222_v30 = vsel %vm13951_vm3, %v12219_v59, %v7274_v17  ;;  %v6621_v59 = vshrl.u32 %v16226_v15, 16  ;;  %v6225_v16 = vshrl.u32 %v12705_v3, 16  ;;  %6353 = vst [vmem:[#allocation2 + $0x120] sm:$0x11] %v6352_v36 }
 0x469   :  { %17591 = vst [vmem:[#allocation61_spill] sm:$0xff] %v16222_v30  ;;  %v7550_v23 = vrot.slane %v7548_v11, 5  ;;  %v16240_v57 = vsel %vm13975_vm4, %v6614_v50, %v7084_v32  ;;  %v6626_v21 = vrot.slane %v6624_v2, 5  ;;  %v6635_v17 = vshrl.u32 %v16251_v35, 16  ;;  %v6354_v32 = vld [vmem:[#allocation2 + $0xc0] sm:$0xff] }
 0x46a   :  { %v16234_v28 = vsel %vm13951_vm3, %v12234_v24, %v7750_v5  ;;  %17593 = vst [vmem:[#allocation71_spill] sm:$0xff] %v16240_v57  ;;  %v6623_v24 = vrot.slane %v6621_v59, 4  ;;  %v6638_v6 = vshll.u32 %v16251_v35, 16  ;;  %v6228_v47 = vshll.u32 %v12705_v3, 16  ;;  %v6357_v43 = vld [vmem:[#allocation2 + $0x50] sm:$0x11] }
 0x46b   :  { %17592 = vst [vmem:[#allocation76_spill] sm:$0xff] %v16234_v28  ;;  %v16247_v46 = vsel %vm13975_vm4, %v6614_v50, %v7550_v23  ;;  %v6227_v50 = vrot.slane %v6225_v16, 7  ;;  %v6637_v11 = vrot.slane %v6635_v17, 4 }
 0x46c   :  { %17594 = vst [vmem:[#allocation35_spill] sm:$0xff] %v16247_v46  ;;  %v6627_v29 = vor.u32 %v6626_v21, %v6623_v24  ;;  %v6640_v5 = vrot.slane %v6638_v6, 5 }
 0x46d   :  { %v6230_v20 = vor.u32 %v6228_v47, %v6227_v50  ;;  %v6231_v27 = vrot.slane %v6227_v50, 4  ;;  %v6708_v59 = vld [vmem:[#allocation2 + $0xd0] sm:$0xee]  ;;  %v6421_v24 = vld [vmem:[#allocation2] sm:$0x11] }
 0x46e   :  { %v6628_v23 = vrot.slane %v6627_v29, 4  ;;  %v7186_v14 = vld [vmem:[#allocation2 + $0xd0] sm:$0xee]  ;;  %v6641_v2 = vor.u32 %v6640_v5, %v6637_v11  ;;  %v12205_v28 = vrot.slane %v6708_v59, 9  ;;  %v6709_v16 = vld [vmem:[#allocation2] sm:$0x11] }
 0x46f   :  { %v12220_v31 = vrot.slane %v7186_v14, 9  ;;  %v7664_v4 = vld [vmem:[#allocation2 + $0xd0] sm:$0xee]  ;;  %v16260_v46 = vsel %vm13911_vm13, %v6230_v20, %v6354_v32  ;;  %v6358_v3 = vsel %vm13907_vm10, %v6231_v27, %v6357_v43  ;;  %v6899_v21 = vld [vmem:[#allocation2] sm:$0x11]  ;;  %v6630_v36 = vshll.u32 %v6421_v24, 16 }
 0x470   :  { %6356 = vst [vmem:[#allocation2 + $0xc0] sm:$0xff] %v16260_v46  ;;  %6359 = vst [vmem:[#allocation2 + $0x50] sm:$0x11] %v6358_v3  ;;  %v6802_v17 = vrot.slane %v6709_v16, 5  ;;  %v7096_v6 = vshll.u32 %v6899_v21, 16  ;;  %v12235_v47 = vrot.slane %v7664_v4, 9 }
 0x471   :  { %v7187_v50 = vld [vmem:[#allocation2] sm:$0x11]  ;;  %v6642_v40 = vrot.slane %v6641_v2, 4  ;;  %v6632_v32 = vrot.slane %v6630_v36, 5  ;;  %v6710_v24 = vld [vmem:[#allocation2 + $0x58] sm:$0xee] }
 0x472   :  { %v7278_v29 = vrot.slane %v7187_v50, 5  ;;  %v7377_v11 = vld [vmem:[#allocation2] sm:$0x11]  ;;  %v16267_v0 = vsel %vm13951_vm3, %v12205_v28, %v6802_v17  ;;  %v7098_v43 = vrot.slane %v7096_v6, 5  ;;  %v12206_v21 = vrot.slane %v6710_v24, 9 }
 0x473   :  { %v7665_v5 = vld [vmem:[#allocation2] sm:$0x11]  ;;  %v7562_v20 = vshll.u32 %v7377_v11, 16  ;;  %v16275_v16 = vsel %vm13975_vm4, %v6628_v23, %v6632_v32  ;;  %v7188_v17 = vld [vmem:[#allocation2 + $0x58] sm:$0xee] }
 0x474   :  { %v6423_v27 = vld [vmem:[#allocation2 + $0x120] sm:$0x11]  ;;  %v16271_v59 = vsel %vm13951_vm3, %v12220_v31, %v7278_v29  ;;  %v7754_v14 = vrot.slane %v7665_v5, 5  ;;  %v16279_v2 = vsel %vm13975_vm4, %v6628_v23, %v7098_v43  ;;  %v12221_v32 = vrot.slane %v7188_v17, 9  ;;  %v7666_v30 = vld [vmem:[#allocation2 + $0x58] sm:$0xee] }
 0x475   :  { %17595 = vst [vmem:[#allocation41_spill] sm:$0xff] %v16271_v59  ;;  %v6644_v3 = vshll.u32 %v6423_v27, 16  ;;  %v6711_v4 = vld [vmem:[#allocation2 + $0x120] sm:$0x11]  ;;  %v7564_v28 = vrot.slane %v7562_v20, 5  ;;  %v7115_v17 = vshrl.u32 %v16260_v46, 16 }
 0x476   :  { %v6901_v36 = vld [vmem:[#allocation2 + $0x120] sm:$0x11]  ;;  %v16283_v31 = vsel %vm13951_vm3, %v12235_v47, %v7754_v14  ;;  %v6806_v50 = vrot.slane %v6711_v4, 5 }
 0x477   :  { %17596 = vst [vmem:[#allocation80_spill] sm:$0xff] %v16283_v31  ;;  %v6646_v6 = vrot.slane %v6644_v3, 5  ;;  %v7110_v29 = vshll.u32 %v6901_v36, 16  ;;  %v7189_v11 = vld [vmem:[#allocation2 + $0x120] sm:$0x11]  ;;  %v16287_v5 = vsel %vm13975_vm4, %v6628_v23, %v7564_v28  ;;  %v12236_v28 = vrot.slane %v7666_v30, 9 }
 0x478   :  { %17597 = vst [vmem:[#allocation94_spill] sm:$0xff] %v16287_v5  ;;  %v7282_v27 = vrot.slane %v7189_v11, 5  ;;  %v7379_v43 = vld [vmem:[#allocation2 + $0x120] sm:$0x11]  ;;  %v16295_v47 = vsel %vm13951_vm3, %v12206_v21, %v6806_v50  ;;  %v6903_v4 = vld [vmem:[#allocation2 + $0x50] sm:$0x11] }
 0x479   :  { %v16291_v20 = vsel %vm13975_vm4, %v6642_v40, %v6646_v6  ;;  %v7112_v14 = vrot.slane %v7110_v29, 5  ;;  %v7576_v3 = vshll.u32 %v7379_v43, 16  ;;  %v7667_v24 = vld [vmem:[#allocation2 + $0x120] sm:$0x11]  ;;  %v7190_v11 = vld [vmem:[#allocation2 + $0xc0] sm:$0xee] }
 0x47a   :  { %v16299_v23 = vsel %vm13951_vm3, %v12221_v32, %v7282_v27  ;;  %v7758_v36 = vrot.slane %v7667_v24, 5  ;;  %v7118_v21 = vshll.u32 %v16260_v46, 16  ;;  %v7124_v50 = vshll.u32 %v6903_v4, 16  ;;  %v7191_v29 = vld [vmem:[#allocation2 + $0x50] sm:$0x11] }
 0x47b   :  { %17598 = vst [vmem:[#allocation89_spill] sm:$0xff] %v16299_v23  ;;  %v16304_v6 = vsel %vm13975_vm4, %v6642_v40, %v7112_v14  ;;  %v7578_v31 = vrot.slane %v7576_v3, 5  ;;  %v7117_v32 = vrot.slane %v7115_v17, 4  ;;  %v12222_v27 = vrot.slane %v7190_v11, 9  ;;  %v7381_v24 = vld [vmem:[#allocation2 + $0x50] sm:$0x11] }
 0x47c   :  { %17599 = vst [vmem:[#allocation104_spill] sm:$0xff] %v16304_v6  ;;  %v16309_v43 = vsel %vm13951_vm3, %v12236_v28, %v7758_v36  ;;  %v7286_v30 = vrot.slane %v7191_v29, 5  ;;  %v7120_v23 = vrot.slane %v7118_v21, 5  ;;  %v7590_v14 = vshll.u32 %v7381_v24, 16  ;;  %v7668_v6 = vld [vmem:[#allocation2 + $0xc0] sm:$0xee] }
 0x47d   :  { %v16313_v5 = vsel %vm13975_vm4, %v6642_v40, %v7578_v31  ;;  %v7669_v4 = vld [vmem:[#allocation2 + $0x50] sm:$0x11]  ;;  %v12237_v59 = vrot.slane %v7668_v6, 9  ;;  %v7126_v28 = vrot.slane %v7124_v50, 5 }
 0x47e   :  { %v16317_v3 = vsel %vm13951_vm3, %v12222_v27, %v7286_v30  ;;  %v7121_v57 = vor.u32 %v7120_v23, %v7117_v32  ;;  %v7592_v36 = vrot.slane %v7590_v14, 5  ;;  %v7762_v17 = vrot.slane %v7669_v4, 5 }
 0x480   :  { %v7122_v11 = vrot.slane %v7121_v57, 4  ;;  %v16321_v29 = vsel %vm13951_vm3, %v12237_v59, %v7762_v17 }
 0x482   :  { %v16325_v40 = vsel %vm13975_vm4, %v7122_v11, %v7126_v28  ;;  %v16329_v31 = vsel %vm13975_vm4, %v7122_v11, %v7592_v36 }
 0x483   :  { %13818 = dma.done.wait [#allocation7], 36864 }
 0x484   :  { %13819 = vsyncadd [#allocation7], 4294930432  ;;  %v17600_v23 = vld [vmem:[#allocation120_spill] sm:$0xff]  ;;  %v17601_v21 = vld [vmem:[#allocation126_spill] sm:$0xff]  ;;  %vm11554_vm5 = vcmask 1041409   ;;  %s13833_s8 = smov [#allocation19]  }
 0x485   :  { %v12240_v6 = vcombine.high %v17600_v23, %v15610_v55  ;;  %v12242_v57 = vcombine.high %v17601_v21, %v15674_v38  ;;  %v13196_v39 = vld [vmem:[#allocation5 + $0x74] ss:$8 sps:$4 sm:$0xff]   ;;  %v13198_v59 = vld [vmem:[#allocation5 + $0x70] ss:$8 sps:$4 sm:$0xff]   ;;  %v13202_v27 = vld [vmem:[#allocation5 + $0x64] ss:$8 sps:$4 sm:$0xff]  }
 0x486   :  { %10406 = vmatprep.subr.bf16.mxu0 %v13196_v39  ;;  %v13199_v50 = vld [vmem:[#allocation5 + $0x174] ss:$8 sps:$4 sm:$0xff]   ;;  %v13201_v32 = vld [vmem:[#allocation5 + $0x170] ss:$8 sps:$4 sm:$0xff]   ;;  %v13204_v7 = vld [vmem:[#allocation5 + $0x60] ss:$8 sps:$4 sm:$0xff]  }
 0x487   :  { %10438 = vmatprep.mubr.bf16.mxu0 %v12240_v6  ;;  %10551 = vmatprep.mubr.bf16.mxu1 %v12242_v57  ;;  %v13205_v30 = vld [vmem:[#allocation5 + $0x164] ss:$8 sps:$4 sm:$0xff]   ;;  %v13207_v24 = vld [vmem:[#allocation5 + $0x160] ss:$8 sps:$4 sm:$0xff]   ;;  %v13208_v14 = vld [vmem:[#allocation5 + $0x54] ss:$8 sps:$4 sm:$0xff]  }
 0x488   :  { %10407 = vmatpush1.bf16.msra.mxu0 %v13198_v59  ;;  %10519 = vmatprep.subr.bf16.mxu1 %v13199_v50  ;;  %v13210_v4 = vld [vmem:[#allocation5 + $0x50] ss:$8 sps:$4 sm:$0xff]   ;;  %v13211_v28 = vld [vmem:[#allocation5 + $0x154] ss:$8 sps:$4 sm:$0xff]   ;;  %v13214_v36 = vld [vmem:[#allocation5 + $0x44] ss:$8 sps:$4 sm:$0xff]  }
 0x489   :  { %10520 = vmatpush1.bf16.msra.mxu1 %v13201_v32  ;;  %10408 = vmatprep.subr.bf16.mxu0 %v13202_v27  ;;  %v13213_v17 = vld [vmem:[#allocation5 + $0x150] ss:$8 sps:$4 sm:$0xff]   ;;  %v13217_v11 = vld [vmem:[#allocation5 + $0x144] ss:$8 sps:$4 sm:$0xff]   ;;  %v13216_v6 = vld [vmem:[#allocation5 + $0x40] ss:$8 sps:$4 sm:$0xff]  }
 0x48a   :  { %10521 = vmatprep.subr.bf16.mxu1 %v13205_v30  ;;  %v13220_v57 = vld [vmem:[#allocation5 + $0x34] ss:$8 sps:$4 sm:$0xff]   ;;  %v13219_v39 = vld [vmem:[#allocation5 + $0x140] ss:$8 sps:$4 sm:$0xff]   ;;  %v13222_v50 = vld [vmem:[#allocation5 + $0x30] ss:$8 sps:$4 sm:$0xff]  }
 0x48b   :  { %v13223_v59 = vld [vmem:[#allocation5 + $0x134] ss:$8 sps:$4 sm:$0xff]   ;;  %v13226_v32 = vld [vmem:[#allocation5 + $0x24] ss:$8 sps:$4 sm:$0xff]   ;;  %v13225_v27 = vld [vmem:[#allocation5 + $0x130] ss:$8 sps:$4 sm:$0xff]  }
 0x48c   :  { %10409 = vmatpush1.bf16.msra.mxu0 %v13204_v7  ;;  %v13229_v7 = vld [vmem:[#allocation5 + $0x124] ss:$8 sps:$4 sm:$0xff]   ;;  %v13228_v30 = vld [vmem:[#allocation5 + $0x20] ss:$8 sps:$4 sm:$0xff]   ;;  %s11637_s15 = sshll.u32 %s13833_s8, 4  ;;  %s11638_s15 = int_to_ptr.vmem [resolvable:$true] %s11637_s15 }
 0x48d   :  { %10410 = vmatprep.subr.bf16.mxu0 %v13208_v14  ;;  %10522 = vmatpush1.bf16.msra.mxu1 %v13207_v24  ;;  %v13232_v24 = vld [vmem:[#allocation5 + $0x14] ss:$8 sps:$4 sm:$0xff]   ;;  %v13231_v14 = vld [vmem:[#allocation5 + $0x120] ss:$8 sps:$4 sm:$0xff]   ;;  %s13788_s3 = scalar_lea.vmem %s11638_s15, 32  ;;  %p13793_p13 = scmp.lt.s32.totalorder %s11638_s15, %s11638_s15 }
 0x48e   :  { %10523 = vmatprep.subr.bf16.mxu1 %v13211_v28  ;;  %v13234_v28 = vld [vmem:[#allocation5 + $0x10] ss:$8 sps:$4 sm:$0xff]   ;;  %p13789_p12 = scmp.ne.s32.totalorder %s11638_s15, %s13788_s3  ;;  %p13794_p0 = scmp.lt.s32.totalorder %s13788_s3, %s13788_s3 }
 0x490   :  { %10411 = vmatpush1.bf16.msra.mxu0 %v13210_v4  ;;  %v13235_v4 = vld [vmem:[#allocation5 + $0x114] ss:$8 sps:$4 sm:$0xff]   ;;  %p13795_p1 = por %p13794_p0, %p13793_p13 }
 0x491   :  { %10412 = vmatprep.subr.bf16.mxu0 %v13214_v36  ;;  %10524 = vmatpush1.bf16.msra.mxu1 %v13213_v17  ;;  %v13238_v36 = vld [vmem:[#allocation5 + $0x4] ss:$8 sps:$4 sm:$0xff]   ;;  %v13237_v17 = vld [vmem:[#allocation5 + $0x110] ss:$8 sps:$4 sm:$0xff]  }
 0x492   :  { %10525 = vmatprep.subr.bf16.mxu1 %v13217_v11  ;;  %v13241_v11 = vld [vmem:[#allocation5 + $0x104] ss:$8 sps:$4 sm:$0xff]   ;;  %p13796_p2 = pnand %p13795_p1, %p13789_p12 }
 0x494   :  { %10413 = vmatpush1.bf16.msra.mxu0 %v13216_v6  ;;  %v13240_v6 = vld [vmem:[#allocation5] ss:$8 sps:$4 sm:$0xff]  }
 0x495   :  { %10414 = vmatprep.subr.bf16.mxu0 %v13220_v57  ;;  %10526 = vmatpush1.bf16.msra.mxu1 %v13219_v39  ;;  %v13244_v57 = vld [vmem:[#allocation5 + $0xf4] ss:$8 sps:$4 sm:$0xff]   ;;  %v13243_v39 = vld [vmem:[#allocation5 + $0x100] ss:$8 sps:$4 sm:$0xff]  }
 0x496   :  { %10527 = vmatprep.subr.bf16.mxu1 %v13223_v59  ;;  %v13247_v59 = vld [vmem:[#allocation5 + $0x1f4] ss:$8 sps:$4 sm:$0xff]  }
 0x498   :  { %10415 = vmatpush1.bf16.msra.mxu0 %v13222_v50  ;;  %v13246_v50 = vld [vmem:[#allocation5 + $0xf0] ss:$8 sps:$4 sm:$0xff]  }
 0x499   :  { %10416 = vmatprep.subr.bf16.mxu0 %v13226_v32  ;;  %10528 = vmatpush1.bf16.msra.mxu1 %v13225_v27  ;;  %v13250_v32 = vld [vmem:[#allocation5 + $0xe4] ss:$8 sps:$4 sm:$0xff]   ;;  %v13249_v27 = vld [vmem:[#allocation5 + $0x1f0] ss:$8 sps:$4 sm:$0xff]  }
 0x49a   :  { %10529 = vmatprep.subr.bf16.mxu1 %v13229_v7  ;;  %v13253_v7 = vld [vmem:[#allocation5 + $0x1e4] ss:$8 sps:$4 sm:$0xff]  }
 0x49c   :  { %10417 = vmatpush1.bf16.msra.mxu0 %v13228_v30  ;;  %v13252_v30 = vld [vmem:[#allocation5 + $0xe0] ss:$8 sps:$4 sm:$0xff]  }
 0x49d   :  { %10418 = vmatprep.subr.bf16.mxu0 %v13232_v24  ;;  %10530 = vmatpush1.bf16.msra.mxu1 %v13231_v14  ;;  %v13256_v24 = vld [vmem:[#allocation5 + $0xd4] ss:$8 sps:$4 sm:$0xff]   ;;  %v13255_v14 = vld [vmem:[#allocation5 + $0x1e0] ss:$8 sps:$4 sm:$0xff]  }
 0x49e   :  { %10531 = vmatprep.subr.bf16.mxu1 %v13235_v4  ;;  %v13259_v4 = vld [vmem:[#allocation5 + $0x1d4] ss:$8 sps:$4 sm:$0xff]  }
 0x4a0   :  { %10419 = vmatpush1.bf16.msra.mxu0 %v13234_v28  ;;  %v13258_v28 = vld [vmem:[#allocation5 + $0xd0] ss:$8 sps:$4 sm:$0xff]  }
 0x4a1   :  { %10420 = vmatprep.subr.bf16.mxu0 %v13238_v36  ;;  %10532 = vmatpush1.bf16.msra.mxu1 %v13237_v17  ;;  %v13262_v36 = vld [vmem:[#allocation5 + $0xc4] ss:$8 sps:$4 sm:$0xff]   ;;  %v13261_v17 = vld [vmem:[#allocation5 + $0x1d0] ss:$8 sps:$4 sm:$0xff]  }
 0x4a2   :  { %10533 = vmatprep.subr.bf16.mxu1 %v13241_v11  ;;  %v13265_v11 = vld [vmem:[#allocation5 + $0x1c4] ss:$8 sps:$4 sm:$0xff]  }
 0x4a4   :  { %10421 = vmatpush1.bf16.msra.mxu0 %v13240_v6  ;;  %v13264_v6 = vld [vmem:[#allocation5 + $0xc0] ss:$8 sps:$4 sm:$0xff]  }
 0x4a5   :  { %10422 = vmatprep.subr.bf16.mxu0 %v13244_v57  ;;  %10534 = vmatpush1.bf16.msra.mxu1 %v13243_v39  ;;  %v13268_v57 = vld [vmem:[#allocation5 + $0xb4] ss:$8 sps:$4 sm:$0xff]   ;;  %v13267_v39 = vld [vmem:[#allocation5 + $0x1c0] ss:$8 sps:$4 sm:$0xff]  }
 0x4a6   :  { %10535 = vmatprep.subr.bf16.mxu1 %v13247_v59  ;;  %v13271_v59 = vld [vmem:[#allocation5 + $0x1b4] ss:$8 sps:$4 sm:$0xff]  }
 0x4a8   :  { %10423 = vmatpush2.bf16.msra.mxu0 %v13246_v50  ;;  %v13270_v50 = vld [vmem:[#allocation5 + $0xb0] ss:$8 sps:$4 sm:$0xff]  }
 0x4a9   :  { %10424 = vmatprep.subr.bf16.mxu0 %v13250_v32  ;;  %10536 = vmatpush2.bf16.msra.mxu1 %v13249_v27  ;;  %v13274_v32 = vld [vmem:[#allocation5 + $0xa4] ss:$8 sps:$4 sm:$0xff]   ;;  %v13273_v27 = vld [vmem:[#allocation5 + $0x1b0] ss:$8 sps:$4 sm:$0xff]  }
 0x4aa   :  { %10537 = vmatprep.subr.bf16.mxu1 %v13253_v7  ;;  %v13277_v7 = vld [vmem:[#allocation5 + $0x1a4] ss:$8 sps:$4 sm:$0xff]  }
 0x4ac   :  { %10425 = vmatpush2.bf16.msra.mxu0 %v13252_v30  ;;  %v13276_v30 = vld [vmem:[#allocation5 + $0xa0] ss:$8 sps:$4 sm:$0xff]  }
 0x4ad   :  { %10426 = vmatprep.subr.bf16.mxu0 %v13256_v24  ;;  %10538 = vmatpush2.bf16.msra.mxu1 %v13255_v14  ;;  %v13280_v24 = vld [vmem:[#allocation5 + $0x94] ss:$8 sps:$4 sm:$0xff]   ;;  %v13279_v14 = vld [vmem:[#allocation5 + $0x1a0] ss:$8 sps:$4 sm:$0xff]  }
 0x4ae   :  { %10539 = vmatprep.subr.bf16.mxu1 %v13259_v4  ;;  %v13283_v4 = vld [vmem:[#allocation5 + $0x194] ss:$8 sps:$4 sm:$0xff]  }
 0x4b0   :  { %10427 = vmatpush2.bf16.msra.mxu0 %v13258_v28  ;;  %v13282_v28 = vld [vmem:[#allocation5 + $0x90] ss:$8 sps:$4 sm:$0xff]  }
 0x4b1   :  { %10428 = vmatprep.subr.bf16.mxu0 %v13262_v36  ;;  %10540 = vmatpush2.bf16.msra.mxu1 %v13261_v17  ;;  %v13286_v36 = vld [vmem:[#allocation5 + $0x84] ss:$8 sps:$4 sm:$0xff]   ;;  %v13285_v17 = vld [vmem:[#allocation5 + $0x190] ss:$8 sps:$4 sm:$0xff]  }
 0x4b2   :  { %10541 = vmatprep.subr.bf16.mxu1 %v13265_v11  ;;  %v13289_v11 = vld [vmem:[#allocation5 + $0x184] ss:$8 sps:$4 sm:$0xff]  }
 0x4b4   :  { %10429 = vmatpush2.bf16.msra.mxu0 %v13264_v6  ;;  %v13288_v6 = vld [vmem:[#allocation5 + $0x80] ss:$8 sps:$4 sm:$0xff]  }
 0x4b5   :  { %10430 = vmatprep.subr.bf16.mxu0 %v13268_v57  ;;  %10542 = vmatpush2.bf16.msra.mxu1 %v13267_v39  ;;  %v13294_v57 = vld [vmem:[#allocation5 + $0x274] ss:$8 sps:$4 sm:$0xff]   ;;  %v13291_v39 = vld [vmem:[#allocation5 + $0x180] ss:$8 sps:$4 sm:$0xff]  }
 0x4b6   :  { %10543 = vmatprep.subr.bf16.mxu1 %v13271_v59  ;;  %v12239_v59 = vcombine.low %v17600_v23, %v15610_v55  ;;  %v13303_v23 = vld [vmem:[#allocation5 + $0x364] ss:$8 sps:$4 sm:$0xff]  }
 0x4b8   :  { %10431 = vmatpush2.bf16.msra.mxu0 %v13270_v50  ;;  %v13297_v50 = vld [vmem:[#allocation5 + $0x374] ss:$8 sps:$4 sm:$0xff]  }
 0x4b9   :  { %10432 = vmatprep.subr.bf16.mxu0 %v13274_v32  ;;  %10544 = vmatpush2.bf16.msra.mxu1 %v13273_v27  ;;  %v13292_v32 = vld [vmem:[#allocation5 + $0x270] ss:$8 sps:$4 sm:$0xff]   ;;  %v16339_v27 = vcombine.high %v15624_v25, %v15655_v61 }
 0x4ba   :  { %10545 = vmatprep.subr.bf16.mxu1 %v13277_v7  ;;  %v12241_v7 = vcombine.low %v17601_v21, %v15674_v38  ;;  %v16348_v38 = vcombine.low %v15624_v25, %v15655_v61  ;;  %v13309_v21 = vld [vmem:[#allocation5 + $0x354] ss:$8 sps:$4 sm:$0xff]  }
 0x4bc   :  { %10433 = vmatpush2.bf16.msra.mxu0 %v13276_v30  ;;  %v13300_v30 = vld [vmem:[#allocation5 + $0x264] ss:$8 sps:$4 sm:$0xff]  }
 0x4bd   :  { %10434 = vmatprep.subr.bf16.mxu0 %v13280_v24  ;;  %10546 = vmatpush2.bf16.msra.mxu1 %v13279_v14  ;;  %v13295_v24 = vld [vmem:[#allocation5 + $0x370] ss:$8 sps:$4 sm:$0xff]   ;;  %v12260_v14 = vcombine.high %v15699_v9, %v15753_v48 }
 0x4be   :  { %10547 = vmatprep.subr.bf16.mxu1 %v13283_v4  ;;  %v13298_v4 = vld [vmem:[#allocation5 + $0x260] ss:$8 sps:$4 sm:$0xff]  }
 0x4c0   :  { %10435 = vmatpush2.bf16.msra.mxu0 %v13282_v28  ;;  %v13306_v28 = vld [vmem:[#allocation5 + $0x254] ss:$8 sps:$4 sm:$0xff]  }
 0x4c1   :  { %10436 = vmatprep.subr.bf16.mxu0 %v13286_v36  ;;  %10548 = vmatpush2.bf16.msra.mxu1 %v13285_v17  ;;  %v13301_v36 = vld [vmem:[#allocation5 + $0x360] ss:$8 sps:$4 sm:$0xff]   ;;  %v13304_v17 = vld [vmem:[#allocation5 + $0x250] ss:$8 sps:$4 sm:$0xff]  }
 0x4c2   :  { %10549 = vmatprep.subr.bf16.mxu1 %v13289_v11  ;;  %v16352_v11 = vcombine.high %v15748_v53, %v15810_v58 }
 0x4c4   :  { %10437 = vmatpush2.bf16.msra.mxu0 %v13288_v6  ;;  %v12259_v6 = vcombine.low %v15699_v9, %v15753_v48  ;;  %v16362_v9 = vcombine.low %v15748_v53, %v15810_v58  ;;  %v13321_v48 = vld [vmem:[#allocation5 + $0x334] ss:$8 sps:$4 sm:$0xff]  }
 0x4c5   :  { %10632 = vmatprep.subr.bf16.mxu0 %v13294_v57  ;;  %10550 = vmatpush2.bf16.msra.mxu1 %v13291_v39  ;;  %v13312_v57 = vld [vmem:[#allocation5 + $0x244] ss:$8 sps:$4 sm:$0xff]   ;;  %v13307_v39 = vld [vmem:[#allocation5 + $0x350] ss:$8 sps:$4 sm:$0xff]  }
 0x4c6   :  { %10745 = vmatprep.subr.bf16.mxu1 %v13297_v50  ;;  %v13315_v50 = vld [vmem:[#allocation5 + $0x344] ss:$8 sps:$4 sm:$0xff]  }
 0x4c7   :  { %10439 = vmatmul.mubr.bf16.vlgmr.msra.gmra.mxu0 %v12239_v59  ;;  %v12278_v59 = vcombine.high %v15833_v62, %v15891_v8 }
 0x4c8   :  { %10633 = vmatpush1.bf16.msra.mxu0 %v13292_v32  ;;  %10448 = vmatprep.mubr.bf16.mxu0 %v16339_v27  ;;  %v13310_v32 = vld [vmem:[#allocation5 + $0x240] ss:$8 sps:$4 sm:$0xff]  }
 0x4c9   :  { %10552 = vmatmul.mubr.bf16.vlgmr.msra.gmra.mxu1 %v12241_v7  ;;  %10634 = vmatprep.subr.bf16.mxu0 %v13300_v30  ;;  %v13318_v7 = vld [vmem:[#allocation5 + $0x234] ss:$8 sps:$4 sm:$0xff]   ;;  %v13313_v30 = vld [vmem:[#allocation5 + $0x340] ss:$8 sps:$4 sm:$0xff]  }
 0x4ca   :  { %10746 = vmatpush1.bf16.msra.mxu1 %v13295_v24  ;;  %10561 = vmatprep.mubr.bf16.mxu1 %v12260_v14  ;;  %v13316_v24 = vld [vmem:[#allocation5 + $0x230] ss:$8 sps:$4 sm:$0xff]   ;;  %v16366_v14 = vcombine.high %v15845_v22, %v15960_v45 }
 0x4cb   :  { %10747 = vmatprep.subr.bf16.mxu1 %v13303_v23  ;;  %v12277_v23 = vcombine.low %v15833_v62, %v15891_v8  ;;  %v16376_v62 = vcombine.low %v15845_v22, %v15960_v45  ;;  %v13333_v8 = vld [vmem:[#allocation5 + $0x314] ss:$8 sps:$4 sm:$0xff]  }
 0x4cc   :  { %10635 = vmatpush1.bf16.msra.mxu0 %v13298_v4  ;;  %v13324_v4 = vld [vmem:[#allocation5 + $0x224] ss:$8 sps:$4 sm:$0xff]  }
 0x4cd   :  { %10636 = vmatprep.subr.bf16.mxu0 %v13306_v28  ;;  %v13319_v28 = vld [vmem:[#allocation5 + $0x330] ss:$8 sps:$4 sm:$0xff]  }
 0x4ce   :  { %10748 = vmatpush1.bf16.msra.mxu1 %v13301_v36  ;;  %v12296_v36 = vcombine.high %v15934_v12, %v16018_v52 }
 0x4cf   :  { %10449 = vmatmul.mubr.bf16.gmra.mxu0 %v16348_v38  ;;  %10749 = vmatprep.subr.bf16.mxu1 %v13309_v21  ;;  %v13327_v21 = vld [vmem:[#allocation5 + $0x324] ss:$8 sps:$4 sm:$0xff]  }
 0x4d0   :  { %10637 = vmatpush1.bf16.msra.mxu0 %v13304_v17  ;;  %10458 = vmatprep.mubr.bf16.mxu0 %v16352_v11  ;;  %v13322_v17 = vld [vmem:[#allocation5 + $0x220] ss:$8 sps:$4 sm:$0xff]  }
 0x4d1   :  { %10562 = vmatmul.mubr.bf16.gmra.mxu1 %v12259_v6  ;;  %10638 = vmatprep.subr.bf16.mxu0 %v13312_v57  ;;  %v13330_v6 = vld [vmem:[#allocation5 + $0x214] ss:$8 sps:$4 sm:$0xff]   ;;  %v13325_v57 = vld [vmem:[#allocation5 + $0x320] ss:$8 sps:$4 sm:$0xff]  }
 0x4d2   :  { %10750 = vmatpush1.bf16.msra.mxu1 %v13307_v39  ;;  %10571 = vmatprep.mubr.bf16.mxu1 %v12278_v59  ;;  %v13328_v39 = vld [vmem:[#allocation5 + $0x210] ss:$8 sps:$4 sm:$0xff]  }
 0x4d3   :  { %10751 = vmatprep.subr.bf16.mxu1 %v13315_v50  ;;  %v17602_v59 = vld [vmem:[#allocation121_spill] sm:$0xff] }
 0x4d4   :  { %10639 = vmatpush1.bf16.msra.mxu0 %v13310_v32  ;;  %v12312_v50 = vcombine.high %v17602_v59, %v15983_v18  ;;  %v12295_v32 = vcombine.low %v15934_v12, %v16018_v52  ;;  %v12311_v12 = vcombine.low %v17602_v59, %v15983_v18  ;;  %v13345_v52 = vld [vmem:[#allocation5 + $0x3f4] ss:$8 sps:$4 sm:$0xff]   ;;  %v13351_v59 = vld [vmem:[#allocation5 + $0x3e4] ss:$8 sps:$4 sm:$0xff]  }
 0x4d5   :  { %10640 = vmatprep.subr.bf16.mxu0 %v13318_v7  ;;  %v13336_v7 = vld [vmem:[#allocation5 + $0x204] ss:$8 sps:$4 sm:$0xff]  }
 0x4d6   :  { %10752 = vmatpush1.bf16.msra.mxu1 %v13313_v30  ;;  %v13331_v30 = vld [vmem:[#allocation5 + $0x310] ss:$8 sps:$4 sm:$0xff]  }
 0x4d7   :  { %10459 = vmatmul.mubr.bf16.gmra.mxu0 %v16362_v9  ;;  %10753 = vmatprep.subr.bf16.mxu1 %v13321_v48  ;;  %v17603_v48 = vld [vmem:[#allocation127_spill] sm:$0xff] }
 0x4d8   :  { %10641 = vmatpush1.bf16.msra.mxu0 %v13316_v24  ;;  %10468 = vmatprep.mubr.bf16.mxu0 %v16366_v14  ;;  %v12314_v24 = vcombine.high %v17603_v48, %v16072_v56 }
 0x4d9   :  { %10572 = vmatmul.mubr.bf16.gmra.mxu1 %v12277_v23  ;;  %10642 = vmatprep.subr.bf16.mxu0 %v13324_v4  ;;  %v13339_v23 = vld [vmem:[#allocation5 + $0x304] ss:$8 sps:$4 sm:$0xff]   ;;  %v13334_v4 = vld [vmem:[#allocation5 + $0x200] ss:$8 sps:$4 sm:$0xff]  }
 0x4da   :  { %10754 = vmatpush1.bf16.msra.mxu1 %v13319_v28  ;;  %10581 = vmatprep.mubr.bf16.mxu1 %v12296_v36  ;;  %v13342_v28 = vld [vmem:[#allocation5 + $0x2f4] ss:$8 sps:$4 sm:$0xff]   ;;  %v13337_v36 = vld [vmem:[#allocation5 + $0x300] ss:$8 sps:$4 sm:$0xff]  }
 0x4db   :  { %10755 = vmatprep.subr.bf16.mxu1 %v13327_v21  ;;  %v13340_v21 = vld [vmem:[#allocation5 + $0x2f0] ss:$8 sps:$4 sm:$0xff]  }
 0x4dc   :  { %10643 = vmatpush1.bf16.msra.mxu0 %v13322_v17  ;;  %v16389_v17 = vcombine.high %v16081_v60, %v16094_v26 }
 0x4dd   :  { %10644 = vmatprep.subr.bf16.mxu0 %v13330_v6  ;;  %v12313_v6 = vcombine.low %v17603_v48, %v16072_v56  ;;  %v16398_v56 = vcombine.low %v16081_v60, %v16094_v26  ;;  %v13352_v48 = vld [vmem:[#allocation5 + $0x2d0] ss:$8 sps:$4 sm:$0xff]  }
 0x4de   :  { %10756 = vmatpush1.bf16.msra.mxu1 %v13325_v57  ;;  %v13348_v57 = vld [vmem:[#allocation5 + $0x2e4] ss:$8 sps:$4 sm:$0xff]  }
 0x4df   :  { %10469 = vmatmul.mubr.bf16.gmra.mxu0 %v16376_v62  ;;  %10757 = vmatprep.subr.bf16.mxu1 %v13333_v8  ;;  %v13343_v8 = vld [vmem:[#allocation5 + $0x3f0] ss:$8 sps:$4 sm:$0xff]  }
 0x4e0   :  { %10645 = vmatpush1.bf16.msra.mxu0 %v13328_v39  ;;  %10478 = vmatprep.mubr.bf16.mxu0 %v12312_v50  ;;  %v12332_v39 = vcombine.high %v16132_v41, %v16162_v13  ;;  %v13346_v50 = vld [vmem:[#allocation5 + $0x2e0] ss:$8 sps:$4 sm:$0xff]  }
 0x4e1   :  { %10582 = vmatmul.mubr.bf16.gmra.mxu1 %v12295_v32  ;;  %10646 = vmatprep.subr.bf16.mxu0 %v13336_v7  ;;  %v13354_v32 = vld [vmem:[#allocation5 + $0x2d4] ss:$8 sps:$4 sm:$0xff]   ;;  %v13349_v7 = vld [vmem:[#allocation5 + $0x3e0] ss:$8 sps:$4 sm:$0xff]  }
 0x4e2   :  { %10758 = vmatpush1.bf16.msra.mxu1 %v13331_v30  ;;  %10591 = vmatprep.mubr.bf16.mxu1 %v12314_v24  ;;  %v13357_v30 = vld [vmem:[#allocation5 + $0x3d4] ss:$8 sps:$4 sm:$0xff]   ;;  %v16402_v24 = vcombine.high %v16110_v19, %v16128_v51 }
 0x4e3   :  { %10759 = vmatprep.subr.bf16.mxu1 %v13339_v23  ;;  %v12331_v23 = vcombine.low %v16132_v41, %v16162_v13  ;;  %v16412_v41 = vcombine.low %v16110_v19, %v16128_v51  ;;  %v13369_v13 = vld [vmem:[#allocation5 + $0x3b4] ss:$8 sps:$4 sm:$0xff]  }
 0x4e4   :  { %10647 = vmatpush1.bf16.msra.mxu0 %v13334_v4  ;;  %v13360_v4 = vld [vmem:[#allocation5 + $0x2c4] ss:$8 sps:$4 sm:$0xff]  }
 0x4e5   :  { %10648 = vmatprep.subr.bf16.mxu0 %v13342_v28  ;;  %v13355_v28 = vld [vmem:[#allocation5 + $0x3d0] ss:$8 sps:$4 sm:$0xff]  }
 0x4e6   :  { %10760 = vmatpush1.bf16.msra.mxu1 %v13337_v36  ;;  %v12350_v36 = vcombine.high %v16192_v44, %v16230_v34 }
 0x4e7   :  { %10479 = vmatmul.mubr.bf16.gmra.mxu0 %v12311_v12  ;;  %10761 = vmatprep.subr.bf16.mxu1 %v13345_v52  ;;  %v13363_v12 = vld [vmem:[#allocation5 + $0x3c4] ss:$8 sps:$4 sm:$0xff]   ;;  %v13358_v52 = vld [vmem:[#allocation5 + $0x2c0] ss:$8 sps:$4 sm:$0xff]  }
 0x4e8   :  { %10649 = vmatpush2.bf16.msra.mxu0 %v13340_v21  ;;  %10488 = vmatprep.mubr.bf16.mxu0 %v16389_v17  ;;  %v13366_v21 = vld [vmem:[#allocation5 + $0x2b4] ss:$8 sps:$4 sm:$0xff]  }
 0x4e9   :  { %10592 = vmatmul.mubr.bf16.gmra.mxu1 %v12313_v6  ;;  %10650 = vmatprep.subr.bf16.mxu0 %v13348_v57  ;;  %v13361_v6 = vld [vmem:[#allocation5 + $0x3c0] ss:$8 sps:$4 sm:$0xff]   ;;  %v13364_v57 = vld [vmem:[#allocation5 + $0x2b0] ss:$8 sps:$4 sm:$0xff]  }
 0x4ea   :  { %10762 = vmatpush2.bf16.msra.mxu1 %v13343_v8  ;;  %10601 = vmatprep.mubr.bf16.mxu1 %v12332_v39  ;;  %v16416_v8 = vcombine.high %v16226_v15, %v16251_v35  ;;  %v12349_v39 = vcombine.low %v16192_v44, %v16230_v34  ;;  %v16426_v44 = vcombine.low %v16226_v15, %v16251_v35  ;;  %v13381_v34 = vld [vmem:[#allocation5 + $0x394] ss:$8 sps:$4 sm:$0xff]  }
 0x4eb   :  { %10763 = vmatprep.subr.bf16.mxu1 %v13351_v59  ;;  %v13372_v59 = vld [vmem:[#allocation5 + $0x2a4] ss:$8 sps:$4 sm:$0xff]  }
 0x4ec   :  { %10651 = vmatpush2.bf16.msra.mxu0 %v13346_v50  ;;  %v13367_v50 = vld [vmem:[#allocation5 + $0x3b0] ss:$8 sps:$4 sm:$0xff]  }
 0x4ed   :  { %10652 = vmatprep.subr.bf16.mxu0 %v13354_v32  ;;  %v12368_v32 = vcombine.high %v16275_v16, %v16291_v20 }
 0x4ee   :  { %10764 = vmatpush2.bf16.msra.mxu1 %v13349_v7  ;;  %v13375_v7 = vld [vmem:[#allocation5 + $0x3a4] ss:$8 sps:$4 sm:$0xff]  }
 0x4ef   :  { %10489 = vmatmul.mubr.bf16.gmra.mxu0 %v16398_v56  ;;  %10765 = vmatprep.subr.bf16.mxu1 %v13357_v30  ;;  %v13370_v30 = vld [vmem:[#allocation5 + $0x2a0] ss:$8 sps:$4 sm:$0xff]  }
 0x4f0   :  { %10653 = vmatpush2.bf16.msra.mxu0 %v13352_v48  ;;  %10498 = vmatprep.mubr.bf16.mxu0 %v16402_v24  ;;  %v13378_v48 = vld [vmem:[#allocation5 + $0x294] ss:$8 sps:$4 sm:$0xff]  }
 0x4f1   :  { %10602 = vmatmul.mubr.bf16.gmra.mxu1 %v12331_v23  ;;  %10654 = vmatprep.subr.bf16.mxu0 %v13360_v4  ;;  %v13373_v23 = vld [vmem:[#allocation5 + $0x3a0] ss:$8 sps:$4 sm:$0xff]   ;;  %v13376_v4 = vld [vmem:[#allocation5 + $0x290] ss:$8 sps:$4 sm:$0xff]  }
 0x4f2   :  { %10766 = vmatpush2.bf16.msra.mxu1 %v13355_v28  ;;  %10611 = vmatprep.mubr.bf16.mxu1 %v12350_v36  ;;  %v17604_v28 = vld [vmem:[#allocation124_spill] sm:$0xff] }
 0x4f3   :  { %10767 = vmatprep.subr.bf16.mxu1 %v13363_v12  ;;  %v12244_v36 = vcombine.high %v17604_v28, %v15662_v1  ;;  %v12367_v12 = vcombine.low %v16275_v16, %v16291_v20  ;;  %v12243_v16 = vcombine.low %v17604_v28, %v15662_v1  ;;  %v13393_v20 = vld [vmem:[#allocation5 + $0x574] ss:$8 sps:$4 sm:$0xff]   ;;  %v13394_v1 = vld [vmem:[#allocation5 + $0x460] ss:$8 sps:$4 sm:$0xff]  }
 0x4f4   :  { %10655 = vmatpush2.bf16.msra.mxu0 %v13358_v52  ;;  %v13384_v52 = vld [vmem:[#allocation5 + $0x284] ss:$8 sps:$4 sm:$0xff]   ;;  %v13397_v28 = vld [vmem:[#allocation5 + $0x560] ss:$8 sps:$4 sm:$0xff]  }
 0x4f5   :  { %10656 = vmatprep.subr.bf16.mxu0 %v13366_v21  ;;  %v13379_v21 = vld [vmem:[#allocation5 + $0x390] ss:$8 sps:$4 sm:$0xff]  }
 0x4f6   :  { %10768 = vmatpush2.bf16.msra.mxu1 %v13361_v6  ;;  %v12246_v6 = vcombine.high %v15610_v55, %v15624_v25 }
 0x4f7   :  { %10499 = vmatmul.mubr.bf16.gmra.mxu0 %v16412_v41  ;;  %10769 = vmatprep.subr.bf16.mxu1 %v13369_v13  ;;  %v13387_v13 = vld [vmem:[#allocation5 + $0x384] ss:$8 sps:$4 sm:$0xff]  }
 0x4f8   :  { %10657 = vmatpush2.bf16.msra.mxu0 %v13364_v57  ;;  %10508 = vmatprep.mubr.bf16.mxu0 %v16416_v8  ;;  %v13382_v57 = vld [vmem:[#allocation5 + $0x280] ss:$8 sps:$4 sm:$0xff]  }
 0x4f9   :  { %10612 = vmatmul.mubr.bf16.gmra.mxu1 %v12349_v39  ;;  %10658 = vmatprep.subr.bf16.mxu0 %v13372_v59  ;;  %v13390_v39 = vld [vmem:[#allocation5 + $0x474] ss:$8 sps:$4 sm:$0xff]   ;;  %v13385_v59 = vld [vmem:[#allocation5 + $0x380] ss:$8 sps:$4 sm:$0xff]  }
 0x4fa   :  { %10770 = vmatpush2.bf16.msra.mxu1 %v13367_v50  ;;  %10621 = vmatprep.mubr.bf16.mxu1 %v12368_v32  ;;  %v13388_v50 = vld [vmem:[#allocation5 + $0x470] ss:$8 sps:$4 sm:$0xff]   ;;  %v12262_v32 = vcombine.high %v15692_v42, %v15738_v54 }
 0x4fb   :  { %10771 = vmatprep.subr.bf16.mxu1 %v13375_v7  ;;  %v12245_v7 = vcombine.low %v15610_v55, %v15624_v25  ;;  %v12261_v55 = vcombine.low %v15692_v42, %v15738_v54  ;;  %v13405_v25 = vld [vmem:[#allocation5 + $0x554] ss:$8 sps:$4 sm:$0xff]   ;;  %v13406_v42 = vld [vmem:[#allocation5 + $0x440] ss:$8 sps:$4 sm:$0xff]  }
 0x4fc   :  { %10659 = vmatpush2.bf16.msra.mxu0 %v13370_v30  ;;  %v13396_v30 = vld [vmem:[#allocation5 + $0x464] ss:$8 sps:$4 sm:$0xff]   ;;  %v13414_v54 = vld [vmem:[#allocation5 + $0x434] ss:$8 sps:$4 sm:$0xff]  }
 0x4fd   :  { %10660 = vmatprep.subr.bf16.mxu0 %v13378_v48  ;;  %v13391_v48 = vld [vmem:[#allocation5 + $0x570] ss:$8 sps:$4 sm:$0xff]  }
 0x4fe   :  { %10772 = vmatpush2.bf16.msra.mxu1 %v13373_v23  ;;  %v12264_v23 = vcombine.high %v15655_v61, %v15748_v53 }
 0x4ff   :  { %10509 = vmatmul.mubr.bf16.gmra.mxu0 %v16426_v44  ;;  %10773 = vmatprep.subr.bf16.mxu1 %v13381_v34  ;;  %v13399_v34 = vld [vmem:[#allocation5 + $0x564] ss:$8 sps:$4 sm:$0xff]  }
 0x500   :  { %10661 = vmatpush2.bf16.msra.mxu0 %v13376_v4  ;;  %10664 = vmatprep.mubr.bf16.mxu0 %v12244_v36  ;;  %v13402_v4 = vld [vmem:[#allocation5 + $0x454] ss:$8 sps:$4 sm:$0xff]   ;;  %v13400_v36 = vld [vmem:[#allocation5 + $0x450] ss:$8 sps:$4 sm:$0xff]  }
 0x501   :  { %10622 = vmatmul.mubr.bf16.gmra.mxu1 %v12367_v12  ;;  %10662 = vmatprep.subr.bf16.mxu0 %v13384_v52  ;;  %v17605_v12 = vld [vmem:[#allocation95_spill] sm:$0xff] }
 0x502   :  { %10774 = vmatpush2.bf16.msra.mxu1 %v13379_v21  ;;  %10777 = vmatprep.mubr.bf16.mxu1 %v12246_v6  ;;  %v12280_v52 = vcombine.high %v17605_v12, %v15879_v63  ;;  %v12263_v21 = vcombine.low %v15655_v61, %v15748_v53  ;;  %v13408_v6 = vld [vmem:[#allocation5 + $0x444] ss:$8 sps:$4 sm:$0xff]   ;;  %v12279_v61 = vcombine.low %v17605_v12, %v15879_v63  ;;  %v13417_v53 = vld [vmem:[#allocation5 + $0x534] ss:$8 sps:$4 sm:$0xff]   ;;  %v13418_v63 = vld [vmem:[#allocation5 + $0x420] ss:$8 sps:$4 sm:$0xff]  }
 0x503   :  { %10775 = vmatprep.subr.bf16.mxu1 %v13387_v13  ;;  %v13403_v13 = vld [vmem:[#allocation5 + $0x550] ss:$8 sps:$4 sm:$0xff]  }
 0x504   :  { %10663 = vmatpush2.bf16.msra.mxu0 %v13382_v57  ;;  %v12282_v57 = vcombine.high %v15810_v58, %v15845_v22  ;;  %v13427_v12 = vld [vmem:[#allocation5 + $0x510] ss:$8 sps:$4 sm:$0xff]  }
 0x505   :  { %10858 = vmatprep.subr.bf16.mxu0 %v13390_v39  ;;  %v13411_v39 = vld [vmem:[#allocation5 + $0x544] ss:$8 sps:$4 sm:$0xff]  }
 0x506   :  { %10776 = vmatpush2.bf16.msra.mxu1 %v13385_v59  ;;  %v13409_v59 = vld [vmem:[#allocation5 + $0x540] ss:$8 sps:$4 sm:$0xff]  }
 0x507   :  { %10665 = vmatmul.mubr.bf16.vlgmr.msra.gmra.mxu0 %v12243_v16  ;;  %10971 = vmatprep.subr.bf16.mxu1 %v13393_v20  ;;  %v13412_v16 = vld [vmem:[#allocation5 + $0x430] ss:$8 sps:$4 sm:$0xff]   ;;  %v12298_v20 = vcombine.high %v15924_v33, %v16022_v49 }
 0x508   :  { %10859 = vmatpush1.bf16.msra.mxu0 %v13388_v50  ;;  %10674 = vmatprep.mubr.bf16.mxu0 %v12262_v32  ;;  %v12281_v50 = vcombine.low %v15810_v58, %v15845_v22  ;;  %v13420_v32 = vld [vmem:[#allocation5 + $0x424] ss:$8 sps:$4 sm:$0xff]   ;;  %v12297_v58 = vcombine.low %v15924_v33, %v16022_v49  ;;  %v13429_v22 = vld [vmem:[#allocation5 + $0x514] ss:$8 sps:$4 sm:$0xff]   ;;  %v13430_v33 = vld [vmem:[#allocation5 + $0x400] ss:$8 sps:$4 sm:$0xff]  }
 0x509   :  { %10778 = vmatmul.mubr.bf16.vlgmr.msra.gmra.mxu1 %v12245_v7  ;;  %10860 = vmatprep.subr.bf16.mxu0 %v13396_v30  ;;  %v13415_v7 = vld [vmem:[#allocation5 + $0x530] ss:$8 sps:$4 sm:$0xff]   ;;  %v13438_v49 = vld [vmem:[#allocation5 + $0x4f4] ss:$8 sps:$4 sm:$0xff]  }
 0x50a   :  { %10972 = vmatpush1.bf16.msra.mxu1 %v13391_v48  ;;  %10787 = vmatprep.mubr.bf16.mxu1 %v12264_v23  ;;  %v17606_v30 = vld [vmem:[#allocation64_spill] sm:$0xff]  ;;  %v13423_v23 = vld [vmem:[#allocation5 + $0x524] ss:$8 sps:$4 sm:$0xff]  }
 0x50b   :  { %10973 = vmatprep.subr.bf16.mxu1 %v13399_v34  ;;  %v12300_v48 = vcombine.high %v15960_v45, %v17606_v30  ;;  %v13426_v34 = vld [vmem:[#allocation5 + $0x414] ss:$8 sps:$4 sm:$0xff]  }
 0x50c   :  { %10861 = vmatpush1.bf16.msra.mxu0 %v13394_v1  ;;  %v13421_v1 = vld [vmem:[#allocation5 + $0x520] ss:$8 sps:$4 sm:$0xff]  }
 0x50d   :  { %10862 = vmatprep.subr.bf16.mxu0 %v13402_v4  ;;  %v13424_v4 = vld [vmem:[#allocation5 + $0x410] ss:$8 sps:$4 sm:$0xff]  }
 0x50e   :  { %10974 = vmatpush1.bf16.msra.mxu1 %v13397_v28  ;;  %v17607_v28 = vld [vmem:[#allocation125_spill] sm:$0xff] }
 0x50f   :  { %10675 = vmatmul.mubr.bf16.gmra.mxu0 %v12261_v55  ;;  %10975 = vmatprep.subr.bf16.mxu1 %v13405_v25  ;;  %v12316_v55 = vcombine.high %v17607_v28, %v16058_v10  ;;  %v12299_v25 = vcombine.low %v15960_v45, %v17606_v30  ;;  %v12315_v45 = vcombine.low %v17607_v28, %v16058_v10  ;;  %v13442_v10 = vld [vmem:[#allocation5 + $0x4e0] ss:$8 sps:$4 sm:$0xff]   ;;  %v13462_v28 = vld [vmem:[#allocation5 + $0x4b4] ss:$8 sps:$4 sm:$0xff]  }
 0x510   :  { %10863 = vmatpush1.bf16.msra.mxu0 %v13400_v36  ;;  %10684 = vmatprep.mubr.bf16.mxu0 %v12280_v52  ;;  %v13432_v36 = vld [vmem:[#allocation5 + $0x404] ss:$8 sps:$4 sm:$0xff]   ;;  %v12318_v52 = vcombine.high %v15983_v18, %v16081_v60 }
 0x511   :  { %10788 = vmatmul.mubr.bf16.gmra.mxu1 %v12263_v21  ;;  %10864 = vmatprep.subr.bf16.mxu0 %v13408_v6  ;;  %v13435_v21 = vld [vmem:[#allocation5 + $0x504] ss:$8 sps:$4 sm:$0xff]   ;;  %v13433_v6 = vld [vmem:[#allocation5 + $0x500] ss:$8 sps:$4 sm:$0xff]  }
 0x512   :  { %10976 = vmatpush1.bf16.msra.mxu1 %v13403_v13  ;;  %10797 = vmatprep.mubr.bf16.mxu1 %v12282_v57  ;;  %v13441_v13 = vld [vmem:[#allocation5 + $0x5f4] ss:$8 sps:$4 sm:$0xff]   ;;  %v13436_v57 = vld [vmem:[#allocation5 + $0x4f0] ss:$8 sps:$4 sm:$0xff]  }
 0x513   :  { %10977 = vmatprep.subr.bf16.mxu1 %v13411_v39  ;;  %v17608_v39 = vld [vmem:[#allocation103_spill] sm:$0xff] }
 0x514   :  { %10865 = vmatpush1.bf16.msra.mxu0 %v13406_v42  ;;  %v17609_v42 = vld [vmem:[#allocation97_spill] sm:$0xff] }
 0x515   :  { %10866 = vmatprep.subr.bf16.mxu0 %v13414_v54  ;;  %v12334_v54 = vcombine.high %v17609_v42, %v17608_v39 }
 0x516   :  { %10978 = vmatpush1.bf16.msra.mxu1 %v13409_v59  ;;  %v12317_v59 = vcombine.low %v15983_v18, %v16081_v60  ;;  %v12333_v18 = vcombine.low %v17609_v42, %v17608_v39  ;;  %v13453_v60 = vld [vmem:[#allocation5 + $0x5d4] ss:$8 sps:$4 sm:$0xff]  }
 0x517   :  { %10685 = vmatmul.mubr.bf16.gmra.mxu0 %v12279_v61  ;;  %10979 = vmatprep.subr.bf16.mxu1 %v13417_v53  ;;  %v13444_v61 = vld [vmem:[#allocation5 + $0x4e4] ss:$8 sps:$4 sm:$0xff]   ;;  %v13439_v53 = vld [vmem:[#allocation5 + $0x5f0] ss:$8 sps:$4 sm:$0xff]  }
 0x518   :  { %10867 = vmatpush1.bf16.msra.mxu0 %v13412_v16  ;;  %10694 = vmatprep.mubr.bf16.mxu0 %v12298_v20  ;;  %v12336_v16 = vcombine.high %v16094_v26, %v16110_v19  ;;  %v13447_v20 = vld [vmem:[#allocation5 + $0x5e4] ss:$8 sps:$4 sm:$0xff]   ;;  %v17612_v39 = vld [vmem:[#allocation57_spill] sm:$0xff] }
 0x519   :  { %10798 = vmatmul.mubr.bf16.gmra.mxu1 %v12281_v50  ;;  %10868 = vmatprep.subr.bf16.mxu0 %v13420_v32  ;;  %v13450_v50 = vld [vmem:[#allocation5 + $0x4d4] ss:$8 sps:$4 sm:$0xff]   ;;  %v13445_v32 = vld [vmem:[#allocation5 + $0x5e0] ss:$8 sps:$4 sm:$0xff]  }
 0x51a   :  { %10980 = vmatpush1.bf16.msra.mxu1 %v13415_v7  ;;  %10807 = vmatprep.mubr.bf16.mxu1 %v12300_v48  ;;  %v13448_v7 = vld [vmem:[#allocation5 + $0x4d0] ss:$8 sps:$4 sm:$0xff]  }
 0x51b   :  { %10981 = vmatprep.subr.bf16.mxu1 %v13423_v23  ;;  %v17610_v48 = vld [vmem:[#allocation116_spill] sm:$0xff] }
 0x51c   :  { %10869 = vmatpush1.bf16.msra.mxu0 %v13418_v63  ;;  %v12352_v23 = vcombine.high %v17610_v48, %v16218_v37  ;;  %v12335_v63 = vcombine.low %v16094_v26, %v16110_v19  ;;  %v12351_v26 = vcombine.low %v17610_v48, %v16218_v37  ;;  %v13465_v19 = vld [vmem:[#allocation5 + $0x5b4] ss:$8 sps:$4 sm:$0xff]   ;;  %v13466_v37 = vld [vmem:[#allocation5 + $0x4a0] ss:$8 sps:$4 sm:$0xff]  }
 0x51d   :  { %10870 = vmatprep.subr.bf16.mxu0 %v13426_v34  ;;  %v13456_v34 = vld [vmem:[#allocation5 + $0x4c4] ss:$8 sps:$4 sm:$0xff]  }
 0x51e   :  { %10982 = vmatpush1.bf16.msra.mxu1 %v13421_v1  ;;  %v13451_v1 = vld [vmem:[#allocation5 + $0x5d0] ss:$8 sps:$4 sm:$0xff]  }
 0x51f   :  { %10695 = vmatmul.mubr.bf16.gmra.mxu0 %v12297_v58  ;;  %10983 = vmatprep.subr.bf16.mxu1 %v13429_v22  ;;  %v12354_v58 = vcombine.high %v16128_v51, %v16226_v15  ;;  %v13459_v22 = vld [vmem:[#allocation5 + $0x5c4] ss:$8 sps:$4 sm:$0xff]  }
 0x520   :  { %10871 = vmatpush1.bf16.msra.mxu0 %v13424_v4  ;;  %10704 = vmatprep.mubr.bf16.mxu0 %v12316_v55  ;;  %v13454_v4 = vld [vmem:[#allocation5 + $0x4c0] ss:$8 sps:$4 sm:$0xff]  }
 0x521   :  { %10808 = vmatmul.mubr.bf16.gmra.mxu1 %v12299_v25  ;;  %10872 = vmatprep.subr.bf16.mxu0 %v13432_v36  ;;  %v13457_v55 = vld [vmem:[#allocation5 + $0x5c0] ss:$8 sps:$4 sm:$0xff]   ;;  %v13460_v25 = vld [vmem:[#allocation5 + $0x4b0] ss:$8 sps:$4 sm:$0xff]   ;;  %v12370_v36 = vcombine.high %v16267_v0, %v16295_v47 }
 0x522   :  { %10984 = vmatpush1.bf16.msra.mxu1 %v13427_v12  ;;  %10817 = vmatprep.mubr.bf16.mxu1 %v12318_v52  ;;  %v12353_v12 = vcombine.low %v16128_v51, %v16226_v15  ;;  %v13468_v52 = vld [vmem:[#allocation5 + $0x4a4] ss:$8 sps:$4 sm:$0xff]   ;;  %v12369_v51 = vcombine.low %v16267_v0, %v16295_v47  ;;  %v13477_v15 = vld [vmem:[#allocation5 + $0x594] ss:$8 sps:$4 sm:$0xff]   ;;  %v13478_v0 = vld [vmem:[#allocation5 + $0x480] ss:$8 sps:$4 sm:$0xff]  }
 0x523   :  { %10985 = vmatprep.subr.bf16.mxu1 %v13435_v21  ;;  %v13463_v21 = vld [vmem:[#allocation5 + $0x5b0] ss:$8 sps:$4 sm:$0xff]   ;;  %v13486_v47 = vld [vmem:[#allocation5 + $0x674] ss:$8 sps:$4 sm:$0xff]  }
 0x524   :  { %10873 = vmatpush1.bf16.msra.mxu0 %v13430_v33  ;;  %v12372_v33 = vcombine.high %v16251_v35, %v16260_v46 }
 0x525   :  { %10874 = vmatprep.subr.bf16.mxu0 %v13438_v49  ;;  %v13471_v49 = vld [vmem:[#allocation5 + $0x5a4] ss:$8 sps:$4 sm:$0xff]  }
 0x526   :  { %10986 = vmatpush1.bf16.msra.mxu1 %v13433_v6  ;;  %v13474_v6 = vld [vmem:[#allocation5 + $0x494] ss:$8 sps:$4 sm:$0xff]  }
 0x527   :  { %10705 = vmatmul.mubr.bf16.gmra.mxu0 %v12315_v45  ;;  %10987 = vmatprep.subr.bf16.mxu1 %v13441_v13  ;;  %v13469_v45 = vld [vmem:[#allocation5 + $0x5a0] ss:$8 sps:$4 sm:$0xff]   ;;  %v13472_v13 = vld [vmem:[#allocation5 + $0x490] ss:$8 sps:$4 sm:$0xff]  }
 0x528   :  { %10875 = vmatpush2.bf16.msra.mxu0 %v13436_v57  ;;  %10714 = vmatprep.mubr.bf16.mxu0 %v12334_v54  ;;  %v17611_v57 = vld [vmem:[#allocation67_spill] sm:$0xff]  ;;  %v12371_v54 = vcombine.low %v16251_v35, %v16260_v46 }
 0x529   :  { %10818 = vmatmul.mubr.bf16.gmra.mxu1 %v12317_v59  ;;  %10876 = vmatprep.subr.bf16.mxu0 %v13444_v61  ;;  %v12248_v42 = vcombine.high %v17612_v39, %v17611_v57  ;;  %v13480_v59 = vld [vmem:[#allocation5 + $0x484] ss:$8 sps:$4 sm:$0xff]   ;;  %v13475_v61 = vld [vmem:[#allocation5 + $0x590] ss:$8 sps:$4 sm:$0xff]   ;;  %v12247_v35 = vcombine.low %v17612_v39, %v17611_v57  ;;  %v13510_v57 = vld [vmem:[#allocation5 + $0x634] ss:$8 sps:$4 sm:$0xff]  }
 0x52a   :  { %10988 = vmatpush2.bf16.msra.mxu1 %v13439_v53  ;;  %10827 = vmatprep.mubr.bf16.mxu1 %v12336_v16  ;;  %v17613_v53 = vld [vmem:[#allocation73_spill] sm:$0xff]  ;;  %v17614_v16 = vld [vmem:[#allocation62_spill] sm:$0xff] }
 0x52b   :  { %10989 = vmatprep.subr.bf16.mxu1 %v13447_v20  ;;  %v12250_v20 = vcombine.high %v17614_v16, %v17613_v53  ;;  %v13505_v39 = vld [vmem:[#allocation5 + $0x740] ss:$8 sps:$4 sm:$0xff]  }
 0x52c   :  { %10877 = vmatpush2.bf16.msra.mxu0 %v13442_v10  ;;  %v13483_v10 = vld [vmem:[#allocation5 + $0x584] ss:$8 sps:$4 sm:$0xff]  }
 0x52d   :  { %10878 = vmatprep.subr.bf16.mxu0 %v13450_v50  ;;  %v13481_v50 = vld [vmem:[#allocation5 + $0x580] ss:$8 sps:$4 sm:$0xff]  }
 0x52e   :  { %10990 = vmatpush2.bf16.msra.mxu1 %v13445_v32  ;;  %v13489_v32 = vld [vmem:[#allocation5 + $0x774] ss:$8 sps:$4 sm:$0xff]  }
 0x52f   :  { %10715 = vmatmul.mubr.bf16.gmra.mxu0 %v12333_v18  ;;  %10991 = vmatprep.subr.bf16.mxu1 %v13453_v60  ;;  %v13484_v18 = vld [vmem:[#allocation5 + $0x670] ss:$8 sps:$4 sm:$0xff]   ;;  %v17615_v60 = vld [vmem:[#allocation106_spill] sm:$0xff] }
 0x530   :  { %10879 = vmatpush2.bf16.msra.mxu0 %v13448_v7  ;;  %10724 = vmatprep.mubr.bf16.mxu0 %v12352_v23  ;;  %v17616_v7 = vld [vmem:[#allocation90_spill] sm:$0xff]  ;;  %v12249_v23 = vcombine.low %v17614_v16, %v17613_v53  ;;  %v17624_v53 = vld [vmem:[#allocation68_spill] sm:$0xff] }
 0x531   :  { %10828 = vmatmul.mubr.bf16.gmra.mxu1 %v12335_v63  ;;  %10880 = vmatprep.subr.bf16.mxu0 %v13456_v34  ;;  %v12266_v48 = vcombine.high %v17616_v7, %v17615_v60  ;;  %v13492_v63 = vld [vmem:[#allocation5 + $0x664] ss:$8 sps:$4 sm:$0xff]   ;;  %v13487_v34 = vld [vmem:[#allocation5 + $0x770] ss:$8 sps:$4 sm:$0xff]  }
 0x532   :  { %10992 = vmatpush2.bf16.msra.mxu1 %v13451_v1  ;;  %10837 = vmatprep.mubr.bf16.mxu1 %v12354_v58  ;;  %v17617_v1 = vld [vmem:[#allocation111_spill] sm:$0xff]  ;;  %v17618_v58 = vld [vmem:[#allocation38_spill] sm:$0xff] }
 0x533   :  { %10993 = vmatprep.subr.bf16.mxu1 %v13459_v22  ;;  %v12268_v22 = vcombine.high %v17618_v58, %v17617_v1 }
 0x534   :  { %10881 = vmatpush2.bf16.msra.mxu0 %v13454_v4  ;;  %v13495_v4 = vld [vmem:[#allocation5 + $0x764] ss:$8 sps:$4 sm:$0xff]  }
 0x535   :  { %10882 = vmatprep.subr.bf16.mxu0 %v13462_v28  ;;  %v13490_v28 = vld [vmem:[#allocation5 + $0x660] ss:$8 sps:$4 sm:$0xff]  }
 0x536   :  { %10994 = vmatpush2.bf16.msra.mxu1 %v13457_v55  ;;  %v13498_v55 = vld [vmem:[#allocation5 + $0x654] ss:$8 sps:$4 sm:$0xff]  }
 0x537   :  { %10725 = vmatmul.mubr.bf16.gmra.mxu0 %v12351_v26  ;;  %10995 = vmatprep.subr.bf16.mxu1 %v13465_v19  ;;  %v13493_v26 = vld [vmem:[#allocation5 + $0x760] ss:$8 sps:$4 sm:$0xff]   ;;  %v12265_v19 = vcombine.low %v17616_v7, %v17615_v60  ;;  %v13522_v60 = vld [vmem:[#allocation5 + $0x614] ss:$8 sps:$4 sm:$0xff]  }
 0x538   :  { %10883 = vmatpush2.bf16.msra.mxu0 %v13460_v25  ;;  %10734 = vmatprep.mubr.bf16.mxu0 %v12370_v36  ;;  %v13501_v25 = vld [vmem:[#allocation5 + $0x754] ss:$8 sps:$4 sm:$0xff]   ;;  %v13496_v36 = vld [vmem:[#allocation5 + $0x650] ss:$8 sps:$4 sm:$0xff]   ;;  %v13517_v7 = vld [vmem:[#allocation5 + $0x720] ss:$8 sps:$4 sm:$0xff]  }
 0x539   :  { %10838 = vmatmul.mubr.bf16.gmra.mxu1 %v12353_v12  ;;  %10884 = vmatprep.subr.bf16.mxu0 %v13468_v52  ;;  %v17619_v12 = vld [vmem:[#allocation58_spill] sm:$0xff]  ;;  %v17620_v52 = vld [vmem:[#allocation48_spill] sm:$0xff] }
 0x53a   :  { %10996 = vmatpush2.bf16.msra.mxu1 %v13463_v21  ;;  %10847 = vmatprep.mubr.bf16.mxu1 %v12372_v33  ;;  %v12284_v21 = vcombine.high %v17620_v52, %v17619_v12  ;;  %v12267_v33 = vcombine.low %v17618_v58, %v17617_v1  ;;  %v17628_v1 = vld [vmem:[#allocation83_spill] sm:$0xff] }
 0x53b   :  { %10997 = vmatprep.subr.bf16.mxu1 %v13471_v49  ;;  %v13504_v49 = vld [vmem:[#allocation5 + $0x644] ss:$8 sps:$4 sm:$0xff]  }
 0x53c   :  { %10885 = vmatpush2.bf16.msra.mxu0 %v13466_v37  ;;  %v13499_v37 = vld [vmem:[#allocation5 + $0x750] ss:$8 sps:$4 sm:$0xff]  }
 0x53d   :  { %10886 = vmatprep.subr.bf16.mxu0 %v13474_v6  ;;  %v17621_v6 = vld [vmem:[#allocation54_spill] sm:$0xff] }
 0x53e   :  { %10998 = vmatpush2.bf16.msra.mxu1 %v13469_v45  ;;  %v17622_v45 = vld [vmem:[#allocation46_spill] sm:$0xff] }
 0x53f   :  { %10735 = vmatmul.mubr.bf16.gmra.mxu0 %v12369_v51  ;;  %10999 = vmatprep.subr.bf16.mxu1 %v13477_v15  ;;  %v12286_v51 = vcombine.high %v17622_v45, %v17621_v6  ;;  %v13507_v15 = vld [vmem:[#allocation5 + $0x744] ss:$8 sps:$4 sm:$0xff]  }
 0x540   :  { %10887 = vmatpush2.bf16.msra.mxu0 %v13472_v13  ;;  %10890 = vmatprep.mubr.bf16.mxu0 %v12248_v42  ;;  %v13502_v13 = vld [vmem:[#allocation5 + $0x640] ss:$8 sps:$4 sm:$0xff]   ;;  %v12283_v42 = vcombine.low %v17620_v52, %v17619_v12  ;;  %v13534_v12 = vld [vmem:[#allocation5 + $0x6f4] ss:$8 sps:$4 sm:$0xff]  }
 0x541   :  { %10848 = vmatmul.mubr.bf16.gmra.mxu1 %v12371_v54  ;;  %10888 = vmatprep.subr.bf16.mxu0 %v13480_v59  ;;  %v13513_v54 = vld [vmem:[#allocation5 + $0x734] ss:$8 sps:$4 sm:$0xff]   ;;  %v13508_v59 = vld [vmem:[#allocation5 + $0x630] ss:$8 sps:$4 sm:$0xff]   ;;  %v13529_v52 = vld [vmem:[#allocation5 + $0x700] ss:$8 sps:$4 sm:$0xff]  }
 0x542   :  { %11000 = vmatpush2.bf16.msra.mxu1 %v13475_v61  ;;  %11003 = vmatprep.mubr.bf16.mxu1 %v12250_v20  ;;  %v17623_v61 = vld [vmem:[#allocation75_spill] sm:$0xff]  ;;  %v12285_v20 = vcombine.low %v17622_v45, %v17621_v6  ;;  %v17632_v6 = vld [vmem:[#allocation101_spill] sm:$0xff] }
 0x543   :  { %11001 = vmatprep.subr.bf16.mxu1 %v13483_v10  ;;  %v12302_v16 = vcombine.high %v17624_v53, %v17623_v61  ;;  %v13516_v10 = vld [vmem:[#allocation5 + $0x624] ss:$8 sps:$4 sm:$0xff]  }
 0x544   :  { %10889 = vmatpush2.bf16.msra.mxu0 %v13478_v0  ;;  %v13511_v0 = vld [vmem:[#allocation5 + $0x730] ss:$8 sps:$4 sm:$0xff]  }
 0x545   :  { %11084 = vmatprep.subr.bf16.mxu0 %v13486_v47  ;;  %v17625_v47 = vld [vmem:[#allocation78_spill] sm:$0xff] }
 0x546   :  { %11002 = vmatpush2.bf16.msra.mxu1 %v13481_v50  ;;  %v17626_v50 = vld [vmem:[#allocation63_spill] sm:$0xff] }
 0x547   :  { %10891 = vmatmul.mubr.bf16.vlgmr.msra.gmra.mxu0 %v12247_v35  ;;  %11197 = vmatprep.subr.bf16.mxu1 %v13489_v32  ;;  %v12304_v35 = vcombine.high %v17626_v50, %v17625_v47  ;;  %v13519_v32 = vld [vmem:[#allocation5 + $0x724] ss:$8 sps:$4 sm:$0xff]  }
 0x548   :  { %11085 = vmatpush1.bf16.msra.mxu0 %v13484_v18  ;;  %10900 = vmatprep.mubr.bf16.mxu0 %v12266_v48  ;;  %v13514_v18 = vld [vmem:[#allocation5 + $0x620] ss:$8 sps:$4 sm:$0xff]   ;;  %v12301_v48 = vcombine.low %v17624_v53, %v17623_v61  ;;  %v13546_v61 = vld [vmem:[#allocation5 + $0x6d4] ss:$8 sps:$4 sm:$0xff]  }
 0x549   :  { %11004 = vmatmul.mubr.bf16.vlgmr.msra.gmra.mxu1 %v12249_v23  ;;  %11086 = vmatprep.subr.bf16.mxu0 %v13492_v63  ;;  %v13525_v23 = vld [vmem:[#allocation5 + $0x714] ss:$8 sps:$4 sm:$0xff]   ;;  %v13520_v63 = vld [vmem:[#allocation5 + $0x610] ss:$8 sps:$4 sm:$0xff]   ;;  %v13541_v53 = vld [vmem:[#allocation5 + $0x7e0] ss:$8 sps:$4 sm:$0xff]  }
 0x54a   :  { %11198 = vmatpush1.bf16.msra.mxu1 %v13487_v34  ;;  %11013 = vmatprep.mubr.bf16.mxu1 %v12268_v22  ;;  %v17627_v34 = vld [vmem:[#allocation96_spill] sm:$0xff]  ;;  %v12303_v22 = vcombine.low %v17626_v50, %v17625_v47 }
 0x54b   :  { %11199 = vmatprep.subr.bf16.mxu1 %v13495_v4  ;;  %v12320_v58 = vcombine.high %v17628_v1, %v17627_v34  ;;  %v13528_v4 = vld [vmem:[#allocation5 + $0x604] ss:$8 sps:$4 sm:$0xff]  }
 0x54c   :  { %11087 = vmatpush1.bf16.msra.mxu0 %v13490_v28  ;;  %v13523_v28 = vld [vmem:[#allocation5 + $0x710] ss:$8 sps:$4 sm:$0xff]  }
 0x54d   :  { %11088 = vmatprep.subr.bf16.mxu0 %v13498_v55  ;;  %v17629_v55 = vld [vmem:[#allocation92_spill] sm:$0xff] }
 0x54e   :  { %11200 = vmatpush1.bf16.msra.mxu1 %v13493_v26  ;;  %v17630_v26 = vld [vmem:[#allocation86_spill] sm:$0xff] }
 0x54f   :  { %10901 = vmatmul.mubr.bf16.gmra.mxu0 %v12265_v19  ;;  %11201 = vmatprep.subr.bf16.mxu1 %v13501_v25  ;;  %v12322_v19 = vcombine.high %v17630_v26, %v17629_v55  ;;  %v13531_v25 = vld [vmem:[#allocation5 + $0x704] ss:$8 sps:$4 sm:$0xff]  }
 0x550   :  { %11089 = vmatpush1.bf16.msra.mxu0 %v13496_v36  ;;  %10910 = vmatprep.mubr.bf16.mxu0 %v12284_v21  ;;  %v13526_v36 = vld [vmem:[#allocation5 + $0x600] ss:$8 sps:$4 sm:$0xff]   ;;  %v12319_v21 = vcombine.low %v17628_v1, %v17627_v34 }
 0x551   :  { %11014 = vmatmul.mubr.bf16.gmra.mxu1 %v12267_v33  ;;  %11090 = vmatprep.subr.bf16.mxu0 %v13504_v49  ;;  %v13537_v33 = vld [vmem:[#allocation5 + $0x7f4] ss:$8 sps:$4 sm:$0xff]   ;;  %v13532_v49 = vld [vmem:[#allocation5 + $0x6f0] ss:$8 sps:$4 sm:$0xff]   ;;  %v13553_v34 = vld [vmem:[#allocation5 + $0x7c0] ss:$8 sps:$4 sm:$0xff]  }
 0x552   :  { %11202 = vmatpush1.bf16.msra.mxu1 %v13499_v37  ;;  %11023 = vmatprep.mubr.bf16.mxu1 %v12286_v51  ;;  %v17631_v37 = vld [vmem:[#allocation56_spill] sm:$0xff]  ;;  %v12321_v51 = vcombine.low %v17630_v26, %v17629_v55  ;;  %v13564_v26 = vld [vmem:[#allocation5 + $0x6a4] ss:$8 sps:$4 sm:$0xff]  }
 0x553   :  { %11203 = vmatprep.subr.bf16.mxu1 %v13507_v15  ;;  %v12338_v45 = vcombine.high %v17632_v6, %v17631_v37  ;;  %v13540_v15 = vld [vmem:[#allocation5 + $0x6e4] ss:$8 sps:$4 sm:$0xff]  }
 0x554   :  { %11091 = vmatpush1.bf16.msra.mxu0 %v13502_v13  ;;  %v13535_v13 = vld [vmem:[#allocation5 + $0x7f0] ss:$8 sps:$4 sm:$0xff]  }
 0x555   :  { %11092 = vmatprep.subr.bf16.mxu0 %v13510_v57  ;;  %v17633_v57 = vld [vmem:[#allocation112_spill] sm:$0xff] }
 0x556   :  { %11204 = vmatpush1.bf16.msra.mxu1 %v13505_v39  ;;  %v17634_v39 = vld [vmem:[#allocation107_spill] sm:$0xff] }
 0x557   :  { %10911 = vmatmul.mubr.bf16.gmra.mxu0 %v12283_v42  ;;  %11205 = vmatprep.subr.bf16.mxu1 %v13513_v54  ;;  %v12340_v42 = vcombine.high %v17634_v39, %v17633_v57  ;;  %v13543_v54 = vld [vmem:[#allocation5 + $0x7e4] ss:$8 sps:$4 sm:$0xff]   ;;  %v12339_v50 = vcombine.low %v17634_v39, %v17633_v57 }
 0x558   :  { %11093 = vmatpush1.bf16.msra.mxu0 %v13508_v59  ;;  %10920 = vmatprep.mubr.bf16.mxu0 %v12302_v16  ;;  %v13538_v59 = vld [vmem:[#allocation5 + $0x6e0] ss:$8 sps:$4 sm:$0xff]   ;;  %v12337_v16 = vcombine.low %v17632_v6, %v17631_v37  ;;  %v13568_v37 = vld [vmem:[#allocation5 + $0x690] ss:$8 sps:$4 sm:$0xff]   ;;  %v13579_v39 = vld [vmem:[#allocation5 + $0x784] ss:$8 sps:$4 sm:$0xff]  }
 0x559   :  { %11024 = vmatmul.mubr.bf16.gmra.mxu1 %v12285_v20  ;;  %11094 = vmatprep.subr.bf16.mxu0 %v13516_v10  ;;  %v13549_v20 = vld [vmem:[#allocation5 + $0x7d4] ss:$8 sps:$4 sm:$0xff]   ;;  %v13544_v10 = vld [vmem:[#allocation5 + $0x6d0] ss:$8 sps:$4 sm:$0xff]  }
 0x55a   :  { %11206 = vmatpush1.bf16.msra.mxu1 %v13511_v0  ;;  %11033 = vmatprep.mubr.bf16.mxu1 %v12304_v35  ;;  %v17635_v0 = vld [vmem:[#allocation71_spill] sm:$0xff] }
 0x55b   :  { %11207 = vmatprep.subr.bf16.mxu1 %v13519_v32  ;;  %v12356_v47 = vcombine.high %v17635_v0, %v16279_v2  ;;  %v13552_v35 = vld [vmem:[#allocation5 + $0x6c4] ss:$8 sps:$4 sm:$0xff]   ;;  %v13547_v32 = vld [vmem:[#allocation5 + $0x7d0] ss:$8 sps:$4 sm:$0xff]   ;;  %v12355_v1 = vcombine.low %v17635_v0, %v16279_v2  ;;  %v13562_v2 = vld [vmem:[#allocation5 + $0x6a0] ss:$8 sps:$4 sm:$0xff]  }
 0x55c   :  { %11095 = vmatpush1.bf16.msra.mxu0 %v13514_v18  ;;  %v17636_v18 = vld [vmem:[#allocation41_spill] sm:$0xff]  ;;  %v17644_v0 = vld [vmem:[#allocation59_spill] sm:$0xff] }
 0x55d   :  { %11096 = vmatprep.subr.bf16.mxu0 %v13522_v60  ;;  %v17637_v60 = vld [vmem:[#allocation61_spill] sm:$0xff] }
 0x55e   :  { %11208 = vmatpush1.bf16.msra.mxu1 %v13517_v7  ;;  %v12358_v7 = vcombine.high %v17637_v60, %v17636_v18  ;;  %v12357_v55 = vcombine.low %v17637_v60, %v17636_v18  ;;  %v13583_v18 = vld [vmem:[#allocation5 + $0x860] ss:$8 sps:$4 sm:$0xff]  }
 0x55f   :  { %10921 = vmatmul.mubr.bf16.gmra.mxu0 %v12301_v48  ;;  %11209 = vmatprep.subr.bf16.mxu1 %v13525_v23  ;;  %v13555_v48 = vld [vmem:[#allocation5 + $0x7c4] ss:$8 sps:$4 sm:$0xff]   ;;  %v13550_v23 = vld [vmem:[#allocation5 + $0x6c0] ss:$8 sps:$4 sm:$0xff]  }
 0x560   :  { %11097 = vmatpush1.bf16.msra.mxu0 %v13520_v63  ;;  %10930 = vmatprep.mubr.bf16.mxu0 %v12320_v58  ;;  %v13558_v63 = vld [vmem:[#allocation5 + $0x6b4] ss:$8 sps:$4 sm:$0xff]  }
 0x561   :  { %11034 = vmatmul.mubr.bf16.gmra.mxu1 %v12303_v22  ;;  %11098 = vmatprep.subr.bf16.mxu0 %v13528_v4  ;;  %v13561_v58 = vld [vmem:[#allocation5 + $0x7b4] ss:$8 sps:$4 sm:$0xff]   ;;  %v13556_v22 = vld [vmem:[#allocation5 + $0x6b0] ss:$8 sps:$4 sm:$0xff]  }
 0x562   :  { %11210 = vmatpush1.bf16.msra.mxu1 %v13523_v28  ;;  %11043 = vmatprep.mubr.bf16.mxu1 %v12322_v19  ;;  %v17638_v4 = vld [vmem:[#allocation104_spill] sm:$0xff] }
 0x563   :  { %11211 = vmatprep.subr.bf16.mxu1 %v13531_v25  ;;  %v12374_v28 = vcombine.high %v17638_v4, %v16325_v40  ;;  %v13559_v19 = vld [vmem:[#allocation5 + $0x7b0] ss:$8 sps:$4 sm:$0xff]  }
 0x564   :  { %11099 = vmatpush1.bf16.msra.mxu0 %v13526_v36  ;;  %v17639_v25 = vld [vmem:[#allocation89_spill] sm:$0xff] }
 0x565   :  { %11100 = vmatprep.subr.bf16.mxu0 %v13534_v12  ;;  %v12376_v36 = vcombine.high %v17639_v25, %v16317_v3  ;;  %v13567_v12 = vld [vmem:[#allocation5 + $0x7a4] ss:$8 sps:$4 sm:$0xff]   ;;  %v12375_v6 = vcombine.low %v17639_v25, %v16317_v3 }
 0x566   :  { %11212 = vmatpush1.bf16.msra.mxu1 %v13529_v52  ;;  %v13570_v52 = vld [vmem:[#allocation5 + $0x694] ss:$8 sps:$4 sm:$0xff]   ;;  %v17642_v3 = vld [vmem:[#allocation43_spill] sm:$0xff] }
 0x567   :  { %10931 = vmatmul.mubr.bf16.gmra.mxu0 %v12319_v21  ;;  %11213 = vmatprep.subr.bf16.mxu1 %v13537_v33  ;;  %v13565_v21 = vld [vmem:[#allocation5 + $0x7a0] ss:$8 sps:$4 sm:$0xff]   ;;  %v12373_v33 = vcombine.low %v17638_v4, %v16325_v40  ;;  %v8090_v40 = vld [vmem:[#allocation14] sm:$0x3] }
 0x568   :  { %11101 = vmatpush2.bf16.msra.mxu0 %v13532_v49  ;;  %10940 = vmatprep.mubr.bf16.mxu0 %v12338_v45  ;;  %v13573_v49 = vld [vmem:[#allocation5 + $0x794] ss:$8 sps:$4 sm:$0xff]   ;;  %v13576_v45 = vld [vmem:[#allocation5 + $0x684] ss:$8 sps:$4 sm:$0xff]  }
 0x569   :  { %11044 = vmatmul.mubr.bf16.gmra.mxu1 %v12321_v51  ;;  %11102 = vmatprep.subr.bf16.mxu0 %v13540_v15  ;;  %v13571_v51 = vld [vmem:[#allocation5 + $0x790] ss:$8 sps:$4 sm:$0xff]  }
 0x56a   :  { %11214 = vmatpush2.bf16.msra.mxu1 %v13535_v13  ;;  %11053 = vmatprep.mubr.bf16.mxu1 %v12340_v42  ;;  %v17640_v15 = vld [vmem:[#allocation100_spill] sm:$0xff]  ;;  %v17641_v13 = vld [vmem:[#allocation82_spill] sm:$0xff]  ;;  %v17646_v25 = vld [vmem:[#allocation79_spill] sm:$0xff] }
 0x56b   :  { %11215 = vmatprep.subr.bf16.mxu1 %v13543_v54  ;;  %v12254_v57 = vcombine.high %v17641_v13, %v17640_v15  ;;  %v13574_v42 = vld [vmem:[#allocation5 + $0x680] ss:$8 sps:$4 sm:$0xff]   ;;  %v13582_v54 = vld [vmem:[#allocation5 + $0x874] ss:$8 sps:$4 sm:$0xff]  }
 0x56c   :  { %11103 = vmatpush2.bf16.msra.mxu0 %v13538_v59  ;;  %v13577_v59 = vld [vmem:[#allocation5 + $0x780] ss:$8 sps:$4 sm:$0xff]  }
 0x56d   :  { %11104 = vmatprep.subr.bf16.mxu0 %v13546_v61  ;;  %v16563_v61 = vrot.slane %v8090_v40, %v17642_v3 }
 0x56e   :  { %11216 = vmatpush2.bf16.msra.mxu1 %v13541_v53  ;;  %v13580_v53 = vld [vmem:[#allocation5 + $0x870] ss:$8 sps:$4 sm:$0xff]  }
 0x56f   :  { %10941 = vmatmul.mubr.bf16.gmra.mxu0 %v12337_v16  ;;  %11217 = vmatprep.subr.bf16.mxu1 %v13549_v20  ;;  %v12253_v16 = vcombine.low %v17641_v13, %v17640_v15  ;;  %v13585_v20 = vld [vmem:[#allocation5 + $0x864] ss:$8 sps:$4 sm:$0xff]  }
 0x570   :  { %11105 = vmatpush2.bf16.msra.mxu0 %v13544_v10  ;;  %10950 = vmatprep.mubr.bf16.mxu0 %v12356_v47  ;;  %v17645_v47 = vld [vmem:[#allocation49_spill] sm:$0xff] }
 0x571   :  { %11054 = vmatmul.mubr.bf16.gmra.mxu1 %v12339_v50  ;;  %11106 = vmatprep.subr.bf16.mxu0 %v13552_v35  ;;  %v12272_v50 = vcombine.high %v17645_v47, %v17644_v0 }
 0x572   :  { %11218 = vmatpush2.bf16.msra.mxu1 %v13547_v32  ;;  %11063 = vmatprep.mubr.bf16.mxu1 %v12358_v7 }
 0x573   :  { %11219 = vmatprep.subr.bf16.mxu1 %v13555_v48  ;;  %v13588_v48 = vld [vmem:[#allocation5 + $0x854] ss:$8 sps:$4 sm:$0xff]  }
 0x574   :  { %11107 = vmatpush2.bf16.msra.mxu0 %v13550_v23 }
 0x575   :  { %11108 = vmatprep.subr.bf16.mxu0 %v13558_v63 }
 0x576   :  { %11220 = vmatpush2.bf16.msra.mxu1 %v13553_v34 }
 0x577   :  { %10951 = vmatmul.mubr.bf16.gmra.mxu0 %v12355_v1  ;;  %11221 = vmatprep.subr.bf16.mxu1 %v13561_v58 }
 0x578   :  { %11109 = vmatpush2.bf16.msra.mxu0 %v13556_v22  ;;  %10960 = vmatprep.mubr.bf16.mxu0 %v12374_v28  ;;  %v13586_v22 = vld [vmem:[#allocation5 + $0x850] ss:$8 sps:$4 sm:$0xff]   ;;  %v12271_v28 = vcombine.low %v17645_v47, %v17644_v0 }
 0x579   :  { %11064 = vmatmul.mubr.bf16.gmra.mxu1 %v12357_v55  ;;  %11110 = vmatprep.subr.bf16.mxu0 %v13564_v26  ;;  %v13591_v55 = vld [vmem:[#allocation5 + $0x844] ss:$8 sps:$4 sm:$0xff]  }
 0x57a   :  { %11222 = vmatpush2.bf16.msra.mxu1 %v13559_v19  ;;  %11073 = vmatprep.mubr.bf16.mxu1 %v12376_v36  ;;  %v17647_v36 = vld [vmem:[#allocation69_spill] sm:$0xff]  ;;  %v17650_v0 = vld [vmem:[#allocation87_spill] sm:$0xff] }
 0x57b   :  { %11223 = vmatprep.subr.bf16.mxu1 %v13567_v12  ;;  %v12290_v12 = vcombine.high %v17647_v36, %v17646_v25  ;;  %v12289_v3 = vcombine.low %v17647_v36, %v17646_v25  ;;  %v13603_v36 = vld [vmem:[#allocation5 + $0x804] ss:$8 sps:$4 sm:$0xff]  }
 0x57c   :  { %11111 = vmatpush2.bf16.msra.mxu0 %v13562_v2 }
 0x57d   :  { %11112 = vmatprep.subr.bf16.mxu0 %v13570_v52 }
 0x57e   :  { %11224 = vmatpush2.bf16.msra.mxu1 %v13565_v21 }
 0x57f   :  { %10961 = vmatmul.mubr.bf16.gmra.mxu0 %v12373_v33  ;;  %11225 = vmatprep.subr.bf16.mxu1 %v13573_v49  ;;  %v13589_v49 = vld [vmem:[#allocation5 + $0x840] ss:$8 sps:$4 sm:$0xff]  }
 0x580   :  { %11113 = vmatpush2.bf16.msra.mxu0 %v13568_v37  ;;  %11116 = vmatprep.mubr.bf16.mxu0 %v16339_v27  ;;  %v17643_v27 = vld [vmem:[#allocation44_spill] sm:$0xff] }
 0x581   :  { %11074 = vmatmul.mubr.bf16.gmra.mxu1 %v12375_v6  ;;  %11114 = vmatprep.subr.bf16.mxu0 %v13576_v45  ;;  %v16568_v10 = vrot.slane %v8090_v40, %v17643_v27  ;;  %v13594_v45 = vld [vmem:[#allocation5 + $0x834] ss:$8 sps:$4 sm:$0xff]   ;;  %v17648_v40 = vld [vmem:[#allocation122_spill] sm:$0xff] }
 0x582   :  { %11226 = vmatpush2.bf16.msra.mxu1 %v13571_v51  ;;  %11229 = vmatprep.mubr.bf16.mxu1 %v12254_v57  ;;  %v17649_v27 = vld [vmem:[#allocation130_spill] sm:$0xff] }
 0x583   :  { %11227 = vmatprep.subr.bf16.mxu1 %v13579_v39  ;;  %v12308_v47 = vcombine.high %v17650_v0, %v17649_v27  ;;  %v12307_v25 = vcombine.low %v17650_v0, %v17649_v27  ;;  %v13609_v0 = vld [vmem:[#allocation5 + $0x8e4] ss:$8 sps:$4 sm:$0xff]  }
 0x584   :  { %11115 = vmatpush2.bf16.msra.mxu0 %v13574_v42  ;;  %v13592_v42 = vld [vmem:[#allocation5 + $0x830] ss:$8 sps:$4 sm:$0xff]  }
 0x585   :  { %11310 = vmatprep.subr.bf16.mxu0 %v13582_v54 }
 0x586   :  { %11228 = vmatpush2.bf16.msra.mxu1 %v13577_v59 }
 0x587   :  { %v10440_v35 = vpop.f32.mrf.mxu0  ;;  %11117 = vmatmul.mubr.bf16.vlgmr.msra.gmra.mxu0 %v16348_v38 }
 0x588   :  { %v10441_v32 = vadd.f32 %v10440_v35, %v16563_v61  ;;  %11311 = vmatpush1.bf16.msra.mxu0 %v13580_v53  ;;  %11126 = vmatprep.mubr.bf16.mxu0 %v16352_v11  ;;  %v13597_v53 = vld [vmem:[#allocation5 + $0x824] ss:$8 sps:$4 sm:$0xff]  }
 0x589   :  { %v10442_v60 = vpop.f32.mrf.mxu0  ;;  %v10553_v7 = vpop.f32.mrf.mxu1  ;;  %11230 = vmatmul.mubr.bf16.vlgmr.msra.gmra.mxu1 %v12253_v16  ;;  %11312 = vmatprep.subr.bf16.mxu0 %v13585_v20 }
 0x58a   :  { %v10443_v23 = vadd.f32 %v10442_v60, %v16568_v10  ;;  %v16576_v63 = vadd.f32 %v10553_v7, %v10441_v32  ;;  %11239 = vmatprep.mubr.bf16.mxu1 %v12272_v50  ;;  %v13595_v60 = vld [vmem:[#allocation5 + $0x820] ss:$8 sps:$4 sm:$0xff]  }
 0x58b   :  { %v10444_v34 = vpop.f32.mrf.mxu0  ;;  %v10555_v1 = vpop.f32.mrf.mxu1 }
 0x58c   :  { %v10445_v38 = vadd.f32 %v10444_v34, %v16563_v61  ;;  %v16579_v58 = vadd.f32 %v10555_v1, %v10443_v23  ;;  %11313 = vmatpush1.bf16.msra.mxu0 %v13583_v18  ;;  %v13600_v23 = vld [vmem:[#allocation5 + $0x814] ss:$8 sps:$4 sm:$0xff]  }
 0x58d   :  { %v10446_v4 = vpop.f32.mrf.mxu0  ;;  %v10557_v11 = vpop.f32.mrf.mxu1  ;;  %11314 = vmatprep.subr.bf16.mxu0 %v13588_v48 }
 0x58e   :  { %v10447_v26 = vadd.f32 %v10446_v4, %v16568_v10  ;;  %v16584_v19 = vadd.f32 %v10557_v11, %v10445_v38 }
 0x58f   :  { %v10450_v2 = vpop.f32.mrf.mxu0  ;;  %v10559_v52 = vpop.f32.mrf.mxu1  ;;  %11127 = vmatmul.mubr.bf16.gmra.mxu0 %v16362_v9 }
 0x590   :  { %v10451_v21 = vadd.f32 %v10450_v2, %v16563_v61  ;;  %v16590_v33 = vadd.f32 %v10559_v52, %v10447_v26  ;;  %11315 = vmatpush1.bf16.msra.mxu0 %v13586_v22  ;;  %11136 = vmatprep.mubr.bf16.mxu0 %v16366_v14  ;;  %v12306_v14 = vcombine.high %v17606_v30, %v17648_v40  ;;  %v17651_v52 = vld [vmem:[#allocation113_spill] sm:$0xff] }
 0x591   :  { %v10452_v37 = vpop.f32.mrf.mxu0  ;;  %v10563_v6 = vpop.f32.mrf.mxu1  ;;  %11240 = vmatmul.mubr.bf16.gmra.mxu1 %v12271_v28  ;;  %11316 = vmatprep.subr.bf16.mxu0 %v13591_v55  ;;  %v13598_v28 = vld [vmem:[#allocation5 + $0x810] ss:$8 sps:$4 sm:$0xff]  }
 0x592   :  { %v10453_v51 = vadd.f32 %v10452_v37, %v16568_v10  ;;  %v16594_v15 = vadd.f32 %v10563_v6, %v10451_v21  ;;  %11249 = vmatprep.mubr.bf16.mxu1 %v12290_v12  ;;  %v17652_v21 = vld [vmem:[#allocation108_spill] sm:$0xff] }
 0x593   :  { %v10454_v13 = vpop.f32.mrf.mxu0  ;;  %v10565_v9 = vpop.f32.mrf.mxu1  ;;  %v12325_v27 = vcombine.low %v17652_v21, %v17651_v52 }
 0x594   :  { %v10455_v57 = vadd.f32 %v10454_v13, %v16563_v61  ;;  %v16597_v39 = vadd.f32 %v10565_v9, %v10453_v51  ;;  %11317 = vmatpush1.bf16.msra.mxu0 %v13589_v49  ;;  %v13601_v51 = vld [vmem:[#allocation5 + $0x800] ss:$8 sps:$4 sm:$0xff]  }
 0x595   :  { %v10456_v54 = vpop.f32.mrf.mxu0  ;;  %v10567_v59 = vpop.f32.mrf.mxu1  ;;  %11318 = vmatprep.subr.bf16.mxu0 %v13594_v45 }
 0x596   :  { %v10457_v16 = vadd.f32 %v10456_v54, %v16568_v10  ;;  %v16604_v20 = vadd.f32 %v10567_v59, %v10455_v57  ;;  %v13606_v57 = vld [vmem:[#allocation5 + $0x8f4] ss:$8 sps:$4 sm:$0xff]  }
 0x597   :  { %v10460_v50 = vpop.f32.mrf.mxu0  ;;  %v10569_v35 = vpop.f32.mrf.mxu1  ;;  %11137 = vmatmul.mubr.bf16.gmra.mxu0 %v16376_v62  ;;  %v12305_v62 = vcombine.low %v17606_v30, %v17648_v40  ;;  %v12326_v30 = vcombine.high %v17652_v21, %v17651_v52  ;;  %v13615_v52 = vld [vmem:[#allocation5 + $0x8c4] ss:$8 sps:$4 sm:$0xff]  }
 0x598   :  { %v10461_v32 = vadd.f32 %v10460_v50, %v16563_v61  ;;  %v16610_v18 = vadd.f32 %v10569_v35, %v10457_v16  ;;  %11319 = vmatpush1.bf16.msra.mxu0 %v13592_v42  ;;  %11146 = vmatprep.mubr.bf16.mxu0 %v12306_v14  ;;  %v17653_v35 = vld [vmem:[#allocation35_spill] sm:$0xff] }
 0x599   :  { %v10462_v7 = vpop.f32.mrf.mxu0  ;;  %v10573_v48 = vpop.f32.mrf.mxu1  ;;  %11250 = vmatmul.mubr.bf16.gmra.mxu1 %v12289_v3  ;;  %11320 = vmatprep.subr.bf16.mxu0 %v13597_v53  ;;  %v13604_v53 = vld [vmem:[#allocation5 + $0x8f0] ss:$8 sps:$4 sm:$0xff]  }
 0x59a   :  { %v10463_v34 = vadd.f32 %v10462_v7, %v16568_v10  ;;  %v16613_v1 = vadd.f32 %v10573_v48, %v10461_v32  ;;  %11259 = vmatprep.mubr.bf16.mxu1 %v12308_v47  ;;  %v17654_v32 = vld [vmem:[#allocation66_spill] sm:$0xff] }
 0x59b   :  { %v10464_v38 = vpop.f32.mrf.mxu0  ;;  %v10575_v22 = vpop.f32.mrf.mxu1 }
 0x59c   :  { %v10465_v4 = vadd.f32 %v10464_v38, %v16563_v61  ;;  %v16618_v11 = vadd.f32 %v10575_v22, %v10463_v34  ;;  %11321 = vmatpush1.bf16.msra.mxu0 %v13595_v60  ;;  %v12344_v60 = vcombine.high %v17654_v32, %v17653_v35  ;;  %v13607_v38 = vld [vmem:[#allocation5 + $0x8e0] ss:$8 sps:$4 sm:$0xff]  }
 0x59d   :  { %v10466_v55 = vpop.f32.mrf.mxu0  ;;  %v10577_v26 = vpop.f32.mrf.mxu1  ;;  %11322 = vmatprep.subr.bf16.mxu0 %v13600_v23 }
 0x59e   :  { %v10467_v12 = vadd.f32 %v10466_v55, %v16568_v10  ;;  %v16623_v2 = vadd.f32 %v10577_v26, %v10465_v4  ;;  %v13612_v4 = vld [vmem:[#allocation5 + $0x8d4] ss:$8 sps:$4 sm:$0xff]  }
 0x59f   :  { %v10470_v49 = vpop.f32.mrf.mxu0  ;;  %v10579_v37 = vpop.f32.mrf.mxu1  ;;  %11147 = vmatmul.mubr.bf16.gmra.mxu0 %v12305_v62 }
 0x5a0   :  { %v10471_v6 = vadd.f32 %v10470_v49, %v16563_v61  ;;  %v16628_v45 = vadd.f32 %v10579_v37, %v10467_v12  ;;  %11323 = vmatpush1.bf16.msra.mxu0 %v13598_v28  ;;  %11156 = vmatprep.mubr.bf16.mxu0 %v16389_v17  ;;  %v17655_v49 = vld [vmem:[#allocation94_spill] sm:$0xff] }
 0x5a1   :  { %v10472_v13 = vpop.f32.mrf.mxu0  ;;  %v10583_v9 = vpop.f32.mrf.mxu1  ;;  %11260 = vmatmul.mubr.bf16.gmra.mxu1 %v12307_v25  ;;  %11324 = vmatprep.subr.bf16.mxu0 %v13603_v36  ;;  %v13610_v25 = vld [vmem:[#allocation5 + $0x8d0] ss:$8 sps:$4 sm:$0xff]   ;;  %v12362_v37 = vcombine.high %v17655_v49, %v16313_v5 }
 0x5a2   :  { %v10473_v42 = vadd.f32 %v10472_v13, %v16568_v10  ;;  %v16632_v40 = vadd.f32 %v10583_v9, %v10471_v6  ;;  %11269 = vmatprep.mubr.bf16.mxu1 %v12326_v30 }
 0x5a3   :  { %v10474_v14 = vpop.f32.mrf.mxu0  ;;  %v10585_v54 = vpop.f32.mrf.mxu1 }
 0x5a4   :  { %v10475_v59 = vadd.f32 %v10474_v14, %v16563_v61  ;;  %v16635_v3 = vadd.f32 %v10585_v54, %v10473_v42  ;;  %11325 = vmatpush1.bf16.msra.mxu0 %v13601_v51  ;;  %v13618_v54 = vld [vmem:[#allocation5 + $0x8b4] ss:$8 sps:$4 sm:$0xff]  }
 0x5a5   :  { %v10476_v16 = vpop.f32.mrf.mxu0  ;;  %v10587_v17 = vpop.f32.mrf.mxu1  ;;  %11326 = vmatprep.subr.bf16.mxu0 %v13606_v57  ;;  %v13613_v57 = vld [vmem:[#allocation5 + $0x8c0] ss:$8 sps:$4 sm:$0xff]  }
 0x5a6   :  { %v10477_v47 = vadd.f32 %v10476_v16, %v16568_v10  ;;  %v16640_v50 = vadd.f32 %v10587_v17, %v10475_v59 }
 0x5a7   :  { %v10480_v7 = vpop.f32.mrf.mxu0  ;;  %v10589_v48 = vpop.f32.mrf.mxu1  ;;  %11157 = vmatmul.mubr.bf16.gmra.mxu0 %v16398_v56 }
 0x5a8   :  { %v10481_v23 = vadd.f32 %v10480_v7, %v16563_v61  ;;  %v16646_v34 = vadd.f32 %v10589_v48, %v10477_v47  ;;  %11327 = vmatpush2.bf16.msra.mxu0 %v13604_v53  ;;  %11166 = vmatprep.mubr.bf16.mxu0 %v16402_v24  ;;  %v12343_v24 = vcombine.low %v17654_v32, %v17653_v35  ;;  %v17656_v47 = vld [vmem:[#allocation123_spill] sm:$0xff] }
 0x5a9   :  { %v16649_v22 = vpop.f32.mrf.mxu0  ;;  %v10593_v62 = vpop.f32.mrf.mxu1  ;;  %11270 = vmatmul.mubr.bf16.gmra.mxu1 %v12325_v27  ;;  %11328 = vmatprep.subr.bf16.mxu0 %v13609_v0  ;;  %v13616_v0 = vld [vmem:[#allocation5 + $0x8b0] ss:$8 sps:$4 sm:$0xff]   ;;  %v13621_v7 = vld [vmem:[#allocation5 + $0x8a4] ss:$8 sps:$4 sm:$0xff]  }
 0x5aa   :  { %v16651_v28 = vadd.f32 %v10593_v62, %v10481_v23  ;;  %11279 = vmatprep.mubr.bf16.mxu1 %v12344_v60  ;;  %v12361_v60 = vcombine.low %v17655_v49, %v16313_v5 }
 0x5ab   :  { %v10484_v55 = vpop.f32.mrf.mxu0  ;;  %v16653_v26 = vpop.f32.mrf.mxu1 }
 0x5ac   :  { %v10485_v56 = vadd.f32 %v10484_v55, %v16563_v61  ;;  %11329 = vmatpush2.bf16.msra.mxu0 %v13607_v38  ;;  %v17657_v38 = vld [vmem:[#allocation131_spill] sm:$0xff] }
 0x5ad   :  { %v10486_v36 = vpop.f32.mrf.mxu0  ;;  %v10597_v12 = vpop.f32.mrf.mxu1  ;;  %11330 = vmatprep.subr.bf16.mxu0 %v13612_v4  ;;  %v12380_v62 = vcombine.high %v16329_v31, %v17657_v38 }
 0x5ae   :  { %v10487_v21 = vadd.f32 %v10486_v36, %v16568_v10  ;;  %v16659_v30 = vadd.f32 %v10597_v12, %v10485_v56  ;;  %v13619_v36 = vld [vmem:[#allocation5 + $0x8a0] ss:$8 sps:$4 sm:$0xff]  }
 0x5af   :  { %v10490_v6 = vpop.f32.mrf.mxu0  ;;  %v10599_v51 = vpop.f32.mrf.mxu1  ;;  %11167 = vmatmul.mubr.bf16.gmra.mxu0 %v16412_v41 }
 0x5b0   :  { %v10491_v13 = vadd.f32 %v10490_v6, %v16563_v61  ;;  %v16665_v9 = vadd.f32 %v10599_v51, %v10487_v21  ;;  %11331 = vmatpush2.bf16.msra.mxu0 %v13610_v25  ;;  %11176 = vmatprep.mubr.bf16.mxu0 %v16416_v8  ;;  %v12378_v8 = vcombine.high %v16260_v46, %v17656_v47 }
 0x5b1   :  { %v10492_v42 = vpop.f32.mrf.mxu0  ;;  %v10603_v14 = vpop.f32.mrf.mxu1  ;;  %11280 = vmatmul.mubr.bf16.gmra.mxu1 %v12343_v24  ;;  %11332 = vmatprep.subr.bf16.mxu0 %v13615_v52  ;;  %v13624_v24 = vld [vmem:[#allocation5 + $0x894] ss:$8 sps:$4 sm:$0xff]  }
 0x5b2   :  { %v10493_v59 = vadd.f32 %v10492_v42, %v16568_v10  ;;  %v16669_v53 = vadd.f32 %v10603_v14, %v10491_v13  ;;  %11289 = vmatprep.mubr.bf16.mxu1 %v12362_v37  ;;  %v13622_v13 = vld [vmem:[#allocation5 + $0x890] ss:$8 sps:$4 sm:$0xff]  }
 0x5b3   :  { %v10494_v16 = vpop.f32.mrf.mxu0  ;;  %v10605_v41 = vpop.f32.mrf.mxu1  ;;  %v17659_v42 = vld [vmem:[#allocation72_spill] sm:$0xff] }
 0x5b4   :  { %v10495_v17 = vadd.f32 %v10494_v16, %v16563_v61  ;;  %v16672_v27 = vadd.f32 %v10605_v41, %v10493_v59  ;;  %11333 = vmatpush2.bf16.msra.mxu0 %v13613_v57  ;;  %v17658_v57 = vld [vmem:[#allocation85_spill] sm:$0xff]  ;;  %v12379_v16 = vcombine.low %v16329_v31, %v17657_v38  ;;  %v13627_v41 = vld [vmem:[#allocation5 + $0x884] ss:$8 sps:$4 sm:$0xff]  }
 0x5b5   :  { %v10496_v35 = vpop.f32.mrf.mxu0  ;;  %v10607_v32 = vpop.f32.mrf.mxu1  ;;  %11334 = vmatprep.subr.bf16.mxu0 %v13618_v54  ;;  %v12256_v14 = vcombine.high %v17659_v42, %v17658_v57 }
 0x5b6   :  { %v10497_v48 = vadd.f32 %v10496_v35, %v16568_v10  ;;  %v16679_v23 = vadd.f32 %v10607_v32, %v10495_v17  ;;  %v13625_v32 = vld [vmem:[#allocation5 + $0x880] ss:$8 sps:$4 sm:$0xff]  }
 0x5b7   :  { %v10500_v4 = vpop.f32.mrf.mxu0  ;;  %v10609_v55 = vpop.f32.mrf.mxu1  ;;  %11177 = vmatmul.mubr.bf16.gmra.mxu0 %v16426_v44  ;;  %v12377_v44 = vcombine.low %v16260_v46, %v17656_v47 }
 0x5b8   :  { %v10501_v56 = vadd.f32 %v10500_v4, %v16563_v61  ;;  %v16685_v25 = vadd.f32 %v10609_v55, %v10497_v48  ;;  %11335 = vmatpush2.bf16.msra.mxu0 %v13616_v0  ;;  %11186 = vmatprep.mubr.bf16.mxu0 %v12378_v8  ;;  %v12255_v4 = vcombine.low %v17659_v42, %v17658_v57 }
 0x5b9   :  { %v10502_v5 = vpop.f32.mrf.mxu0  ;;  %v10613_v12 = vpop.f32.mrf.mxu1  ;;  %11290 = vmatmul.mubr.bf16.gmra.mxu1 %v12361_v60  ;;  %11336 = vmatprep.subr.bf16.mxu0 %v13621_v7 }
 0x5ba   :  { %v10503_v52 = vadd.f32 %v10502_v5, %v16568_v10  ;;  %v16688_v21 = vadd.f32 %v10613_v12, %v10501_v56  ;;  %11299 = vmatprep.mubr.bf16.mxu1 %v12380_v62  ;;  %v17661_v5 = vld [vmem:[#allocation105_spill] sm:$0xff] }
 0x5bb   :  { %v10504_v49 = vpop.f32.mrf.mxu0  ;;  %v10615_v37 = vpop.f32.mrf.mxu1 }
 0x5bc   :  { %v10505_v6 = vadd.f32 %v10504_v49, %v16563_v61  ;;  %v16693_v51 = vadd.f32 %v10615_v37, %v10503_v52  ;;  %11337 = vmatpush2.bf16.msra.mxu0 %v13619_v36  ;;  %v17660_v36 = vld [vmem:[#allocation45_spill] sm:$0xff] }
 0x5bd   :  { %v10506_v54 = vpop.f32.mrf.mxu0  ;;  %v10617_v59 = vpop.f32.mrf.mxu1  ;;  %11338 = vmatprep.subr.bf16.mxu0 %v13624_v24  ;;  %v12274_v12 = vcombine.high %v17661_v5, %v17660_v36 }
 0x5be   :  { %v10507_v17 = vadd.f32 %v10506_v54, %v16568_v10  ;;  %v16700_v0 = vadd.f32 %v10617_v59, %v10505_v6 }
 0x5bf   :  { %v10510_v46 = vpop.f32.mrf.mxu0  ;;  %v10619_v47 = vpop.f32.mrf.mxu1  ;;  %11187 = vmatmul.mubr.bf16.gmra.mxu0 %v12377_v44 }
 0x5c0   :  { %v10511_v8 = vadd.f32 %v10510_v46, %v16563_v61  ;;  %v16703_v35 = vadd.f32 %v10619_v47, %v10507_v17  ;;  %11339 = vmatpush2.bf16.msra.mxu0 %v13622_v13  ;;  %11342 = vmatprep.mubr.bf16.mxu0 %v12256_v14  ;;  %v17662_v47 = vld [vmem:[#allocation74_spill] sm:$0xff] }
 0x5c1   :  { %v10512_v60 = vpop.f32.mrf.mxu0  ;;  %v10623_v7 = vpop.f32.mrf.mxu1  ;;  %11300 = vmatmul.mubr.bf16.gmra.mxu1 %v12379_v16  ;;  %11340 = vmatprep.subr.bf16.mxu0 %v13627_v41  ;;  %v12273_v41 = vcombine.low %v17661_v5, %v17660_v36 }
 0x5c2   :  { %v10513_v31 = vadd.f32 %v10512_v60, %v16568_v10  ;;  %v16706_v48 = vadd.f32 %v10623_v7, %v10511_v8  ;;  %v17663_v8 = vld [vmem:[#allocation53_spill] sm:$0xff] }
 0x5c3   :  { %v10514_v38 = vpop.f32.mrf.mxu0  ;;  %v10625_v62 = vpop.f32.mrf.mxu1 }
 0x5c4   :  { %v10515_v55 = vadd.f32 %v10514_v38, %v16563_v61  ;;  %v16711_v56 = vadd.f32 %v10625_v62, %v10513_v31  ;;  %11341 = vmatpush2.bf16.msra.mxu0 %v13625_v32  ;;  %v12292_v32 = vcombine.high %v17663_v8, %v17662_v47 }
 0x5c5   :  { %v10516_v24 = vpop.f32.mrf.mxu0  ;;  %v10627_v52 = vpop.f32.mrf.mxu1 }
 0x5c6   :  { %v10517_v49 = vadd.f32 %v10516_v24, %v16568_v10  ;;  %v16716_v37 = vadd.f32 %v10627_v52, %v10515_v55 }
 0x5c7   :  { %v10629_v44 = vpop.f32.mrf.mxu1  ;;  %v10666_v6 = vpop.f32.mrf.mxu0  ;;  %11343 = vmatmul.mubr.bf16.vlgmr.msra.gmra.mxu0 %v12255_v4 }
 0x5c8   :  { %v16718_v13 = vadd.f32 %v10629_v44, %v10517_v49  ;;  %v10667_v57 = vadd.f32 %v10666_v6, %v16576_v63  ;;  %11352 = vmatprep.mubr.bf16.mxu0 %v12274_v12  ;;  %v17664_v44 = vld [vmem:[#allocation128_spill] sm:$0xff] }
 0x5c9   :  { %v10668_v61 = vpop.f32.mrf.mxu0  ;;  %v10779_v42 = vpop.f32.mrf.mxu1 }
 0x5ca   :  { %v10669_v14 = vadd.f32 %v10668_v61, %v16579_v58  ;;  %v16722_v54 = vadd.f32 %v10779_v42, %v10667_v57 }
 0x5cb   :  { %v10670_v59 = vpop.f32.mrf.mxu0  ;;  %v10781_v16 = vpop.f32.mrf.mxu1 }
 0x5cc   :  { %v10671_v17 = vadd.f32 %v10670_v59, %v16584_v19  ;;  %v16727_v46 = vadd.f32 %v10781_v16, %v10669_v14 }
 0x5cd   :  { %v10672_v63 = vpop.f32.mrf.mxu0  ;;  %v10783_v60 = vpop.f32.mrf.mxu1 }
 0x5ce   :  { %v10673_v7 = vadd.f32 %v10672_v63, %v16590_v33  ;;  %v16732_v31 = vadd.f32 %v10783_v60, %v10671_v17  ;;  %v12291_v33 = vcombine.low %v17663_v8, %v17662_v47 }
 0x5cf   :  { %v10676_v58 = vpop.f32.mrf.mxu0  ;;  %v10785_v38 = vpop.f32.mrf.mxu1  ;;  %11353 = vmatmul.mubr.bf16.gmra.mxu0 %v12273_v41 }
 0x5d0   :  { %v10677_v62 = vadd.f32 %v10676_v58, %v16594_v15  ;;  %v16735_v4 = vadd.f32 %v10785_v38, %v10673_v7  ;;  %11362 = vmatprep.mubr.bf16.mxu0 %v12292_v32  ;;  %v17665_v15 = vld [vmem:[#allocation84_spill] sm:$0xff]  ;;  %v17666_v58 = vld [vmem:[#allocation118_spill] sm:$0xff] }
 0x5d1   :  { %v10678_v19 = vpop.f32.mrf.mxu0  ;;  %v10789_v55 = vpop.f32.mrf.mxu1  ;;  %v12310_v6 = vcombine.high %v17665_v15, %v17664_v44 }
 0x5d2   :  { %v10679_v36 = vadd.f32 %v10678_v19, %v16597_v39  ;;  %v16738_v5 = vadd.f32 %v10789_v55, %v10677_v62 }
 0x5d3   :  { %v10680_v12 = vpop.f32.mrf.mxu0  ;;  %v10791_v24 = vpop.f32.mrf.mxu1 }
 0x5d4   :  { %v10681_v52 = vadd.f32 %v10680_v12, %v16604_v20  ;;  %v16743_v49 = vadd.f32 %v10791_v24, %v10679_v36 }
 0x5d5   :  { %v10682_v57 = vpop.f32.mrf.mxu0  ;;  %v10793_v61 = vpop.f32.mrf.mxu1 }
 0x5d6   :  { %v10683_v42 = vadd.f32 %v10682_v57, %v16610_v18  ;;  %v16748_v14 = vadd.f32 %v10793_v61, %v10681_v52  ;;  %v12309_v18 = vcombine.low %v17665_v15, %v17664_v44  ;;  %v10483_v61 = vadd.f32 %v16649_v22, %v16568_v10 }
 0x5d7   :  { %v10686_v39 = vpop.f32.mrf.mxu0  ;;  %v10795_v59 = vpop.f32.mrf.mxu1  ;;  %11363 = vmatmul.mubr.bf16.gmra.mxu0 %v12291_v33 }
 0x5d8   :  { %v10687_v16 = vadd.f32 %v10686_v39, %v16613_v1  ;;  %v16751_v41 = vadd.f32 %v10795_v59, %v10683_v42  ;;  %11372 = vmatprep.mubr.bf16.mxu0 %v12310_v6  ;;  %v17667_v1 = vld [vmem:[#allocation91_spill] sm:$0xff]  ;;  %v17668_v39 = vld [vmem:[#allocation76_spill] sm:$0xff] }
 0x5d9   :  { %v10688_v20 = vpop.f32.mrf.mxu0  ;;  %v10799_v17 = vpop.f32.mrf.mxu1  ;;  %v12328_v38 = vcombine.high %v17667_v1, %v17666_v58  ;;  %v17669_v59 = vld [vmem:[#allocation51_spill] sm:$0xff] }
 0x5da   :  { %v10689_v47 = vadd.f32 %v10688_v20, %v16618_v11  ;;  %v16754_v8 = vadd.f32 %v10799_v17, %v10687_v16  ;;  %v12346_v16 = vcombine.high %v17669_v59, %v17668_v39 }
 0x5db   :  { %v10690_v32 = vpop.f32.mrf.mxu0  ;;  %v10801_v63 = vpop.f32.mrf.mxu1 }
 0x5dc   :  { %v10691_v60 = vadd.f32 %v10690_v32, %v16623_v2  ;;  %v16759_v7 = vadd.f32 %v10801_v63, %v10689_v47 }
 0x5dd   :  { %v10692_v62 = vpop.f32.mrf.mxu0  ;;  %v10803_v19 = vpop.f32.mrf.mxu1 }
 0x5de   :  { %v10693_v55 = vadd.f32 %v10692_v62, %v16628_v45  ;;  %v16764_v36 = vadd.f32 %v10803_v19, %v10691_v60  ;;  %v12327_v45 = vcombine.low %v17667_v1, %v17666_v58 }
 0x5df   :  { %v10696_v11 = vpop.f32.mrf.mxu0  ;;  %v10805_v12 = vpop.f32.mrf.mxu1  ;;  %11373 = vmatmul.mubr.bf16.gmra.mxu0 %v12309_v18  ;;  %v10596_v18 = vadd.f32 %v16653_v26, %v10483_v61  ;;  %v17670_v26 = vld [vmem:[#allocation80_spill] sm:$0xff] }
 0x5e0   :  { %v10697_v24 = vadd.f32 %v10696_v11, %v16632_v40  ;;  %v16767_v33 = vadd.f32 %v10805_v12, %v10693_v55  ;;  %11382 = vmatprep.mubr.bf16.mxu0 %v12328_v38 }
 0x5e1   :  { %v10698_v2 = vpop.f32.mrf.mxu0  ;;  %v10809_v52 = vpop.f32.mrf.mxu1 }
 0x5e2   :  { %v10699_v44 = vadd.f32 %v10698_v2, %v16635_v3  ;;  %v16770_v15 = vadd.f32 %v10809_v52, %v10697_v24 }
 0x5e3   :  { %v10700_v6 = vpop.f32.mrf.mxu0  ;;  %v10811_v57 = vpop.f32.mrf.mxu1 }
 0x5e4   :  { %v10701_v42 = vadd.f32 %v10700_v6, %v16640_v50  ;;  %v16777_v40 = vadd.f32 %v10811_v57, %v10699_v44 }
 0x5e5   :  { %v10702_v20 = vpop.f32.mrf.mxu0  ;;  %v10813_v17 = vpop.f32.mrf.mxu1 }
 0x5e6   :  { %v10703_v3 = vadd.f32 %v10702_v20, %v16646_v34  ;;  %v16782_v47 = vadd.f32 %v10813_v17, %v10701_v42  ;;  %v12345_v34 = vcombine.low %v17669_v59, %v17668_v39  ;;  %v17671_v17 = vld [vmem:[#allocation129_spill] sm:$0xff] }
 0x5e7   :  { %v10706_v32 = vpop.f32.mrf.mxu0  ;;  %v10815_v63 = vpop.f32.mrf.mxu1  ;;  %11383 = vmatmul.mubr.bf16.gmra.mxu0 %v12327_v45 }
 0x5e8   :  { %v10707_v10 = vadd.f32 %v10706_v32, %v16651_v28  ;;  %v16786_v22 = vadd.f32 %v10815_v63, %v10703_v3  ;;  %11392 = vmatprep.mubr.bf16.mxu0 %v12346_v16  ;;  %v12364_v28 = vcombine.high %v17670_v26, %v16309_v43 }
 0x5e9   :  { %v10708_v50 = vpop.f32.mrf.mxu0  ;;  %v10819_v60 = vpop.f32.mrf.mxu1 }
 0x5ea   :  { %v10709_v58 = vadd.f32 %v10708_v50, %v10596_v18  ;;  %v16788_v1 = vadd.f32 %v10819_v60, %v10707_v10 }
 0x5eb   :  { %v10710_v38 = vpop.f32.mrf.mxu0  ;;  %v10821_v62 = vpop.f32.mrf.mxu1 }
 0x5ec   :  { %v10711_v19 = vadd.f32 %v10710_v38, %v16659_v30  ;;  %v16793_v55 = vadd.f32 %v10821_v62, %v10709_v58 }
 0x5ed   :  { %v10712_v11 = vpop.f32.mrf.mxu0  ;;  %v10823_v12 = vpop.f32.mrf.mxu1 }
 0x5ee   :  { %v10713_v24 = vadd.f32 %v10712_v11, %v16665_v9  ;;  %v16798_v2 = vadd.f32 %v10823_v12, %v10711_v19  ;;  %v12363_v9 = vcombine.low %v17670_v26, %v16309_v43 }
 0x5ef   :  { %v10716_v52 = vpop.f32.mrf.mxu0  ;;  %v10825_v44 = vpop.f32.mrf.mxu1  ;;  %11393 = vmatmul.mubr.bf16.gmra.mxu0 %v12345_v34 }
 0x5f0   :  { %v10717_v6 = vadd.f32 %v10716_v52, %v16669_v53  ;;  %v16801_v57 = vadd.f32 %v10825_v44, %v10713_v24  ;;  %11402 = vmatprep.mubr.bf16.mxu0 %v12364_v28  ;;  %v12382_v53 = vcombine.high %v16321_v29, %v17671_v17 }
 0x5f1   :  { %v10718_v30 = vpop.f32.mrf.mxu0  ;;  %v10829_v45 = vpop.f32.mrf.mxu1 }
 0x5f2   :  { %v10719_v61 = vadd.f32 %v10718_v30, %v16672_v27  ;;  %v16804_v42 = vadd.f32 %v10829_v45, %v10717_v6 }
 0x5f3   :  { %v10720_v39 = vpop.f32.mrf.mxu0  ;;  %v10831_v59 = vpop.f32.mrf.mxu1 }
 0x5f4   :  { %v10721_v16 = vadd.f32 %v10720_v39, %v16679_v23  ;;  %v16809_v20 = vadd.f32 %v10831_v59, %v10719_v61 }
 0x5f5   :  { %v10722_v3 = vpop.f32.mrf.mxu0  ;;  %v10833_v32 = vpop.f32.mrf.mxu1 }
 0x5f6   :  { %v10723_v63 = vadd.f32 %v10722_v3, %v16685_v25  ;;  %v16814_v18 = vadd.f32 %v10833_v32, %v10721_v16  ;;  %v12381_v25 = vcombine.low %v16321_v29, %v17671_v17 }
 0x5f7   :  { %v10726_v27 = vpop.f32.mrf.mxu0  ;;  %v10835_v10 = vpop.f32.mrf.mxu1  ;;  %11403 = vmatmul.mubr.bf16.gmra.mxu0 %v12363_v9 }
 0x5f8   :  { %v10727_v50 = vadd.f32 %v10726_v27, %v16688_v21  ;;  %v16817_v60 = vadd.f32 %v10835_v10, %v10723_v63  ;;  %11412 = vmatprep.mubr.bf16.mxu0 %v12382_v53 }
 0x5f9   :  { %v10728_v43 = vpop.f32.mrf.mxu0  ;;  %v10839_v23 = vpop.f32.mrf.mxu1 }
 0x5fa   :  { %v10729_v58 = vadd.f32 %v10728_v43, %v16693_v51  ;;  %v16820_v38 = vadd.f32 %v10839_v23, %v10727_v50 }
 0x5fb   :  { %v10730_v62 = vpop.f32.mrf.mxu0  ;;  %v10841_v34 = vpop.f32.mrf.mxu1 }
 0x5fc   :  { %v10731_v19 = vadd.f32 %v10730_v62, %v16700_v0  ;;  %v16825_v26 = vadd.f32 %v10841_v34, %v10729_v58 }
 0x5fd   :  { %v10732_v28 = vpop.f32.mrf.mxu0  ;;  %v10843_v21 = vpop.f32.mrf.mxu1 }
 0x5fe   :  { %v10733_v11 = vadd.f32 %v10732_v28, %v16703_v35  ;;  %v16828_v12 = vadd.f32 %v10843_v21, %v10731_v19 }
 0x5ff   :  { %v10736_v24 = vpop.f32.mrf.mxu0  ;;  %v10845_v52 = vpop.f32.mrf.mxu1  ;;  %11413 = vmatmul.mubr.bf16.gmra.mxu0 %v12381_v25 }
 0x600   :  { %v10737_v51 = vadd.f32 %v10736_v24, %v16706_v48  ;;  %v16831_v44 = vadd.f32 %v10845_v52, %v10733_v11 }
 0x601   :  { %v10738_v6 = vpop.f32.mrf.mxu0  ;;  %v10849_v30 = vpop.f32.mrf.mxu1 }
 0x602   :  { %v10739_v29 = vadd.f32 %v10738_v6, %v16711_v56  ;;  %v16834_v0 = vadd.f32 %v10849_v30, %v10737_v51 }
 0x603   :  { %v10740_v45 = vpop.f32.mrf.mxu0  ;;  %v10851_v61 = vpop.f32.mrf.mxu1 }
 0x604   :  { %v10741_v39 = vadd.f32 %v10740_v45, %v16716_v37  ;;  %v16837_v35 = vadd.f32 %v10851_v61, %v10739_v29 }
 0x605   :  { %v10742_v59 = vpop.f32.mrf.mxu0  ;;  %v10853_v9 = vpop.f32.mrf.mxu1 }
 0x606   :  { %v10743_v16 = vadd.f32 %v10742_v59, %v16718_v13  ;;  %v16840_v17 = vadd.f32 %v10853_v9, %v10741_v39 }
 0x607   :  { %v10855_v48 = vpop.f32.mrf.mxu1  ;;  %v10892_v53 = vpop.f32.mrf.mxu0 }
 0x608   :  { %v16842_v3 = vadd.f32 %v10855_v48, %v10743_v16  ;;  %v10893_v56 = vadd.f32 %v10892_v53, %v16722_v54 }
 0x609   :  { %v10894_v32 = vpop.f32.mrf.mxu0  ;;  %v11005_v63 = vpop.f32.mrf.mxu1 }
 0x60a   :  { %v10895_v27 = vadd.f32 %v10894_v32, %v16727_v46  ;;  %v16846_v10 = vadd.f32 %v11005_v63, %v10893_v56 }
 0x60b   :  { %v10896_v37 = vpop.f32.mrf.mxu0  ;;  %v11007_v50 = vpop.f32.mrf.mxu1 }
 0x60c   :  { %v10897_v43 = vadd.f32 %v10896_v37, %v16732_v31  ;;  %v16849_v23 = vadd.f32 %v11007_v50, %v10895_v27 }
 0x60d   :  { %v10898_v13 = vpop.f32.mrf.mxu0  ;;  %v11009_v58 = vpop.f32.mrf.mxu1 }
 0x60e   :  { %v10899_v62 = vadd.f32 %v10898_v13, %v16735_v4  ;;  %v16852_v34 = vadd.f32 %v11009_v58, %v10897_v43 }
 0x60f   :  { %v10902_v25 = vpop.f32.mrf.mxu0  ;;  %v11011_v54 = vpop.f32.mrf.mxu1 }
 0x610   :  { %v10903_v19 = vadd.f32 %v10902_v25, %v16738_v5  ;;  %v16855_v28 = vadd.f32 %v11011_v54, %v10899_v62  ;;  %v11526_v54 = vld [vmem:[#allocation16 + $0x78] sm:$0xff] }
 0x611   :  { %v10904_v46 = vpop.f32.mrf.mxu0  ;;  %v11015_v21 = vpop.f32.mrf.mxu1 }
 0x612   :  { %v10905_v11 = vadd.f32 %v10904_v46, %v16743_v49  ;;  %v16858_v24 = vadd.f32 %v11015_v21, %v10903_v19 }
 0x613   :  { %v10906_v31 = vpop.f32.mrf.mxu0  ;;  %v11017_v52 = vpop.f32.mrf.mxu1 }
 0x614   :  { %v10907_v51 = vadd.f32 %v10906_v31, %v16748_v14  ;;  %v16861_v6 = vadd.f32 %v11017_v52, %v10905_v11  ;;  %v11541_v11 = vld [vmem:[#allocation16 + $0xf0] sm:$0xff] }
 0x615   :  { %v10908_v4 = vpop.f32.mrf.mxu0  ;;  %v11019_v30 = vpop.f32.mrf.mxu1 }
 0x616   :  { %v10909_v29 = vadd.f32 %v10908_v4, %v16751_v41  ;;  %v16864_v45 = vadd.f32 %v11019_v30, %v10907_v51  ;;  %v11525_v4 = vld [vmem:[#allocation16 + $0x70] sm:$0xff] }
 0x617   :  { %v10912_v5 = vpop.f32.mrf.mxu0  ;;  %v11021_v61 = vpop.f32.mrf.mxu1 }
 0x618   :  { %v10913_v39 = vadd.f32 %v10912_v5, %v16754_v8  ;;  %v16867_v59 = vadd.f32 %v11021_v61, %v10909_v29 }
 0x619   :  { %v10914_v49 = vpop.f32.mrf.mxu0  ;;  %v11025_v9 = vpop.f32.mrf.mxu1 }
 0x61a   :  { %v10915_v16 = vadd.f32 %v10914_v49, %v16759_v7  ;;  %v16870_v48 = vadd.f32 %v11025_v9, %v10913_v39  ;;  %v11542_v7 = vld [vmem:[#allocation16 + $0xf8] sm:$0xff] }
 0x61b   :  { %v10916_v14 = vpop.f32.mrf.mxu0  ;;  %v11027_v53 = vpop.f32.mrf.mxu1  ;;  %12706 = vmatprep.subr.mxu1 %v11542_v7 }
 0x61c   :  { %v10917_v56 = vadd.f32 %v10916_v14, %v16764_v36  ;;  %v16873_v32 = vadd.f32 %v11027_v53, %v10915_v16  ;;  %12707 = vmatpush3.msra.mxu1 %v11526_v54 }
 0x61d   :  { %v10918_v41 = vpop.f32.mrf.mxu0  ;;  %v11029_v63 = vpop.f32.mrf.mxu1  ;;  %12708 = vmatprep.subr.mxu1 %v11541_v11  ;;  %v11524_v11 = vld [vmem:[#allocation16 + $0x68] sm:$0xff] }
 0x61e   :  { %v10919_v27 = vadd.f32 %v10918_v41, %v16767_v33  ;;  %v16876_v37 = vadd.f32 %v11029_v63, %v10917_v56  ;;  %12709 = vmatpush3.msra.mxu1 %v11525_v4 }
 0x61f   :  { %v10922_v8 = vpop.f32.mrf.mxu0  ;;  %v11031_v50 = vpop.f32.mrf.mxu1 }
 0x620   :  { %v10923_v43 = vadd.f32 %v10922_v8, %v16770_v15  ;;  %v16879_v13 = vadd.f32 %v11031_v50, %v10919_v27 }
 0x621   :  { %v10924_v58 = vpop.f32.mrf.mxu0  ;;  %v11035_v62 = vpop.f32.mrf.mxu1 }
 0x622   :  { %v10925_v36 = vadd.f32 %v10924_v58, %v16777_v40  ;;  %v16882_v25 = vadd.f32 %v11035_v62, %v10923_v43 }
 0x623   :  { %v10926_v19 = vpop.f32.mrf.mxu0  ;;  %v11037_v46 = vpop.f32.mrf.mxu1 }
 0x624   :  { %v10927_v33 = vadd.f32 %v10926_v19, %v16782_v47  ;;  %v16885_v21 = vadd.f32 %v11037_v46, %v10925_v36 }
 0x625   :  { %v10928_v15 = vpop.f32.mrf.mxu0  ;;  %v11039_v31 = vpop.f32.mrf.mxu1 }
 0x626   :  { %v10929_v52 = vadd.f32 %v10928_v15, %v16786_v22  ;;  %v16888_v51 = vadd.f32 %v11039_v31, %v10927_v33  ;;  %v11539_v15 = vld [vmem:[#allocation16 + $0xe0] sm:$0xff] }
 0x627   :  { %v10932_v40 = vpop.f32.mrf.mxu0  ;;  %v11041_v30 = vpop.f32.mrf.mxu1 }
 0x628   :  { %v10933_v29 = vadd.f32 %v10932_v40, %v16788_v1  ;;  %v16891_v5 = vadd.f32 %v11041_v30, %v10929_v52 }
 0x629   :  { %v10934_v61 = vpop.f32.mrf.mxu0  ;;  %v11045_v47 = vpop.f32.mrf.mxu1 }
 0x62a   :  { %v10935_v39 = vadd.f32 %v10934_v61, %v16793_v55  ;;  %v16894_v49 = vadd.f32 %v11045_v47, %v10933_v29  ;;  %v11522_v61 = vld [vmem:[#allocation16 + $0x58] sm:$0xff] }
 0x62b   :  { %v10936_v9 = vpop.f32.mrf.mxu0  ;;  %v11047_v16 = vpop.f32.mrf.mxu1 }
 0x62c   :  { %v10937_v22 = vadd.f32 %v10936_v9, %v16798_v2  ;;  %v16897_v14 = vadd.f32 %v11047_v16, %v10935_v39  ;;  %v11537_v39 = vld [vmem:[#allocation16 + $0xd0] sm:$0xff] }
 0x62d   :  { %v10938_v53 = vpop.f32.mrf.mxu0  ;;  %v11049_v56 = vpop.f32.mrf.mxu1 }
 0x62e   :  { %v10939_v41 = vadd.f32 %v10938_v53, %v16801_v57  ;;  %v16900_v63 = vadd.f32 %v11049_v56, %v10937_v22  ;;  %v11521_v22 = vld [vmem:[#allocation16 + $0x50] sm:$0xff]  ;;  %v11536_v56 = vld [vmem:[#allocation16 + $0xc8] sm:$0xff] }
 0x62f   :  { %v10942_v1 = vpop.f32.mrf.mxu0  ;;  %v11051_v27 = vpop.f32.mrf.mxu1 }
 0x630   :  { %v10943_v8 = vadd.f32 %v10942_v1, %v16804_v42  ;;  %v16903_v50 = vadd.f32 %v11051_v27, %v10939_v41  ;;  %v11540_v42 = vld [vmem:[#allocation16 + $0xe8] sm:$0xff] }
 0x631   :  { %v10944_v55 = vpop.f32.mrf.mxu0  ;;  %v11055_v43 = vpop.f32.mrf.mxu1  ;;  %12710 = vmatprep.subr.mxu1 %v11540_v42  ;;  %v11520_v27 = vld [vmem:[#allocation16 + $0x48] sm:$0xff]  ;;  %v11518_v42 = vld [vmem:[#allocation16 + $0x38] sm:$0xff] }
 0x632   :  { %v10945_v7 = vadd.f32 %v10944_v55, %v16809_v20  ;;  %v16906_v58 = vadd.f32 %v11055_v43, %v10943_v8  ;;  %v11523_v20 = vld [vmem:[#allocation16 + $0x60] sm:$0xff]  ;;  %12711 = vmatpush3.msra.mxu1 %v11524_v11 }
 0x633   :  { %v10946_v2 = vpop.f32.mrf.mxu0  ;;  %v11057_v62 = vpop.f32.mrf.mxu1  ;;  %12712 = vmatprep.subr.mxu1 %v11539_v15  ;;  %v11535_v55 = vld [vmem:[#allocation16 + $0xc0] sm:$0xff] }
 0x634   :  { %v10947_v36 = vadd.f32 %v10946_v2, %v16814_v18  ;;  %v16909_v54 = vadd.f32 %v11057_v62, %v10945_v7  ;;  %v11538_v18 = vld [vmem:[#allocation16 + $0xd8] sm:$0xff]  ;;  %12713 = vmatpush3.msra.mxu1 %v11523_v20  ;;  %v11519_v2 = vld [vmem:[#allocation16 + $0x40] sm:$0xff] }
 0x635   :  { %v10948_v57 = vpop.f32.mrf.mxu0  ;;  %v11059_v19 = vpop.f32.mrf.mxu1  ;;  %12714 = vmatprep.subr.mxu1 %v11538_v18 }
 0x636   :  { %v10949_v46 = vadd.f32 %v10948_v57, %v16817_v60  ;;  %v16912_v33 = vadd.f32 %v11059_v19, %v10947_v36  ;;  %12715 = vmatpush3.msra.mxu1 %v11522_v61  ;;  %v11534_v36 = vld [vmem:[#allocation16 + $0xb8] sm:$0xff] }
 0x637   :  { %v10952_v31 = vpop.f32.mrf.mxu0  ;;  %v11061_v52 = vpop.f32.mrf.mxu1  ;;  %12716 = vmatprep.subr.mxu1 %v11537_v39 }
 0x638   :  { %v10953_v4 = vadd.f32 %v10952_v31, %v16820_v38  ;;  %v16915_v40 = vadd.f32 %v11061_v52, %v10949_v46  ;;  %12717 = vmatpush3.msra.mxu1 %v11521_v22  ;;  %v11533_v31 = vld [vmem:[#allocation16 + $0xb0] sm:$0xff] }
 0x639   :  { %v10954_v30 = vpop.f32.mrf.mxu0  ;;  %v11065_v29 = vpop.f32.mrf.mxu1  ;;  %12718 = vmatprep.subr.mxu1 %v11536_v56 }
 0x63a   :  { %v10955_v60 = vadd.f32 %v10954_v30, %v16825_v26  ;;  %v16918_v47 = vadd.f32 %v11065_v29, %v10953_v4  ;;  %12719 = vmatpush3.msra.mxu1 %v11520_v27  ;;  %v11517_v4 = vld [vmem:[#allocation16 + $0x30] sm:$0xff]  ;;  %v11516_v27 = vld [vmem:[#allocation16 + $0x28] sm:$0xff] }
 0x63b   :  { %v10956_v9 = vpop.f32.mrf.mxu0  ;;  %v11067_v16 = vpop.f32.mrf.mxu1  ;;  %12720 = vmatprep.subr.mxu1 %v11535_v55 }
 0x63c   :  { %v10957_v38 = vadd.f32 %v10956_v9, %v16828_v12  ;;  %v16921_v53 = vadd.f32 %v11067_v16, %v10955_v60  ;;  %12721 = vmatpush3.msra.mxu1 %v11519_v2 }
 0x63d   :  { %v10958_v41 = vpop.f32.mrf.mxu0  ;;  %v11069_v1 = vpop.f32.mrf.mxu1  ;;  %12722 = vmatprep.subr.mxu1 %v11534_v36 }
 0x63e   :  { %v10959_v26 = vadd.f32 %v10958_v41, %v16831_v44  ;;  %v16924_v8 = vadd.f32 %v11069_v1, %v10957_v38  ;;  %12723 = vmatpush3.msra.mxu1 %v11518_v42 }
 0x63f   :  { %v10962_v43 = vpop.f32.mrf.mxu0  ;;  %v11071_v7 = vpop.f32.mrf.mxu1  ;;  %12724 = vmatprep.subr.mxu1 %v11533_v31 }
 0x640   :  { %v10963_v12 = vadd.f32 %v10962_v43, %v16834_v0  ;;  %v16927_v62 = vadd.f32 %v11071_v7, %v10959_v26  ;;  %12725 = vmatpush3.msra.mxu1 %v11517_v4  ;;  %v11515_v43 = vld [vmem:[#allocation16 + $0x20] sm:$0xff] }
 0x641   :  { %v10964_v57 = vpop.f32.mrf.mxu0  ;;  %v11075_v19 = vpop.f32.mrf.mxu1 }
 0x642   :  { %v16930_v46 = vadd.f32 %v10964_v57, %v16837_v35  ;;  %v16932_v44 = vadd.f32 %v11075_v19, %v10963_v12  ;;  %v11514_v12 = vld [vmem:[#allocation16 + $0x18] sm:$0xff]  ;;  %v11513_v57 = vld [vmem:[#allocation16 + $0x10] sm:$0xff]  ;;  %v11528_v19 = vld [vmem:[#allocation16 + $0x88] sm:$0xff] }
 0x643   :  { %v10966_v11 = vpop.f32.mrf.mxu0  ;;  %v16934_v15 = vpop.f32.mrf.mxu1 }
 0x644   :  { %v16937_v0 = vadd.f32 %v10966_v11, %v16840_v17  ;;  %v11512_v11 = vld [vmem:[#allocation16 + $0x8] sm:$0xff] }
 0x645   :  { %v10968_v52 = vpop.f32.mrf.mxu0  ;;  %v16939_v20 = vpop.f32.mrf.mxu1 }
 0x646   :  { %v16942_v35 = vadd.f32 %v10968_v52, %v16842_v3  ;;  %v11527_v52 = vld [vmem:[#allocation16 + $0x80] sm:$0xff] }
 0x647   :  { %v16944_v18 = vpop.f32.mrf.mxu1  ;;  %v11118_v30 = vpop.f32.mrf.mxu0 }
 0x648   :  { %17672 = vst [vmem:[#allocation99_spill] sm:$0xff] %v16942_v35  ;;  %17673 = vst [vmem:[#allocation115_spill] sm:$0xff] %v16944_v18  ;;  %v16947_v29 = vadd.f32 %v11118_v30, %v16846_v10  ;;  %v11511_v30 = vld [vmem:[#allocation16] sm:$0xff] }
 0x649   :  { %v11120_v61 = vpop.f32.mrf.mxu0  ;;  %v16949_v17 = vpop.f32.mrf.mxu1 }
 0x64a   :  { %v16952_v60 = vadd.f32 %v11120_v61, %v16849_v23  ;;  %v11532_v23 = vld [vmem:[#allocation16 + $0xa8] sm:$0xff] }
 0x64b   :  { %v11122_v39 = vpop.f32.mrf.mxu0  ;;  %v16954_v9 = vpop.f32.mrf.mxu1  ;;  %12726 = vmatprep.subr.mxu1 %v11532_v23 }
 0x64c   :  { %v16957_v3 = vadd.f32 %v11122_v39, %v16852_v34  ;;  %12727 = vmatpush3.msra.mxu1 %v11516_v27  ;;  %v11531_v34 = vld [vmem:[#allocation16 + $0xa0] sm:$0xff] }
 0x64d   :  { %v11124_v16 = vpop.f32.mrf.mxu0  ;;  %v16959_v22 = vpop.f32.mrf.mxu1  ;;  %12728 = vmatprep.subr.mxu1 %v11531_v34 }
 0x64e   :  { %v16962_v38 = vadd.f32 %v11124_v16, %v16855_v28  ;;  %12729 = vmatpush3.msra.mxu1 %v11515_v43 }
 0x64f   :  { %v11128_v10 = vpop.f32.mrf.mxu0  ;;  %v16967_v41 = vpop.f32.mrf.mxu1 }
 0x650   :  { %v16965_v56 = vadd.f32 %v11128_v10, %v16858_v24  ;;  %v11530_v24 = vld [vmem:[#allocation16 + $0x98] sm:$0xff] }
 0x651   :  { %v11130_v1 = vpop.f32.mrf.mxu0  ;;  %v16972_v28 = vpop.f32.mrf.mxu1  ;;  %12730 = vmatprep.subr.mxu1 %v11530_v24 }
 0x652   :  { %v16970_v26 = vadd.f32 %v11130_v1, %v16861_v6  ;;  %12731 = vmatpush3.msra.mxu1 %v11514_v12  ;;  %v11529_v6 = vld [vmem:[#allocation16 + $0x90] sm:$0xff] }
 0x653   :  { %v11132_v55 = vpop.f32.mrf.mxu0  ;;  %12732 = vmatprep.subr.mxu1 %v11529_v6  ;;  %v16980_v31 = vpop.f32.mrf.mxu1 }
 0x654   :  { %v16975_v7 = vadd.f32 %v11132_v55, %v16864_v45  ;;  %12733 = vmatpush3.msra.mxu1 %v11513_v57 }
 0x655   :  { %v11134_v2 = vpop.f32.mrf.mxu0  ;;  %12734 = vmatprep.subr.mxu1 %v11528_v19  ;;  %v16988_v39 = vpop.f32.mrf.mxu1 }
 0x656   :  { %v16978_v36 = vadd.f32 %v11134_v2, %v16867_v59  ;;  %12735 = vmatpush3.msra.mxu1 %v11512_v11 }
 0x657   :  { %v11138_v42 = vpop.f32.mrf.mxu0  ;;  %12736 = vmatprep.subr.mxu1 %v11527_v52  ;;  %v16996_v1 = vpop.f32.mrf.mxu1 }
 0x658   :  { %v16983_v45 = vadd.f32 %v11138_v42, %v16870_v48  ;;  %12737 = vmatpush3.msra.mxu1 %v11511_v30 }
 0x659   :  { %v11140_v4 = vpop.f32.mrf.mxu0  ;;  %v17004_v43 = vpop.f32.mrf.mxu1 }
 0x65a   :  { %v16986_v59 = vadd.f32 %v11140_v4, %v16873_v32 }
 0x65b   :  { %v11142_v61 = vpop.f32.mrf.mxu0  ;;  %v17012_v12 = vpop.f32.mrf.mxu1 }
 0x65c   :  { %v16991_v16 = vadd.f32 %v11142_v61, %v16876_v37 }
 0x65d   :  { %v11144_v10 = vpop.f32.mrf.mxu0  ;;  %v17020_v19 = vpop.f32.mrf.mxu1 }
 0x65e   :  { %v16994_v48 = vadd.f32 %v11144_v10, %v16879_v13 }
 0x65f   :  { %v11148_v23 = vpop.f32.mrf.mxu0  ;;  %v17028_v52 = vpop.f32.mrf.mxu1 }
 0x660   :  { %v16999_v27 = vadd.f32 %v11148_v23, %v16882_v25 }
 0x661   :  { %v11150_v32 = vpop.f32.mrf.mxu0  ;;  %v17036_v61 = vpop.f32.mrf.mxu1 }
 0x662   :  { %v17002_v34 = vadd.f32 %v11150_v32, %v16885_v21 }
 0x663   :  { %v11152_v55 = vpop.f32.mrf.mxu0  ;;  %v17044_v32 = vpop.f32.mrf.mxu1 }
 0x664   :  { %v17007_v37 = vadd.f32 %v11152_v55, %v16888_v51 }
 0x665   :  { %v11154_v24 = vpop.f32.mrf.mxu0 }
 0x666   :  { %v17010_v13 = vadd.f32 %v11154_v24, %v16891_v5 }
 0x667   :  { %v11158_v2 = vpop.f32.mrf.mxu0 }
 0x668   :  { %v17015_v25 = vadd.f32 %v11158_v2, %v16894_v49  ;;  %v17052_v2 = vpop.f32.mrf.mxu1 }
 0x669   :  { %v11160_v6 = vpop.f32.mrf.mxu0 }
 0x66a   :  { %v17018_v21 = vadd.f32 %v11160_v6, %v16897_v14 }
 0x66b   :  { %v11162_v57 = vpop.f32.mrf.mxu0 }
 0x66c   :  { %v17023_v51 = vadd.f32 %v11162_v57, %v16900_v63 }
 0x66d   :  { %v11164_v42 = vpop.f32.mrf.mxu0 }
 0x66e   :  { %v17026_v5 = vadd.f32 %v11164_v42, %v16903_v50  ;;  %v17060_v42 = vpop.f32.mrf.mxu1 }
 0x66f   :  { %v11168_v11 = vpop.f32.mrf.mxu0 }
 0x670   :  { %v17031_v49 = vadd.f32 %v11168_v11, %v16906_v58 }
 0x671   :  { %v11170_v4 = vpop.f32.mrf.mxu0 }
 0x672   :  { %v17034_v14 = vadd.f32 %v11170_v4, %v16909_v54  ;;  %v17069_v4 = vpop.f32.mrf.mxu1 }
 0x673   :  { %v11172_v30 = vpop.f32.mrf.mxu0 }
 0x674   :  { %v17039_v63 = vadd.f32 %v11172_v30, %v16912_v33 }
 0x675   :  { %v11174_v10 = vpop.f32.mrf.mxu0 }
 0x676   :  { %v17042_v50 = vadd.f32 %v11174_v10, %v16915_v40  ;;  %v11232_v10 = vadd.f32 %v16949_v17, %v16947_v29  ;;  %v11242_v29 = vadd.f32 %v16972_v28, %v16965_v56 }
 0x677   :  { %v11178_v23 = vpop.f32.mrf.mxu0 }
 0x678   :  { %v17047_v58 = vadd.f32 %v11178_v23, %v16918_v47 }
 0x679   :  { %v11180_v55 = vpop.f32.mrf.mxu0 }
 0x67a   :  { %v17050_v54 = vadd.f32 %v11180_v55, %v16921_v53  ;;  %v11234_v55 = vadd.f32 %v16954_v9, %v16952_v60  ;;  %v11244_v60 = vadd.f32 %v16980_v31, %v16970_v26 }
 0x67b   :  { %v11182_v24 = vpop.f32.mrf.mxu0 }
 0x67c   :  { %v17055_v33 = vadd.f32 %v11182_v24, %v16924_v8 }
 0x67d   :  { %v11184_v6 = vpop.f32.mrf.mxu0 }
 0x67e   :  { %v17058_v40 = vadd.f32 %v11184_v6, %v16927_v62  ;;  %v17075_v62 = vpop.f32.mrf.mxu1 }
 0x67f   :  { %v11188_v57 = vpop.f32.mrf.mxu0 }
 0x680   :  { %17674 = vst [vmem:[#allocation110_spill] sm:$0xff] %v17058_v40  ;;  %v17063_v47 = vadd.f32 %v11188_v57, %v16932_v44  ;;  %v11236_v44 = vadd.f32 %v16959_v22, %v16957_v3  ;;  %v11238_v57 = vadd.f32 %v16967_v41, %v16962_v38 }
 0x681   :  { %v17065_v11 = vpop.f32.mrf.mxu0 }
 0x682   :  { %17675 = vst [vmem:[#allocation36_spill] sm:$0xff] %v17063_v47 }
 0x683   :  { %v17067_v53 = vpop.f32.mrf.mxu0 }
 0x684   :  { %17676 = vst [vmem:[#allocation42_spill] sm:$0xff] %v17067_v53  ;;  %v17083_v53 = vpop.f32.mrf.mxu1 }
 0x685   :  { %v17071_v30 = vpop.f32.mrf.mxu0 }
 0x686   :  { %17677 = vst [vmem:[#allocation119_spill] sm:$0xff] %v17071_v30  ;;  %v17089_v3 = vpop.f32.mrf.mxu1 }
 0x687   :  { %v11344_v8 = vpop.f32.mrf.mxu0 }
 0x688   :  { %v11345_v24 = vadd.f32 %v11344_v8, %v11232_v10 }
 0x689   :  { %v11346_v23 = vpop.f32.mrf.mxu0 }
 0x68a   :  { %v11347_v30 = vadd.f32 %v11346_v23, %v11234_v55  ;;  %v11423_v17 = vmax.f32 %v11345_v24, 0.0  ;;  %v11246_v23 = vadd.f32 %v16988_v39, %v16975_v7  ;;  %v11254_v39 = vadd.f32 %v17012_v12, %v16986_v59 }
 0x68b   :  { %v11348_v6 = vpop.f32.mrf.mxu0  ;;  %v11262_v12 = vadd.f32 %v17036_v61, %v16999_v27  ;;  %v11268_v27 = vadd.f32 %v17060_v42, %v17010_v13  ;;  %v11274_v13 = vadd.f32 %v17075_v62, %v17018_v21  ;;  %v11276_v42 = vadd.f32 %v17083_v53, %v17023_v51 }
 0x68c   :  { %v11349_v47 = vadd.f32 %v11348_v6, %v11236_v44  ;;  %v11424_v22 = vmax.f32 %v11347_v30, 0.0 }
 0x68d   :  { %v11350_v18 = vpop.f32.mrf.mxu0 }
 0x68e   :  { %v11425_v35 = vmax.f32 %v11349_v47, 0.0  ;;  %v11351_v40 = vadd.f32 %v11350_v18, %v11238_v57  ;;  %v11248_v18 = vadd.f32 %v16996_v1, %v16978_v36  ;;  %v17095_v47 = vpop.f32.mrf.mxu1 }
 0x68f   :  { %v11354_v9 = vpop.f32.mrf.mxu0  ;;  %v11282_v21 = vadd.f32 %v17095_v47, %v17031_v49 }
 0x690   :  { %v11455_v8 = vadd.f32 %v11425_v35, %v11423_v17  ;;  %v11426_v38 = vmax.f32 %v11351_v40, 0.0  ;;  %v11355_v41 = vadd.f32 %v11354_v9, %v11242_v29  ;;  %v11252_v35 = vadd.f32 %v17004_v43, %v16983_v45  ;;  %v11283_v29 = vpop.f32.mrf.mxu1 }
 0x691   :  { %v11356_v10 = vpop.f32.mrf.mxu0  ;;  %v11256_v9 = vadd.f32 %v17020_v19, %v16991_v16  ;;  %v11258_v45 = vadd.f32 %v17028_v52, %v16994_v48  ;;  %v11264_v16 = vadd.f32 %v17044_v32, %v17002_v34  ;;  %v11266_v52 = vadd.f32 %v17052_v2, %v17007_v37 }
 0x692   :  { %v11468_v55 = vadd.f32 %v11426_v38, %v11424_v22  ;;  %v11427_v44 = vmax.f32 %v11355_v41, 0.0  ;;  %v11357_v56 = vadd.f32 %v11356_v10, %v11244_v60  ;;  %v11285_v43 = vpop.f32.mrf.mxu1  ;;  %v11284_v51 = vadd.f32 %v11283_v29, %v17034_v14 }
 0x693   :  { %v11358_v28 = vpop.f32.mrf.mxu0 }
 0x694   :  { %v11456_v26 = vadd.f32 %v11455_v8, %v11427_v44  ;;  %v11428_v31 = vmax.f32 %v11357_v56, 0.0  ;;  %v11359_v24 = vadd.f32 %v11358_v28, %v11246_v23  ;;  %v11287_v19 = vpop.f32.mrf.mxu1 }
 0x695   :  { %v11360_v30 = vpop.f32.mrf.mxu0 }
 0x696   :  { %v11469_v40 = vadd.f32 %v11468_v55, %v11428_v31  ;;  %v11429_v6 = vmax.f32 %v11359_v24, 0.0  ;;  %v11361_v57 = vadd.f32 %v11360_v30, %v11248_v18  ;;  %v11291_v61 = vpop.f32.mrf.mxu1 }
 0x697   :  { %v11364_v7 = vpop.f32.mrf.mxu0  ;;  %v11292_v14 = vadd.f32 %v11291_v61, %v17047_v58  ;;  %v11080_v58 = vadd.f32 %v16939_v20, %v16937_v0 }
 0x698   :  { %v11457_v17 = vadd.f32 %v11456_v26, %v11429_v6  ;;  %v11430_v60 = vmax.f32 %v11361_v57, 0.0  ;;  %v11365_v36 = vadd.f32 %v11364_v7, %v11252_v35  ;;  %v11293_v37 = vpop.f32.mrf.mxu1 }
 0x699   :  { %v11366_v1 = vpop.f32.mrf.mxu0 }
 0x69a   :  { %v11470_v22 = vadd.f32 %v11469_v40, %v11430_v60  ;;  %v11431_v8 = vmax.f32 %v11365_v36, 0.0  ;;  %v11367_v38 = vadd.f32 %v11366_v1, %v11254_v39  ;;  %v11272_v1 = vadd.f32 %v17069_v4, %v17015_v25 }
 0x69b   :  { %v11368_v41 = vpop.f32.mrf.mxu0 }
 0x69c   :  { %v11458_v10 = vadd.f32 %v11457_v17, %v11431_v8  ;;  %v11432_v23 = vmax.f32 %v11367_v38, 0.0  ;;  %v11369_v55 = vadd.f32 %v11368_v41, %v11256_v9 }
 0x69d   :  { %v11370_v59 = vpop.f32.mrf.mxu0 }
 0x69e   :  { %v11471_v44 = vadd.f32 %v11470_v22, %v11432_v23  ;;  %v11433_v56 = vmax.f32 %v11369_v55, 0.0  ;;  %v11371_v28 = vadd.f32 %v11370_v59, %v11258_v45  ;;  %v11278_v45 = vadd.f32 %v17089_v3, %v17026_v5 }
 0x69f   :  { %v11374_v18 = vpop.f32.mrf.mxu0  ;;  %v11286_v5 = vadd.f32 %v11285_v43, %v17039_v63 }
 0x6a0   :  { %v11459_v26 = vadd.f32 %v11458_v10, %v11433_v56  ;;  %v11434_v31 = vmax.f32 %v11371_v28, 0.0  ;;  %v11375_v24 = vadd.f32 %v11374_v18, %v11262_v12  ;;  %v11295_v10 = vpop.f32.mrf.mxu1 }
 0x6a1   :  { %v11376_v48 = vpop.f32.mrf.mxu0 }
 0x6a2   :  { %v11472_v30 = vadd.f32 %v11471_v44, %v11434_v31  ;;  %v11435_v35 = vmax.f32 %v11375_v24, 0.0  ;;  %v11377_v40 = vadd.f32 %v11376_v48, %v11264_v16  ;;  %v11297_v53 = vpop.f32.mrf.mxu1  ;;  %v11288_v48 = vadd.f32 %v11287_v19, %v17042_v50 }
 0x6a3   :  { %v11378_v6 = vpop.f32.mrf.mxu0  ;;  %v11078_v50 = vadd.f32 %v16934_v15, %v16930_v46  ;;  %v17680_v46 = vld [vmem:[#allocation115_spill] sm:$0xff] }
 0x6a4   :  { %v11460_v57 = vadd.f32 %v11459_v26, %v11435_v35  ;;  %v11436_v7 = vmax.f32 %v11377_v40, 0.0  ;;  %v11379_v39 = vadd.f32 %v11378_v6, %v11266_v52  ;;  %v11301_v52 = vpop.f32.mrf.mxu1 }
 0x6a5   :  { %v11380_v34 = vpop.f32.mrf.mxu0  ;;  %v11191_v61 = vadd.f32 %v17065_v11, %v11078_v50 }
 0x6a6   :  { %v11473_v32 = vadd.f32 %v11472_v30, %v11436_v7  ;;  %v11437_v17 = vmax.f32 %v11379_v39, 0.0  ;;  %v11381_v60 = vadd.f32 %v11380_v34, %v11268_v27  ;;  %v11303_v63 = vpop.f32.mrf.mxu1  ;;  %v11296_v34 = vadd.f32 %v11295_v10, %v17055_v33 }
 0x6a7   :  { %v11384_v36 = vpop.f32.mrf.mxu0 }
 0x6a8   :  { %v17115_v2 = vadd.f32 %v11460_v57, %v11437_v17  ;;  %v11438_v9 = vmax.f32 %v11381_v60, 0.0  ;;  %v11385_v38 = vadd.f32 %v11384_v36, %v11272_v1  ;;  %v11294_v57 = vadd.f32 %v11293_v37, %v17050_v54  ;;  %v17678_v54 = vld [vmem:[#allocation110_spill] sm:$0xff]  ;;  %v11305_v37 = vpop.f32.mrf.mxu1 }
 0x6a9   :  { %v11386_v22 = vpop.f32.mrf.mxu0  ;;  %v11298_v1 = vadd.f32 %v11297_v53, %v17678_v54 }
 0x6aa   :  { %v17121_v8 = vadd.f32 %v11473_v32, %v11438_v9  ;;  %v11387_v25 = vadd.f32 %v11386_v22, %v11274_v13  ;;  %v11439_v55 = vmax.f32 %v11385_v38, 0.0  ;;  %v17681_v38 = vld [vmem:[#allocation36_spill] sm:$0xff] }
 0x6ab   :  { %v11388_v41 = vpop.f32.mrf.mxu0  ;;  %v11302_v33 = vadd.f32 %v11301_v52, %v17681_v38  ;;  %v12671_v38 = vld [vmem:[#allocation17] ss:$0 sm:$0xff] }
 0x6ac   :  { %v11389_v4 = vadd.f32 %v11388_v41, %v11276_v42  ;;  %v11440_v44 = vmax.f32 %v11387_v25, 0.0  ;;  %v17679_v42 = vld [vmem:[#allocation99_spill] sm:$0xff]  ;;  %v17682_v41 = vld [vmem:[#allocation42_spill] sm:$0xff]  ;;  %v11462_v25 = vrot.slane %v17115_v2, 4 }
 0x6ad   :  { %v11390_v23 = vpop.f32.mrf.mxu0  ;;  %v11082_v15 = vadd.f32 %v17680_v46, %v17679_v42 }
 0x6ae   :  { %v11441_v59 = vmax.f32 %v11389_v4, 0.0  ;;  %v11391_v12 = vadd.f32 %v11390_v23, %v11278_v45  ;;  %v11193_v45 = vadd.f32 %v17682_v41, %v11080_v58  ;;  %v11304_v4 = vadd.f32 %v11303_v63, %v11191_v61  ;;  %v17683_v23 = vld [vmem:[#allocation119_spill] sm:$0xff] }
 0x6af   :  { %v11394_v62 = vpop.f32.mrf.mxu0 }
 0x6b0   :  { %v11481_v56 = vadd.f32 %v11441_v59, %v11439_v55  ;;  %v11442_v28 = vmax.f32 %v11391_v12, 0.0  ;;  %v11395_v18 = vadd.f32 %v11394_v62, %v11282_v21  ;;  %v11195_v55 = vadd.f32 %v17683_v23, %v11082_v15  ;;  %v11307_v12 = vpop.f32.mrf.mxu1 }
 0x6b1   :  { %v11396_v16 = vpop.f32.mrf.mxu0  ;;  %v11475_v21 = vrot.slane %v17121_v8, 4 }
 0x6b2   :  { %v11494_v3 = vadd.f32 %v11442_v28, %v11440_v44  ;;  %v11397_v26 = vadd.f32 %v11396_v16, %v11284_v51  ;;  %v11443_v31 = vmax.f32 %v11395_v18, 0.0  ;;  %v11306_v44 = vadd.f32 %v11305_v37, %v11193_v45 }
 0x6b3   :  { %v11398_v24 = vpop.f32.mrf.mxu0  ;;  %v11463_v28 = vadd.f32 %v11462_v25, %v17115_v2 }
 0x6b4   :  { %v11444_v30 = vmax.f32 %v11397_v26, 0.0  ;;  %v11399_v49 = vadd.f32 %v11398_v24, %v11286_v5  ;;  %v11482_v47 = vadd.f32 %v11481_v56, %v11443_v31  ;;  %v11476_v31 = vadd.f32 %v11475_v21, %v17121_v8 }
 0x6b5   :  { %v11400_v35 = vpop.f32.mrf.mxu0 }
 0x6b6   :  { %v11495_v29 = vadd.f32 %v11494_v3, %v11444_v30  ;;  %v11445_v40 = vmax.f32 %v11399_v49, 0.0  ;;  %v11401_v6 = vadd.f32 %v11400_v35, %v11288_v48  ;;  %v11308_v3 = vadd.f32 %v11307_v12, %v11195_v55 }
 0x6b7   :  { %v11404_v27 = vpop.f32.mrf.mxu0  ;;  %v11464_v49 = vrot.slane %v11463_v28, 2 }
 0x6b8   :  { %v11483_v43 = vadd.f32 %v11482_v47, %v11445_v40  ;;  %v11446_v7 = vmax.f32 %v11401_v6, 0.0  ;;  %v11405_v39 = vadd.f32 %v11404_v27, %v11292_v14 }
 0x6b9   :  { %v11406_v19 = vpop.f32.mrf.mxu0  ;;  %v11465_v27 = vadd.f32 %v11464_v49, %v11463_v28 }
 0x6ba   :  { %v11496_v32 = vadd.f32 %v11495_v29, %v11446_v7  ;;  %v11447_v17 = vmax.f32 %v11405_v39, 0.0  ;;  %v11407_v60 = vadd.f32 %v11406_v19, %v11294_v57  ;;  %v11477_v29 = vrot.slane %v11476_v31, 2 }
 0x6bb   :  { %v11408_v36 = vpop.f32.mrf.mxu0  ;;  %v11466_v39 = vrot.slane %v11465_v27, 1 }
 0x6bc   :  { %v11484_v9 = vadd.f32 %v11483_v43, %v11447_v17  ;;  %v11448_v22 = vmax.f32 %v11407_v60, 0.0  ;;  %v11409_v13 = vadd.f32 %v11408_v36, %v11296_v34  ;;  %v11478_v63 = vadd.f32 %v11477_v29, %v11476_v31 }
 0x6bd   :  { %v11410_v10 = vpop.f32.mrf.mxu0  ;;  %v11467_v17 = vadd.f32 %v11466_v39, %v11465_v27 }
 0x6be   :  { %v11497_v0 = vadd.f32 %v11496_v32, %v11448_v22  ;;  %v11449_v20 = vmax.f32 %v11409_v13, 0.0  ;;  %v11411_v11 = vadd.f32 %v11410_v10, %v11298_v1  ;;  %v11479_v32 = vrot.slane %v11478_v63, 1 }
 0x6bf   :  { %v11414_v59 = vpop.f32.mrf.mxu0  ;;  %v11507_v1 = vmul.f32 0.015625, %v11467_v17 }
 0x6c0   :  { %v11485_v62 = vadd.f32 %v11484_v9, %v11449_v20  ;;  %v11450_v51 = vmax.f32 %v11411_v11, 0.0  ;;  %v11415_v53 = vadd.f32 %v11414_v59, %v11302_v33  ;;  %v11480_v36 = vadd.f32 %v11479_v32, %v11478_v63 }
 0x6c1   :  { %v11416_v56 = vpop.f32.mrf.mxu0 }
 0x6c2   :  { %v11498_v18 = vadd.f32 %v11497_v0, %v11450_v51  ;;  %v11451_v16 = vmax.f32 %v11415_v53, 0.0  ;;  %v11417_v5 = vadd.f32 %v11416_v56, %v11304_v4  ;;  %v11508_v22 = vmul.f32 0.015625, %v11480_v36 }
 0x6c3   :  { %v11418_v26 = vpop.f32.mrf.mxu0 }
 0x6c4   :  { %v11486_v24 = vadd.f32 %v11485_v62, %v11451_v16  ;;  %v11452_v48 = vmax.f32 %v11417_v5, 0.0  ;;  %v11419_v52 = vadd.f32 %v11418_v26, %v11306_v44 }
 0x6c5   :  { %v11420_v30 = vpop.f32.mrf.mxu0 }
 0x6c6   :  { %v11499_v47 = vadd.f32 %v11498_v18, %v11452_v48  ;;  %v11453_v35 = vmax.f32 %v11419_v52, 0.0  ;;  %v11421_v14 = vadd.f32 %v11420_v30, %v11308_v3 }
 0x6c8   :  { %v11487_v40 = vadd.f32 %v11486_v24, %v11453_v35  ;;  %v11454_v6 = vmax.f32 %v11421_v14, 0.0 }
 0x6ca   :  { %v11488_v2 = vrot.slane %v11487_v40, 4  ;;  %v11500_v57 = vadd.f32 %v11499_v47, %v11454_v6 }
 0x6cc   :  { %v11489_v43 = vadd.f32 %v11488_v2, %v11487_v40  ;;  %v11501_v7 = vrot.slane %v11500_v57, 4 }
 0x6ce   :  { %v11490_v50 = vrot.slane %v11489_v43, 2  ;;  %v11502_v8 = vadd.f32 %v11501_v7, %v11500_v57 }
 0x6d0   :  { %v11491_v19 = vadd.f32 %v11490_v50, %v11489_v43  ;;  %v11503_v34 = vrot.slane %v11502_v8, 2 }
 0x6d2   :  { %v11492_v60 = vrot.slane %v11491_v19, 1  ;;  %v11504_v58 = vadd.f32 %v11503_v34, %v11502_v8 }
 0x6d4   :  { %v11493_v61 = vadd.f32 %v11492_v60, %v11491_v19  ;;  %v11505_v54 = vrot.slane %v11504_v58, 1 }
 0x6d6   :  { %v11509_v37 = vmul.f32 0.015625, %v11493_v61  ;;  %v11506_v9 = vadd.f32 %v11505_v54, %v11504_v58 }
 0x6d8   :  { %v11510_v13 = vmul.f32 0.015625, %v11506_v9  ;;  %v11555_v42 = vsel %vm11554_vm5, %v11509_v37, %v11507_v1 }
 0x6da   :  { %v11556_v46 = vsel %vm11554_vm5, %v11510_v13, %v11508_v22 }
 0x6db   :  { %11623 = vmatprep.mubr.f32.mxu1 %v11556_v46 }
 0x6dc   :  { %11624 = vmatmul.mubr.f32.vlgmr.msra.gmra.mxu1 %v11555_v42 }
 0x79c   :  { %v12738_v15 = vpop.f32.mrf.mxu1 }
 0x79e   :  { %v12739_v33 = vpop.f32.mrf.mxu1 }
 0x79f   :  { %v12740_v41 = vadd.f32 %v12739_v33, %v12738_v15 }
 0x7a1   :  { %v11626_v45 = vadd.f32 %v12740_v41, %v12671_v38 }
 0x7a3   :  { %v11629_v10 = vmul.f32 0.01, %v11626_v45 }
 0x7a5   :  { %11630 = vst [vmem:[#allocation19] sm:$0x3] %v11629_v10 }
 0x7a6   :  { %13799 = shalt.err (!%p13796_p2)
}
 0x7a7   :  { %11640 = dma.vmem_to_hbm [thread:$0]  %s11638_s15, 32, %s17160_s9, [#allocation10]  }
 0x7a8   :  { %13820 = dma.done.wait [#allocation10], 32  }
 0x7a9   :  { %13821 = vsyncadd [#allocation10], 4294967264 }
 0x7aa   :  { %11644 = vsyncpa [#allocation9], 1 }
 0x7ab   :  { %11645 = vsyncpa [#allocation12], 1 }
 0x7ac   :  { %11646 = vsyncpa [#allocation15], 1 }
 0x7ad   :  { %11647 = vsyncpa [#allocation18], 1 }
 0x7ae   :  { %11648 = vsyncpa [#allocation10], 1 }
 0x7af   :  { %11649 = vsyncmov [#allocation6] }
 0x7b2   :  { %s11650_s6 = vpop.sfrf %11649 }
 0x7b3   :  { %p12672_p3 = scmp.ne.s32.totalorder %s11650_s6, 0 }
 0x7b5   :  { %11654 = shalt.err (%p12672_p3)  }
 0x7b6   :  { %11655 = vsyncmov [#allocation7] }
 0x7b9   :  { %s11656_s17 = vpop.sfrf %11655 }
 0x7ba   :  { %p12673_p4 = scmp.ne.s32.totalorder %s11656_s17, 0 }
 0x7bc   :  { %11660 = shalt.err (%p12673_p4)  }

</bundles_post_ra>
